<compile_context>
chip_gen: v7x
topology: tpu7x:2x2x1
jax: 0.10.0
libtpu: 0.0.40
codegen_flags: <defaults>
</compile_context>

<pallas_src>
import jax
import jax.numpy as jnp
from jax.experimental import pallas as pl
from jax.experimental.pallas import tpu as pltpu

EMBED_DIM = 32      # encoder.embed_dim (small synthetic value)
IMG_SIZE = 256      # hard-wired by the module (32x32 / 16x16 / 8x8 pyramid)
OUT_DIM = 10        # decoder stand-in output width
DEC_PAD = 128       # decoder head padded to a full 128-lane output

T32 = 1024          # 32*32 tokens
T16 = 256           # 16*16 tokens
T8 = 64             # 8*8  tokens
K16 = 3 * 16 * 16   # 768  (patch-16 im2col columns)
K8 = 3 * 8 * 8      # 192  (patch-8  im2col columns)


# ---------------------------------------------------------------------------
# Fused kernel: one grid step per batch element (grid=(B,), "parallel").
# ---------------------------------------------------------------------------
def _handnet_kernel(cols16_ref, cols8_ref, rmat_ref, pmat_ref,
                    w_enc_ref, b_enc_ref, w_pe_ref, b_pe_ref,
                    w_c1_ref, b_c1_ref, w_qkv_ref, b_qkv_ref,
                    w_o_ref, b_o_ref, w_dec_ref, b_dec_ref,
                    o32_ref, o16_ref, o8_ref, g_ref, res_ref):
    E = w_enc_ref.shape[1]
    bf16 = jnp.bfloat16

    cols16 = cols16_ref[0]                                   # (T16, K16) bf16
    cols8 = cols8_ref[0]                                     # (T32, K8)  bf16

    # encoder stand-in (TODO(synk): real ViTPose backbone): feature16x16 tokens
    tok16 = (jnp.dot(cols16, w_enc_ref[...],
                     preferred_element_type=jnp.float32) + b_enc_ref[...])
    # PatchEmbed(img_size=256, patch_size=8): feature32x32 tokens
    tok32 = (jnp.dot(cols8, w_pe_ref[...],
                     preferred_element_type=jnp.float32) + b_pe_ref[...])

    tok16_b = tok16.astype(bf16)

    # conv1(feature32x32 + 2x nearest-upsample(feature16x16)); by linearity
    # conv1(x + up(f)) = x@W + R@(f@W) + b, with R the constant 0/1 replication
    # matrix passed in as a bf16 input (no per-step iota/VPU rebuild).
    y16 = jnp.dot(tok16_b, w_c1_ref[...], preferred_element_type=jnp.float32)
    y32 = jnp.dot(tok32.astype(bf16), w_c1_ref[...],
                  preferred_element_type=jnp.float32)
    up = jnp.dot(rmat_ref[...], y16.astype(bf16),
                 preferred_element_type=jnp.float32)          # (T32, E)
    f32map = y32 + up + b_c1_ref[...]                         # (T32, E)

    # Myattention stand-in (TODO(synk)): 8x8 pooled queries attend over the
    # 16x16 tokens; fused q|k|v projection, 1/sqrt(E) pre-folded into q.
    qkv = (jnp.dot(tok16_b, w_qkv_ref[...],
                   preferred_element_type=jnp.float32) + b_qkv_ref[...])
    q = jnp.dot(pmat_ref[...], qkv[:, :E].astype(bf16),
                preferred_element_type=jnp.float32)           # (T8, E)
    k = qkv[:, E:2 * E]
    v = qkv[:, 2 * E:]
    s = jax.lax.dot_general(q.astype(bf16), k.astype(bf16),
                            (((1,), (1,)), ((), ())),
                            preferred_element_type=jnp.float32)   # (T8, T16)
    s = s - jnp.max(s, axis=-1, keepdims=True)
    p = jnp.exp(s)
    # approx reciprocal on the EUP slot; ~1e-3 rel err vs an exact divide.
    p = p * pl.reciprocal(jnp.sum(p, axis=-1, keepdims=True), approx=True)
    att = jnp.dot(p.astype(bf16), v.astype(bf16),
                  preferred_element_type=jnp.float32)         # (T8, E)
    f8map = (jnp.dot(att.astype(bf16), w_o_ref[...],
                     preferred_element_type=jnp.float32) + b_o_ref[...])

    # Channel-major (E, T) stores: last dim 1024/256/64 -> unmasked lane-dense
    # vst, and the wrapper's NCHW conversion becomes a free reshape.
    o32_ref[0] = f32map.T
    o16_ref[0] = tok16.T
    o8_ref[0] = f8map.T

    # adaptive_avg_pool2d(feature16x16, 1) + decoder head (128-lane padded).
    g = jnp.mean(tok16, axis=0, keepdims=True)                # (1, E)
    g_ref[0] = g
    res_ref[0] = (jnp.dot(g.astype(bf16), w_dec_ref[...],
                          preferred_element_type=jnp.float32) + b_dec_ref[...])


def handnet_fused(cols16, cols8, kp):
    B = cols16.shape[0]
    E = EMBED_DIM

    def bcast(shape):
        return pl.BlockSpec(shape, lambda b: tuple(0 for _ in shape))

    # Advisory cost estimate so XLA schedules surrounding glue around the call.
    flops = B * 2 * (T16 * K16 * E + T32 * K8 * E + (T16 + T32) * E * E
                     + T32 * T16 * E + T16 * E * 3 * E + 3 * T8 * T16 * E
                     + T8 * E * E + E * DEC_PAD)
    transcendentals = B * T8 * T16
    weight_bytes = sum(int(v.size) * v.dtype.itemsize for v in kp.values())
    bytes_accessed = (B * ((T16 * K16 + T32 * K8) * 2
                           + (T32 + T16 + T8) * E * 4 + (E + DEC_PAD) * 4)
                      + weight_bytes)

    return pl.pallas_call(
        _handnet_kernel,
        out_shape=(jax.ShapeDtypeStruct((B, E, T32), jnp.float32),
                   jax.ShapeDtypeStruct((B, E, T16), jnp.float32),
                   jax.ShapeDtypeStruct((B, E, T8), jnp.float32),
                   jax.ShapeDtypeStruct((B, 1, E), jnp.float32),
                   jax.ShapeDtypeStruct((B, 1, DEC_PAD), jnp.float32)),
        grid=(B,),
        in_specs=[
            pl.BlockSpec((1, T16, K16), lambda b: (b, 0, 0)),   # cols16
            pl.BlockSpec((1, T32, K8), lambda b: (b, 0, 0)),    # cols8
            bcast((T32, T16)),                    # R (upsample replication)
            bcast((T8, T16)),                     # P (2x2 avg-pool)
            bcast((K16, E)), bcast((1, E)),       # encoder stand-in
            bcast((K8, E)), bcast((1, E)),        # patch_embed
            bcast((E, E)), bcast((1, E)),         # conv1 (1x1)
            bcast((E, 3 * E)), bcast((1, 3 * E)),  # fused qkv
            bcast((E, E)), bcast((1, E)),         # attention out proj
            bcast((E, DEC_PAD)), bcast((1, DEC_PAD)),  # decoder head
        ],
        out_specs=(
            pl.BlockSpec((1, E, T32), lambda b: (b, 0, 0)),
            pl.BlockSpec((1, E, T16), lambda b: (b, 0, 0)),
            pl.BlockSpec((1, E, T8), lambda b: (b, 0, 0)),
            pl.BlockSpec((1, 1, E), lambda b: (b, 0, 0)),
            pl.BlockSpec((1, 1, DEC_PAD), lambda b: (b, 0, 0)),
        ),
        compiler_params=pltpu.CompilerParams(
            dimension_semantics=("parallel",),
            vmem_limit_bytes=16 * 1024 * 1024),
        cost_estimate=pl.CostEstimate(flops=flops,
                                      transcendentals=transcendentals,
                                      bytes_accessed=bytes_accessed),
    )(cols16, cols8, kp["rmat"], kp["pmat"],
      kp["w_enc"], kp["b_enc"], kp["w_pe"], kp["b_pe"],
      kp["w_c1"], kp["b_c1"], kp["w_qkv"], kp["b_qkv"],
      kp["w_o"], kp["b_o"], kp["w_dec"], kp["b_dec"])


# ---------------------------------------------------------------------------
# Parameters: PyTorch-layout stand-ins + one-time kernel re-layout.
# ---------------------------------------------------------------------------
def init_params(key, embed_dim=EMBED_DIM, out_dim=OUT_DIM):
    """Stand-in parameters in PyTorch (Conv2d/Linear) layouts.
    TODO(synk): encoder (ViTPose), decoder, Myattention and cliff are not
    defined in the reference file; deterministic stand-ins with the correct
    interface shapes are used (cliff is never used in forward)."""
    ks = jax.random.split(key, 8)
    s = 0.02
    E = embed_dim
    return {
        "w_enc": s * jax.random.normal(ks[0], (3 * 16 * 16, E), jnp.float32),
        "b_enc": jnp.zeros((E,), jnp.float32),
        "w_pe": s * jax.random.normal(ks[1], (3 * 8 * 8, E), jnp.float32),
        "b_pe": jnp.zeros((E,), jnp.float32),
        "w_c1": s * jax.random.normal(ks[2], (E, E), jnp.float32),
        "b_c1": jnp.zeros((E,), jnp.float32),
        "wq": s * jax.random.normal(ks[3], (E, E), jnp.float32),
        "wk": s * jax.random.normal(ks[4], (E, E), jnp.float32),
        "wv": s * jax.random.normal(ks[5], (E, E), jnp.float32),
        "wo": s * jax.random.normal(ks[6], (E, E), jnp.float32),
        "bq": jnp.zeros((E,), jnp.float32),
        "bk": jnp.zeros((E,), jnp.float32),
        "bv": jnp.zeros((E,), jnp.float32),
        "bo": jnp.zeros((E,), jnp.float32),
        "w_dec": s * jax.random.normal(ks[7], (E, out_dim), jnp.float32),
        "b_dec": jnp.zeros((out_dim,), jnp.float32),
    }


def prepare_kernel_params(p, embed_dim=EMBED_DIM, out_dim=OUT_DIM):
    """One-time re-layout: permute conv-weight rows to the im2col column order,
    fuse q|k|v (folding 1/sqrt(E) into q), pad the decoder head to 128 lanes,
    cast matmul operands to bf16, and build the constant R / P matrices."""
    E = embed_dim
    bf16 = jnp.bfloat16

    # Encoder weight rows (c, kh16, kw16) -> (dr, dc, c, kh8, kw8), matching
    # cols16 = regrouped patch-8 columns built in the wrapper.
    w_enc = (p["w_enc"].reshape(3, 2, 8, 2, 8, E)
             .transpose(1, 3, 0, 2, 4, 5).reshape(3 * 16 * 16, E))

    scale = 1.0 / (float(E) ** 0.5)
    w_qkv = jnp.concatenate([p["wq"] * scale, p["wk"], p["wv"]], axis=1)
    b_qkv = jnp.concatenate([p["bq"] * scale, p["bk"], p["bv"]], axis=0)

    w_dec = jnp.pad(p["w_dec"], ((0, 0), (0, DEC_PAD - out_dim)))
    b_dec = jnp.pad(p["b_dec"], (0, DEC_PAD - out_dim))

    # R: 0/1 replication matrix, 2x nearest-upsample 16x16 -> 32x32 tokens.
    r32 = jnp.arange(T32) // 32
    c32 = jnp.arange(T32) % 32
    src = (r32 // 2) * 16 + (c32 // 2)
    rmat = (src[:, None] == jnp.arange(T16)[None, :]).astype(bf16)
    # P: 2x2 average-pool matrix 16x16 -> 8x8 tokens (rows sum to 1).
    r8 = jnp.arange(T8) // 8
    c8 = jnp.arange(T8) % 8
    r16 = jnp.arange(T16) // 16
    c16 = jnp.arange(T16) % 16
    pool = (((r16[None, :] // 2) == r8[:, None]) &
            ((c16[None, :] // 2) == c8[:, None]))
    pmat = (pool.astype(jnp.float32) * 0.25).astype(bf16)

    return {
        "w_enc": w_enc.astype(bf16), "b_enc": p["b_enc"].reshape(1, E),
        "w_pe": p["w_pe"].astype(bf16), "b_pe": p["b_pe"].reshape(1, E),
        "w_c1": p["w_c1"].astype(bf16), "b_c1": p["b_c1"].reshape(1, E),
        "w_qkv": w_qkv.astype(bf16), "b_qkv": b_qkv.reshape(1, 3 * E),
        "w_o": p["wo"].astype(bf16), "b_o": p["bo"].reshape(1, E),
        "w_dec": w_dec.astype(bf16), "b_dec": b_dec.reshape(1, DEC_PAD),
        "rmat": rmat, "pmat": pmat,
    }


# ---------------------------------------------------------------------------
# Forward pass.
# ---------------------------------------------------------------------------
@jax.jit
def hand_net_forward(kparams, img):
    """img: NCHW float32 [B, 3, 256, 256] (PyTorch input convention)."""
    B = img.shape[0]
    E = EMBED_DIM

    # Patch-8 im2col (glue: the single channel-moving transpose), cast to bf16
    # so the dominant HBM input traffic is halved on the MXU-native dtype.
    cols8 = (img.reshape(B, 3, 32, 8, 32, 8)
             .transpose(0, 2, 4, 1, 3, 5)
             .reshape(B, T32, K8).astype(jnp.bfloat16))
    # Patch-16 columns are a pure regrouping of the patch-8 columns (encoder
    # weight rows were permuted at init), so no second channel-moving transpose.
    cols16 = (cols8.reshape(B, 16, 2, 16, 2, K8)
              .transpose(0, 1, 3, 2, 4, 5)
              .reshape(B, T16, K16))

    o32, o16, o8, g, res = handnet_fused(cols16, cols8, kparams)

    result = res.reshape(B, DEC_PAD)[:, :OUT_DIM]
    global_feature = g.reshape(B, E)
    # Channel-major kernel outputs -> NCHW fmaps via free reshapes.
    f8 = o8.reshape(B, E, 8, 8)
    f16 = o16.reshape(B, E, 16, 16)
    f32 = o32.reshape(B, E, 32, 32)
    return result, (f8, f16, f32), global_feature


if __name__ == "__main__":
    key = jax.random.PRNGKey(0)
    k_param, k_img = jax.random.split(key)
    params = init_params(k_param)
    kparams = prepare_kernel_params(params)
    img = jax.random.normal(k_img, (2, 3, IMG_SIZE, IMG_SIZE), jnp.float32)

    result, (f8, f16, f32), gfeat = hand_net_forward(kparams, img)
    jax.block_until_ready((result, f8, f16, f32, gfeat))

    assert result.shape == (2, OUT_DIM)
    assert f8.shape == (2, EMBED_DIM, 8, 8)
    assert f16.shape == (2, EMBED_DIM, 16, 16)
    assert f32.shape == (2, EMBED_DIM, 32, 32)
    assert gfeat.shape == (2, EMBED_DIM)
    print("KERNEL_OK")
</pallas_src>

<mosaic_0001>
module attributes {stable_mosaic.version = 11 : i64} {
  func.func @_handnet_kernel(%arg0: i32, %arg1: memref<1x256x768xbf16, #tpu.memory_space<vmem>>, %arg2: memref<1x1024x192xbf16, #tpu.memory_space<vmem>>, %arg3: memref<1024x256xbf16, #tpu.memory_space<vmem>>, %arg4: memref<64x256xbf16, #tpu.memory_space<vmem>>, %arg5: memref<768x32xbf16, #tpu.memory_space<vmem>>, %arg6: memref<1x32xf32, #tpu.memory_space<vmem>>, %arg7: memref<192x32xbf16, #tpu.memory_space<vmem>>, %arg8: memref<1x32xf32, #tpu.memory_space<vmem>>, %arg9: memref<32x32xbf16, #tpu.memory_space<vmem>>, %arg10: memref<1x32xf32, #tpu.memory_space<vmem>>, %arg11: memref<32x96xbf16, #tpu.memory_space<vmem>>, %arg12: memref<1x96xf32, #tpu.memory_space<vmem>>, %arg13: memref<32x32xbf16, #tpu.memory_space<vmem>>, %arg14: memref<1x32xf32, #tpu.memory_space<vmem>>, %arg15: memref<32x128xbf16, #tpu.memory_space<vmem>>, %arg16: memref<1x128xf32, #tpu.memory_space<vmem>>, %arg17: memref<1x32x1024xf32, #tpu.memory_space<vmem>>, %arg18: memref<1x32x256xf32, #tpu.memory_space<vmem>>, %arg19: memref<1x32x64xf32, #tpu.memory_space<vmem>>, %arg20: memref<1x1x32xf32, #tpu.memory_space<vmem>>, %arg21: memref<1x1x128xf32, #tpu.memory_space<vmem>>) attributes {dimension_semantics = [#tpu.dimension_semantics<parallel>], iteration_bounds = array<i64: 2>, scalar_prefetch = 0 : i64, scratch_operands = 0 : i64, tpu.core_type = #tpu.core_type<tc>, window_params = [{transform_indices = @transform_0, window_bounds = array<i64: 1, 256, 768>}, {transform_indices = @transform_1, window_bounds = array<i64: 1, 1024, 192>}, {pipeline_mode = #tpu.pipeline_mode<synchronous>, transform_indices = @transform_2, window_bounds = array<i64: 1024, 256>}, {pipeline_mode = #tpu.pipeline_mode<synchronous>, transform_indices = @transform_3, window_bounds = array<i64: 64, 256>}, {pipeline_mode = #tpu.pipeline_mode<synchronous>, transform_indices = @transform_4, window_bounds = array<i64: 768, 32>}, {pipeline_mode = #tpu.pipeline_mode<synchronous>, transform_indices = @transform_5, window_bounds = array<i64: 1, 32>}, {pipeline_mode = #tpu.pipeline_mode<synchronous>, transform_indices = @transform_6, window_bounds = array<i64: 192, 32>}, {pipeline_mode = #tpu.pipeline_mode<synchronous>, transform_indices = @transform_7, window_bounds = array<i64: 1, 32>}, {pipeline_mode = #tpu.pipeline_mode<synchronous>, transform_indices = @transform_8, window_bounds = array<i64: 32, 32>}, {pipeline_mode = #tpu.pipeline_mode<synchronous>, transform_indices = @transform_9, window_bounds = array<i64: 1, 32>}, {pipeline_mode = #tpu.pipeline_mode<synchronous>, transform_indices = @transform_10, window_bounds = array<i64: 32, 96>}, {pipeline_mode = #tpu.pipeline_mode<synchronous>, transform_indices = @transform_11, window_bounds = array<i64: 1, 96>}, {pipeline_mode = #tpu.pipeline_mode<synchronous>, transform_indices = @transform_12, window_bounds = array<i64: 32, 32>}, {pipeline_mode = #tpu.pipeline_mode<synchronous>, transform_indices = @transform_13, window_bounds = array<i64: 1, 32>}, {pipeline_mode = #tpu.pipeline_mode<synchronous>, transform_indices = @transform_14, window_bounds = array<i64: 32, 128>}, {pipeline_mode = #tpu.pipeline_mode<synchronous>, transform_indices = @transform_15, window_bounds = array<i64: 1, 128>}, {transform_indices = @transform_16, window_bounds = array<i64: 1, 32, 1024>}, {transform_indices = @transform_17, window_bounds = array<i64: 1, 32, 256>}, {transform_indices = @transform_18, window_bounds = array<i64: 1, 32, 64>}, {transform_indices = @transform_19, window_bounds = array<i64: 1, 1, 32>}, {transform_indices = @transform_20, window_bounds = array<i64: 1, 1, 128>}]} {
    %c0 = arith.constant 0 : index
    %c0_0 = arith.constant 0 : index
    %c0_1 = arith.constant 0 : index
    %0 = vector.load %arg1[%c0, %c0_0, %c0_1] : memref<1x256x768xbf16, #tpu.memory_space<vmem>>, vector<1x256x768xbf16>
    %1 = vector.shape_cast %0 : vector<1x256x768xbf16> to vector<256x768xbf16>
    %c0_2 = arith.constant 0 : index
    %c0_3 = arith.constant 0 : index
    %c0_4 = arith.constant 0 : index
    %2 = vector.load %arg2[%c0_2, %c0_3, %c0_4] : memref<1x1024x192xbf16, #tpu.memory_space<vmem>>, vector<1x1024x192xbf16>
    %3 = vector.shape_cast %2 : vector<1x1024x192xbf16> to vector<1024x192xbf16>
    %c0_5 = arith.constant 0 : index
    %c0_6 = arith.constant 0 : index
    %4 = vector.load %arg5[%c0_5, %c0_6] : memref<768x32xbf16, #tpu.memory_space<vmem>>, vector<768x32xbf16>
    %cst = arith.constant dense<0.000000e+00> : vector<256x32xf32>
    %5 = tpu.matmul %1, %4, %cst {dimension_numbers = #tpu.dot_dimension_numbers<[1], [0], [0], [1], [0, 0, 1, 1], [], []>} : vector<256x768xbf16>, vector<768x32xbf16>, vector<256x32xf32> -> vector<256x32xf32>
    %c0_7 = arith.constant 0 : index
    %c0_8 = arith.constant 0 : index
    %6 = vector.load %arg6[%c0_7, %c0_8] : memref<1x32xf32, #tpu.memory_space<vmem>>, vector<1x32xf32>
    %7 = vector.broadcast %6 : vector<1x32xf32> to vector<256x32xf32>
    %8 = arith.addf %5, %7 : vector<256x32xf32>
    %c0_9 = arith.constant 0 : index
    %c0_10 = arith.constant 0 : index
    %9 = vector.load %arg7[%c0_9, %c0_10] : memref<192x32xbf16, #tpu.memory_space<vmem>>, vector<192x32xbf16>
    %cst_11 = arith.constant dense<0.000000e+00> : vector<1024x32xf32>
    %10 = tpu.matmul %3, %9, %cst_11 {dimension_numbers = #tpu.dot_dimension_numbers<[1], [0], [0], [1], [0, 0, 1, 1], [], []>} : vector<1024x192xbf16>, vector<192x32xbf16>, vector<1024x32xf32> -> vector<1024x32xf32>
    %c0_12 = arith.constant 0 : index
    %c0_13 = arith.constant 0 : index
    %11 = vector.load %arg8[%c0_12, %c0_13] : memref<1x32xf32, #tpu.memory_space<vmem>>, vector<1x32xf32>
    %12 = vector.broadcast %11 : vector<1x32xf32> to vector<1024x32xf32>
    %13 = arith.addf %10, %12 : vector<1024x32xf32>
    %14 = arith.truncf %8 : vector<256x32xf32> to vector<256x32xbf16>
    %c0_14 = arith.constant 0 : index
    %c0_15 = arith.constant 0 : index
    %15 = vector.load %arg9[%c0_14, %c0_15] : memref<32x32xbf16, #tpu.memory_space<vmem>>, vector<32x32xbf16>
    %cst_16 = arith.constant dense<0.000000e+00> : vector<256x32xf32>
    %16 = tpu.matmul %14, %15, %cst_16 {dimension_numbers = #tpu.dot_dimension_numbers<[1], [0], [0], [1], [0, 0, 1, 1], [], []>} : vector<256x32xbf16>, vector<32x32xbf16>, vector<256x32xf32> -> vector<256x32xf32>
    %17 = arith.truncf %13 : vector<1024x32xf32> to vector<1024x32xbf16>
    %c0_17 = arith.constant 0 : index
    %c0_18 = arith.constant 0 : index
    %18 = vector.load %arg9[%c0_17, %c0_18] : memref<32x32xbf16, #tpu.memory_space<vmem>>, vector<32x32xbf16>
    %cst_19 = arith.constant dense<0.000000e+00> : vector<1024x32xf32>
    %19 = tpu.matmul %17, %18, %cst_19 {dimension_numbers = #tpu.dot_dimension_numbers<[1], [0], [0], [1], [0, 0, 1, 1], [], []>} : vector<1024x32xbf16>, vector<32x32xbf16>, vector<1024x32xf32> -> vector<1024x32xf32>
    %c0_20 = arith.constant 0 : index
    %c0_21 = arith.constant 0 : index
    %20 = vector.load %arg3[%c0_20, %c0_21] : memref<1024x256xbf16, #tpu.memory_space<vmem>>, vector<1024x256xbf16>
    %21 = arith.truncf %16 : vector<256x32xf32> to vector<256x32xbf16>
    %cst_22 = arith.constant dense<0.000000e+00> : vector<1024x32xf32>
    %22 = tpu.matmul %20, %21, %cst_22 {dimension_numbers = #tpu.dot_dimension_numbers<[1], [0], [0], [1], [0, 0, 1, 1], [], []>} : vector<1024x256xbf16>, vector<256x32xbf16>, vector<1024x32xf32> -> vector<1024x32xf32>
    %23 = arith.addf %19, %22 : vector<1024x32xf32>
    %c0_23 = arith.constant 0 : index
    %c0_24 = arith.constant 0 : index
    %24 = vector.load %arg10[%c0_23, %c0_24] : memref<1x32xf32, #tpu.memory_space<vmem>>, vector<1x32xf32>
    %25 = vector.broadcast %24 : vector<1x32xf32> to vector<1024x32xf32>
    %26 = arith.addf %23, %25 : vector<1024x32xf32>
    %c0_25 = arith.constant 0 : index
    %c0_26 = arith.constant 0 : index
    %27 = vector.load %arg11[%c0_25, %c0_26] : memref<32x96xbf16, #tpu.memory_space<vmem>>, vector<32x96xbf16>
    %cst_27 = arith.constant dense<0.000000e+00> : vector<256x96xf32>
    %28 = tpu.matmul %14, %27, %cst_27 {dimension_numbers = #tpu.dot_dimension_numbers<[1], [0], [0], [1], [0, 0, 1, 1], [], []>} : vector<256x32xbf16>, vector<32x96xbf16>, vector<256x96xf32> -> vector<256x96xf32>
    %c0_28 = arith.constant 0 : index
    %c0_29 = arith.constant 0 : index
    %29 = vector.load %arg12[%c0_28, %c0_29] : memref<1x96xf32, #tpu.memory_space<vmem>>, vector<1x96xf32>
    %30 = vector.broadcast %29 : vector<1x96xf32> to vector<256x96xf32>
    %31 = arith.addf %28, %30 : vector<256x96xf32>
    %c0_30 = arith.constant 0 : index
    %c0_31 = arith.constant 0 : index
    %32 = vector.load %arg4[%c0_30, %c0_31] : memref<64x256xbf16, #tpu.memory_space<vmem>>, vector<64x256xbf16>
    %33 = vector.extract_strided_slice %31 {offsets = [0, 0], sizes = [256, 32], strides = [1, 1]} : vector<256x96xf32> to vector<256x32xf32>
    %34 = arith.truncf %33 : vector<256x32xf32> to vector<256x32xbf16>
    %cst_32 = arith.constant dense<0.000000e+00> : vector<64x32xf32>
    %35 = tpu.matmul %32, %34, %cst_32 {dimension_numbers = #tpu.dot_dimension_numbers<[1], [0], [0], [1], [0, 0, 1, 1], [], []>} : vector<64x256xbf16>, vector<256x32xbf16>, vector<64x32xf32> -> vector<64x32xf32>
    %36 = vector.extract_strided_slice %31 {offsets = [0, 32], sizes = [256, 32], strides = [1, 1]} : vector<256x96xf32> to vector<256x32xf32>
    %37 = vector.extract_strided_slice %31 {offsets = [0, 64], sizes = [256, 32], strides = [1, 1]} : vector<256x96xf32> to vector<256x32xf32>
    %38 = arith.truncf %35 : vector<64x32xf32> to vector<64x32xbf16>
    %39 = arith.truncf %36 : vector<256x32xf32> to vector<256x32xbf16>
    %cst_33 = arith.constant dense<0.000000e+00> : vector<64x256xf32>
    %40 = tpu.matmul %38, %39, %cst_33 {dimension_numbers = #tpu.dot_dimension_numbers<[1], [1], [0], [0], [0, 0, 1, 0], [], []>} : vector<64x32xbf16>, vector<256x32xbf16>, vector<64x256xf32> -> vector<64x256xf32>
    %cst_34 = arith.constant dense<0xFF800000> : vector<64xf32>
    %41 = vector.multi_reduction <maximumf>, %40, %cst_34 [1] : vector<64x256xf32> to vector<64xf32>
    %42 = vector.shape_cast %41 : vector<64xf32> to vector<64x1xf32>
    %43 = vector.broadcast %42 : vector<64x1xf32> to vector<64x256xf32>
    %44 = arith.subf %40, %43 : vector<64x256xf32>
    %45 = math.exp %44 : vector<64x256xf32>
    %cst_35 = arith.constant dense<0.000000e+00> : vector<64xf32>
    %46 = vector.multi_reduction <add>, %45, %cst_35 [1] : vector<64x256xf32> to vector<64xf32>
    %47 = vector.shape_cast %46 : vector<64xf32> to vector<64x1xf32>
    %48 = tpu.reciprocal %47 {approx = true} : vector<64x1xf32> -> vector<64x1xf32>
    %49 = vector.broadcast %48 : vector<64x1xf32> to vector<64x256xf32>
    %50 = arith.mulf %45, %49 : vector<64x256xf32>
    %51 = arith.truncf %50 : vector<64x256xf32> to vector<64x256xbf16>
    %52 = arith.truncf %37 : vector<256x32xf32> to vector<256x32xbf16>
    %cst_36 = arith.constant dense<0.000000e+00> : vector<64x32xf32>
    %53 = tpu.matmul %51, %52, %cst_36 {dimension_numbers = #tpu.dot_dimension_numbers<[1], [0], [0], [1], [0, 0, 1, 1], [], []>} : vector<64x256xbf16>, vector<256x32xbf16>, vector<64x32xf32> -> vector<64x32xf32>
    %54 = arith.truncf %53 : vector<64x32xf32> to vector<64x32xbf16>
    %c0_37 = arith.constant 0 : index
    %c0_38 = arith.constant 0 : index
    %55 = vector.load %arg13[%c0_37, %c0_38] : memref<32x32xbf16, #tpu.memory_space<vmem>>, vector<32x32xbf16>
    %cst_39 = arith.constant dense<0.000000e+00> : vector<64x32xf32>
    %56 = tpu.matmul %54, %55, %cst_39 {dimension_numbers = #tpu.dot_dimension_numbers<[1], [0], [0], [1], [0, 0, 1, 1], [], []>} : vector<64x32xbf16>, vector<32x32xbf16>, vector<64x32xf32> -> vector<64x32xf32>
    %c0_40 = arith.constant 0 : index
    %c0_41 = arith.constant 0 : index
    %57 = vector.load %arg14[%c0_40, %c0_41] : memref<1x32xf32, #tpu.memory_space<vmem>>, vector<1x32xf32>
    %58 = vector.broadcast %57 : vector<1x32xf32> to vector<64x32xf32>
    %59 = arith.addf %56, %58 : vector<64x32xf32>
    %60 = tpu.transpose %26, [1, 0] : vector<1024x32xf32> -> vector<32x1024xf32>
    %c0_42 = arith.constant 0 : index
    %c0_43 = arith.constant 0 : index
    %c0_44 = arith.constant 0 : index
    %61 = vector.load %arg17[%c0_42, %c0_43, %c0_44] : memref<1x32x1024xf32, #tpu.memory_space<vmem>>, vector<1x32x1024xf32>
    %62 = vector.shape_cast %61 : vector<1x32x1024xf32> to vector<32x1024xf32>
    %63 = vector.shape_cast %60 : vector<32x1024xf32> to vector<1x32x1024xf32>
    tpu.vector_store %arg17[%c0_42, %c0_43, %c0_44], %63 {strides = array<i32>} : memref<1x32x1024xf32, #tpu.memory_space<vmem>>, vector<1x32x1024xf32>,
    %64 = tpu.transpose %8, [1, 0] : vector<256x32xf32> -> vector<32x256xf32>
    %c0_45 = arith.constant 0 : index
    %c0_46 = arith.constant 0 : index
    %c0_47 = arith.constant 0 : index
    %65 = vector.load %arg18[%c0_45, %c0_46, %c0_47] : memref<1x32x256xf32, #tpu.memory_space<vmem>>, vector<1x32x256xf32>
    %66 = vector.shape_cast %65 : vector<1x32x256xf32> to vector<32x256xf32>
    %67 = vector.shape_cast %64 : vector<32x256xf32> to vector<1x32x256xf32>
    tpu.vector_store %arg18[%c0_45, %c0_46, %c0_47], %67 {strides = array<i32>} : memref<1x32x256xf32, #tpu.memory_space<vmem>>, vector<1x32x256xf32>,
    %68 = tpu.transpose %59, [1, 0] : vector<64x32xf32> -> vector<32x64xf32>
    %c0_48 = arith.constant 0 : index
    %c0_49 = arith.constant 0 : index
    %c0_50 = arith.constant 0 : index
    %69 = vector.load %arg19[%c0_48, %c0_49, %c0_50] : memref<1x32x64xf32, #tpu.memory_space<vmem>>, vector<1x32x64xf32>
    %70 = vector.shape_cast %69 : vector<1x32x64xf32> to vector<32x64xf32>
    %71 = vector.shape_cast %68 : vector<32x64xf32> to vector<1x32x64xf32>
    tpu.vector_store %arg19[%c0_48, %c0_49, %c0_50], %71 {strides = array<i32>} : memref<1x32x64xf32, #tpu.memory_space<vmem>>, vector<1x32x64xf32>,
    %cst_51 = arith.constant dense<0.000000e+00> : vector<32xf32>
    %72 = vector.multi_reduction <add>, %8, %cst_51 [0] : vector<256x32xf32> to vector<32xf32>
    %73 = vector.shape_cast %72 : vector<32xf32> to vector<1x32xf32>
    %cst_52 = arith.constant 2.560000e+02 : f32
    %74 = vector.broadcast %cst_52 : f32 to vector<1x32xf32>
    %75 = arith.divf %73, %74 : vector<1x32xf32>
    %c0_53 = arith.constant 0 : index
    %c0_54 = arith.constant 0 : index
    %c0_55 = arith.constant 0 : index
    %76 = vector.load %arg20[%c0_53, %c0_54, %c0_55] : memref<1x1x32xf32, #tpu.memory_space<vmem>>, vector<1x1x32xf32>
    %77 = vector.shape_cast %76 : vector<1x1x32xf32> to vector<1x32xf32>
    %78 = vector.shape_cast %75 : vector<1x32xf32> to vector<1x1x32xf32>
    tpu.vector_store %arg20[%c0_53, %c0_54, %c0_55], %78 {strides = array<i32>} : memref<1x1x32xf32, #tpu.memory_space<vmem>>, vector<1x1x32xf32>,
    %79 = arith.truncf %75 : vector<1x32xf32> to vector<1x32xbf16>
    %c0_56 = arith.constant 0 : index
    %c0_57 = arith.constant 0 : index
    %80 = vector.load %arg15[%c0_56, %c0_57] : memref<32x128xbf16, #tpu.memory_space<vmem>>, vector<32x128xbf16>
    %cst_58 = arith.constant dense<0.000000e+00> : vector<1x128xf32>
    %81 = tpu.matmul %79, %80, %cst_58 {dimension_numbers = #tpu.dot_dimension_numbers<[1], [0], [0], [1], [0, 0, 1, 1], [], []>} : vector<1x32xbf16>, vector<32x128xbf16>, vector<1x128xf32> -> vector<1x128xf32>
    %c0_59 = arith.constant 0 : index
    %c0_60 = arith.constant 0 : index
    %82 = vector.load %arg16[%c0_59, %c0_60] : memref<1x128xf32, #tpu.memory_space<vmem>>, vector<1x128xf32>
    %83 = arith.addf %81, %82 : vector<1x128xf32>
    %c0_61 = arith.constant 0 : index
    %c0_62 = arith.constant 0 : index
    %c0_63 = arith.constant 0 : index
    %84 = vector.load %arg21[%c0_61, %c0_62, %c0_63] : memref<1x1x128xf32, #tpu.memory_space<vmem>>, vector<1x1x128xf32>
    %85 = vector.shape_cast %84 : vector<1x1x128xf32> to vector<1x128xf32>
    %86 = vector.shape_cast %83 : vector<1x128xf32> to vector<1x1x128xf32>
    tpu.vector_store %arg21[%c0_61, %c0_62, %c0_63], %86 {strides = array<i32>} : memref<1x1x128xf32, #tpu.memory_space<vmem>>, vector<1x1x128xf32>,
    return
  }
  func.func @transform_0(%arg0: i32) -> (i32, i32, i32) {
    %c0_i32 = arith.constant 0 : i32
    %c0_i32_0 = arith.constant 0 : i32
    %c0_i32_1 = arith.constant 0 : i32
    return %arg0, %c0_i32, %c0_i32_0 : i32, i32, i32
  }
  func.func @transform_1(%arg0: i32) -> (i32, i32, i32) {
    %c0_i32 = arith.constant 0 : i32
    %c0_i32_0 = arith.constant 0 : i32
    %c0_i32_1 = arith.constant 0 : i32
    return %arg0, %c0_i32, %c0_i32_0 : i32, i32, i32
  }
  func.func @transform_2(%arg0: i32) -> (i32, i32) {
    %c0_i32 = arith.constant 0 : i32
    %c0_i32_0 = arith.constant 0 : i32
    %c0_i32_1 = arith.constant 0 : i32
    return %c0_i32, %c0_i32_0 : i32, i32
  }
  func.func @transform_3(%arg0: i32) -> (i32, i32) {
    %c0_i32 = arith.constant 0 : i32
    %c0_i32_0 = arith.constant 0 : i32
    %c0_i32_1 = arith.constant 0 : i32
    return %c0_i32, %c0_i32_0 : i32, i32
  }
  func.func @transform_4(%arg0: i32) -> (i32, i32) {
    %c0_i32 = arith.constant 0 : i32
    %c0_i32_0 = arith.constant 0 : i32
    %c0_i32_1 = arith.constant 0 : i32
    return %c0_i32, %c0_i32_0 : i32, i32
  }
  func.func @transform_5(%arg0: i32) -> (i32, i32) {
    %c0_i32 = arith.constant 0 : i32
    %c0_i32_0 = arith.constant 0 : i32
    %c0_i32_1 = arith.constant 0 : i32
    return %c0_i32, %c0_i32_0 : i32, i32
  }
  func.func @transform_6(%arg0: i32) -> (i32, i32) {
    %c0_i32 = arith.constant 0 : i32
    %c0_i32_0 = arith.constant 0 : i32
    %c0_i32_1 = arith.constant 0 : i32
    return %c0_i32, %c0_i32_0 : i32, i32
  }
  func.func @transform_7(%arg0: i32) -> (i32, i32) {
    %c0_i32 = arith.constant 0 : i32
    %c0_i32_0 = arith.constant 0 : i32
    %c0_i32_1 = arith.constant 0 : i32
    return %c0_i32, %c0_i32_0 : i32, i32
  }
  func.func @transform_8(%arg0: i32) -> (i32, i32) {
    %c0_i32 = arith.constant 0 : i32
    %c0_i32_0 = arith.constant 0 : i32
    %c0_i32_1 = arith.constant 0 : i32
    return %c0_i32, %c0_i32_0 : i32, i32
  }
  func.func @transform_9(%arg0: i32) -> (i32, i32) {
    %c0_i32 = arith.constant 0 : i32
    %c0_i32_0 = arith.constant 0 : i32
    %c0_i32_1 = arith.constant 0 : i32
    return %c0_i32, %c0_i32_0 : i32, i32
  }
  func.func @transform_10(%arg0: i32) -> (i32, i32) {
    %c0_i32 = arith.constant 0 : i32
    %c0_i32_0 = arith.constant 0 : i32
    %c0_i32_1 = arith.constant 0 : i32
    return %c0_i32, %c0_i32_0 : i32, i32
  }
  func.func @transform_11(%arg0: i32) -> (i32, i32) {
    %c0_i32 = arith.constant 0 : i32
    %c0_i32_0 = arith.constant 0 : i32
    %c0_i32_1 = arith.constant 0 : i32
    return %c0_i32, %c0_i32_0 : i32, i32
  }
  func.func @transform_12(%arg0: i32) -> (i32, i32) {
    %c0_i32 = arith.constant 0 : i32
    %c0_i32_0 = arith.constant 0 : i32
    %c0_i32_1 = arith.constant 0 : i32
    return %c0_i32, %c0_i32_0 : i32, i32
  }
  func.func @transform_13(%arg0: i32) -> (i32, i32) {
    %c0_i32 = arith.constant 0 : i32
    %c0_i32_0 = arith.constant 0 : i32
    %c0_i32_1 = arith.constant 0 : i32
    return %c0_i32, %c0_i32_0 : i32, i32
  }
  func.func @transform_14(%arg0: i32) -> (i32, i32) {
    %c0_i32 = arith.constant 0 : i32
    %c0_i32_0 = arith.constant 0 : i32
    %c0_i32_1 = arith.constant 0 : i32
    return %c0_i32, %c0_i32_0 : i32, i32
  }
  func.func @transform_15(%arg0: i32) -> (i32, i32) {
    %c0_i32 = arith.constant 0 : i32
    %c0_i32_0 = arith.constant 0 : i32
    %c0_i32_1 = arith.constant 0 : i32
    return %c0_i32, %c0_i32_0 : i32, i32
  }
  func.func @transform_16(%arg0: i32) -> (i32, i32, i32) {
    %c0_i32 = arith.constant 0 : i32
    %c0_i32_0 = arith.constant 0 : i32
    %c0_i32_1 = arith.constant 0 : i32
    return %arg0, %c0_i32, %c0_i32_0 : i32, i32, i32
  }
  func.func @transform_17(%arg0: i32) -> (i32, i32, i32) {
    %c0_i32 = arith.constant 0 : i32
    %c0_i32_0 = arith.constant 0 : i32
    %c0_i32_1 = arith.constant 0 : i32
    return %arg0, %c0_i32, %c0_i32_0 : i32, i32, i32
  }
  func.func @transform_18(%arg0: i32) -> (i32, i32, i32) {
    %c0_i32 = arith.constant 0 : i32
    %c0_i32_0 = arith.constant 0 : i32
    %c0_i32_1 = arith.constant 0 : i32
    return %arg0, %c0_i32, %c0_i32_0 : i32, i32, i32
  }
  func.func @transform_19(%arg0: i32) -> (i32, i32, i32) {
    %c0_i32 = arith.constant 0 : i32
    %c0_i32_0 = arith.constant 0 : i32
    %c0_i32_1 = arith.constant 0 : i32
    return %arg0, %c0_i32, %c0_i32_0 : i32, i32, i32
  }
  func.func @transform_20(%arg0: i32) -> (i32, i32, i32) {
    %c0_i32 = arith.constant 0 : i32
    %c0_i32_0 = arith.constant 0 : i32
    %c0_i32_1 = arith.constant 0 : i32
    return %arg0, %c0_i32, %c0_i32_0 : i32, i32, i32
  }
}

</mosaic_0001>

<bundles_post_ra>
// kernel: hand_net_forward.1
= control target key start
LH: loop header
LB: loop body
LE: loop exit
PB: predicated region body
PF: predicated region fallthrough
CT: control target
= control target key end

     0   :  { %s13623_s0 = inlined_call_operand.vmem [shape: bf16[2,256,768], index: 0, kind: input, shape index: {}]   ;;  %s13624_s1 = inlined_call_operand.vmem [shape: bf16[2,1024,192], index: 1, kind: input, shape index: {}]   ;;  %s13625_s2 = inlined_call_operand.vmem [shape: bf16[1024,256], index: 2, kind: input, shape index: {}]   ;;  %s13626_s3 = inlined_call_operand.vmem [shape: bf16[64,256], index: 3, kind: input, shape index: {}]   ;;  %s13627_s4 = inlined_call_operand.vmem [shape: bf16[768,32], index: 4, kind: input, shape index: {}]   ;;  %s13628_s5 = inlined_call_operand.vmem [shape: f32[1,32], index: 5, kind: input, shape index: {}]   ;;  %s13629_s6 = inlined_call_operand.vmem [shape: bf16[192,32], index: 6, kind: input, shape index: {}]   ;;  %s13630_s7 = inlined_call_operand.vmem [shape: f32[1,32], index: 7, kind: input, shape index: {}]   ;;  %s13631_s8 = inlined_call_operand.vmem [shape: bf16[32,32], index: 8, kind: input, shape index: {}]   ;;  %s13632_s9 = inlined_call_operand.vmem [shape: f32[1,32], index: 9, kind: input, shape index: {}]   ;;  %s13633_s10 = inlined_call_operand.vmem [shape: bf16[32,96], index: 10, kind: input, shape index: {}]   ;;  %s13634_s11 = inlined_call_operand.vmem [shape: f32[1,96], index: 11, kind: input, shape index: {}]   ;;  %s13635_s12 = inlined_call_operand.vmem [shape: bf16[32,32], index: 12, kind: input, shape index: {}]   ;;  %s13636_s13 = inlined_call_operand.vmem [shape: f32[1,32], index: 13, kind: input, shape index: {}]   ;;  %s13637_s14 = inlined_call_operand.vmem [shape: bf16[32,128], index: 14, kind: input, shape index: {}]   ;;  %s13638_s15 = inlined_call_operand.vmem [shape: f32[1,128], index: 15, kind: input, shape index: {}]   ;;  %s13639_s16 = inlined_call_operand.vmem [shape: f32[2,32,1024], index: 16, kind: output, shape index: {0}]   ;;  %s13640_s17 = inlined_call_operand.vmem [shape: f32[2,32,256], index: 17, kind: output, shape index: {1}]   ;;  %s13641_s18 = inlined_call_operand.vmem [shape: f32[2,32,64], index: 18, kind: output, shape index: {2}]   ;;  %s13642_s19 = inlined_call_operand.hbm [shape: f32[2,1,32], index: 19, kind: output, shape index: {3}]   ;;  %s13643_s20 = inlined_call_operand.hbm [shape: f32[2,1,128], index: 20, kind: output, shape index: {4}]  }
   0x1   :  { %13716 = sst [smem:[#allocation145_spill]] %s13623_s0 }
   0x2   :  { %13717 = sst [smem:[#allocation146_spill]] %s13624_s1 }
   0x3   :  { %13718 = sst [smem:[#allocation147_spill]] %s13625_s2 }
   0x4   :  { %13719 = sst [smem:[#allocation148_spill]] %s13626_s3 }
   0x5   :  { %13720 = sst [smem:[#allocation149_spill]] %s13627_s4 }
   0x6   :  { %13721 = sst [smem:[#allocation150_spill]] %s13628_s5 }
   0x7   :  { %13722 = sst [smem:[#allocation151_spill]] %s13629_s6 }
   0x8   :  { %13723 = sst [smem:[#allocation152_spill]] %s13641_s18 }
   0x9   :  { %13724 = sst [smem:[#allocation153_spill]] %s13643_s20 }
   0xa   :  { %26 = vsyncpa [#allocation3], 0 }
   0xb   :  { %28 = vsyncpa [#allocation3 + $0x1], 0 }
   0xc   :  { %29 = vsyncpa [#allocation5], 0 }
   0xd   :  { %31 = vsyncpa [#allocation5 + $0x1], 0  ;;  %s10115_s1 = smov 0   ;;  %s10117_s22 = smov 0  }
   0xe   :  { %s10119_s23 = smov 0   ;;  %s10121_s24 = smov 0  }
   0xf LB: > { %13725 = sst [smem:[#allocation8_spill]] %s9989_s1  ;;  %s10136_s2 = sadd.s32 4294967295, %s10001_s24   ;;  %s10001_s24 = sphi %s10121_s24, %s14108_s24   ;;  %s9997_s23 = sphi %s10119_s23, %s14110_s23   ;;  %s9993_s22 = sphi %s10117_s22, %s14112_s22   ;;  %s9989_s1 = sphi %s10115_s1, %s14111_s1  }
  0x10   : > { %13726 = sst [smem:[#allocation9_spill]] %s9997_s23  ;;  %s7794_s25 = sadd.s32 4294967294, %s10001_s24  }
  0x11   : > { %13727 = sst [smem:[#allocation10_spill]] %s10001_s24  ;;  %s10140_s3 = sadd.s32 1, %s10001_s24  }
  0x12   : > { %13728 = sst [smem:[#allocation11_spill]] %s10140_s3  ;;  %s468_s26 = sadd.s32 1, %s9997_s23 }
  0x13   : > { %s465_s27 = ssub.s32 %s10001_s24, %s10140_s3  ;;  %p478_p0 = scmp.ne.s32.totalorder %s9997_s23, %s9993_s22 }
  0x14   : > { %p466_p1 = scmp.eq.s32.totalorder %s465_s27, 0  ;;  %p479_p2 = scmp.eq.s32.totalorder %s10136_s2, 1 }
  0x15   : > { %p484_p3 = scmp.ne.s32.totalorder %s9993_s22, %s9989_s1  ;;  %p485_p4 = scmp.eq.s32.totalorder %s7794_s25, 1 }
  0x16   : > { %s10151_s28 = scalar_select %p466_p1, %s9997_s23, %s468_s26  }
  0x17   : > { %p10153_p5 = por %p479_p2, %p478_p0  ;;  %p10157_p6 = por %p485_p4, %p484_p3 }
  0x18   : > { %13729 = sst [smem:[#allocation12_spill]] %s10151_s28  ;;  %p7797_p7 = scmp.ge.s32.totalorder %s10001_s24, 1 }
  0x19   : > { %s13731_s29 = scalar_select %p10157_p6, 1, 0 }
  0x1a   : > { %p587_p8 = scmp.lt.s32.totalorder %s10001_s24, 3 }
  0x1b   : > { %13732 = sst [smem:[#allocation13_spill]] %s13731_s29 }
  0x1c   : > { %p588_p9 = pnand %p7797_p7, %p587_p8 }
  0x1e   : > { %591 = sbr.rel (%p588_p9) target bundleno = 2989 (0xbad), region = 84 }
  0x25   : > { %s13733_s21 = sld [smem:[#allocation149_spill]]  ;;  %p668_p10 = scmp.lt.s32.totalorder %s10136_s2, 1  ;;  %v13654_v38 = vmov 0   ;;  %vm2951_vm0 = vcmask 523264   ;;  %vm3721_vm1 = vcmask 261120   ;;  %vm7506_vm2 = vcmask 253952  }
  0x26   : > { %s13734_s20 = sld [smem:[#allocation145_spill]]  ;;  %s13735_s6 = sld [smem:[#allocation151_spill]]  ;;  %vm10007_vm3 = vmmov 0  }
  0x27   : > { %s10228_s27 = scalar_select %p668_p10, %s10136_s2, 1 }
  0x28   : > { %s13736_s3 = sld [smem:[#allocation146_spill]]  ;;  %s13737_s5 = sld [smem:[#allocation150_spill]] }
  0x29   : > { %s9200_s0 = smul.u32 768, %s10228_s27  ;;  %s8413_s26 = sshll.u32 %s10228_s27, 10 }
  0x2a   : > { %s13787_s23 = sld [smem:[#allocation147_spill]]  ;;  %s10004_s30 = smov 96  }
  0x2b   : > { %v9250_v0 = vld [vmem:[%s13733_s21 + $0x40] sm:$0xff]   ;;  %v9254_v4 = vld [vmem:[%s13733_s21 + $0x48] sm:$0xff]   ;;  %v9258_v8 = vld [vmem:[%s13733_s21 + $0x50] sm:$0xff]   ;;  %s10005_s25 = smov 64  }
  0x2c   : > { %v9251_v1 = vld [vmem:[%s13733_s21] sm:$0xff]   ;;  %8417 = vmatprep.subr.bf16.mxu0 %v9250_v0  ;;  %v9255_v5 = vld [vmem:[%s13733_s21 + $0x8] sm:$0xff]   ;;  %v9259_v9 = vld [vmem:[%s13733_s21 + $0x10] sm:$0xff]   ;;  %s10258_s24 = scalar_lea.vmem %s13734_s20, %s9200_s0  ;;  %s13957_s20 = sld [smem:[#allocation148_spill]] }
  0x2d   : > { %v9252_v2 = vld [vmem:[%s13733_s21 + $0xc0] sm:$0xff]   ;;  %8418 = vmatpush3.bf16.msra.mxu0 %v9251_v1  ;;  %v9256_v6 = vld [vmem:[%s13733_s21 + $0xc8] sm:$0xff]   ;;  %v9260_v10 = vld [vmem:[%s13733_s21 + $0xd0] sm:$0xff]  }
  0x2e   : > { %v9253_v3 = vld [vmem:[%s13733_s21 + $0x80] sm:$0xff]   ;;  %8529 = vmatprep.subr.bf16.mxu1 %v9252_v2  ;;  %8419 = vmatprep.subr.bf16.mxu0 %v9254_v4  ;;  %v9257_v7 = vld [vmem:[%s13733_s21 + $0x88] sm:$0xff]   ;;  %v9261_v11 = vld [vmem:[%s13733_s21 + $0x90] sm:$0xff]   ;;  %s10384_s1 = scalar_lea.vmem %s13736_s3, %s8413_s26  ;;  %s8415_s3 = sshll.u32 %s10228_s27, 6 }
  0x2f   : > { %8530 = vmatpush3.bf16.msra.mxu1 %v9253_v3  ;;  %v9262_v12 = vld [vmem:[%s13733_s21 + $0x58] sm:$0xff]   ;;  %v9266_v16 = vld [vmem:[%s13733_s21 + $0x60] sm:$0xff]   ;;  %v9270_v20 = vld [vmem:[%s13733_s21 + $0x68] sm:$0xff]   ;;  %s687_s26 = scalar_lea.vmem %s13640_s17, %s8415_s3 }
  0x30   : > { %8531 = vmatprep.subr.bf16.mxu1 %v9256_v6  ;;  %v9263_v13 = vld [vmem:[%s13733_s21 + $0x18] sm:$0xff]   ;;  %v9267_v17 = vld [vmem:[%s13733_s21 + $0x20] sm:$0xff]   ;;  %v9271_v21 = vld [vmem:[%s13733_s21 + $0x28] sm:$0xff]   ;;  %s13788_s18 = smov %s13787_s23 }
  0x31   : > { %8420 = vmatpush3.bf16.msra.mxu0 %v9255_v5  ;;  %v9264_v14 = vld [vmem:[%s13733_s21 + $0xd8] sm:$0xff]   ;;  %v9268_v18 = vld [vmem:[%s13733_s21 + $0xe0] sm:$0xff]   ;;  %v9272_v22 = vld [vmem:[%s13733_s21 + $0xe8] sm:$0xff]  }
  0x32   : > { %8421 = vmatprep.subr.bf16.mxu0 %v9258_v8  ;;  %v9265_v15 = vld [vmem:[%s13733_s21 + $0x98] sm:$0xff]   ;;  %v9269_v19 = vld [vmem:[%s13733_s21 + $0xa0] sm:$0xff]   ;;  %v9273_v23 = vld [vmem:[%s13733_s21 + $0xa8] sm:$0xff]  }
  0x33   : > { %8532 = vmatpush3.bf16.msra.mxu1 %v9257_v7  ;;  %v9274_v24 = vld [vmem:[%s13733_s21 + $0x70] sm:$0xff]   ;;  %v9278_v28 = vld [vmem:[%s13733_s21 + $0x78] sm:$0xff]   ;;  %v9285_v34 = vld [vmem:[%s10258_s24 + $0x8] ss:$24 sps:$4 sm:$0xff]  }
  0x34   : > { %8533 = vmatprep.subr.bf16.mxu1 %v9260_v10  ;;  %v9275_v25 = vld [vmem:[%s13733_s21 + $0x30] sm:$0xff]   ;;  %v9279_v29 = vld [vmem:[%s13733_s21 + $0x38] sm:$0xff]   ;;  %v9287_v35 = vld [vmem:[%s10258_s24 + $0xc] ss:$24 sps:$4 sm:$0xff]  }
  0x35   : > { %8422 = vmatpush3.bf16.msra.mxu0 %v9259_v9  ;;  %v9276_v26 = vld [vmem:[%s13733_s21 + $0xf0] sm:$0xff]   ;;  %v9280_v30 = vld [vmem:[%s13733_s21 + $0xf8] sm:$0xff]   ;;  %1982 = vmatprep.mubr.bf16.mxu1 %v9287_v35  ;;  %v9297_v42 = vld [vmem:[%s10258_s24 + $0x6c] ss:$24 sps:$4 sm:$0xff]  }
  0x36   : > { %8423 = vmatprep.subr.bf16.mxu0 %v9262_v12  ;;  %v9277_v27 = vld [vmem:[%s13733_s21 + $0xb0] sm:$0xff]   ;;  %v9281_v31 = vld [vmem:[%s10258_s24] ss:$24 sps:$4 sm:$0xff]   ;;  %v9283_v32 = vld [vmem:[%s10258_s24 + $0x4] ss:$24 sps:$4 sm:$0xff]  }
  0x37   : > { %8534 = vmatpush3.bf16.msra.mxu1 %v9261_v11  ;;  %v9284_v33 = vld [vmem:[%s13733_s21 + $0xb8] sm:$0xff]   ;;  %1821 = vmatprep.mubr.bf16.mxu0 %v9283_v32  ;;  %v9288_v36 = vld [vmem:[%s10258_s24 + $0x34] ss:$24 sps:$4 sm:$0xff]   ;;  %v9290_v39 = vld [vmem:[%s10258_s24 + $0x30] ss:$24 sps:$4 sm:$0xff]  }
  0x38   : > { %8535 = vmatprep.subr.bf16.mxu1 %v9264_v14  ;;  %v9291_v37 = vld [vmem:[%s10258_s24 + $0x3c] ss:$24 sps:$4 sm:$0xff]   ;;  %v9293_v41 = vld [vmem:[%s10258_s24 + $0x38] ss:$24 sps:$4 sm:$0xff]   ;;  %v9299_v45 = vld [vmem:[%s10258_s24 + $0x68] ss:$24 sps:$4 sm:$0xff]  }
  0x39   : > { %8424 = vmatpush3.bf16.msra.mxu0 %v9263_v13  ;;  %v9294_v40 = vld [vmem:[%s10258_s24 + $0x64] ss:$24 sps:$4 sm:$0xff]   ;;  %v9296_v43 = vld [vmem:[%s10258_s24 + $0x60] ss:$24 sps:$4 sm:$0xff]   ;;  %v9300_v44 = vld [vmem:[%s10258_s24 + $0x94] ss:$24 sps:$4 sm:$0xff]  }
  0x3a   : > { %8425 = vmatprep.subr.bf16.mxu0 %v9266_v16  ;;  %v9303_v46 = vld [vmem:[%s10258_s24 + $0x9c] ss:$24 sps:$4 sm:$0xff]   ;;  %v9302_v47 = vld [vmem:[%s10258_s24 + $0x90] ss:$24 sps:$4 sm:$0xff]   ;;  %v9309_v50 = vld [vmem:[%s10258_s24 + $0xcc] ss:$24 sps:$4 sm:$0xff]  }
  0x3b   : > { %8536 = vmatpush3.bf16.msra.mxu1 %v9265_v15  ;;  %v9306_v48 = vld [vmem:[%s10258_s24 + $0xc4] ss:$24 sps:$4 sm:$0xff]   ;;  %v9305_v49 = vld [vmem:[%s10258_s24 + $0x98] ss:$24 sps:$4 sm:$0xff]   ;;  %v9312_v52 = vld [vmem:[%s10258_s24 + $0xf4] ss:$24 sps:$4 sm:$0xff]  }
  0x3c   : > { %8537 = vmatprep.subr.bf16.mxu1 %v9268_v18  ;;  %v9308_v51 = vld [vmem:[%s10258_s24 + $0xc0] ss:$24 sps:$4 sm:$0xff]   ;;  %v9315_v55 = vld [vmem:[%s10258_s24 + $0xfc] ss:$24 sps:$4 sm:$0xff]   ;;  %v9362_v57 = vld [vmem:[%s13733_s21 + $0x148] sm:$0xff]  }
  0x3d   : > { %8426 = vmatpush3.bf16.msra.mxu0 %v9267_v17  ;;  %v9311_v53 = vld [vmem:[%s10258_s24 + $0xc8] ss:$24 sps:$4 sm:$0xff]   ;;  %v9318_v60 = vld [vmem:[%s10258_s24 + $0x124] ss:$24 sps:$4 sm:$0xff]   ;;  %v9367_v61 = vld [vmem:[%s13733_s21 + $0x150] sm:$0xff]  }
  0x3e   : > { %8427 = vmatprep.subr.bf16.mxu0 %v9270_v20  ;;  %v9357_v54 = vld [vmem:[%s13733_s21 + $0x140] sm:$0xff]   ;;  %v9363_v58 = vld [vmem:[%s13733_s21 + $0x108] sm:$0xff]   ;;  %v9317_v62 = vld [vmem:[%s10258_s24 + $0xf8] ss:$24 sps:$4 sm:$0xff]  }
  0x3f   : > { %8538 = vmatpush3.bf16.msra.mxu1 %v9269_v19  ;;  %v9360_v56 = vld [vmem:[%s13733_s21 + $0x100] sm:$0xff]   ;;  %v9314_v59 = vld [vmem:[%s10258_s24 + $0xf0] ss:$24 sps:$4 sm:$0xff]   ;;  %v9372_v1 = vld [vmem:[%s13733_s21 + $0x158] sm:$0xff]  }
  0x40   : > { %8539 = vmatprep.subr.bf16.mxu1 %v9272_v22  ;;  %v9370_v63 = vld [vmem:[%s13733_s21 + $0x110] sm:$0xff]   ;;  %v9321_v0 = vld [vmem:[%s10258_s24 + $0x12c] ss:$24 sps:$4 sm:$0xff]   ;;  %v9320_v2 = vld [vmem:[%s10258_s24 + $0x120] ss:$24 sps:$4 sm:$0xff]  }
  0x41   : > { %8428 = vmatpush3.bf16.msra.mxu0 %v9271_v21  ;;  %v9373_v3 = vld [vmem:[%s13733_s21 + $0x118] sm:$0xff]   ;;  %v9377_v4 = vld [vmem:[%s13733_s21 + $0x160] sm:$0xff]   ;;  %v9324_v5 = vld [vmem:[%s10258_s24 + $0x154] ss:$24 sps:$4 sm:$0xff]  }
  0x42   : > { %8429 = vmatprep.subr.bf16.mxu0 %v9274_v24  ;;  %v9323_v6 = vld [vmem:[%s10258_s24 + $0x128] ss:$24 sps:$4 sm:$0xff]   ;;  %v9327_v7 = vld [vmem:[%s10258_s24 + $0x15c] ss:$24 sps:$4 sm:$0xff]   ;;  %v9329_v14 = vld [vmem:[%s10258_s24 + $0x158] ss:$24 sps:$4 sm:$0xff]  }
  0x43   : > { %8540 = vmatpush3.bf16.msra.mxu1 %v9273_v23  ;;  %v9380_v8 = vld [vmem:[%s13733_s21 + $0x120] sm:$0xff]   ;;  %v9382_v9 = vld [vmem:[%s13733_s21 + $0x168] sm:$0xff]   ;;  %v9387_v12 = vld [vmem:[%s13733_s21 + $0x170] sm:$0xff]  }
  0x44   : > { %8541 = vmatprep.subr.bf16.mxu1 %v9276_v26  ;;  %v9326_v10 = vld [vmem:[%s10258_s24 + $0x150] ss:$24 sps:$4 sm:$0xff]   ;;  %v9330_v13 = vld [vmem:[%s10258_s24 + $0x184] ss:$24 sps:$4 sm:$0xff]   ;;  %v9332_v19 = vld [vmem:[%s10258_s24 + $0x180] ss:$24 sps:$4 sm:$0xff]  }
  0x45   : > { %8430 = vmatpush3.bf16.msra.mxu0 %v9275_v25  ;;  %v9383_v11 = vld [vmem:[%s13733_s21 + $0x128] sm:$0xff]   ;;  %v9390_v15 = vld [vmem:[%s13733_s21 + $0x130] sm:$0xff]   ;;  %v9392_v17 = vld [vmem:[%s13733_s21 + $0x178] sm:$0xff]  }
  0x46   : > { %8431 = vmatprep.subr.bf16.mxu0 %v9278_v28  ;;  %v9333_v16 = vld [vmem:[%s10258_s24 + $0x18c] ss:$24 sps:$4 sm:$0xff]   ;;  %v9393_v20 = vld [vmem:[%s13733_s21 + $0x138] sm:$0xff]   ;;  %v9335_v23 = vld [vmem:[%s10258_s24 + $0x188] ss:$24 sps:$4 sm:$0xff]  }
  0x47   : > { %8542 = vmatpush3.bf16.msra.mxu1 %v9277_v27  ;;  %v9397_v18 = vld [vmem:[%s13735_s6] sm:$0xff]   ;;  %v9336_v21 = vld [vmem:[%s10258_s24 + $0x1b4] ss:$24 sps:$4 sm:$0xff]   ;;  %v9338_v26 = vld [vmem:[%s10258_s24 + $0x1b0] ss:$24 sps:$4 sm:$0xff]  }
  0x48   : > { %8543 = vmatprep.subr.bf16.mxu1 %v9280_v30  ;;  %v9401_v22 = vld [vmem:[%s13735_s6 + $0x8] sm:$0xff]   ;;  %v9339_v24 = vld [vmem:[%s10258_s24 + $0x1bc] ss:$24 sps:$4 sm:$0xff]   ;;  %v9344_v32 = vld [vmem:[%s10258_s24 + $0x1e0] ss:$24 sps:$4 sm:$0xff]  }
  0x49   : > { %8432 = vmatpush3.bf16.msra.mxu0 %v9279_v29  ;;  %v9402_v25 = vld [vmem:[%s13735_s6 + $0x10] sm:$0xff]   ;;  %v9342_v27 = vld [vmem:[%s10258_s24 + $0x1e4] ss:$24 sps:$4 sm:$0xff]   ;;  %v9347_v35 = vld [vmem:[%s10258_s24 + $0x1e8] ss:$24 sps:$4 sm:$0xff]  }
  0x4a   : > { %8641 = vmatprep.subr.bf16.mxu0 %v9357_v54  ;;  %v9406_v28 = vld [vmem:[%s13735_s6 + $0x18] sm:$0xff]   ;;  %v9345_v30 = vld [vmem:[%s10258_s24 + $0x1ec] ss:$24 sps:$4 sm:$0xff]  }
  0x4b   : > { %8544 = vmatpush3.bf16.msra.mxu1 %v9284_v33  ;;  %v9341_v29 = vld [vmem:[%s10258_s24 + $0x1b8] ss:$24 sps:$4 sm:$0xff]   ;;  %v9348_v33 = vld [vmem:[%s10258_s24 + $0x214] ss:$24 sps:$4 sm:$0xff]  }
  0x4c   : > { %1822 = vmatmul.mubr.bf16.vlgmr.msra.gmra.mrb[0].mxu0 %v9281_v31  ;;  %3144 = vmatprep.subr.bf16.mxu1 %v13654_v38  ;;  %v9407_v31 = vld [vmem:[%s13735_s6 + $0x20] sm:$0xff]   ;;  %v9371_v54 = vld [vmem:[%s10258_s24 + $0x278] ss:$24 sps:$4 sm:$0xff]  }
  0x4d   : > { %1829 = vmatprep.mubr.bf16.mxu0 %v9288_v36  ;;  %8642 = vmatpush3.bf16.msra.mxu0 %v9360_v56  ;;  %v9351_v36 = vld [vmem:[%s10258_s24 + $0x21c] ss:$24 sps:$4 sm:$0xff]   ;;  %v9376_v56 = vld [vmem:[%s10258_s24 + $0x2a0] ss:$24 sps:$4 sm:$0xff]  }
  0x4e   : > { %1983 = vmatmul.mubr.bf16.vlgmr.msra.gmra.mrb[0].mxu1 %v9285_v34  ;;  %8643 = vmatprep.subr.bf16.mxu0 %v9362_v57  ;;  %v9411_v34 = vld [vmem:[%s13735_s6 + $0x28] sm:$0xff]  }
  0x4f   : > { %1990 = vmatprep.mubr.bf16.mxu1 %v9291_v37  ;;  %3145 = vmatpush1.bf16.msra.mxu1 %v9397_v18  ;;  %v9412_v37 = vld [vmem:[%s13735_s6 + $0x30] sm:$0xff]   ;;  %v9453_v18 = vld [vmem:[%s10384_s1 + $0x40] ss:$8 sps:$4 sm:$0xff]  }
  0x50   : > { %3146 = vmatprep.subr.bf16.mxu1 %v13654_v38  ;;  %v9384_v57 = vld [vmem:[%s10258_s24 + $0x2d4] ss:$24 sps:$4 sm:$0xff]  }
  0x51   : > { %8644 = vmatpush3.bf16.msra.mxu0 %v9363_v58  ;;  %v9381_v58 = vld [vmem:[%s10258_s24 + $0x2a8] ss:$24 sps:$4 sm:$0xff]  }
  0x52   : > { %8645 = vmatprep.subr.bf16.mxu0 %v9367_v61  ;;  %v9396_v61 = vld [vmem:[%s10258_s24 + $0x14] ss:$24 sps:$4 sm:$0xff]  }
  0x53   : > { %3147 = vmatpush1.bf16.msra.mxu1 %v9401_v22  ;;  %v9459_v22 = vld [vmem:[%s10384_s1 + $0x50] ss:$8 sps:$4 sm:$0xff]  }
  0x54   : > { %1830 = vmatmul.mubr.bf16.gmra.mrb[4].mxu0 %v9290_v39  ;;  %3148 = vmatprep.subr.bf16.mxu1 %v13654_v38  ;;  %v9350_v39 = vld [vmem:[%s10258_s24 + $0x210] ss:$24 sps:$4 sm:$0xff]  }
  0x55   : > { %1837 = vmatprep.mubr.bf16.mxu0 %v9294_v40  ;;  %8646 = vmatpush3.bf16.msra.mxu0 %v9370_v63  ;;  %v9354_v40 = vld [vmem:[%s10258_s24 + $0x244] ss:$24 sps:$4 sm:$0xff]  }
  0x56   : > { %1991 = vmatmul.mubr.bf16.gmra.mrb[4].mxu1 %v9293_v41  ;;  %8647 = vmatprep.subr.bf16.mxu0 %v9372_v1  ;;  %v9416_v41 = vld [vmem:[%s13735_s6 + $0x38] sm:$0xff]   ;;  %v9429_v63 = vld [vmem:[%s10384_s1 + $0x4] ss:$8 sps:$4 sm:$0xff]  }
  0x57   : > { %1998 = vmatprep.mubr.bf16.mxu1 %v9297_v42  ;;  %3149 = vmatpush1.bf16.msra.mxu1 %v9402_v25  ;;  %v9353_v42 = vld [vmem:[%s10258_s24 + $0x218] ss:$24 sps:$4 sm:$0xff]   ;;  %v9398_v1 = vld [vmem:[%s10258_s24 + $0x44] ss:$24 sps:$4 sm:$0xff]  }
  0x58   : > { %3150 = vmatprep.subr.bf16.mxu1 %v13654_v38  ;;  %v9430_v25 = vld [vmem:[%s10258_s24 + $0x164] ss:$24 sps:$4 sm:$0xff]  }
  0x59   : > { %8648 = vmatpush3.bf16.msra.mxu0 %v9373_v3  ;;  %v9433_v3 = vld [vmem:[%s10384_s1 + $0x14] ss:$8 sps:$4 sm:$0xff]  }
  0x5a   : > { %8649 = vmatprep.subr.bf16.mxu0 %v9377_v4  ;;  %v9400_v4 = vld [vmem:[%s10258_s24 + $0x40] ss:$24 sps:$4 sm:$0xff]  }
  0x5b   : > { %3151 = vmatpush1.bf16.msra.mxu1 %v9406_v28  ;;  %v9432_v28 = vld [vmem:[%s10258_s24 + $0x160] ss:$24 sps:$4 sm:$0xff]  }
  0x5c   : > { %1838 = vmatmul.mubr.bf16.gmra.mrb[8].mxu0 %v9296_v43  ;;  %3152 = vmatprep.subr.bf16.mxu1 %v13654_v38  ;;  %v9358_v43 = vld [vmem:[%s10258_s24 + $0x24c] ss:$24 sps:$4 sm:$0xff]  }
  0x5d   : > { %1845 = vmatprep.mubr.bf16.mxu0 %v9300_v44  ;;  %8650 = vmatpush3.bf16.msra.mxu0 %v9380_v8  ;;  %v9417_v44 = vld [vmem:[%s13735_s6 + $0x40] sm:$0xff]   ;;  %v9405_v8 = vld [vmem:[%s10258_s24 + $0x70] ss:$24 sps:$4 sm:$0xff]  }
  0x5e   : > { %1999 = vmatmul.mubr.bf16.gmra.mrb[8].mxu1 %v9299_v45  ;;  %8651 = vmatprep.subr.bf16.mxu0 %v9382_v9  ;;  %v9356_v45 = vld [vmem:[%s10258_s24 + $0x240] ss:$24 sps:$4 sm:$0xff]   ;;  %v9408_v9 = vld [vmem:[%s10258_s24 + $0xa4] ss:$24 sps:$4 sm:$0xff]  }
  0x5f   : > { %2006 = vmatprep.mubr.bf16.mxu1 %v9303_v46  ;;  %3153 = vmatpush1.bf16.msra.mxu1 %v9407_v31  ;;  %v9364_v46 = vld [vmem:[%s10258_s24 + $0x274] ss:$24 sps:$4 sm:$0xff]  }
  0x60   : > { %3154 = vmatprep.subr.bf16.mxu1 %v13654_v38  ;;  %v9475_v31 = vld [vmem:[%s10384_s1 + $0x84] ss:$8 sps:$4 sm:$0xff]  }
  0x61   : > { %8652 = vmatpush3.bf16.msra.mxu0 %v9383_v11  ;;  %v9445_v11 = vld [vmem:[%s10384_s1 + $0x34] ss:$8 sps:$4 sm:$0xff]  }
  0x62   : > { %8653 = vmatprep.subr.bf16.mxu0 %v9387_v12  ;;  %v9410_v12 = vld [vmem:[%s10258_s24 + $0xa0] ss:$24 sps:$4 sm:$0xff]  }
  0x63   : > { %3155 = vmatpush1.bf16.msra.mxu1 %v9411_v34  ;;  %v9477_v34 = vld [vmem:[%s10384_s1 + $0x80] ss:$8 sps:$4 sm:$0xff]  }
  0x64   : > { %1846 = vmatmul.mubr.bf16.gmra.mrb[12].mxu0 %v9302_v47  ;;  %3156 = vmatprep.subr.bf16.mxu1 %v13654_v38  ;;  %v9421_v47 = vld [vmem:[%s13735_s6 + $0x48] sm:$0xff]  }
  0x65   : > { %1853 = vmatprep.mubr.bf16.mxu0 %v9306_v48  ;;  %8654 = vmatpush3.bf16.msra.mxu0 %v9390_v15  ;;  %v9361_v48 = vld [vmem:[%s10258_s24 + $0x248] ss:$24 sps:$4 sm:$0xff]   ;;  %v9451_v15 = vld [vmem:[%s10384_s1 + $0x44] ss:$8 sps:$4 sm:$0xff]  }
  0x66   : > { %2007 = vmatmul.mubr.bf16.gmra.mrb[12].mxu1 %v9305_v49  ;;  %8655 = vmatprep.subr.bf16.mxu0 %v9392_v17  ;;  %v9368_v49 = vld [vmem:[%s10258_s24 + $0x27c] ss:$24 sps:$4 sm:$0xff]  }
  0x67   : > { %2014 = vmatprep.mubr.bf16.mxu1 %v9309_v50  ;;  %3157 = vmatpush1.bf16.msra.mxu1 %v9412_v37  ;;  %v9422_v50 = vld [vmem:[%s13735_s6 + $0x50] sm:$0xff]   ;;  %v9418_v17 = vld [vmem:[%s10258_s24 + $0x104] ss:$24 sps:$4 sm:$0xff]  }
  0x68   : > { %3158 = vmatprep.subr.bf16.mxu1 %v13654_v38  ;;  %v9448_v37 = vld [vmem:[%s10258_s24 + $0x1f4] ss:$24 sps:$4 sm:$0xff]  }
  0x69   : > { %8656 = vmatpush3.bf16.msra.mxu0 %v9393_v20  ;;  %v9420_v20 = vld [vmem:[%s10258_s24 + $0x100] ss:$24 sps:$4 sm:$0xff]  }
  0x6b   : > { %3159 = vmatpush1.bf16.msra.mxu1 %v9416_v41  ;;  %v9450_v41 = vld [vmem:[%s10258_s24 + $0x1f0] ss:$24 sps:$4 sm:$0xff]  }
  0x6c   : > { %1854 = vmatmul.mubr.bf16.gmra.mrb[16].mxu0 %v9308_v51  ;;  %3160 = vmatprep.subr.bf16.mxu1 %v13654_v38  ;;  %v9366_v51 = vld [vmem:[%s10258_s24 + $0x270] ss:$24 sps:$4 sm:$0xff]  }
  0x6d   : > { %1861 = vmatprep.mubr.bf16.mxu0 %v9312_v52  ;;  %v9374_v52 = vld [vmem:[%s10258_s24 + $0x2a4] ss:$24 sps:$4 sm:$0xff]  }
  0x6e   : > { %2015 = vmatmul.mubr.bf16.gmra.mrb[16].mxu1 %v9311_v53  ;;  %v9426_v53 = vld [vmem:[%s13735_s6 + $0x58] sm:$0xff]  }
  0x6f   : > { %2022 = vmatprep.mubr.bf16.mxu1 %v9315_v55  ;;  %3161 = vmatpush1.bf16.msra.mxu1 %v9417_v44  ;;  %v9378_v55 = vld [vmem:[%s10258_s24 + $0x2ac] ss:$24 sps:$4 sm:$0xff]   ;;  %v9487_v44 = vld [vmem:[%s10384_s1 + $0xb4] ss:$8 sps:$4 sm:$0xff]  }
  0x70   : > { %3162 = vmatprep.subr.bf16.mxu1 %v13654_v38 }
  0x73   : > { %3163 = vmatpush1.bf16.msra.mxu1 %v9421_v47 }
  0x74   : > { %1862 = vmatmul.mubr.bf16.gmra.mrb[20].mxu0 %v9314_v59  ;;  %3164 = vmatprep.subr.bf16.mxu1 %v13654_v38  ;;  %v9388_v59 = vld [vmem:[%s10258_s24 + $0x2dc] ss:$24 sps:$4 sm:$0xff]  }
  0x75   : > { %1869 = vmatprep.mubr.bf16.mxu0 %v9318_v60  ;;  %v9386_v60 = vld [vmem:[%s10258_s24 + $0x2d0] ss:$24 sps:$4 sm:$0xff]  }
  0x76   : > { %2023 = vmatmul.mubr.bf16.gmra.mrb[20].mxu1 %v9317_v62  ;;  %v9391_v62 = vld [vmem:[%s10258_s24 + $0x2d8] ss:$24 sps:$4 sm:$0xff]  }
  0x77   : > { %2030 = vmatprep.mubr.bf16.mxu1 %v9321_v0  ;;  %3165 = vmatpush1.bf16.msra.mxu1 %v9422_v50  ;;  %v9394_v0 = vld [vmem:[%s10258_s24 + $0x10] ss:$24 sps:$4 sm:$0xff]  }
  0x78   : > { %3166 = vmatprep.subr.bf16.mxu1 %v13654_v38 }
  0x7b   : > { %3167 = vmatpush1.bf16.msra.mxu1 %v9426_v53 }
  0x7c   : > { %1870 = vmatmul.mubr.bf16.gmra.mrb[24].mxu0 %v9320_v2  ;;  %v9427_v2 = vld [vmem:[%s10384_s1] ss:$8 sps:$4 sm:$0xff]  }
  0x7d   : > { %1877 = vmatprep.mubr.bf16.mxu0 %v9324_v5  ;;  %v9403_v5 = vld [vmem:[%s10258_s24 + $0x74] ss:$24 sps:$4 sm:$0xff]  }
  0x7e   : > { %2031 = vmatmul.mubr.bf16.gmra.mrb[24].mxu1 %v9323_v6  ;;  %v9435_v6 = vld [vmem:[%s10384_s1 + $0x10] ss:$8 sps:$4 sm:$0xff]  }
  0x7f   : > { %2038 = vmatprep.mubr.bf16.mxu1 %v9327_v7  ;;  %v9439_v7 = vld [vmem:[%s10384_s1 + $0x24] ss:$8 sps:$4 sm:$0xff]  }
  0x84   : > { %1878 = vmatmul.mubr.bf16.gmra.mrb[28].mxu0 %v9326_v10  ;;  %v9441_v10 = vld [vmem:[%s10384_s1 + $0x20] ss:$8 sps:$4 sm:$0xff]  }
  0x85   : > { %1885 = vmatprep.mubr.bf16.mxu0 %v9330_v13  ;;  %v9413_v13 = vld [vmem:[%s10258_s24 + $0xd4] ss:$24 sps:$4 sm:$0xff]  }
  0x86   : > { %2039 = vmatmul.mubr.bf16.gmra.mrb[28].mxu1 %v9329_v14  ;;  %v9447_v14 = vld [vmem:[%s10384_s1 + $0x30] ss:$8 sps:$4 sm:$0xff]  }
  0x87   : > { %2046 = vmatprep.mubr.bf16.mxu1 %v9333_v16  ;;  %v9415_v16 = vld [vmem:[%s10258_s24 + $0xd0] ss:$24 sps:$4 sm:$0xff]  }
  0x8c   : > { %1886 = vmatmul.mubr.bf16.gmra.mrb[32].mxu0 %v9332_v19  ;;  %v9457_v19 = vld [vmem:[%s10384_s1 + $0x54] ss:$8 sps:$4 sm:$0xff]  }
  0x8d   : > { %1893 = vmatprep.mubr.bf16.mxu0 %v9336_v21  ;;  %v9423_v21 = vld [vmem:[%s10258_s24 + $0x134] ss:$24 sps:$4 sm:$0xff]  }
  0x8e   : > { %2047 = vmatmul.mubr.bf16.gmra.mrb[32].mxu1 %v9335_v23  ;;  %v9463_v23 = vld [vmem:[%s10384_s1 + $0x64] ss:$8 sps:$4 sm:$0xff]  }
  0x8f   : > { %2054 = vmatprep.mubr.bf16.mxu1 %v9339_v24  ;;  %v9425_v24 = vld [vmem:[%s10258_s24 + $0x130] ss:$24 sps:$4 sm:$0xff]  }
  0x94   : > { %1894 = vmatmul.mubr.bf16.gmra.mrb[36].mxu0 %v9338_v26  ;;  %v9465_v26 = vld [vmem:[%s10384_s1 + $0x60] ss:$8 sps:$4 sm:$0xff]  }
  0x95   : > { %1901 = vmatprep.mubr.bf16.mxu0 %v9342_v27  ;;  %v9469_v27 = vld [vmem:[%s10384_s1 + $0x74] ss:$8 sps:$4 sm:$0xff]  }
  0x96   : > { %2055 = vmatmul.mubr.bf16.gmra.mrb[36].mxu1 %v9341_v29  ;;  %v9436_v29 = vld [vmem:[%s10258_s24 + $0x194] ss:$24 sps:$4 sm:$0xff]  }
  0x97   : > { %2062 = vmatprep.mubr.bf16.mxu1 %v9345_v30  ;;  %v9471_v30 = vld [vmem:[%s10384_s1 + $0x70] ss:$8 sps:$4 sm:$0xff]  }
  0x9c   : > { %1902 = vmatmul.mubr.bf16.gmra.mrb[40].mxu0 %v9344_v32  ;;  %v9438_v32 = vld [vmem:[%s10258_s24 + $0x190] ss:$24 sps:$4 sm:$0xff]  }
  0x9d   : > { %1909 = vmatprep.mubr.bf16.mxu0 %v9348_v33  ;;  %v9442_v33 = vld [vmem:[%s10258_s24 + $0x1c4] ss:$24 sps:$4 sm:$0xff]  }
  0x9e   : > { %2063 = vmatmul.mubr.bf16.gmra.mrb[40].mxu1 %v9347_v35  ;;  %v9481_v35 = vld [vmem:[%s10384_s1 + $0x94] ss:$8 sps:$4 sm:$0xff]  }
  0x9f   : > { %2070 = vmatprep.mubr.bf16.mxu1 %v9351_v36  ;;  %v9444_v36 = vld [vmem:[%s10258_s24 + $0x1c0] ss:$24 sps:$4 sm:$0xff]  }
  0xa4   : > { %1910 = vmatmul.mubr.bf16.gmra.mrb[44].mxu0 %v9350_v39  ;;  %v9483_v39 = vld [vmem:[%s10384_s1 + $0x90] ss:$8 sps:$4 sm:$0xff]  }
  0xa5   : > { %1917 = vmatprep.mubr.bf16.mxu0 %v9354_v40  ;;  %v9484_v40 = vld [vmem:[%s10384_s1 + $0xa4] ss:$8 sps:$4 sm:$0xff]  }
  0xa6   : > { %2071 = vmatmul.mubr.bf16.gmra.mrb[44].mxu1 %v9353_v42  ;;  %v9454_v42 = vld [vmem:[%s10258_s24 + $0x224] ss:$24 sps:$4 sm:$0xff]  }
  0xa7   : > { %2078 = vmatprep.mubr.bf16.mxu1 %v9358_v43  ;;  %v9486_v43 = vld [vmem:[%s10384_s1 + $0xa0] ss:$8 sps:$4 sm:$0xff]  }
  0xac   : > { %1918 = vmatmul.mubr.bf16.gmra.mrb[48].mxu0 %v9356_v45 }
  0xad   : > { %1925 = vmatprep.mubr.bf16.mxu0 %v9364_v46  ;;  %v10495_v46 = vld [vmem:[%s13737_s5] ss:$0 sm:$0xff] }
  0xae   : > { %2079 = vmatmul.mubr.bf16.gmra.mrb[48].mxu1 %v9361_v48  ;;  %v9456_v48 = vld [vmem:[%s10258_s24 + $0x220] ss:$24 sps:$4 sm:$0xff]  }
  0xaf   : > { %2086 = vmatprep.mubr.bf16.mxu1 %v9368_v49 }
  0xb4   : > { %1926 = vmatmul.mubr.bf16.gmra.mrb[52].mxu0 %v9366_v51  ;;  %v9460_v51 = vld [vmem:[%s10258_s24 + $0x254] ss:$24 sps:$4 sm:$0xff]  }
  0xb5   : > { %1933 = vmatprep.mubr.bf16.mxu0 %v9374_v52 }
  0xb6   : > { %2087 = vmatmul.mubr.bf16.gmra.mrb[52].mxu1 %v9371_v54 }
  0xb7   : > { %2094 = vmatprep.mubr.bf16.mxu1 %v9378_v55 }
  0xbc   : > { %1934 = vmatmul.mubr.bf16.gmra.mrb[56].mxu0 %v9376_v56 }
  0xbd   : > { %1941 = vmatprep.mubr.bf16.mxu0 %v9384_v57  ;;  %v9489_v57 = vld [vmem:[%s10384_s1 + $0xb0] ss:$8 sps:$4 sm:$0xff]  }
  0xbe   : > { %2095 = vmatmul.mubr.bf16.gmra.mrb[56].mxu1 %v9381_v58 }
  0xbf   : > { %2102 = vmatprep.mubr.bf16.mxu1 %v9388_v59 }
  0xc4   : > { %1942 = vmatmul.mubr.bf16.gmra.mrb[60].mxu0 %v9386_v60  ;;  %v9490_v60 = vld [vmem:[%s10384_s1 + $0xc4] ss:$8 sps:$4 sm:$0xff]  }
  0xc5   : > { %2143 = vmatprep.mubr.bf16.mxu0 %v9396_v61 }
  0xc6   : > { %2103 = vmatmul.mubr.bf16.gmra.mrb[60].mxu1 %v9391_v62 }
  0xc7   : > { %8093 = vmatprep.mubr.msk.bf16.mxu1 %vm2951_vm0, %v9429_v63 }
  0xcc   : > { %2144 = vmatmul.mubr.bf16.vlgmr.msra.gmra.mrb[64].mxu0 %v9394_v0 }
  0xcd   : > { %2151 = vmatprep.mubr.bf16.mxu0 %v9398_v1 }
  0xce   : > { %3177 = vmatmul.mubr.bf16.vlgmr.msra.gmra.mrb[64].mxu1 %v9427_v2 }
  0xcf   : > { %8094 = vmatprep.mubr.msk.bf16.mxu1 %vm2951_vm0, %v9433_v3 }
  0xd4   : > { %2152 = vmatmul.mubr.bf16.gmra.mrb[68].mxu0 %v9400_v4  ;;  %v9462_v4 = vld [vmem:[%s10258_s24 + $0x250] ss:$24 sps:$4 sm:$0xff]  }
  0xd5   : > { %2159 = vmatprep.mubr.bf16.mxu0 %v9403_v5  ;;  %v9520_v5 = vld [vmem:[%s13631_s8] sm:$0xff]  }
  0xd6   : > { %3185 = vmatmul.mubr.bf16.gmra.mrb[68].mxu1 %v9435_v6  ;;  %8968 = vmatprep.subr.bf16.mxu0 %v9520_v5 }
  0xd7   : > { %8095 = vmatprep.mubr.msk.bf16.mxu1 %vm2951_vm0, %v9439_v7  ;;  %9004 = vmatprep.subr.bf16.mxu1 %v9520_v5 }
  0xd8   : > { %8969 = vmatpush3.bf16.msra.mxu0 %v9520_v5  ;;  %9005 = vmatpush3.bf16.msra.mxu1 %v9520_v5 }
  0xdc   : > { %2160 = vmatmul.mubr.bf16.gmra.mrb[72].mxu0 %v9405_v8  ;;  %v9466_v8 = vld [vmem:[%s10258_s24 + $0x284] ss:$24 sps:$4 sm:$0xff]  }
  0xdd   : > { %2167 = vmatprep.mubr.bf16.mxu0 %v9408_v9 }
  0xde   : > { %3193 = vmatmul.mubr.bf16.gmra.mrb[72].mxu1 %v9441_v10 }
  0xdf   : > { %8096 = vmatprep.mubr.msk.bf16.mxu1 %vm2951_vm0, %v9445_v11 }
  0xe4   : > { %2168 = vmatmul.mubr.bf16.gmra.mrb[76].mxu0 %v9410_v12 }
  0xe5   : > { %2175 = vmatprep.mubr.bf16.mxu0 %v9413_v13 }
  0xe6   : > { %3201 = vmatmul.mubr.bf16.gmra.mrb[76].mxu1 %v9447_v14  ;;  %v9492_v14 = vld [vmem:[%s10384_s1 + $0xc0] ss:$8 sps:$4 sm:$0xff]  }
  0xe7   : > { %8097 = vmatprep.mubr.msk.bf16.mxu1 %vm2951_vm0, %v9451_v15 }
  0xec   : > { %2176 = vmatmul.mubr.bf16.gmra.mrb[80].mxu0 %v9415_v16 }
  0xed   : > { %2183 = vmatprep.mubr.bf16.mxu0 %v9418_v17  ;;  %v9493_v17 = vld [vmem:[%s10384_s1 + $0xd4] ss:$8 sps:$4 sm:$0xff]  }
  0xee   : > { %3209 = vmatmul.mubr.bf16.gmra.mrb[80].mxu1 %v9453_v18  ;;  %v9521_v18 = vld [vmem:[%s13631_s8 + $0x8] sm:$0xff]  }
  0xef   : > { %8098 = vmatprep.mubr.msk.bf16.mxu1 %vm2951_vm0, %v9457_v19  ;;  %8970 = vmatprep.subr.bf16.mxu0 %v9521_v18 }
  0xf0   : > { %9006 = vmatprep.subr.bf16.mxu1 %v9521_v18  ;;  %8971 = vmatpush3.bf16.msra.mxu0 %v9521_v18 }
  0xf1   : > { %4779 = vmatprep.subr.bf16.mxu0 %v13654_v38  ;;  %9007 = vmatpush3.bf16.msra.mxu1 %v9521_v18  ;;  %v9606_v38 = vld [vmem:[%s10384_s1 + $0x320] ss:$8 sps:$4 sm:$0xff]  }
  0xf4   : > { %2184 = vmatmul.mubr.bf16.gmra.mrb[84].mxu0 %v9420_v20 }
  0xf5   : > { %2191 = vmatprep.mubr.bf16.mxu0 %v9423_v21 }
  0xf6   : > { %3217 = vmatmul.mubr.bf16.gmra.mrb[84].mxu1 %v9459_v22 }
  0xf7   : > { %8099 = vmatprep.mubr.msk.bf16.mxu1 %vm2951_vm0, %v9463_v23 }
  0xfc   : > { %2192 = vmatmul.mubr.bf16.gmra.mrb[88].mxu0 %v9425_v24 }
  0xfd   : > { %2199 = vmatprep.mubr.bf16.mxu0 %v9430_v25 }
  0xfe   : > { %3225 = vmatmul.mubr.bf16.gmra.mrb[88].mxu1 %v9465_v26  ;;  %v9468_v26 = vld [vmem:[%s10258_s24 + $0x280] ss:$24 sps:$4 sm:$0xff]  }
  0xff   : > { %8100 = vmatprep.mubr.msk.bf16.mxu1 %vm2951_vm0, %v9469_v27 }
 0x104   : > { %2200 = vmatmul.mubr.bf16.gmra.mrb[92].mxu0 %v9432_v28 }
 0x105   : > { %2207 = vmatprep.mubr.bf16.mxu0 %v9436_v29  ;;  %v9472_v29 = vld [vmem:[%s10258_s24 + $0x2b4] ss:$24 sps:$4 sm:$0xff]  }
 0x106   : > { %3233 = vmatmul.mubr.bf16.gmra.mrb[92].mxu1 %v9471_v30 }
 0x107   : > { %8101 = vmatprep.mubr.msk.bf16.mxu1 %vm2951_vm0, %v9475_v31 }
 0x10c   : > { %2208 = vmatmul.mubr.bf16.gmra.mrb[96].mxu0 %v9438_v32 }
 0x10d   : > { %2215 = vmatprep.mubr.bf16.mxu0 %v9442_v33 }
 0x10e   : > { %3241 = vmatmul.mubr.bf16.gmra.mrb[96].mxu1 %v9477_v34 }
 0x10f   : > { %8102 = vmatprep.mubr.msk.bf16.mxu1 %vm2951_vm0, %v9481_v35  ;;  %v9495_v35 = vld [vmem:[%s10384_s1 + $0xd0] ss:$8 sps:$4 sm:$0xff]  }
 0x114   : > { %2216 = vmatmul.mubr.bf16.gmra.mrb[100].mxu0 %v9444_v36 }
 0x115   : > { %2223 = vmatprep.mubr.bf16.mxu0 %v9448_v37 }
 0x116   : > { %3249 = vmatmul.mubr.bf16.gmra.mrb[100].mxu1 %v9483_v39  ;;  %v9496_v39 = vld [vmem:[%s10384_s1 + $0xe4] ss:$8 sps:$4 sm:$0xff]  }
 0x117   : > { %8103 = vmatprep.mubr.msk.bf16.mxu1 %vm2951_vm0, %v9484_v40 }
 0x11c   : > { %2224 = vmatmul.mubr.bf16.gmra.mrb[104].mxu0 %v9450_v41 }
 0x11d   : > { %2231 = vmatprep.mubr.bf16.mxu0 %v9454_v42 }
 0x11e   : > { %3257 = vmatmul.mubr.bf16.gmra.mrb[104].mxu1 %v9486_v43 }
 0x11f   : > { %v8433_v45 = vpop.f32.mrb[0].mxu0  ;;  %8104 = vmatprep.mubr.msk.bf16.mxu1 %vm2951_vm0, %v9487_v44 }
 0x120   : > { %v8434_v47 = vpop.f32.mrb[1].mxu0 }
 0x121   : > { %v8435_v49 = vadd.f32 %v8434_v47, %v8433_v45  ;;  %v8436_v50 = vpop.f32.mrb[2].mxu0  ;;  %v8545_v52 = vpop.f32.mrb[0].mxu1 }
 0x122   : > { %v8437_v53 = vpop.f32.mrb[3].mxu0  ;;  %v8546_v56 = vpop.f32.mrb[1].mxu1 }
 0x123   : > { %v1824_v54 = vadd.f32 %v8435_v49, %v10495_v46  ;;  %v8438_v55 = vadd.f32 %v8437_v53, %v8436_v50  ;;  %v8547_v58 = vadd.f32 %v8546_v56, %v8545_v52  ;;  %v8548_v59 = vpop.f32.mrb[2].mxu1 }
 0x124   : > { %2232 = vmatmul.mubr.bf16.gmra.mrb[108].mxu0 %v9456_v48  ;;  %v8549_v62 = vpop.f32.mrb[3].mxu1  ;;  %v9474_v48 = vld [vmem:[%s10258_s24 + $0x2b0] ss:$24 sps:$4 sm:$0xff]  }
 0x125   : > { %v1827_v61 = vadd.f32 %v8438_v55, %v10495_v46  ;;  %2239 = vmatprep.mubr.bf16.mxu0 %v9460_v51  ;;  %v10504_v63 = vadd.f32 %v8547_v58, %v1824_v54  ;;  %v8550_v0 = vadd.f32 %v8549_v62, %v8548_v59  ;;  %v9478_v51 = vld [vmem:[%s10258_s24 + $0x2e4] ss:$24 sps:$4 sm:$0xff]  }
 0x126   : > { %3265 = vmatmul.mubr.bf16.gmra.mrb[108].mxu1 %v9489_v57  ;;  %v9498_v57 = vld [vmem:[%s10384_s1 + $0xe0] ss:$8 sps:$4 sm:$0xff]  }
 0x127   : > { %v8439_v1 = vpop.f32.mrb[4].mxu0  ;;  %v10506_v2 = vadd.f32 %v8550_v0, %v1827_v61  ;;  %8105 = vmatprep.mubr.msk.bf16.mxu1 %vm2951_vm0, %v9490_v60  ;;  %v9499_v60 = vld [vmem:[%s10384_s1 + $0xf4] ss:$8 sps:$4 sm:$0xff]  }
 0x128   : > { %v8440_v3 = vpop.f32.mrb[5].mxu0 }
 0x129   : > { %v8441_v6 = vadd.f32 %v8440_v3, %v8439_v1  ;;  %v8442_v7 = vpop.f32.mrb[6].mxu0  ;;  %v8551_v9 = vpop.f32.mrb[4].mxu1 }
 0x12a   : > { %v8443_v10 = vpop.f32.mrb[7].mxu0  ;;  %v8552_v13 = vpop.f32.mrb[5].mxu1 }
 0x12b   : > { %v1832_v11 = vadd.f32 %v8441_v6, %v10495_v46  ;;  %v8444_v12 = vadd.f32 %v8443_v10, %v8442_v7  ;;  %v8553_v15 = vadd.f32 %v8552_v13, %v8551_v9  ;;  %v8554_v16 = vpop.f32.mrb[6].mxu1  ;;  %v9480_v6 = vld [vmem:[%s10258_s24 + $0x2e0] ss:$24 sps:$4 sm:$0xff]   ;;  %s10966_s24 = sand.u32 1, %s9993_s22  }
 0x12c   : > { %2240 = vmatmul.mubr.bf16.gmra.mrb[112].mxu0 %v9462_v4  ;;  %v8555_v20 = vpop.f32.mrb[7].mxu1  ;;  %s661_s29 = scalar_lea.vmem [#allocation2], %s10966_s24 }
 0x12d   : > { %v1835_v19 = vadd.f32 %v8444_v12, %v10495_v46  ;;  %2247 = vmatprep.mubr.bf16.mxu0 %v9466_v8  ;;  %v10521_v21 = vadd.f32 %v8553_v15, %v1832_v11  ;;  %v8556_v22 = vadd.f32 %v8555_v20, %v8554_v16 }
 0x12e   : > { %3273 = vmatmul.mubr.bf16.gmra.mrb[112].mxu1 %v9492_v14  ;;  %v9501_v14 = vld [vmem:[%s10384_s1 + $0xf0] ss:$8 sps:$4 sm:$0xff]  }
 0x12f   : > { %v8445_v23 = vpop.f32.mrb[8].mxu0  ;;  %v10523_v24 = vadd.f32 %v8556_v22, %v1835_v19  ;;  %8106 = vmatprep.mubr.msk.bf16.mxu1 %vm2951_vm0, %v9493_v17  ;;  %v9502_v17 = vld [vmem:[%s10384_s1 + $0x104] ss:$8 sps:$4 sm:$0xff]  }
 0x130   : > { %v8446_v25 = vpop.f32.mrb[9].mxu0 }
 0x131   : > { %v8447_v27 = vadd.f32 %v8446_v25, %v8445_v23  ;;  %v8448_v28 = vpop.f32.mrb[10].mxu0  ;;  %v8557_v30 = vpop.f32.mrb[8].mxu1 }
 0x132   : > { %v8449_v31 = vpop.f32.mrb[11].mxu0  ;;  %v8558_v34 = vpop.f32.mrb[9].mxu1 }
 0x133   : > { %v1840_v32 = vadd.f32 %v8447_v27, %v10495_v46  ;;  %v8450_v33 = vadd.f32 %v8449_v31, %v8448_v28  ;;  %v8559_v36 = vadd.f32 %v8558_v34, %v8557_v30  ;;  %v8560_v37 = vpop.f32.mrb[10].mxu1  ;;  %v9504_v34 = vld [vmem:[%s10384_s1 + $0x100] ss:$8 sps:$4 sm:$0xff]  }
 0x134   : > { %2248 = vmatmul.mubr.bf16.gmra.mrb[116].mxu0 %v9468_v26  ;;  %v8561_v41 = vpop.f32.mrb[11].mxu1 }
 0x135   : > { %v1843_v40 = vadd.f32 %v8450_v33, %v10495_v46  ;;  %2255 = vmatprep.mubr.bf16.mxu0 %v9472_v29  ;;  %v10533_v42 = vadd.f32 %v8559_v36, %v1840_v32  ;;  %v8562_v43 = vadd.f32 %v8561_v41, %v8560_v37  ;;  %v9505_v37 = vld [vmem:[%s10384_s1 + $0x114] ss:$8 sps:$4 sm:$0xff]  }
 0x136   : > { %3281 = vmatmul.mubr.bf16.gmra.mrb[116].mxu1 %v9495_v35 }
 0x137   : > { %v8451_v44 = vpop.f32.mrb[12].mxu0  ;;  %v10535_v45 = vadd.f32 %v8562_v43, %v1843_v40  ;;  %8107 = vmatprep.mubr.msk.bf16.mxu1 %vm2951_vm0, %v9496_v39 }
 0x138   : > { %v8452_v47 = vpop.f32.mrb[13].mxu0 }
 0x139   : > { %v8453_v49 = vadd.f32 %v8452_v47, %v8451_v44  ;;  %v8454_v50 = vpop.f32.mrb[14].mxu0  ;;  %v8563_v52 = vpop.f32.mrb[12].mxu1 }
 0x13a   : > { %v8455_v53 = vpop.f32.mrb[15].mxu0  ;;  %v8564_v56 = vpop.f32.mrb[13].mxu1 }
 0x13b   : > { %v1848_v54 = vadd.f32 %v8453_v49, %v10495_v46  ;;  %v8456_v55 = vadd.f32 %v8455_v53, %v8454_v50  ;;  %v8565_v58 = vadd.f32 %v8564_v56, %v8563_v52  ;;  %v8566_v59 = vpop.f32.mrb[14].mxu1  ;;  %v9507_v56 = vld [vmem:[%s10384_s1 + $0x110] ss:$8 sps:$4 sm:$0xff]  }
 0x13c   : > { %2256 = vmatmul.mubr.bf16.gmra.mrb[120].mxu0 %v9474_v48  ;;  %v8567_v62 = vpop.f32.mrb[15].mxu1 }
 0x13d   : > { %v1851_v61 = vadd.f32 %v8456_v55, %v10495_v46  ;;  %2263 = vmatprep.mubr.bf16.mxu0 %v9478_v51  ;;  %v10544_v0 = vadd.f32 %v8565_v58, %v1848_v54  ;;  %v8568_v1 = vadd.f32 %v8567_v62, %v8566_v59  ;;  %v9508_v59 = vld [vmem:[%s10384_s1 + $0x124] ss:$8 sps:$4 sm:$0xff]  }
 0x13e   : > { %3289 = vmatmul.mubr.bf16.gmra.mrb[120].mxu1 %v9498_v57 }
 0x13f   : > { %v8457_v3 = vpop.f32.mrb[16].mxu0  ;;  %v10546_v4 = vadd.f32 %v8568_v1, %v1851_v61  ;;  %8108 = vmatprep.mubr.msk.bf16.mxu1 %vm2951_vm0, %v9499_v60 }
 0x140   : > { %v8458_v5 = vpop.f32.mrb[17].mxu0 }
 0x141   : > { %v8459_v7 = vadd.f32 %v8458_v5, %v8457_v3  ;;  %v8460_v8 = vpop.f32.mrb[18].mxu0  ;;  %v8569_v9 = vpop.f32.mrb[16].mxu1 }
 0x142   : > { %v8461_v10 = vpop.f32.mrb[19].mxu0  ;;  %v8570_v13 = vpop.f32.mrb[17].mxu1 }
 0x143   : > { %v1856_v11 = vadd.f32 %v8459_v7, %v10495_v46  ;;  %v8462_v12 = vadd.f32 %v8461_v10, %v8460_v8  ;;  %v8571_v15 = vadd.f32 %v8570_v13, %v8569_v9  ;;  %v8572_v16 = vpop.f32.mrb[18].mxu1 }
 0x144   : > { %2264 = vmatmul.mubr.bf16.gmra.mrb[124].mxu0 %v9480_v6  ;;  %v8573_v19 = vpop.f32.mrb[19].mxu1 }
 0x145   : > { %v1859_v18 = vadd.f32 %v8462_v12, %v10495_v46  ;;  %v10554_v20 = vadd.f32 %v8571_v15, %v1856_v11  ;;  %v8574_v22 = vadd.f32 %v8573_v19, %v8572_v16 }
 0x146   : > { %3297 = vmatmul.mubr.bf16.gmra.mrb[124].mxu1 %v9501_v14  ;;  %v9510_v14 = vld [vmem:[%s10384_s1 + $0x120] ss:$8 sps:$4 sm:$0xff]  }
 0x147   : > { %v8463_v23 = vpop.f32.mrb[20].mxu0  ;;  %v10556_v25 = vadd.f32 %v8574_v22, %v1859_v18  ;;  %8109 = vmatprep.mubr.msk.bf16.mxu1 %vm2951_vm0, %v9502_v17  ;;  %v9511_v17 = vld [vmem:[%s10384_s1 + $0x134] ss:$8 sps:$4 sm:$0xff]  }
 0x148   : > { %v8464_v26 = vpop.f32.mrb[21].mxu0 }
 0x149   : > { %v8465_v27 = vadd.f32 %v8464_v26, %v8463_v23  ;;  %v8466_v28 = vpop.f32.mrb[22].mxu0  ;;  %v8575_v29 = vpop.f32.mrb[20].mxu1 }
 0x14a   : > { %v8467_v30 = vpop.f32.mrb[23].mxu0  ;;  %v8576_v33 = vpop.f32.mrb[21].mxu1 }
 0x14b   : > { %v1864_v31 = vadd.f32 %v8465_v27, %v10495_v46  ;;  %v8468_v32 = vadd.f32 %v8467_v30, %v8466_v28  ;;  %v8577_v35 = vadd.f32 %v8576_v33, %v8575_v29  ;;  %v8578_v36 = vpop.f32.mrb[22].mxu1 }
 0x14c   : > { %v8579_v40 = vpop.f32.mrb[23].mxu1 }
 0x14d   : > { %v1867_v39 = vadd.f32 %v8468_v32, %v10495_v46  ;;  %v10563_v41 = vadd.f32 %v8577_v35, %v1864_v31  ;;  %v8580_v43 = vadd.f32 %v8579_v40, %v8578_v36  ;;  %v9513_v36 = vld [vmem:[%s10384_s1 + $0x130] ss:$8 sps:$4 sm:$0xff]   ;;  %v9514_v40 = vld [vmem:[%s10384_s1 + $0x144] ss:$8 sps:$4 sm:$0xff]  }
 0x14e   : > { %3305 = vmatmul.mubr.bf16.gmra.mrb[128].mxu1 %v9504_v34 }
 0x14f   : > { %v8469_v44 = vpop.f32.mrb[24].mxu0  ;;  %v10565_v47 = vadd.f32 %v8580_v43, %v1867_v39  ;;  %8110 = vmatprep.mubr.msk.bf16.mxu1 %vm2951_vm0, %v9505_v37 }
 0x150   : > { %v8470_v48 = vpop.f32.mrb[25].mxu0 }
 0x151   : > { %v8471_v49 = vadd.f32 %v8470_v48, %v8469_v44  ;;  %v8472_v50 = vpop.f32.mrb[26].mxu0  ;;  %v8581_v51 = vpop.f32.mrb[24].mxu1 }
 0x152   : > { %v8473_v52 = vpop.f32.mrb[27].mxu0  ;;  %v8582_v55 = vpop.f32.mrb[25].mxu1 }
 0x153   : > { %v1872_v53 = vadd.f32 %v8471_v49, %v10495_v46  ;;  %v8474_v54 = vadd.f32 %v8473_v52, %v8472_v50  ;;  %v8583_v57 = vadd.f32 %v8582_v55, %v8581_v51  ;;  %v8584_v58 = vpop.f32.mrb[26].mxu1 }
 0x154   : > { %v8585_v61 = vpop.f32.mrb[27].mxu1 }
 0x155   : > { %v1875_v60 = vadd.f32 %v8474_v54, %v10495_v46  ;;  %v10572_v62 = vadd.f32 %v8583_v57, %v1872_v53  ;;  %v8586_v1 = vadd.f32 %v8585_v61, %v8584_v58 }
 0x156   : > { %3313 = vmatmul.mubr.bf16.gmra.mrb[132].mxu1 %v9507_v56 }
 0x157   : > { %v8475_v3 = vpop.f32.mrb[28].mxu0  ;;  %v10574_v5 = vadd.f32 %v8586_v1, %v1875_v60  ;;  %8111 = vmatprep.mubr.msk.bf16.mxu1 %vm2951_vm0, %v9508_v59  ;;  %v9516_v60 = vld [vmem:[%s10384_s1 + $0x140] ss:$8 sps:$4 sm:$0xff]  }
 0x158   : > { %v8476_v6 = vpop.f32.mrb[29].mxu0 }
 0x159   : > { %v8477_v7 = vadd.f32 %v8476_v6, %v8475_v3  ;;  %v8478_v8 = vpop.f32.mrb[30].mxu0  ;;  %v8587_v9 = vpop.f32.mrb[28].mxu1  ;;  %v9517_v3 = vld [vmem:[%s10384_s1 + $0x154] ss:$8 sps:$4 sm:$0xff]  }
 0x15a   : > { %v8479_v10 = vpop.f32.mrb[31].mxu0  ;;  %v8588_v13 = vpop.f32.mrb[29].mxu1 }
 0x15b   : > { %v1880_v11 = vadd.f32 %v8477_v7, %v10495_v46  ;;  %v8480_v12 = vadd.f32 %v8479_v10, %v8478_v8  ;;  %v8589_v15 = vadd.f32 %v8588_v13, %v8587_v9  ;;  %v8590_v16 = vpop.f32.mrb[30].mxu1 }
 0x15c   : > { %v8591_v19 = vpop.f32.mrb[31].mxu1 }
 0x15d   : > { %v1883_v18 = vadd.f32 %v8480_v12, %v10495_v46  ;;  %v10581_v22 = vadd.f32 %v8589_v15, %v1880_v11  ;;  %v8592_v23 = vadd.f32 %v8591_v19, %v8590_v16 }
 0x15e   : > { %3321 = vmatmul.mubr.bf16.gmra.mrb[136].mxu1 %v9510_v14 }
 0x15f   : > { %v8481_v26 = vpop.f32.mrb[32].mxu0  ;;  %v10583_v27 = vadd.f32 %v8592_v23, %v1883_v18  ;;  %8112 = vmatprep.mubr.msk.bf16.mxu1 %vm2951_vm0, %v9511_v17  ;;  %v9519_v23 = vld [vmem:[%s10384_s1 + $0x150] ss:$8 sps:$4 sm:$0xff]  }
 0x160   : > { %v8482_v28 = vpop.f32.mrb[33].mxu0 }
 0x161   : > { %v8483_v29 = vadd.f32 %v8482_v28, %v8481_v26  ;;  %v8484_v30 = vpop.f32.mrb[34].mxu0  ;;  %v8593_v31 = vpop.f32.mrb[32].mxu1 }
 0x162   : > { %v8485_v32 = vpop.f32.mrb[35].mxu0  ;;  %v8594_v35 = vpop.f32.mrb[33].mxu1 }
 0x163   : > { %v1888_v33 = vadd.f32 %v8483_v29, %v10495_v46  ;;  %v8486_v34 = vadd.f32 %v8485_v32, %v8484_v30  ;;  %v8595_v37 = vadd.f32 %v8594_v35, %v8593_v31  ;;  %v8596_v39 = vpop.f32.mrb[34].mxu1  ;;  %v9522_v29 = vld [vmem:[%s10384_s1 + $0x164] ss:$8 sps:$4 sm:$0xff]  }
 0x164   : > { %v8597_v44 = vpop.f32.mrb[35].mxu1 }
 0x165   : > { %v1891_v43 = vadd.f32 %v8486_v34, %v10495_v46  ;;  %v10590_v48 = vadd.f32 %v8595_v37, %v1888_v33  ;;  %v8598_v49 = vadd.f32 %v8597_v44, %v8596_v39 }
 0x166   : > { %3329 = vmatmul.mubr.bf16.gmra.mrb[140].mxu1 %v9513_v36 }
 0x167   : > { %v8487_v50 = vpop.f32.mrb[36].mxu0  ;;  %v10592_v51 = vadd.f32 %v8598_v49, %v1891_v43  ;;  %8113 = vmatprep.mubr.msk.bf16.mxu1 %vm2951_vm0, %v9514_v40 }
 0x168   : > { %v8488_v52 = vpop.f32.mrb[37].mxu0 }
 0x169   : > { %v8489_v53 = vadd.f32 %v8488_v52, %v8487_v50  ;;  %v8490_v54 = vpop.f32.mrb[38].mxu0  ;;  %v8599_v55 = vpop.f32.mrb[36].mxu1  ;;  %v9524_v52 = vld [vmem:[%s10384_s1 + $0x160] ss:$8 sps:$4 sm:$0xff]  }
 0x16a   : > { %v8491_v56 = vpop.f32.mrb[39].mxu0  ;;  %v8600_v59 = vpop.f32.mrb[37].mxu1 }
 0x16b   : > { %v1896_v57 = vadd.f32 %v8489_v53, %v10495_v46  ;;  %v8492_v58 = vadd.f32 %v8491_v56, %v8490_v54  ;;  %v8601_v61 = vadd.f32 %v8600_v59, %v8599_v55  ;;  %v8602_v1 = vpop.f32.mrb[38].mxu1  ;;  %v9525_v55 = vld [vmem:[%s10384_s1 + $0x174] ss:$8 sps:$4 sm:$0xff]  }
 0x16c   : > { %v8603_v7 = vpop.f32.mrb[39].mxu1 }
 0x16d   : > { %v1899_v6 = vadd.f32 %v8492_v58, %v10495_v46  ;;  %v10599_v8 = vadd.f32 %v8601_v61, %v1896_v57  ;;  %v8604_v9 = vadd.f32 %v8603_v7, %v8602_v1 }
 0x16e   : > { %3337 = vmatmul.mubr.bf16.gmra.mrb[144].mxu1 %v9516_v60 }
 0x16f   : > { %v8493_v10 = vpop.f32.mrb[40].mxu0  ;;  %v10601_v11 = vadd.f32 %v8604_v9, %v1899_v6  ;;  %8114 = vmatprep.mubr.msk.bf16.mxu1 %vm2951_vm0, %v9517_v3 }
 0x170   : > { %v8494_v12 = vpop.f32.mrb[41].mxu0 }
 0x171   : > { %v8495_v13 = vadd.f32 %v8494_v12, %v8493_v10  ;;  %v8496_v14 = vpop.f32.mrb[42].mxu0  ;;  %v8605_v15 = vpop.f32.mrb[40].mxu1 }
 0x172   : > { %v8497_v16 = vpop.f32.mrb[43].mxu0  ;;  %v8606_v19 = vpop.f32.mrb[41].mxu1 }
 0x173   : > { %v1904_v17 = vadd.f32 %v8495_v13, %v10495_v46  ;;  %v8498_v18 = vadd.f32 %v8497_v16, %v8496_v14  ;;  %v8607_v26 = vadd.f32 %v8606_v19, %v8605_v15  ;;  %v8608_v28 = vpop.f32.mrb[42].mxu1  ;;  %v9527_v14 = vld [vmem:[%s10384_s1 + $0x170] ss:$8 sps:$4 sm:$0xff]  }
 0x174   : > { %v8609_v31 = vpop.f32.mrb[43].mxu1 }
 0x175   : > { %v1907_v30 = vadd.f32 %v8498_v18, %v10495_v46  ;;  %v10608_v32 = vadd.f32 %v8607_v26, %v1904_v17  ;;  %v8610_v33 = vadd.f32 %v8609_v31, %v8608_v28  ;;  %v9528_v17 = vld [vmem:[%s10384_s1 + $0x184] ss:$8 sps:$4 sm:$0xff]  }
 0x176   : > { %3345 = vmatmul.mubr.bf16.gmra.mrb[148].mxu1 %v9519_v23 }
 0x177   : > { %v8499_v34 = vpop.f32.mrb[44].mxu0  ;;  %v10610_v35 = vadd.f32 %v8610_v33, %v1907_v30  ;;  %8115 = vmatprep.mubr.msk.bf16.mxu1 %vm2951_vm0, %v9522_v29 }
 0x178   : > { %v8500_v36 = vpop.f32.mrb[45].mxu0 }
 0x179   : > { %v8501_v37 = vadd.f32 %v8500_v36, %v8499_v34  ;;  %v8502_v39 = vpop.f32.mrb[46].mxu0  ;;  %v8611_v40 = vpop.f32.mrb[44].mxu1 }
 0x17a   : > { %v8503_v43 = vpop.f32.mrb[47].mxu0  ;;  %v8612_v50 = vpop.f32.mrb[45].mxu1 }
 0x17b   : > { %v1912_v44 = vadd.f32 %v8501_v37, %v10495_v46  ;;  %v8504_v49 = vadd.f32 %v8503_v43, %v8502_v39  ;;  %v8613_v53 = vadd.f32 %v8612_v50, %v8611_v40  ;;  %v8614_v54 = vpop.f32.mrb[46].mxu1  ;;  %v9530_v43 = vld [vmem:[%s10384_s1 + $0x180] ss:$8 sps:$4 sm:$0xff]   ;;  %v9531_v50 = vld [vmem:[%s10384_s1 + $0x194] ss:$8 sps:$4 sm:$0xff]  }
 0x17c   : > { %v8615_v57 = vpop.f32.mrb[47].mxu1 }
 0x17d   : > { %v1915_v56 = vadd.f32 %v8504_v49, %v10495_v46  ;;  %v10617_v58 = vadd.f32 %v8613_v53, %v1912_v44  ;;  %v8616_v59 = vadd.f32 %v8615_v57, %v8614_v54 }
 0x17e   : > { %3353 = vmatmul.mubr.bf16.gmra.mrb[152].mxu1 %v9524_v52 }
 0x17f   : > { %v8505_v60 = vpop.f32.mrb[48].mxu0  ;;  %v10619_v61 = vadd.f32 %v8616_v59, %v1915_v56  ;;  %8116 = vmatprep.mubr.msk.bf16.mxu1 %vm2951_vm0, %v9525_v55 }
 0x180   : > { %v8506_v1 = vpop.f32.mrb[49].mxu0 }
 0x181   : > { %v8507_v3 = vadd.f32 %v8506_v1, %v8505_v60  ;;  %v8508_v6 = vpop.f32.mrb[50].mxu0  ;;  %v8617_v7 = vpop.f32.mrb[48].mxu1 }
 0x182   : > { %v8509_v9 = vpop.f32.mrb[51].mxu0  ;;  %v8618_v13 = vpop.f32.mrb[49].mxu1 }
 0x183   : > { %v1920_v10 = vadd.f32 %v8507_v3, %v10495_v46  ;;  %v8510_v12 = vadd.f32 %v8509_v9, %v8508_v6  ;;  %v8619_v15 = vadd.f32 %v8618_v13, %v8617_v7  ;;  %v8620_v16 = vpop.f32.mrb[50].mxu1 }
 0x184   : > { %v8621_v19 = vpop.f32.mrb[51].mxu1 }
 0x185   : > { %v1923_v18 = vadd.f32 %v8510_v12, %v10495_v46  ;;  %v10626_v23 = vadd.f32 %v8619_v15, %v1920_v10  ;;  %v8622_v26 = vadd.f32 %v8621_v19, %v8620_v16  ;;  %v9533_v12 = vld [vmem:[%s10384_s1 + $0x190] ss:$8 sps:$4 sm:$0xff]   ;;  %v9534_v15 = vld [vmem:[%s10384_s1 + $0x1a4] ss:$8 sps:$4 sm:$0xff]  }
 0x186   : > { %3361 = vmatmul.mubr.bf16.gmra.mrb[156].mxu1 %v9527_v14 }
 0x187   : > { %v8511_v28 = vpop.f32.mrb[52].mxu0  ;;  %v10628_v29 = vadd.f32 %v8622_v26, %v1923_v18  ;;  %8117 = vmatprep.mubr.msk.bf16.mxu1 %vm2951_vm0, %v9528_v17 }
 0x188   : > { %v8512_v30 = vpop.f32.mrb[53].mxu0 }
 0x189   : > { %v8513_v31 = vadd.f32 %v8512_v30, %v8511_v28  ;;  %v8514_v33 = vpop.f32.mrb[54].mxu0  ;;  %v8623_v34 = vpop.f32.mrb[52].mxu1 }
 0x18a   : > { %v8515_v36 = vpop.f32.mrb[55].mxu0  ;;  %v8624_v40 = vpop.f32.mrb[53].mxu1 }
 0x18b   : > { %v1928_v37 = vadd.f32 %v8513_v31, %v10495_v46  ;;  %v8516_v39 = vadd.f32 %v8515_v36, %v8514_v33  ;;  %v8625_v44 = vadd.f32 %v8624_v40, %v8623_v34  ;;  %v8626_v49 = vpop.f32.mrb[54].mxu1 }
 0x18c   : > { %v8627_v53 = vpop.f32.mrb[55].mxu1 }
 0x18d   : > { %v1931_v52 = vadd.f32 %v8516_v39, %v10495_v46  ;;  %v10635_v54 = vadd.f32 %v8625_v44, %v1928_v37  ;;  %v8628_v55 = vadd.f32 %v8627_v53, %v8626_v49 }
 0x18e   : > { %3369 = vmatmul.mubr.bf16.gmra.mrb[160].mxu1 %v9530_v43  ;;  %v9536_v43 = vld [vmem:[%s10384_s1 + $0x1a0] ss:$8 sps:$4 sm:$0xff]  }
 0x18f   : > { %v8517_v56 = vpop.f32.mrb[56].mxu0  ;;  %v10637_v57 = vadd.f32 %v8628_v55, %v1931_v52  ;;  %8118 = vmatprep.mubr.msk.bf16.mxu1 %vm2951_vm0, %v9531_v50  ;;  %v9537_v50 = vld [vmem:[%s10384_s1 + $0x1b4] ss:$8 sps:$4 sm:$0xff]  }
 0x190   : > { %v8518_v59 = vpop.f32.mrb[57].mxu0 }
 0x191   : > { %v8519_v60 = vadd.f32 %v8518_v59, %v8517_v56  ;;  %v8520_v1 = vpop.f32.mrb[58].mxu0  ;;  %v8629_v3 = vpop.f32.mrb[56].mxu1 }
 0x192   : > { %v8521_v6 = vpop.f32.mrb[59].mxu0  ;;  %v8630_v10 = vpop.f32.mrb[57].mxu1 }
 0x193   : > { %v1936_v7 = vadd.f32 %v8519_v60, %v10495_v46  ;;  %v8522_v9 = vadd.f32 %v8521_v6, %v8520_v1  ;;  %v8631_v13 = vadd.f32 %v8630_v10, %v8629_v3  ;;  %v8632_v14 = vpop.f32.mrb[58].mxu1 }
 0x194   : > { %v8633_v17 = vpop.f32.mrb[59].mxu1 }
 0x195   : > { %v1939_v16 = vadd.f32 %v8522_v9, %v10495_v46  ;;  %v10644_v18 = vadd.f32 %v8631_v13, %v1936_v7  ;;  %v8634_v19 = vadd.f32 %v8633_v17, %v8632_v14 }
 0x196   : > { %3377 = vmatmul.mubr.bf16.gmra.mrb[164].mxu1 %v9533_v12  ;;  %v9540_v12 = vld [vmem:[%s10384_s1 + $0x1c4] ss:$8 sps:$4 sm:$0xff]  }
 0x197   : > { %v8523_v26 = vpop.f32.mrb[60].mxu0  ;;  %v10646_v28 = vadd.f32 %v8634_v19, %v1939_v16  ;;  %8119 = vmatprep.mubr.msk.bf16.mxu1 %vm2951_vm0, %v9534_v15 }
 0x198   : > { %v8524_v30 = vpop.f32.mrb[61].mxu0 }
 0x199   : > { %v8525_v31 = vadd.f32 %v8524_v30, %v8523_v26  ;;  %v8526_v33 = vpop.f32.mrb[62].mxu0  ;;  %v8635_v34 = vpop.f32.mrb[60].mxu1  ;;  %v9542_v30 = vld [vmem:[%s10384_s1 + $0x1c0] ss:$8 sps:$4 sm:$0xff]  }
 0x19a   : > { %v8527_v36 = vpop.f32.mrb[63].mxu0  ;;  %v8636_v40 = vpop.f32.mrb[61].mxu1 }
 0x19b   : > { %v1944_v37 = vadd.f32 %v8525_v31, %v10495_v46  ;;  %v8528_v39 = vadd.f32 %v8527_v36, %v8526_v33  ;;  %v8637_v44 = vadd.f32 %v8636_v40, %v8635_v34  ;;  %v8638_v49 = vpop.f32.mrb[62].mxu1  ;;  %v9543_v31 = vld [vmem:[%s10384_s1 + $0x1d4] ss:$8 sps:$4 sm:$0xff]  }
 0x19c   : > { %v8639_v53 = vpop.f32.mrb[63].mxu1 }
 0x19d   : > { %v1947_v52 = vadd.f32 %v8528_v39, %v10495_v46  ;;  %v10653_v55 = vadd.f32 %v8637_v44, %v1944_v37  ;;  %v8640_v56 = vadd.f32 %v8639_v53, %v8638_v49  ;;  %v9539_v46 = vld [vmem:[%s10384_s1 + $0x1b0] ss:$8 sps:$4 sm:$0xff]   ;;  %v9546_v49 = vld [vmem:[%s10384_s1 + $0x1e4] ss:$8 sps:$4 sm:$0xff]  }
 0x19e   : > { %3385 = vmatmul.mubr.bf16.gmra.mrb[168].mxu1 %v9536_v43  ;;  %v9545_v44 = vld [vmem:[%s10384_s1 + $0x1d0] ss:$8 sps:$4 sm:$0xff]  }
 0x19f   : > { %v8657_v59 = vpop.f32.mrb[64].mxu0  ;;  %v10655_v60 = vadd.f32 %v8640_v56, %v1947_v52  ;;  %8120 = vmatprep.mubr.msk.bf16.mxu1 %vm2951_vm0, %v9537_v50 }
 0x1a0   : > { %v8658_v1 = vpop.f32.mrb[65].mxu0 }
 0x1a1   : > { %v8659_v3 = vadd.f32 %v8658_v1, %v8657_v59  ;;  %v8660_v6 = vpop.f32.mrb[66].mxu0 }
 0x1a2   : > { %v8661_v7 = vpop.f32.mrb[67].mxu0 }
 0x1a3   : > { %v10659_v9 = vadd.f32 %v8659_v3, %v10504_v63  ;;  %v8662_v10 = vadd.f32 %v8661_v7, %v8660_v6  ;;  %v9548_v6 = vld [vmem:[%s10384_s1 + $0x1e0] ss:$8 sps:$4 sm:$0xff]   ;;  %v9549_v7 = vld [vmem:[%s10384_s1 + $0x1f4] ss:$8 sps:$4 sm:$0xff]  }
 0x1a5   : > { %13738 = vst [vmem:[#allocation14_spill] sm:$0xff] %v10659_v9  ;;  %v10664_v13 = vadd.f32 %v8662_v10, %v10506_v2 }
 0x1a6   : > { %3393 = vmatmul.mubr.bf16.gmra.mrb[172].mxu1 %v9539_v46 }
 0x1a7   : > { %13739 = vst [vmem:[#allocation15_spill] sm:$0xff] %v10664_v13  ;;  %v8663_v14 = vpop.f32.mrb[68].mxu0  ;;  %v10668_v15 = vpack.c.bf16 %v10664_v13, %v10659_v9  ;;  %8121 = vmatprep.mubr.msk.bf16.mxu1 %vm2951_vm0, %v9540_v12 }
 0x1a8   : > { %v8664_v16 = vpop.f32.mrb[69].mxu0 }
 0x1a9   : > { %13740 = vst [vmem:[#allocation16_spill] sm:$0xff] %v10668_v15  ;;  %v8665_v63 = vadd.f32 %v8664_v16, %v8663_v14  ;;  %v8666_v17 = vpop.f32.mrb[70].mxu0  ;;  %8972 = vmatprep.mubr.msk.bf16.mxu0 %vm3721_vm1, %v10668_v15 }
 0x1aa   : > { %v8667_v19 = vpop.f32.mrb[71].mxu0 }
 0x1ab   : > { %v10674_v26 = vadd.f32 %v8665_v63, %v10521_v21  ;;  %v8668_v2 = vadd.f32 %v8667_v19, %v8666_v17  ;;  %v9551_v19 = vld [vmem:[%s10384_s1 + $0x1f0] ss:$8 sps:$4 sm:$0xff]  }
 0x1ad   : > { %13741 = vst [vmem:[#allocation17_spill] sm:$0xff] %v10674_v26  ;;  %v10679_v33 = vadd.f32 %v8668_v2, %v10523_v24  ;;  %v9552_v2 = vld [vmem:[%s10384_s1 + $0x204] ss:$8 sps:$4 sm:$0xff]  }
 0x1ae   : > { %3401 = vmatmul.mubr.bf16.gmra.mrb[176].mxu1 %v9542_v30  ;;  %v7436_v30 = vsel %vm3721_vm1, %v10664_v13, 0.0 }
 0x1af   : > { %13742 = vst [vmem:[#allocation18_spill] sm:$0xff] %v10679_v33  ;;  %v10683_v34 = vpack.c.bf16 %v10679_v33, %v10674_v26  ;;  %v8669_v36 = vpop.f32.mrb[72].mxu0  ;;  %8122 = vmatprep.mubr.msk.bf16.mxu1 %vm2951_vm0, %v9543_v31 }
 0x1b0   : > { %v8670_v37 = vpop.f32.mrb[73].mxu0 }
 0x1b1   : > { %13743 = vst [vmem:[#allocation19_spill] sm:$0xff] %v10683_v34  ;;  %v8671_v39 = vadd.f32 %v8670_v37, %v8669_v36  ;;  %v8672_v21 = vpop.f32.mrb[74].mxu0  ;;  %8973 = vmatmul.mubr.msk.bf16.vlgmr.msra.gmra.mrb[128].mxu0 %vm3721_vm1, %v10683_v34  ;;  %v7435_v36 = vsel %vm3721_vm1, %v10659_v9, 0.0  ;;  %v7438_v37 = vsel %vm3721_vm1, %v10674_v26, 0.0 }
 0x1b2   : > { %v8673_v40 = vpop.f32.mrb[75].mxu0 }
 0x1b3   : > { %v10689_v43 = vadd.f32 %v8671_v39, %v10533_v42  ;;  %v8674_v24 = vadd.f32 %v8673_v40, %v8672_v21  ;;  %v7437_v21 = vadd.f32 %v7436_v30, %v7435_v36  ;;  %v9557_v36 = vld [vmem:[%s10384_s1 + $0x210] ss:$8 sps:$4 sm:$0xff]  }
 0x1b5   : > { %13744 = vst [vmem:[#allocation20_spill] sm:$0xff] %v10689_v43  ;;  %v10694_v50 = vadd.f32 %v8674_v24, %v10535_v45 }
 0x1b6   : > { %3409 = vmatmul.mubr.bf16.gmra.mrb[180].mxu1 %v9545_v44  ;;  %v7439_v44 = vadd.f32 %v7438_v37, %v7437_v21 }
 0x1b7   : > { %13745 = vst [vmem:[#allocation21_spill] sm:$0xff] %v10694_v50  ;;  %v8675_v52 = vpop.f32.mrb[76].mxu0  ;;  %v10698_v53 = vpack.c.bf16 %v10694_v50, %v10689_v43  ;;  %8123 = vmatprep.mubr.msk.bf16.mxu1 %vm2951_vm0, %v9546_v49 }
 0x1b8   : > { %v8676_v56 = vpop.f32.mrb[77].mxu0 }
 0x1b9   : > { %13746 = vst [vmem:[#allocation22_spill] sm:$0xff] %v10698_v53  ;;  %v8677_v59 = vadd.f32 %v8676_v56, %v8675_v52  ;;  %v8678_v42 = vpop.f32.mrb[78].mxu0  ;;  %8976 = vmatprep.mubr.msk.bf16.mxu0 %vm3721_vm1, %v10698_v53  ;;  %v7440_v52 = vsel %vm3721_vm1, %v10679_v33, 0.0  ;;  %v9632_v33 = vld [vmem:[%s10384_s1 + $0x3a4] ss:$8 sps:$4 sm:$0xff]  }
 0x1ba   : > { %v8679_v1 = vpop.f32.mrb[79].mxu0 }
 0x1bb   : > { %v10704_v3 = vadd.f32 %v8677_v59, %v10544_v0  ;;  %v8680_v45 = vadd.f32 %v8679_v1, %v8678_v42  ;;  %v9554_v42 = vld [vmem:[%s10384_s1 + $0x200] ss:$8 sps:$4 sm:$0xff]   ;;  %v9555_v1 = vld [vmem:[%s10384_s1 + $0x214] ss:$8 sps:$4 sm:$0xff]  }
 0x1bd   : > { %13747 = vst [vmem:[#allocation23_spill] sm:$0xff] %v10704_v3  ;;  %v10709_v10 = vadd.f32 %v8680_v45, %v10546_v4  ;;  %v7442_v45 = vsel %vm3721_vm1, %v10689_v43, 0.0 }
 0x1be   : > { %3417 = vmatmul.mubr.bf16.gmra.mrb[184].mxu1 %v9548_v6 }
 0x1bf   : > { %13748 = vst [vmem:[#allocation24_spill] sm:$0xff] %v10709_v10  ;;  %v8681_v46 = vpop.f32.mrb[80].mxu0  ;;  %v10713_v12 = vpack.c.bf16 %v10709_v10, %v10704_v3  ;;  %8124 = vmatprep.mubr.msk.bf16.mxu1 %vm2951_vm0, %v9549_v7  ;;  %v7441_v7 = vadd.f32 %v7440_v52, %v7439_v44 }
 0x1c0   : > { %v8682_v14 = vpop.f32.mrb[81].mxu0 }
 0x1c1   : > { %13749 = vst [vmem:[#allocation25_spill] sm:$0xff] %v10713_v12  ;;  %v8683_v16 = vadd.f32 %v8682_v14, %v8681_v46  ;;  %v8684_v0 = vpop.f32.mrb[82].mxu0  ;;  %8977 = vmatmul.mubr.msk.bf16.gmra.mrb[132].mxu0 %vm3721_vm1, %v10713_v12  ;;  %v9644_v12 = vld [vmem:[%s10384_s1 + $0x3e4] ss:$8 sps:$4 sm:$0xff]  }
 0x1c2   : > { %v8685_v63 = vpop.f32.mrb[83].mxu0 }
 0x1c3   : > { %v10719_v17 = vadd.f32 %v8683_v16, %v10554_v20  ;;  %v8686_v4 = vadd.f32 %v8685_v63, %v8684_v0  ;;  %v7444_v0 = vsel %vm3721_vm1, %v10694_v50, 0.0 }
 0x1c5   : > { %13750 = vst [vmem:[#allocation26_spill] sm:$0xff] %v10719_v17  ;;  %v10726_v31 = vadd.f32 %v8686_v4, %v10556_v25 }
 0x1c6   : > { %3425 = vmatmul.mubr.bf16.gmra.mrb[188].mxu1 %v9551_v19  ;;  %v7446_v19 = vsel %vm3721_vm1, %v10704_v3, 0.0 }
 0x1c7   : > { %13751 = vst [vmem:[#allocation27_spill] sm:$0xff] %v10726_v31  ;;  %v8687_v39 = vpop.f32.mrb[84].mxu0  ;;  %v10734_v20 = vpack.c.bf16 %v10726_v31, %v10719_v17  ;;  %8125 = vmatprep.mubr.msk.bf16.mxu1 %vm2951_vm0, %v9552_v2 }
 0x1c8   : > { %v8688_v40 = vpop.f32.mrb[85].mxu0 }
 0x1c9   : > { %13752 = vst [vmem:[#allocation28_spill] sm:$0xff] %v10734_v20  ;;  %v8689_v25 = vadd.f32 %v8688_v40, %v8687_v39  ;;  %v8690_v24 = vpop.f32.mrb[86].mxu0  ;;  %8980 = vmatprep.mubr.msk.bf16.mxu0 %vm3721_vm1, %v10734_v20  ;;  %v9558_v39 = vld [vmem:[%s10384_s1 + $0x224] ss:$8 sps:$4 sm:$0xff]  }
 0x1ca   : > { %v8691_v49 = vpop.f32.mrb[87].mxu0 }
 0x1cb   : > { %v10742_v56 = vadd.f32 %v8689_v25, %v10563_v41  ;;  %v8692_v59 = vadd.f32 %v8691_v49, %v8690_v24  ;;  %v7443_v41 = vadd.f32 %v7442_v45, %v7441_v7  ;;  %v7448_v25 = vsel %vm3721_vm1, %v10709_v10, 0.0  ;;  %v9560_v7 = vld [vmem:[%s10384_s1 + $0x220] ss:$8 sps:$4 sm:$0xff]  }
 0x1cc   : > { %v7450_v49 = vsel %vm3721_vm1, %v10719_v17, 0.0 }
 0x1cd   : > { %13753 = vst [vmem:[#allocation29_spill] sm:$0xff] %v10742_v56  ;;  %v10749_v6 = vadd.f32 %v8692_v59, %v10565_v47  ;;  %v7445_v37 = vadd.f32 %v7444_v0, %v7443_v41  ;;  %v9561_v41 = vld [vmem:[%s10384_s1 + $0x234] ss:$8 sps:$4 sm:$0xff]  }
 0x1ce   : > { %3433 = vmatmul.mubr.bf16.gmra.mrb[192].mxu1 %v9554_v42 }
 0x1cf   : > { %13754 = vst [vmem:[#allocation30_spill] sm:$0xff] %v10749_v6  ;;  %v8693_v46 = vpop.f32.mrb[88].mxu0  ;;  %v10753_v14 = vpack.c.bf16 %v10749_v6, %v10742_v56  ;;  %8126 = vmatprep.mubr.msk.bf16.mxu1 %vm2951_vm0, %v9555_v1  ;;  %v7447_v40 = vadd.f32 %v7446_v19, %v7445_v37 }
 0x1d0   : > { %v8694_v16 = vpop.f32.mrb[89].mxu0 }
 0x1d1   : > { %13755 = vst [vmem:[#allocation31_spill] sm:$0xff] %v10753_v14  ;;  %v8695_v63 = vadd.f32 %v8694_v16, %v8693_v46  ;;  %v8696_v4 = vpop.f32.mrb[90].mxu0  ;;  %8981 = vmatmul.mubr.msk.bf16.gmra.mrb[136].mxu0 %vm3721_vm1, %v10753_v14  ;;  %v7449_v59 = vadd.f32 %v7448_v25, %v7447_v40  ;;  %v7452_v16 = vsel %vm3721_vm1, %v10726_v31, 0.0  ;;  %v9621_v31 = vld [vmem:[%s10384_s1 + $0x370] ss:$8 sps:$4 sm:$0xff]  }
 0x1d2   : > { %v8697_v47 = vpop.f32.mrb[91].mxu0 }
 0x1d3   : > { %v10763_v2 = vadd.f32 %v8695_v63, %v10572_v62  ;;  %v8698_v30 = vadd.f32 %v8697_v47, %v8696_v4  ;;  %v7451_v46 = vadd.f32 %v7450_v49, %v7449_v59  ;;  %v7454_v63 = vsel %vm3721_vm1, %v10742_v56, 0.0  ;;  %v9623_v56 = vld [vmem:[%s10384_s1 + $0x374] ss:$8 sps:$4 sm:$0xff]  }
 0x1d5   : > { %13756 = vst [vmem:[#allocation32_spill] sm:$0xff] %v10763_v2  ;;  %v10768_v21 = vadd.f32 %v8698_v30, %v10574_v5  ;;  %v7453_v47 = vadd.f32 %v7452_v16, %v7451_v46  ;;  %v7458_v49 = vsel %vm3721_vm1, %v10763_v2, 0.0 }
 0x1d6   : > { %3441 = vmatmul.mubr.bf16.gmra.mrb[196].mxu1 %v9557_v36 }
 0x1d7   : > { %13757 = vst [vmem:[#allocation33_spill] sm:$0xff] %v10768_v21  ;;  %v8699_v24 = vpop.f32.mrb[92].mxu0  ;;  %v10774_v44 = vpack.c.bf16 %v10768_v21, %v10763_v2  ;;  %8127 = vmatprep.mubr.msk.bf16.mxu1 %vm2951_vm0, %v9558_v39  ;;  %v7456_v39 = vsel %vm3721_vm1, %v10749_v6, 0.0  ;;  %v9620_v2 = vld [vmem:[%s10384_s1 + $0x364] ss:$8 sps:$4 sm:$0xff]  }
 0x1d8   : > { %v8700_v62 = vpop.f32.mrb[93].mxu0 }
 0x1d9   : > { %13758 = vst [vmem:[#allocation34_spill] sm:$0xff] %v10774_v44  ;;  %v8701_v5 = vadd.f32 %v8700_v62, %v8699_v24  ;;  %v8702_v52 = vpop.f32.mrb[94].mxu0  ;;  %8984 = vmatprep.mubr.msk.bf16.mxu0 %vm3721_vm1, %v10774_v44  ;;  %v9563_v24 = vld [vmem:[%s10384_s1 + $0x230] ss:$8 sps:$4 sm:$0xff]   ;;  %v9564_v62 = vld [vmem:[%s10384_s1 + $0x244] ss:$8 sps:$4 sm:$0xff]  }
 0x1da   : > { %v8703_v42 = vpop.f32.mrb[95].mxu0 }
 0x1db   : > { %v10782_v1 = vadd.f32 %v8701_v5, %v10581_v22  ;;  %v8704_v45 = vadd.f32 %v8703_v42, %v8702_v52 }
 0x1dd   : > { %13759 = vst [vmem:[#allocation35_spill] sm:$0xff] %v10782_v1  ;;  %v10789_v0 = vadd.f32 %v8704_v45, %v10583_v27  ;;  %v7455_v27 = vadd.f32 %v7454_v63, %v7453_v47  ;;  %v7462_v16 = vsel %vm3721_vm1, %v10782_v1, 0.0  ;;  %v9566_v47 = vld [vmem:[%s10384_s1 + $0x240] ss:$8 sps:$4 sm:$0xff]  }
 0x1de   : > { %3449 = vmatmul.mubr.bf16.gmra.mrb[200].mxu1 %v9560_v7  ;;  %v7460_v7 = vsel %vm3721_vm1, %v10768_v21, 0.0 }
 0x1df   : > { %13760 = vst [vmem:[#allocation36_spill] sm:$0xff] %v10789_v0  ;;  %v8705_v4 = vpop.f32.mrb[96].mxu0  ;;  %v10795_v22 = vpack.c.bf16 %v10789_v0, %v10782_v1  ;;  %8128 = vmatprep.mubr.msk.bf16.mxu1 %vm2951_vm0, %v9561_v41  ;;  %v7457_v52 = vadd.f32 %v7456_v39, %v7455_v27  ;;  %v9617_v1 = vld [vmem:[%s10384_s1 + $0x354] ss:$8 sps:$4 sm:$0xff]  }
 0x1e0   : > { %v8706_v19 = vpop.f32.mrb[97].mxu0 }
 0x1e1   : > { %13761 = vst [vmem:[#allocation37_spill] sm:$0xff] %v10795_v22  ;;  %v8707_v30 = vadd.f32 %v8706_v19, %v8705_v4  ;;  %v8708_v36 = vpop.f32.mrb[98].mxu0  ;;  %8985 = vmatmul.mubr.msk.bf16.gmra.mrb[140].mxu0 %vm3721_vm1, %v10795_v22 }
 0x1e2   : > { %v8709_v37 = vpop.f32.mrb[99].mxu0 }
 0x1e3   : > { %v10803_v40 = vadd.f32 %v8707_v30, %v10590_v48  ;;  %v8710_v25 = vadd.f32 %v8709_v37, %v8708_v36  ;;  %v7459_v48 = vadd.f32 %v7458_v49, %v7457_v52  ;;  %v9567_v30 = vld [vmem:[%s10384_s1 + $0x254] ss:$8 sps:$4 sm:$0xff]   ;;  %v7464_v37 = vsel %vm3721_vm1, %v10789_v0, 0.0 }
 0x1e5   : > { %13762 = vst [vmem:[#allocation38_spill] sm:$0xff] %v10803_v40  ;;  %v10810_v5 = vadd.f32 %v8710_v25, %v10592_v51  ;;  %v7461_v19 = vadd.f32 %v7460_v7, %v7459_v48 }
 0x1e6   : > { %3457 = vmatmul.mubr.bf16.gmra.mrb[204].mxu1 %v9563_v24  ;;  %v7466_v24 = vsel %vm3721_vm1, %v10803_v40, 0.0 }
 0x1e7   : > { %13763 = vst [vmem:[#allocation39_spill] sm:$0xff] %v10810_v5  ;;  %v8711_v59 = vpop.f32.mrb[100].mxu0  ;;  %v10814_v42 = vpack.c.bf16 %v10810_v5, %v10803_v40  ;;  %8129 = vmatprep.mubr.msk.bf16.mxu1 %vm2951_vm0, %v9564_v62  ;;  %v7463_v27 = vadd.f32 %v7462_v16, %v7461_v19  ;;  %v9627_v40 = vld [vmem:[%s10384_s1 + $0x390] ss:$8 sps:$4 sm:$0xff]  }
 0x1e8   : > { %v8712_v45 = vpop.f32.mrb[101].mxu0 }
 0x1e9   : > { %13764 = vst [vmem:[#allocation40_spill] sm:$0xff] %v10814_v42  ;;  %v8713_v46 = vadd.f32 %v8712_v45, %v8711_v59  ;;  %v8714_v41 = vpop.f32.mrb[102].mxu0  ;;  %8988 = vmatprep.mubr.msk.bf16.mxu0 %vm3721_vm1, %v10814_v42  ;;  %v7465_v49 = vadd.f32 %v7464_v37, %v7463_v27  ;;  %v9569_v45 = vld [vmem:[%s10384_s1 + $0x250] ss:$8 sps:$4 sm:$0xff]  }
 0x1ea   : > { %v8715_v51 = vpop.f32.mrb[103].mxu0 }
 0x1eb   : > { %v10824_v63 = vadd.f32 %v8713_v46, %v10599_v8  ;;  %v8716_v4 = vadd.f32 %v8715_v51, %v8714_v41  ;;  %v7467_v7 = vadd.f32 %v7466_v24, %v7465_v49  ;;  %v9570_v46 = vld [vmem:[%s10384_s1 + $0x264] ss:$8 sps:$4 sm:$0xff]   ;;  %v7468_v41 = vsel %vm3721_vm1, %v10810_v5, 0.0 }
 0x1ed   : > { %13765 = vst [vmem:[#allocation41_spill] sm:$0xff] %v10824_v63  ;;  %v10829_v36 = vadd.f32 %v8716_v4, %v10601_v11  ;;  %v7470_v16 = vsel %vm3721_vm1, %v10824_v63, 0.0 }
 0x1ee   : > { %3465 = vmatmul.mubr.bf16.gmra.mrb[208].mxu1 %v9566_v47  ;;  %v7469_v47 = vadd.f32 %v7468_v41, %v7467_v7 }
 0x1ef   : > { %13766 = vst [vmem:[#allocation42_spill] sm:$0xff] %v10829_v36  ;;  %v8717_v39 = vpop.f32.mrb[104].mxu0  ;;  %v10835_v25 = vpack.c.bf16 %v10829_v36, %v10824_v63  ;;  %8130 = vmatprep.mubr.msk.bf16.mxu1 %vm2951_vm0, %v9567_v30 }
 0x1f0   : > { %v8718_v8 = vpop.f32.mrb[105].mxu0 }
 0x1f1   : > { %13767 = vst [vmem:[#allocation43_spill] sm:$0xff] %v10835_v25  ;;  %v8719_v11 = vadd.f32 %v8718_v8, %v8717_v39  ;;  %v8720_v62 = vpop.f32.mrb[106].mxu0  ;;  %8989 = vmatmul.mubr.msk.bf16.gmra.mrb[144].mxu0 %vm3721_vm1, %v10835_v25  ;;  %v7472_v39 = vsel %vm3721_vm1, %v10829_v36, 0.0 }
 0x1f2   : > { %v8721_v52 = vpop.f32.mrb[107].mxu0 }
 0x1f3   : > { %v10843_v59 = vadd.f32 %v8719_v11, %v10608_v32  ;;  %v8722_v48 = vadd.f32 %v8721_v52, %v8720_v62  ;;  %v9572_v11 = vld [vmem:[%s10384_s1 + $0x260] ss:$8 sps:$4 sm:$0xff]   ;;  %v9573_v62 = vld [vmem:[%s10384_s1 + $0x274] ss:$8 sps:$4 sm:$0xff]  }
 0x1f5   : > { %13768 = vst [vmem:[#allocation44_spill] sm:$0xff] %v10843_v59  ;;  %v10850_v51 = vadd.f32 %v8722_v48, %v10610_v35  ;;  %v7471_v35 = vadd.f32 %v7470_v16, %v7469_v47  ;;  %v7474_v49 = vsel %vm3721_vm1, %v10843_v59, 0.0 }
 0x1f6   : > { %3473 = vmatmul.mubr.bf16.gmra.mrb[212].mxu1 %v9569_v45 }
 0x1f7   : > { %13769 = vst [vmem:[#allocation45_spill] sm:$0xff] %v10850_v51  ;;  %v8723_v4 = vpop.f32.mrb[108].mxu0  ;;  %v10856_v32 = vpack.c.bf16 %v10850_v51, %v10843_v59  ;;  %8131 = vmatprep.mubr.msk.bf16.mxu1 %vm2951_vm0, %v9570_v46  ;;  %v7473_v48 = vadd.f32 %v7472_v39, %v7471_v35  ;;  %v7476_v41 = vsel %vm3721_vm1, %v10850_v51, 0.0 }
 0x1f8   : > { %v8724_v19 = vpop.f32.mrb[109].mxu0 }
 0x1f9   : > { %13770 = vst [vmem:[#allocation46_spill] sm:$0xff] %v10856_v32  ;;  %v8725_v30 = vadd.f32 %v8724_v19, %v8723_v4  ;;  %v8726_v27 = vpop.f32.mrb[110].mxu0  ;;  %8992 = vmatprep.mubr.msk.bf16.mxu0 %vm3721_vm1, %v10856_v32 }
 0x1fa   : > { %v8727_v37 = vpop.f32.mrb[111].mxu0 }
 0x1fb   : > { %v10864_v8 = vadd.f32 %v8725_v30, %v10617_v58  ;;  %v8728_v24 = vadd.f32 %v8727_v37, %v8726_v27  ;;  %v7475_v58 = vadd.f32 %v7474_v49, %v7473_v48  ;;  %v9575_v27 = vld [vmem:[%s10384_s1 + $0x270] ss:$8 sps:$4 sm:$0xff]   ;;  %v9576_v37 = vld [vmem:[%s10384_s1 + $0x284] ss:$8 sps:$4 sm:$0xff]  }
 0x1fd   : > { %13771 = vst [vmem:[#allocation47_spill] sm:$0xff] %v10864_v8  ;;  %v10871_v52 = vadd.f32 %v8728_v24, %v10619_v61  ;;  %v7478_v47 = vsel %vm3721_vm1, %v10864_v8, 0.0  ;;  %v7477_v35 = vadd.f32 %v7476_v41, %v7475_v58 }
 0x1fe   : > { %3481 = vmatmul.mubr.bf16.gmra.mrb[216].mxu1 %v9572_v11 }
 0x1ff   : > { %13772 = vst [vmem:[#allocation48_spill] sm:$0xff] %v10871_v52  ;;  %v8729_v45 = vpop.f32.mrb[112].mxu0  ;;  %v10875_v7 = vpack.c.bf16 %v10871_v52, %v10864_v8  ;;  %8132 = vmatprep.mubr.msk.bf16.mxu1 %vm2951_vm0, %v9573_v62  ;;  %v7479_v24 = vadd.f32 %v7478_v47, %v7477_v35  ;;  %v7480_v11 = vsel %vm3721_vm1, %v10871_v52, 0.0  ;;  %v9579_v47 = vld [vmem:[%s10384_s1 + $0x294] ss:$8 sps:$4 sm:$0xff]  }
 0x200   : > { %v8730_v46 = vpop.f32.mrb[113].mxu0  ;;  %v9618_v8 = vld [vmem:[%s10384_s1 + $0x360] ss:$8 sps:$4 sm:$0xff]  }
 0x201   : > { %13773 = vst [vmem:[#allocation49_spill] sm:$0xff] %v10875_v7  ;;  %v8731_v16 = vadd.f32 %v8730_v46, %v8729_v45  ;;  %v8732_v4 = vpop.f32.mrb[114].mxu0  ;;  %8993 = vmatmul.mubr.msk.bf16.gmra.mrb[148].mxu0 %vm3721_vm1, %v10875_v7  ;;  %v7481_v58 = vadd.f32 %v7480_v11, %v7479_v24  ;;  %v9638_v7 = vld [vmem:[%s10384_s1 + $0x3c4] ss:$8 sps:$4 sm:$0xff]  }
 0x202   : > { %v8733_v61 = vpop.f32.mrb[115].mxu0 }
 0x203   : > { %v10885_v19 = vadd.f32 %v8731_v16, %v10626_v23  ;;  %v8734_v30 = vadd.f32 %v8733_v61, %v8732_v4  ;;  %v9578_v4 = vld [vmem:[%s10384_s1 + $0x280] ss:$8 sps:$4 sm:$0xff]  }
 0x205   : > { %13774 = vst [vmem:[#allocation50_spill] sm:$0xff] %v10885_v19  ;;  %v10890_v39 = vadd.f32 %v8734_v30, %v10628_v29  ;;  %v7482_v48 = vsel %vm3721_vm1, %v10885_v19, 0.0 }
 0x206   : > { %3489 = vmatmul.mubr.bf16.gmra.mrb[220].mxu1 %v9575_v27  ;;  %v7483_v61 = vadd.f32 %v7482_v48, %v7481_v58 }
 0x207   : > { %13775 = vst [vmem:[#allocation51_spill] sm:$0xff] %v10890_v39  ;;  %v8735_v62 = vpop.f32.mrb[116].mxu0  ;;  %v10896_v49 = vpack.c.bf16 %v10890_v39, %v10885_v19  ;;  %8133 = vmatprep.mubr.msk.bf16.mxu1 %vm2951_vm0, %v9576_v37  ;;  %v7484_v30 = vsel %vm3721_vm1, %v10890_v39, 0.0  ;;  %v9615_v19 = vld [vmem:[%s10384_s1 + $0x350] ss:$8 sps:$4 sm:$0xff]  }
 0x208   : > { %v8736_v23 = vpop.f32.mrb[117].mxu0  ;;  %v7485_v24 = vadd.f32 %v7484_v30, %v7483_v61 }
 0x209   : > { %13776 = vst [vmem:[#allocation52_spill] sm:$0xff] %v10896_v49  ;;  %v8737_v29 = vadd.f32 %v8736_v23, %v8735_v62  ;;  %v8738_v45 = vpop.f32.mrb[118].mxu0  ;;  %8996 = vmatprep.mubr.msk.bf16.mxu0 %vm3721_vm1, %v10896_v49 }
 0x20a   : > { %v8739_v46 = vpop.f32.mrb[119].mxu0 }
 0x20b   : > { %v10904_v41 = vadd.f32 %v8737_v29, %v10635_v54  ;;  %v8740_v16 = vadd.f32 %v8739_v46, %v8738_v45  ;;  %v9581_v46 = vld [vmem:[%s10384_s1 + $0x290] ss:$8 sps:$4 sm:$0xff]  }
 0x20d   : > { %13777 = vst [vmem:[#allocation53_spill] sm:$0xff] %v10904_v41  ;;  %v10911_v27 = vadd.f32 %v8740_v16, %v10637_v57  ;;  %v7486_v35 = vsel %vm3721_vm1, %v10904_v41, 0.0  ;;  %v9582_v16 = vld [vmem:[%s10384_s1 + $0x2a4] ss:$8 sps:$4 sm:$0xff]  }
 0x20e   : > { %3497 = vmatmul.mubr.bf16.gmra.mrb[224].mxu1 %v9578_v4  ;;  %v7487_v57 = vadd.f32 %v7486_v35, %v7485_v24 }
 0x20f   : > { %13778 = vst [vmem:[#allocation54_spill] sm:$0xff] %v10911_v27  ;;  %v8741_v37 = vpop.f32.mrb[120].mxu0  ;;  %v10917_v54 = vpack.c.bf16 %v10911_v27, %v10904_v41  ;;  %8134 = vmatprep.mubr.msk.bf16.mxu1 %vm2951_vm0, %v9579_v47  ;;  %v7488_v29 = vsel %vm3721_vm1, %v10911_v27, 0.0  ;;  %v9612_v41 = vld [vmem:[%s10384_s1 + $0x340] ss:$8 sps:$4 sm:$0xff]  }
 0x210   : > { %v8742_v11 = vpop.f32.mrb[121].mxu0  ;;  %v7489_v47 = vadd.f32 %v7488_v29, %v7487_v57 }
 0x211   : > { %13779 = vst [vmem:[#allocation55_spill] sm:$0xff] %v10917_v54  ;;  %v8743_v62 = vadd.f32 %v8742_v11, %v8741_v37  ;;  %v8744_v23 = vpop.f32.mrb[122].mxu0  ;;  %8997 = vmatmul.mubr.msk.bf16.gmra.mrb[152].mxu0 %vm3721_vm1, %v10917_v54 }
 0x212   : > { %v8745_v48 = vpop.f32.mrb[123].mxu0 }
 0x213   : > { %v10925_v45 = vadd.f32 %v8743_v62, %v10644_v18  ;;  %v8746_v58 = vadd.f32 %v8745_v48, %v8744_v23  ;;  %v9584_v48 = vld [vmem:[%s10384_s1 + $0x2a0] ss:$8 sps:$4 sm:$0xff]  }
 0x215   : > { %13780 = vst [vmem:[#allocation56_spill] sm:$0xff] %v10925_v45  ;;  %v7490_v4 = vsel %vm3721_vm1, %v10925_v45, 0.0  ;;  %v10932_v61 = vadd.f32 %v8746_v58, %v10646_v28  ;;  %v9585_v58 = vld [vmem:[%s10384_s1 + $0x2b4] ss:$8 sps:$4 sm:$0xff]  }
 0x216   : > { %3505 = vmatmul.mubr.bf16.gmra.mrb[228].mxu1 %v9581_v46  ;;  %v7491_v18 = vadd.f32 %v7490_v4, %v7489_v47 }
 0x217   : > { %13781 = vst [vmem:[#allocation57_spill] sm:$0xff] %v10932_v61  ;;  %v8747_v30 = vpop.f32.mrb[124].mxu0  ;;  %v10936_v35 = vpack.c.bf16 %v10932_v61, %v10925_v45  ;;  %8135 = vmatprep.mubr.msk.bf16.mxu1 %vm2951_vm0, %v9582_v16  ;;  %v7492_v24 = vsel %vm3721_vm1, %v10932_v61, 0.0  ;;  %v9609_v61 = vld [vmem:[%s10384_s1 + $0x330] ss:$8 sps:$4 sm:$0xff]  }
 0x218   : > { %v8748_v37 = vpop.f32.mrb[125].mxu0  ;;  %v7493_v29 = vadd.f32 %v7492_v24, %v7491_v18  ;;  %v9587_v18 = vld [vmem:[%s10384_s1 + $0x2b0] ss:$8 sps:$4 sm:$0xff]   ;;  %v9588_v24 = vld [vmem:[%s10384_s1 + $0x2c4] ss:$8 sps:$4 sm:$0xff]  }
 0x219   : > { %13782 = vst [vmem:[#allocation58_spill] sm:$0xff] %v10936_v35  ;;  %v8749_v11 = vadd.f32 %v8748_v37, %v8747_v30  ;;  %v8750_v62 = vpop.f32.mrb[126].mxu0  ;;  %9000 = vmatprep.mubr.msk.bf16.mxu0 %vm3721_vm1, %v10936_v35  ;;  %v9614_v45 = vld [vmem:[%s10384_s1 + $0x344] ss:$8 sps:$4 sm:$0xff]  }
 0x21a   : > { %v8751_v28 = vpop.f32.mrb[127].mxu0 }
 0x21b   : > { %v10944_v23 = vadd.f32 %v8749_v11, %v10653_v55  ;;  %v8752_v57 = vadd.f32 %v8751_v28, %v8750_v62 }
 0x21d   : > { %13783 = vst [vmem:[#allocation59_spill] sm:$0xff] %v10944_v23  ;;  %v7494_v46 = vsel %vm3721_vm1, %v10944_v23, 0.0  ;;  %v10951_v16 = vadd.f32 %v8752_v57, %v10655_v60  ;;  %v9590_v57 = vld [vmem:[%s10384_s1 + $0x2c0] ss:$8 sps:$4 sm:$0xff]  }
 0x21e   : > { %v7495_v4 = vadd.f32 %v7494_v46, %v7493_v29  ;;  %3513 = vmatmul.mubr.bf16.gmra.mrb[232].mxu1 %v9584_v48  ;;  %v9591_v29 = vld [vmem:[%s10384_s1 + $0x2d4] ss:$8 sps:$4 sm:$0xff]   ;;  %v9593_v46 = vld [vmem:[%s10384_s1 + $0x2d0] ss:$8 sps:$4 sm:$0xff]  }
 0x21f   : > { %13784 = vst [vmem:[#allocation60_spill] sm:$0xff] %v10951_v16  ;;  %v7496_v47 = vsel %vm3721_vm1, %v10951_v16, 0.0  ;;  %v10957_v55 = vpack.c.bf16 %v10951_v16, %v10944_v23  ;;  %8136 = vmatprep.mubr.msk.bf16.mxu1 %vm2951_vm0, %v9585_v58 }
 0x220   : > { %v7497_v30 = vadd.f32 %v7496_v47, %v7495_v4  ;;  %v9594_v4 = vld [vmem:[%s10384_s1 + $0x2e4] ss:$8 sps:$4 sm:$0xff]   ;;  %v9596_v47 = vld [vmem:[%s10384_s1 + $0x2e0] ss:$8 sps:$4 sm:$0xff]  }
 0x221   : > { %13785 = vst [vmem:[#allocation61_spill] sm:$0xff] %v10957_v55  ;;  %9001 = vmatmul.mubr.msk.bf16.gmra.mrb[156].mxu0 %vm3721_vm1, %v10957_v55 }
 0x222   : > { %v7498_v60 = vrot.slane %v7497_v30, 4 }
 0x224   : > { %v7499_v37 = vadd.f32 %v7498_v60, %v7497_v30  ;;  %v9597_v30 = vld [vmem:[%s10384_s1 + $0x2f4] ss:$8 sps:$4 sm:$0xff]   ;;  %v9599_v60 = vld [vmem:[%s10384_s1 + $0x2f0] ss:$8 sps:$4 sm:$0xff]  }
 0x226   : > { %v7500_v11 = vrot.slane %v7499_v37, 2  ;;  %3521 = vmatmul.mubr.bf16.gmra.mrb[236].mxu1 %v9587_v18  ;;  %v9602_v18 = vld [vmem:[%s10384_s1 + $0x304] ss:$8 sps:$4 sm:$0xff]  }
 0x227   : > { %8137 = vmatprep.mubr.msk.bf16.mxu1 %vm2951_vm0, %v9588_v24  ;;  %v9605_v24 = vld [vmem:[%s10384_s1 + $0x314] ss:$8 sps:$4 sm:$0xff]  }
 0x228   : > { %v7501_v62 = vadd.f32 %v7500_v11, %v7499_v37  ;;  %v9600_v37 = vld [vmem:[%s10384_s1 + $0x300] ss:$8 sps:$4 sm:$0xff]   ;;  %v3178_v11 = vpop.f32.mrb[64].mxu1 }
 0x22a   : > { %v7502_v28 = vrot.slane %v7501_v62, 1 }
 0x22c   : > { %v7503_v48 = vadd.f32 %v7502_v28, %v7501_v62  ;;  %v10992_v62 = vld [vmem:[%s13630_s7] ss:$0 sm:$0xff]  ;;  %v3180_v28 = vpop.f32.mrb[65].mxu1 }
 0x22e   : > { %v10970_v58 = vmul.f32 0.00390625, %v7503_v48  ;;  %3529 = vmatmul.mubr.bf16.gmra.mrb[240].mxu1 %v9590_v57  ;;  %v9603_v57 = vld [vmem:[%s10384_s1 + $0x310] ss:$8 sps:$4 sm:$0xff]   ;;  %v10996_v48 = vadd.f32 %v10992_v62, %v3178_v11 }
 0x22f   : > { %8138 = vmatprep.mubr.msk.bf16.mxu1 %vm2951_vm0, %v9591_v29  ;;  %v9608_v29 = vld [vmem:[%s10384_s1 + $0x324] ss:$8 sps:$4 sm:$0xff]  }
 0x230   : > { %13786 = vst [vmem:[#allocation62_spill] sm:$0xff] %v10970_v58  ;;  %7507 = vst.msk [vmem:[%s661_s29] sm:$0x1] %vm7506_vm2, %v10970_v58  ;;  %v9611_v58 = vld [vmem:[%s10384_s1 + $0x334] ss:$8 sps:$4 sm:$0xff]  }
 0x236   : > { %3537 = vmatmul.mubr.bf16.gmra.mrb[244].mxu1 %v9593_v46  ;;  %v3181_v46 = vpop.f32.mrb[66].mxu1 }
 0x237   : > { %8139 = vmatprep.mubr.msk.bf16.mxu1 %vm2951_vm0, %v9594_v4  ;;  %v11000_v4 = vadd.f32 %v10992_v62, %v3181_v46 }
 0x23e   : > { %3545 = vmatmul.mubr.bf16.gmra.mrb[248].mxu1 %v9596_v47  ;;  %v3183_v47 = vpop.f32.mrb[67].mxu1 }
 0x23f   : > { %8140 = vmatprep.mubr.msk.bf16.mxu1 %vm2951_vm0, %v9597_v30 }
 0x246   : > { %3553 = vmatmul.mubr.bf16.gmra.mrb[252].mxu1 %v9599_v60  ;;  %v3186_v60 = vpop.f32.mrb[68].mxu1 }
 0x247   : > { %8141 = vmatprep.mubr.msk.bf16.mxu1 %vm2951_vm0, %v9602_v18  ;;  %v11006_v18 = vadd.f32 %v10992_v62, %v3186_v60 }
 0x24e   : > { %3561 = vmatmul.mubr.bf16.gmra.mrb[0].mxu1 %v9600_v37  ;;  %v3188_v37 = vpop.f32.mrb[69].mxu1 }
 0x24f   : > { %8142 = vmatprep.mubr.msk.bf16.mxu1 %vm2951_vm0, %v9605_v24  ;;  %v3189_v24 = vpop.f32.mrb[70].mxu1 }
 0x250   : > { %v11009_v11 = vadd.f32 %v10992_v62, %v3189_v24  ;;  %v3191_v28 = vpop.f32.mrb[71].mxu1 }
 0x251   : > { %v3194_v46 = vpop.f32.mrb[72].mxu1 }
 0x252   : > { %v11016_v47 = vadd.f32 %v10992_v62, %v3194_v46 }
 0x256   : > { %3569 = vmatmul.mubr.bf16.gmra.mrb[4].mxu1 %v9603_v57 }
 0x257   : > { %8143 = vmatprep.mubr.msk.bf16.mxu1 %vm2951_vm0, %v9608_v29  ;;  %v3196_v29 = vpop.f32.mrb[73].mxu1 }
 0x258   : > { %v3197_v60 = vpop.f32.mrb[74].mxu1 }
 0x259   : > { %v11019_v37 = vadd.f32 %v10992_v62, %v3197_v60  ;;  %v3199_v30 = vpop.f32.mrb[75].mxu1 }
 0x25a   : > { %v3202_v24 = vpop.f32.mrb[76].mxu1 }
 0x25b   : > { %v11025_v16 = vadd.f32 %v10992_v62, %v3202_v24  ;;  %v3204_v57 = vpop.f32.mrb[77].mxu1 }
 0x25c   : > { %v3205_v46 = vpop.f32.mrb[78].mxu1 }
 0x25d   : > { %v11028_v23 = vadd.f32 %v10992_v62, %v3205_v46  ;;  %v3207_v29 = vpop.f32.mrb[79].mxu1 }
 0x25e   : > { %3577 = vmatmul.mubr.bf16.gmra.mrb[8].mxu1 %v9606_v38  ;;  %v3210_v60 = vpop.f32.mrb[80].mxu1 }
 0x25f   : > { %8144 = vmatprep.mubr.msk.bf16.mxu1 %vm2951_vm0, %v9611_v58  ;;  %v11035_v58 = vadd.f32 %v10992_v62, %v3210_v60  ;;  %v3212_v30 = vpop.f32.mrb[81].mxu1 }
 0x260   : > { %v3213_v24 = vpop.f32.mrb[82].mxu1 }
 0x261   : > { %v11038_v57 = vadd.f32 %v10992_v62, %v3213_v24  ;;  %v3215_v28 = vpop.f32.mrb[83].mxu1 }
 0x262   : > { %v3218_v46 = vpop.f32.mrb[84].mxu1 }
 0x263   : > { %v11044_v27 = vadd.f32 %v10992_v62, %v3218_v46  ;;  %v3220_v38 = vpop.f32.mrb[85].mxu1 }
 0x264   : > { %v3221_v60 = vpop.f32.mrb[86].mxu1 }
 0x265   : > { %v11047_v0 = vadd.f32 %v10992_v62, %v3221_v60  ;;  %v3223_v30 = vpop.f32.mrb[87].mxu1 }
 0x266   : > { %3585 = vmatmul.mubr.bf16.gmra.mrb[12].mxu1 %v9609_v61  ;;  %v3226_v24 = vpop.f32.mrb[88].mxu1 }
 0x267   : > { %8145 = vmatprep.mubr.msk.bf16.mxu1 %vm2951_vm0, %v9614_v45  ;;  %v11054_v45 = vadd.f32 %v10992_v62, %v3226_v24  ;;  %v3228_v28 = vpop.f32.mrb[89].mxu1 }
 0x268   : > { %v3229_v46 = vpop.f32.mrb[90].mxu1 }
 0x269   : > { %v11057_v38 = vadd.f32 %v10992_v62, %v3229_v46  ;;  %v3231_v29 = vpop.f32.mrb[91].mxu1 }
 0x26a   : > { %v3234_v60 = vpop.f32.mrb[92].mxu1 }
 0x26b   : > { %v11063_v39 = vadd.f32 %v10992_v62, %v3234_v60  ;;  %v3236_v61 = vpop.f32.mrb[93].mxu1 }
 0x26c   : > { %v3237_v24 = vpop.f32.mrb[94].mxu1 }
 0x26d   : > { %v11066_v21 = vadd.f32 %v10992_v62, %v3237_v24  ;;  %v3239_v28 = vpop.f32.mrb[95].mxu1 }
 0x26e   : > { %3593 = vmatmul.mubr.bf16.gmra.mrb[16].mxu1 %v9612_v41  ;;  %v3242_v46 = vpop.f32.mrb[96].mxu1 }
 0x26f   : > { %8146 = vmatprep.mubr.msk.bf16.mxu1 %vm2951_vm0, %v9617_v1  ;;  %v11073_v1 = vadd.f32 %v10992_v62, %v3242_v46  ;;  %v3244_v29 = vpop.f32.mrb[97].mxu1 }
 0x270   : > { %v3245_v60 = vpop.f32.mrb[98].mxu1 }
 0x271   : > { %v11076_v61 = vadd.f32 %v10992_v62, %v3245_v60  ;;  %v3247_v30 = vpop.f32.mrb[99].mxu1 }
 0x272   : > { %v3250_v24 = vpop.f32.mrb[100].mxu1 }
 0x273   : > { %v11082_v52 = vadd.f32 %v10992_v62, %v3250_v24  ;;  %v3252_v41 = vpop.f32.mrb[101].mxu1 }
 0x274   : > { %v3253_v46 = vpop.f32.mrb[102].mxu1 }
 0x275   : > { %v11085_v6 = vadd.f32 %v10992_v62, %v3253_v46  ;;  %v3255_v29 = vpop.f32.mrb[103].mxu1  ;;  %v9650_v46 = vld [vmem:[%s13787_s23 + $0x4] ss:$8 sps:$4 sm:$0xff]  }
 0x276   : > { %3601 = vmatmul.mubr.bf16.gmra.mrb[20].mxu1 %v9615_v19  ;;  %v3258_v60 = vpop.f32.mrb[104].mxu1  ;;  %4811 = vmatprep.mubr.bf16.mxu0 %v9650_v46 }
 0x277   : > { %8147 = vmatprep.mubr.msk.bf16.mxu1 %vm2951_vm0, %v9620_v2  ;;  %v11092_v2 = vadd.f32 %v10992_v62, %v3258_v60  ;;  %v3260_v30 = vpop.f32.mrb[105].mxu1 }
 0x278   : > { %v3261_v28 = vpop.f32.mrb[106].mxu1 }
 0x279   : > { %v11095_v24 = vadd.f32 %v10992_v62, %v3261_v28  ;;  %v3263_v41 = vpop.f32.mrb[107].mxu1 }
 0x27a   : > { %v3266_v29 = vpop.f32.mrb[108].mxu1 }
 0x27b   : > { %v11104_v19 = vadd.f32 %v10992_v62, %v3266_v29  ;;  %v3268_v30 = vpop.f32.mrb[109].mxu1 }
 0x27c   : > { %v3269_v28 = vpop.f32.mrb[110].mxu1 }
 0x27d   : > { %v11107_v51 = vadd.f32 %v10992_v62, %v3269_v28  ;;  %v3271_v41 = vpop.f32.mrb[111].mxu1 }
 0x27e   : > { %3609 = vmatmul.mubr.bf16.gmra.mrb[24].mxu1 %v9618_v8  ;;  %v3274_v59 = vpop.f32.mrb[112].mxu1  ;;  %v9626_v8 = vld [vmem:[%s10384_s1 + $0x384] ss:$8 sps:$4 sm:$0xff]  }
 0x27f   : > { %8148 = vmatprep.mubr.msk.bf16.mxu1 %vm2951_vm0, %v9623_v56  ;;  %v11114_v36 = vadd.f32 %v10992_v62, %v3274_v59  ;;  %v3276_v60 = vpop.f32.mrb[113].mxu1 }
 0x280   : > { %v3277_v10 = vpop.f32.mrb[114].mxu1 }
 0x281   : > { %v11117_v46 = vadd.f32 %v10992_v62, %v3277_v10  ;;  %v3279_v28 = vpop.f32.mrb[115].mxu1 }
 0x282   : > { %v3282_v3 = vpop.f32.mrb[116].mxu1 }
 0x283   : > { %v11123_v60 = vadd.f32 %v10992_v62, %v3282_v3  ;;  %v3284_v56 = vpop.f32.mrb[117].mxu1 }
 0x284   : > { %v8974_v17 = vpop.f32.mrb[128].mxu0  ;;  %v3285_v50 = vpop.f32.mrb[118].mxu1 }
 0x285   : > { %v3804_v29 = vpop.f32.mrb[129].mxu0  ;;  %v11126_v10 = vadd.f32 %v10992_v62, %v3285_v50 }
 0x286   : > { %v8975_v30 = vpop.f32.mrb[130].mxu0  ;;  %3617 = vmatmul.mubr.bf16.gmra.mrb[28].mxu1 %v9621_v31  ;;  %v9624_v31 = vld [vmem:[%s10384_s1 + $0x380] ss:$8 sps:$4 sm:$0xff]  }
 0x287   : > { %v4124_v41 = vpack.c.bf16 %v8975_v30, %v8974_v17  ;;  %v3807_v63 = vpop.f32.mrb[131].mxu0  ;;  %8149 = vmatprep.mubr.msk.bf16.mxu1 %vm2951_vm0, %v9626_v8  ;;  %v3287_v17 = vpop.f32.mrb[119].mxu1  ;;  %v13789_v30 = vmov 0  }
 0x288   : > { %v4123_v5 = vpack.c.bf16 %v3807_v63, %v3804_v29  ;;  %v3290_v28 = vpop.f32.mrb[120].mxu1  ;;  %v9629_v63 = vld [vmem:[%s10384_s1 + $0x394] ss:$8 sps:$4 sm:$0xff]  }
 0x289   : > { %v11134_v29 = vadd.f32 %v10992_v62, %v3290_v28  ;;  %v3292_v3 = vpop.f32.mrb[121].mxu1 }
 0x28a   : > { %4780 = vmatpush1.bf16.msra.mxu0 %v4123_v5  ;;  %v3293_v56 = vpop.f32.mrb[122].mxu1 }
 0x28b   : > { %4781 = vmatprep.subr.bf16.mxu0 %v13789_v30  ;;  %v11137_v50 = vadd.f32 %v10992_v62, %v3293_v56  ;;  %v3295_v5 = vpop.f32.mrb[123].mxu1 }
 0x28c   : > { %v3298_v17 = vpop.f32.mrb[124].mxu1 }
 0x28d   : > { %v11144_v28 = vadd.f32 %v10992_v62, %v3298_v17  ;;  %v3300_v3 = vpop.f32.mrb[125].mxu1 }
 0x28e   : > { %4782 = vmatpush1.bf16.msra.mxu0 %v4124_v41  ;;  %3625 = vmatmul.mubr.bf16.gmra.mrb[32].mxu1 %v9624_v31  ;;  %v3301_v59 = vpop.f32.mrb[126].mxu1 }
 0x28f   : > { %4783 = vmatprep.subr.bf16.mxu0 %v13789_v30  ;;  %8150 = vmatprep.mubr.msk.bf16.mxu1 %vm2951_vm0, %v9629_v63  ;;  %v11147_v41 = vadd.f32 %v10992_v62, %v3301_v59  ;;  %v3303_v56 = vpop.f32.mrb[127].mxu1 }
 0x290   : > { %v3306_v5 = vpop.f32.mrb[128].mxu1 }
 0x291   : > { %v11154_v63 = vadd.f32 %v10992_v62, %v3306_v5  ;;  %v3308_v8 = vpop.f32.mrb[129].mxu1  ;;  %v9633_v5 = vld [vmem:[%s10384_s1 + $0x3b0] ss:$8 sps:$4 sm:$0xff]  }
 0x292   : > { %v3309_v17 = vpop.f32.mrb[130].mxu1 }
 0x293   : > { %v11157_v3 = vadd.f32 %v10992_v62, %v3309_v17  ;;  %v3311_v59 = vpop.f32.mrb[131].mxu1 }
 0x294   : > { %v8978_v43 = vpop.f32.mrb[132].mxu0  ;;  %v3314_v55 = vpop.f32.mrb[132].mxu1 }
 0x295   : > { %v3820_v26 = vpop.f32.mrb[133].mxu0  ;;  %v11163_v8 = vadd.f32 %v10992_v62, %v3314_v55  ;;  %v3316_v31 = vpop.f32.mrb[133].mxu1 }
 0x296   : > { %v8979_v13 = vpop.f32.mrb[134].mxu0  ;;  %3633 = vmatmul.mubr.bf16.gmra.mrb[36].mxu1 %v9627_v40  ;;  %v3317_v54 = vpop.f32.mrb[134].mxu1 }
 0x297   : > { %v4126_v56 = vpack.c.bf16 %v8979_v13, %v8978_v43  ;;  %v3823_v9 = vpop.f32.mrb[135].mxu0  ;;  %8151 = vmatprep.mubr.msk.bf16.mxu1 %vm2951_vm0, %v9632_v33  ;;  %v11166_v17 = vadd.f32 %v10992_v62, %v3317_v54  ;;  %v3319_v13 = vpop.f32.mrb[135].mxu1  ;;  %v9630_v43 = vld [vmem:[%s10384_s1 + $0x3a0] ss:$8 sps:$4 sm:$0xff]  }
 0x298   : > { %v4125_v35 = vpack.c.bf16 %v3823_v9, %v3820_v26  ;;  %v3322_v40 = vpop.f32.mrb[136].mxu1  ;;  %v9635_v9 = vld [vmem:[%s10384_s1 + $0x3b4] ss:$8 sps:$4 sm:$0xff]  }
 0x299   : > { %v11174_v33 = vadd.f32 %v10992_v62, %v3322_v40  ;;  %v3324_v55 = vpop.f32.mrb[137].mxu1 }
 0x29a   : > { %4784 = vmatpush1.bf16.msra.mxu0 %v4125_v35  ;;  %v3325_v31 = vpop.f32.mrb[138].mxu1 }
 0x29b   : > { %4785 = vmatprep.subr.bf16.mxu0 %v13789_v30  ;;  %v11177_v54 = vadd.f32 %v10992_v62, %v3325_v31  ;;  %v3327_v35 = vpop.f32.mrb[139].mxu1 }
 0x29c   : > { %v3330_v59 = vpop.f32.mrb[140].mxu1 }
 0x29d   : > { %v11184_v40 = vadd.f32 %v10992_v62, %v3330_v59  ;;  %v3332_v55 = vpop.f32.mrb[141].mxu1 }
 0x29e   : > { %4786 = vmatpush1.bf16.msra.mxu0 %v4126_v56  ;;  %3641 = vmatmul.mubr.bf16.gmra.mrb[40].mxu1 %v9630_v43  ;;  %v3333_v26 = vpop.f32.mrb[142].mxu1 }
 0x29f   : > { %4787 = vmatprep.subr.bf16.mxu0 %v13789_v30  ;;  %8152 = vmatprep.mubr.msk.bf16.mxu1 %vm2951_vm0, %v9635_v9  ;;  %v11187_v56 = vadd.f32 %v10992_v62, %v3333_v26  ;;  %v3335_v31 = vpop.f32.mrb[143].mxu1 }
 0x2a0   : > { %v3338_v35 = vpop.f32.mrb[144].mxu1 }
 0x2a1   : > { %v11194_v9 = vadd.f32 %v10992_v62, %v3338_v35  ;;  %v3340_v13 = vpop.f32.mrb[145].mxu1  ;;  %v9639_v35 = vld [vmem:[%s10384_s1 + $0x3d0] ss:$8 sps:$4 sm:$0xff]  }
 0x2a2   : > { %v3341_v59 = vpop.f32.mrb[146].mxu1 }
 0x2a3   : > { %v11197_v55 = vadd.f32 %v10992_v62, %v3341_v59  ;;  %v3343_v26 = vpop.f32.mrb[147].mxu1 }
 0x2a4   : > { %v8982_v49 = vpop.f32.mrb[136].mxu0  ;;  %v3346_v22 = vpop.f32.mrb[148].mxu1 }
 0x2a5   : > { %v3836_v32 = vpop.f32.mrb[137].mxu0  ;;  %v11203_v13 = vadd.f32 %v10992_v62, %v3346_v22  ;;  %v3348_v43 = vpop.f32.mrb[149].mxu1 }
 0x2a6   : > { %v8983_v25 = vpop.f32.mrb[138].mxu0  ;;  %3649 = vmatmul.mubr.bf16.gmra.mrb[44].mxu1 %v9633_v5  ;;  %v3349_v14 = vpop.f32.mrb[150].mxu1 }
 0x2a7   : > { %v4128_v31 = vpack.c.bf16 %v8983_v25, %v8982_v49  ;;  %v3839_v42 = vpop.f32.mrb[139].mxu0  ;;  %8153 = vmatprep.mubr.msk.bf16.mxu1 %vm2951_vm0, %v9638_v7  ;;  %v11206_v59 = vadd.f32 %v10992_v62, %v3349_v14  ;;  %v3351_v25 = vpop.f32.mrb[151].mxu1  ;;  %v9636_v49 = vld [vmem:[%s10384_s1 + $0x3c0] ss:$8 sps:$4 sm:$0xff]  }
 0x2a8   : > { %v4127_v44 = vpack.c.bf16 %v3839_v42, %v3836_v32  ;;  %v3354_v5 = vpop.f32.mrb[152].mxu1  ;;  %v9641_v42 = vld [vmem:[%s10384_s1 + $0x3d4] ss:$8 sps:$4 sm:$0xff]  }
 0x2a9   : > { %v11214_v7 = vadd.f32 %v10992_v62, %v3354_v5  ;;  %v3356_v22 = vpop.f32.mrb[153].mxu1 }
 0x2aa   : > { %4788 = vmatpush1.bf16.msra.mxu0 %v4127_v44  ;;  %v3357_v43 = vpop.f32.mrb[154].mxu1 }
 0x2ab   : > { %4789 = vmatprep.subr.bf16.mxu0 %v13789_v30  ;;  %13790 = vst [vmem:[#allocation63_spill] sm:$0xff] %v11214_v7  ;;  %v11217_v14 = vadd.f32 %v10992_v62, %v3357_v43  ;;  %v3359_v44 = vpop.f32.mrb[155].mxu1 }
 0x2ac   : > { %v3362_v26 = vpop.f32.mrb[156].mxu1 }
 0x2ad   : > { %13791 = vst [vmem:[#allocation64_spill] sm:$0xff] %v11217_v14  ;;  %v11224_v5 = vadd.f32 %v10992_v62, %v3362_v26  ;;  %v3364_v22 = vpop.f32.mrb[157].mxu1 }
 0x2ae   : > { %4790 = vmatpush1.bf16.msra.mxu0 %v4128_v31  ;;  %3657 = vmatmul.mubr.bf16.gmra.mrb[48].mxu1 %v9636_v49  ;;  %v3365_v32 = vpop.f32.mrb[158].mxu1 }
 0x2af   : > { %4791 = vmatprep.subr.bf16.mxu0 %v13789_v30  ;;  %8154 = vmatprep.mubr.msk.bf16.mxu1 %vm2951_vm0, %v9641_v42  ;;  %13792 = vst [vmem:[#allocation65_spill] sm:$0xff] %v11224_v5  ;;  %v11227_v31 = vadd.f32 %v10992_v62, %v3365_v32  ;;  %v3367_v43 = vpop.f32.mrb[159].mxu1 }
 0x2b0   : > { %v3370_v44 = vpop.f32.mrb[160].mxu1 }
 0x2b1   : > { %13793 = vst [vmem:[#allocation66_spill] sm:$0xff] %v11227_v31  ;;  %v11234_v42 = vadd.f32 %v10992_v62, %v3370_v44  ;;  %v3372_v25 = vpop.f32.mrb[161].mxu1  ;;  %v9645_v44 = vld [vmem:[%s10384_s1 + $0x3f0] ss:$8 sps:$4 sm:$0xff]   ;;  %v13800_v31 = vpack.c.bf16 %v11000_v4, %v10996_v48 }
 0x2b2   : > { %v3373_v26 = vpop.f32.mrb[162].mxu1 }
 0x2b3   : > { %13794 = vst [vmem:[#allocation67_spill] sm:$0xff] %v11234_v42  ;;  %v11237_v22 = vadd.f32 %v10992_v62, %v3373_v26  ;;  %v3375_v32 = vpop.f32.mrb[163].mxu1 }
 0x2b4   : > { %v8986_v20 = vpop.f32.mrb[140].mxu0  ;;  %v3378_v7 = vpop.f32.mrb[164].mxu1 }
 0x2b5   : > { %v3852_v53 = vpop.f32.mrb[141].mxu0  ;;  %13795 = vst [vmem:[#allocation68_spill] sm:$0xff] %v11237_v22  ;;  %v11243_v25 = vadd.f32 %v10992_v62, %v3378_v7  ;;  %v3380_v49 = vpop.f32.mrb[165].mxu1 }
 0x2b6   : > { %v8987_v34 = vpop.f32.mrb[142].mxu0  ;;  %3665 = vmatmul.mubr.bf16.gmra.mrb[52].mxu1 %v9639_v35  ;;  %v3381_v5 = vpop.f32.mrb[166].mxu1 }
 0x2b7   : > { %v4130_v43 = vpack.c.bf16 %v8987_v34, %v8986_v20  ;;  %v3855_v15 = vpop.f32.mrb[143].mxu0  ;;  %8155 = vmatprep.mubr.msk.bf16.mxu1 %vm2951_vm0, %v9644_v12  ;;  %13796 = vst [vmem:[#allocation69_spill] sm:$0xff] %v11243_v25  ;;  %v11246_v26 = vadd.f32 %v10992_v62, %v3381_v5  ;;  %v3383_v34 = vpop.f32.mrb[167].mxu1  ;;  %v9642_v20 = vld [vmem:[%s10384_s1 + $0x3e0] ss:$8 sps:$4 sm:$0xff]  }
 0x2b8   : > { %v4129_v14 = vpack.c.bf16 %v3855_v15, %v3852_v53  ;;  %v3386_v35 = vpop.f32.mrb[168].mxu1  ;;  %v9647_v15 = vld [vmem:[%s10384_s1 + $0x3f4] ss:$8 sps:$4 sm:$0xff]   ;;  %s13715_s1 = sshll.u32 %s10136_s2, 4 }
 0x2b9   : > { %13797 = vst [vmem:[#allocation70_spill] sm:$0xff] %v11246_v26  ;;  %v11254_v12 = vadd.f32 %v10992_v62, %v3386_v35  ;;  %v3388_v7 = vpop.f32.mrb[169].mxu1  ;;  %s13530_s28 = scalar_lea.hbm %s13642_s19, %s13715_s1 }
 0x2ba   : > { %4792 = vmatpush1.bf16.msra.mxu0 %v4129_v14  ;;  %v3389_v49 = vpop.f32.mrb[170].mxu1 }
 0x2bb   : > { %4793 = vmatprep.subr.bf16.mxu0 %v13789_v30  ;;  %13798 = vst [vmem:[#allocation71_spill] sm:$0xff] %v11254_v12  ;;  %v11257_v14 = vadd.f32 %v10992_v62, %v3389_v49  ;;  %v3391_v5 = vpop.f32.mrb[171].mxu1 }
 0x2bc   : > { %v3394_v32 = vpop.f32.mrb[172].mxu1 }
 0x2bd   : > { %13799 = vst [vmem:[#allocation72_spill] sm:$0xff] %v11257_v14  ;;  %v11264_v35 = vadd.f32 %v10992_v62, %v3394_v32  ;;  %v3396_v53 = vpop.f32.mrb[173].mxu1 }
 0x2be   : > { %4794 = vmatpush1.bf16.msra.mxu0 %v4130_v43  ;;  %3673 = vmatmul.mubr.bf16.gmra.mrb[56].mxu1 %v9642_v20  ;;  %v3397_v7 = vpop.f32.mrb[174].mxu1 }
 0x2bf   : > { %4795 = vmatprep.subr.bf16.mxu0 %v13789_v30  ;;  %8156 = vmatprep.mubr.msk.bf16.mxu1 %vm2951_vm0, %v9647_v15  ;;  %v11267_v43 = vadd.f32 %v10992_v62, %v3397_v7  ;;  %v3399_v49 = vpop.f32.mrb[175].mxu1 }
 0x2c0   : > { %v3402_v5 = vpop.f32.mrb[176].mxu1 }
 0x2c1   : > { %v11273_v15 = vadd.f32 %v10992_v62, %v3402_v5  ;;  %v3404_v26 = vpop.f32.mrb[177].mxu1 }
 0x2c2   : > { %v3405_v12 = vpop.f32.mrb[178].mxu1 }
 0x2c3   : > { %v11276_v53 = vadd.f32 %v10992_v62, %v3405_v12  ;;  %v3407_v14 = vpop.f32.mrb[179].mxu1 }
 0x2c4   : > { %v8990_v25 = vpop.f32.mrb[144].mxu0  ;;  %v3410_v49 = vpop.f32.mrb[180].mxu1 }
 0x2c5   : > { %v3868_v34 = vpop.f32.mrb[145].mxu0  ;;  %v11285_v5 = vadd.f32 %v10992_v62, %v3410_v49  ;;  %v3412_v20 = vpop.f32.mrb[181].mxu1  ;;  %v13802_v49 = vpack.c.bf16 %v11019_v37, %v11016_v47 }
 0x2c6   : > { %v8991_v32 = vpop.f32.mrb[146].mxu0  ;;  %3681 = vmatmul.mubr.bf16.gmra.mrb[60].mxu1 %v9645_v44  ;;  %v3413_v12 = vpop.f32.mrb[182].mxu1  ;;  %v13801_v20 = vpack.c.bf16 %v11009_v11, %v11006_v18 }
 0x2c7   : > { %v4132_v7 = vpack.c.bf16 %v8991_v32, %v8990_v25  ;;  %v3871_v42 = vpop.f32.mrb[147].mxu0  ;;  %9008 = vmatprep.mubr.msk.bf16.mxu1 %vm3721_vm1, %v13800_v31  ;;  %v11288_v25 = vadd.f32 %v10992_v62, %v3413_v12  ;;  %v3415_v44 = vpop.f32.mrb[183].mxu1 }
 0x2c8   : > { %v4131_v22 = vpack.c.bf16 %v3871_v42, %v3868_v34  ;;  %v3418_v42 = vpop.f32.mrb[184].mxu1 }
 0x2c9   : > { %v11294_v4 = vadd.f32 %v10992_v62, %v3418_v42  ;;  %v3420_v31 = vpop.f32.mrb[185].mxu1 }
 0x2ca   : > { %4796 = vmatpush1.bf16.msra.mxu0 %v4131_v22  ;;  %v3421_v14 = vpop.f32.mrb[186].mxu1 }
 0x2cb   : > { %4797 = vmatprep.subr.bf16.mxu0 %v13789_v30  ;;  %v11297_v34 = vadd.f32 %v10992_v62, %v3421_v14  ;;  %v3423_v22 = vpop.f32.mrb[187].mxu1 }
 0x2cc   : > { %v3426_v32 = vpop.f32.mrb[188].mxu1 }
 0x2cd   : > { %v11311_v12 = vadd.f32 %v10992_v62, %v3426_v32  ;;  %v3428_v44 = vpop.f32.mrb[189].mxu1 }
 0x2ce   : > { %4798 = vmatpush1.bf16.msra.mxu0 %v4132_v7  ;;  %9009 = vmatmul.mubr.msk.bf16.vlgmr.msra.gmra.mrb[64].mxu1 %vm3721_vm1, %v13801_v20  ;;  %v3429_v42 = vpop.f32.mrb[190].mxu1 }
 0x2cf   : > { %4799 = vmatprep.subr.bf16.mxu0 %v13789_v30  ;;  %9012 = vmatprep.mubr.msk.bf16.mxu1 %vm3721_vm1, %v13802_v49  ;;  %v11314_v31 = vadd.f32 %v10992_v62, %v3429_v42  ;;  %v3431_v18 = vpop.f32.mrb[191].mxu1 }
 0x2d0   : > { %v3434_v11 = vpop.f32.mrb[192].mxu1  ;;  %v13803_v18 = vpack.c.bf16 %v11028_v23, %v11025_v16 }
 0x2d1   : > { %v11319_v47 = vadd.f32 %v10992_v62, %v3434_v11  ;;  %v3436_v37 = vpop.f32.mrb[193].mxu1  ;;  %v13804_v11 = vpack.c.bf16 %v11038_v57, %v11035_v58 }
 0x2d2   : > { %v3437_v49 = vpop.f32.mrb[194].mxu1 }
 0x2d3   : > { %v11322_v32 = vadd.f32 %v10992_v62, %v3437_v49  ;;  %v3439_v44 = vpop.f32.mrb[195].mxu1 }
 0x2d4   : > { %v8994_v14 = vpop.f32.mrb[148].mxu0  ;;  %v3442_v26 = vpop.f32.mrb[196].mxu1 }
 0x2d5   : > { %v3884_v20 = vpop.f32.mrb[149].mxu0  ;;  %v11335_v49 = vadd.f32 %v10992_v62, %v3442_v26 }
 0x2d6   : > { %v8995_v7 = vpop.f32.mrb[150].mxu0  ;;  %9013 = vmatmul.mubr.msk.bf16.gmra.mrb[68].mxu1 %vm3721_vm1, %v13803_v18  ;;  %v13805_v18 = vpack.c.bf16 %v11047_v0, %v11044_v27 }
 0x2d7   : > { %v4134_v48 = vpack.c.bf16 %v8995_v7, %v8994_v14  ;;  %v3887_v42 = vpop.f32.mrb[151].mxu0  ;;  %9016 = vmatprep.mubr.msk.bf16.mxu1 %vm3721_vm1, %v13804_v11  ;;  %v3444_v7 = vpop.f32.mrb[197].mxu1 }
 0x2d8   : > { %v4133_v22 = vpack.c.bf16 %v3887_v42, %v3884_v20  ;;  %v3445_v14 = vpop.f32.mrb[198].mxu1  ;;  %v13806_v7 = vpack.c.bf16 %v11057_v38, %v11054_v45 }
 0x2d9   : > { %v11338_v23 = vadd.f32 %v10992_v62, %v3445_v14  ;;  %v3447_v16 = vpop.f32.mrb[199].mxu1 }
 0x2da   : > { %4800 = vmatpush1.bf16.msra.mxu0 %v4133_v22  ;;  %v3450_v20 = vpop.f32.mrb[200].mxu1 }
 0x2db   : > { %4801 = vmatprep.subr.bf16.mxu0 %v13789_v30  ;;  %v11344_v57 = vadd.f32 %v10992_v62, %v3450_v20  ;;  %v3452_v44 = vpop.f32.mrb[201].mxu1 }
 0x2dc   : > { %v3453_v42 = vpop.f32.mrb[202].mxu1 }
 0x2dd   : > { %v11347_v26 = vadd.f32 %v10992_v62, %v3453_v42  ;;  %v3455_v22 = vpop.f32.mrb[203].mxu1 }
 0x2de   : > { %4802 = vmatpush1.bf16.msra.mxu0 %v4134_v48  ;;  %9017 = vmatmul.mubr.msk.bf16.gmra.mrb[72].mxu1 %vm3721_vm1, %v13805_v18  ;;  %v3458_v11 = vpop.f32.mrb[204].mxu1 }
 0x2df   : > { %4803 = vmatprep.subr.bf16.mxu0 %v13789_v30  ;;  %9020 = vmatprep.mubr.msk.bf16.mxu1 %vm3721_vm1, %v13806_v7  ;;  %v11361_v14 = vadd.f32 %v10992_v62, %v3458_v11  ;;  %v3460_v16 = vpop.f32.mrb[205].mxu1 }
 0x2e0   : > { %v3461_v20 = vpop.f32.mrb[206].mxu1 }
 0x2e1   : > { %v11364_v44 = vadd.f32 %v10992_v62, %v3461_v20  ;;  %v3463_v0 = vpop.f32.mrb[207].mxu1 }
 0x2e2   : > { %v3466_v27 = vpop.f32.mrb[208].mxu1  ;;  %v13807_v0 = vpack.c.bf16 %v11066_v21, %v11063_v39 }
 0x2e3   : > { %v11369_v45 = vadd.f32 %v10992_v62, %v3466_v27  ;;  %v3468_v38 = vpop.f32.mrb[209].mxu1  ;;  %v13808_v27 = vpack.c.bf16 %v11076_v61, %v11073_v1 }
 0x2e4   : > { %v8998_v42 = vpop.f32.mrb[152].mxu0  ;;  %v3469_v7 = vpop.f32.mrb[210].mxu1 }
 0x2e5   : > { %v3900_v18 = vpop.f32.mrb[153].mxu0  ;;  %v11372_v11 = vadd.f32 %v10992_v62, %v3469_v7  ;;  %v3471_v16 = vpop.f32.mrb[211].mxu1 }
 0x2e6   : > { %v8999_v48 = vpop.f32.mrb[154].mxu0  ;;  %9021 = vmatmul.mubr.msk.bf16.gmra.mrb[76].mxu1 %vm3721_vm1, %v13807_v0  ;;  %v3474_v37 = vpop.f32.mrb[212].mxu1  ;;  %v13809_v0 = vpack.c.bf16 %v11085_v6, %v11082_v52 }
 0x2e7   : > { %v4136_v58 = vpack.c.bf16 %v8999_v48, %v8998_v42  ;;  %v3903_v20 = vpop.f32.mrb[155].mxu0  ;;  %9024 = vmatprep.mubr.msk.bf16.mxu1 %vm3721_vm1, %v13808_v27  ;;  %v11385_v7 = vadd.f32 %v10992_v62, %v3474_v37  ;;  %v3476_v48 = vpop.f32.mrb[213].mxu1 }
 0x2e8   : > { %v4135_v22 = vpack.c.bf16 %v3903_v20, %v3900_v18  ;;  %v3477_v42 = vpop.f32.mrb[214].mxu1  ;;  %v13810_v48 = vpack.c.bf16 %v11095_v24, %v11092_v2 }
 0x2e9   : > { %v11388_v21 = vadd.f32 %v10992_v62, %v3477_v42  ;;  %v3479_v39 = vpop.f32.mrb[215].mxu1 }
 0x2ea   : > { %4804 = vmatpush1.bf16.msra.mxu0 %v4135_v22  ;;  %v3482_v18 = vpop.f32.mrb[216].mxu1 }
 0x2eb   : > { %4805 = vmatprep.subr.bf16.mxu0 %v13789_v30  ;;  %v11394_v61 = vadd.f32 %v10992_v62, %v3482_v18  ;;  %v3484_v16 = vpop.f32.mrb[217].mxu1 }
 0x2ec   : > { %v3485_v20 = vpop.f32.mrb[218].mxu1 }
 0x2ed   : > { %v11397_v37 = vadd.f32 %v10992_v62, %v3485_v20  ;;  %v3487_v22 = vpop.f32.mrb[219].mxu1 }
 0x2ee   : > { %4806 = vmatpush1.bf16.msra.mxu0 %v4136_v58  ;;  %9025 = vmatmul.mubr.msk.bf16.gmra.mrb[80].mxu1 %vm3721_vm1, %v13809_v0  ;;  %v3490_v27 = vpop.f32.mrb[220].mxu1 }
 0x2ef   : > { %4807 = vmatprep.subr.bf16.mxu0 %v13789_v30  ;;  %9028 = vmatprep.mubr.msk.bf16.mxu1 %vm3721_vm1, %v13810_v48  ;;  %v11411_v42 = vadd.f32 %v10992_v62, %v3490_v27  ;;  %v3492_v39 = vpop.f32.mrb[221].mxu1 }
 0x2f0   : > { %v3493_v18 = vpop.f32.mrb[222].mxu1 }
 0x2f1   : > { %v11414_v16 = vadd.f32 %v10992_v62, %v3493_v18  ;;  %v3495_v6 = vpop.f32.mrb[223].mxu1 }
 0x2f2   : > { %v3498_v52 = vpop.f32.mrb[224].mxu1  ;;  %v13811_v6 = vpack.c.bf16 %v11107_v51, %v11104_v19 }
 0x2f3   : > { %v11419_v2 = vadd.f32 %v10992_v62, %v3498_v52  ;;  %v3500_v24 = vpop.f32.mrb[225].mxu1  ;;  %v13812_v52 = vpack.c.bf16 %v11117_v46, %v11114_v36  ;;  %v9695_v36 = vld [vmem:[%s13633_s10] sm:$0xff]  }
 0x2f4   : > { %v9002_v20 = vpop.f32.mrb[156].mxu0  ;;  %v3501_v48 = vpop.f32.mrb[226].mxu1 }
 0x2f5   : > { %v3916_v0 = vpop.f32.mrb[157].mxu0  ;;  %v11422_v27 = vadd.f32 %v10992_v62, %v3501_v48  ;;  %v3503_v39 = vpop.f32.mrb[227].mxu1 }
 0x2f6   : > { %v9003_v58 = vpop.f32.mrb[158].mxu0  ;;  %9029 = vmatmul.mubr.msk.bf16.gmra.mrb[84].mxu1 %vm3721_vm1, %v13811_v6  ;;  %v3506_v38 = vpop.f32.mrb[228].mxu1 }
 0x2f7   : > { %v4138_v1 = vpack.c.bf16 %v9003_v58, %v9002_v20  ;;  %v3919_v18 = vpop.f32.mrb[159].mxu0  ;;  %9032 = vmatprep.mubr.msk.bf16.mxu1 %vm3721_vm1, %v13812_v52  ;;  %v3971_v24 = vpack.c.bf16 %v11422_v27, %v11419_v2  ;;  %v11435_v48 = vadd.f32 %v10992_v62, %v3506_v38  ;;  %v3508_v58 = vpop.f32.mrb[229].mxu1  ;;  %v9693_v2 = vld [vmem:[%s13788_s18 + $0xf4] ss:$8 sps:$4 sm:$0xff]  }
 0x2f8   : > { %v4137_v22 = vpack.c.bf16 %v3919_v18, %v3916_v0  ;;  %v3509_v20 = vpop.f32.mrb[230].mxu1  ;;  %v13813_v58 = vpack.c.bf16 %v11126_v10, %v11123_v60 }
 0x2f9   : > { %v11438_v51 = vadd.f32 %v10992_v62, %v3509_v20  ;;  %v3511_v19 = vpop.f32.mrb[231].mxu1 }
 0x2fa   : > { %4808 = vmatpush1.bf16.msra.mxu0 %v4137_v22  ;;  %v3514_v46 = vpop.f32.mrb[232].mxu1  ;;  %v9648_v22 = vld [vmem:[%s13788_s18] ss:$8 sps:$4 sm:$0xff]   ;;  %v13814_v19 = vpack.c.bf16 %v11137_v50, %v11134_v29 }
 0x2fb   : > { %4809 = vmatprep.subr.bf16.mxu0 %v13789_v30  ;;  %v3972_v0 = vpack.c.bf16 %v11438_v51, %v11435_v48  ;;  %v11447_v38 = vadd.f32 %v10992_v62, %v3514_v46  ;;  %v3516_v39 = vpop.f32.mrb[233].mxu1  ;;  %v9651_v30 = vld [vmem:[%s13788_s18 + $0x14] ss:$8 sps:$4 sm:$0xff]  }
 0x2fc   : > { %v3517_v18 = vpop.f32.mrb[234].mxu1 }
 0x2fd   : > { %v11456_v6 = vadd.f32 %v10992_v62, %v3517_v18  ;;  %v3519_v52 = vpop.f32.mrb[235].mxu1 }
 0x2fe   : > { %4810 = vmatpush1.bf16.msra.mxu0 %v4138_v1  ;;  %9033 = vmatmul.mubr.msk.bf16.gmra.mrb[88].mxu1 %vm3721_vm1, %v13813_v58  ;;  %v3522_v20 = vpop.f32.mrb[236].mxu1 }
 0x2ff   : > { %9136 = vmatprep.subr.bf16.mxu0 %v9695_v36  ;;  %9036 = vmatprep.mubr.msk.bf16.mxu1 %vm3721_vm1, %v13814_v19  ;;  %v3973_v1 = vpack.c.bf16 %v11456_v6, %v11447_v38  ;;  %v11469_v46 = vadd.f32 %v10992_v62, %v3522_v20  ;;  %v3524_v39 = vpop.f32.mrb[237].mxu1  ;;  %v9653_v20 = vld [vmem:[%s13788_s18 + $0x10] ss:$8 sps:$4 sm:$0xff]  }
 0x300   : > { %v3525_v18 = vpop.f32.mrb[238].mxu1  ;;  %v13815_v39 = vpack.c.bf16 %v11147_v41, %v11144_v28  ;;  %v9656_v28 = vld [vmem:[%s13788_s18 + $0x20] ss:$8 sps:$4 sm:$0xff]  }
 0x301   : > { %4812 = vmatmul.mubr.bf16.vlgmr.msra.gmra.mrb[160].mxu0 %v9648_v22  ;;  %v11472_v60 = vadd.f32 %v10992_v62, %v3525_v18  ;;  %v3527_v10 = vpop.f32.mrb[239].mxu1  ;;  %v13816_v18 = vpack.c.bf16 %v11157_v3, %v11154_v63  ;;  %v9657_v3 = vld [vmem:[%s13788_s18 + $0x34] ss:$8 sps:$4 sm:$0xff]  }
 0x302   : > { %4819 = vmatprep.mubr.bf16.mxu0 %v9651_v30  ;;  %9137 = vmatpush3.bf16.msra.mxu0 %v9695_v36  ;;  %v3530_v52 = vpop.f32.mrb[240].mxu1  ;;  %v9654_v36 = vld [vmem:[%s13788_s18 + $0x24] ss:$8 sps:$4 sm:$0xff]  }
 0x303   : > { %v3974_v29 = vpack.c.bf16 %v11472_v60, %v11469_v46  ;;  %v11477_v50 = vadd.f32 %v10992_v62, %v3530_v52  ;;  %v3532_v58 = vpop.f32.mrb[241].mxu1 }
 0x304   : > { %v3533_v22 = vpop.f32.mrb[242].mxu1 }
 0x305   : > { %v11486_v30 = vadd.f32 %v10992_v62, %v3533_v22  ;;  %v3535_v19 = vpop.f32.mrb[243].mxu1 }
 0x306   : > { %9037 = vmatmul.mubr.msk.bf16.gmra.mrb[92].mxu1 %vm3721_vm1, %v13815_v39  ;;  %v13818_v39 = vpack.c.bf16 %v11177_v54, %v11174_v33  ;;  %v9660_v33 = vld [vmem:[%s13788_s18 + $0x44] ss:$8 sps:$4 sm:$0xff]  }
 0x307   : > { %9040 = vmatprep.mubr.msk.bf16.mxu1 %vm3721_vm1, %v13816_v18  ;;  %v13850_v6 = vpack.c.bf16 %v11486_v30, %v11477_v50 }
 0x309   : > { %4820 = vmatmul.mubr.bf16.gmra.mrb[164].mxu0 %v9653_v20  ;;  %v3538_v52 = vpop.f32.mrb[244].mxu1  ;;  %v13817_v20 = vpack.c.bf16 %v11166_v17, %v11163_v8  ;;  %v9659_v8 = vld [vmem:[%s13788_s18 + $0x30] ss:$8 sps:$4 sm:$0xff]  }
 0x30a   : > { %4827 = vmatprep.mubr.bf16.mxu0 %v9654_v36  ;;  %v11499_v58 = vadd.f32 %v10992_v62, %v3538_v52  ;;  %v3540_v22 = vpop.f32.mrb[245].mxu1 }
 0x30b   : > { %v3541_v19 = vpop.f32.mrb[246].mxu1 }
 0x30c   : > { %v11505_v41 = vadd.f32 %v10992_v62, %v3541_v19  ;;  %v3543_v63 = vpop.f32.mrb[247].mxu1 }
 0x30e   : > { %9041 = vmatmul.mubr.msk.bf16.gmra.mrb[96].mxu1 %vm3721_vm1, %v13817_v20  ;;  %v13851_v30 = vpack.c.bf16 %v11505_v41, %v11499_v58 }
 0x30f   : > { %9044 = vmatprep.mubr.msk.bf16.mxu1 %vm3721_vm1, %v13818_v39 }
 0x311   : > { %4828 = vmatmul.mubr.bf16.gmra.mrb[168].mxu0 %v9656_v28  ;;  %v3546_v18 = vpop.f32.mrb[248].mxu1  ;;  %v13819_v28 = vpack.c.bf16 %v11187_v56, %v11184_v40  ;;  %v11551_v40 = vld [vmem:[%s13630_s7] ss:$0 sm:$0xff] }
 0x312   : > { %4835 = vmatprep.mubr.bf16.mxu0 %v9657_v3  ;;  %v11521_v52 = vadd.f32 %v10992_v62, %v3546_v18  ;;  %v3548_v22 = vpop.f32.mrb[249].mxu1  ;;  %v13820_v3 = vpack.c.bf16 %v11197_v55, %v11194_v9 }
 0x313   : > { %v3549_v19 = vpop.f32.mrb[250].mxu1 }
 0x314   : > { %v11527_v17 = vadd.f32 %v10992_v62, %v3549_v19  ;;  %v3551_v63 = vpop.f32.mrb[251].mxu1  ;;  %v9662_v19 = vld [vmem:[%s13788_s18 + $0x40] ss:$8 sps:$4 sm:$0xff]  }
 0x315   : > { %v13822_v63 = vld [vmem:[#allocation64_spill] sm:$0xff] }
 0x316   : > { %9045 = vmatmul.mubr.msk.bf16.gmra.mrb[100].mxu1 %vm3721_vm1, %v13819_v28 }
 0x317   : > { %9048 = vmatprep.mubr.msk.bf16.mxu1 %vm3721_vm1, %v13820_v3 }
 0x319   : > { %4836 = vmatmul.mubr.bf16.gmra.mrb[172].mxu0 %v9659_v8  ;;  %v3554_v20 = vpop.f32.mrb[252].mxu1  ;;  %v13821_v8 = vpack.c.bf16 %v11206_v59, %v11203_v13 }
 0x31a   : > { %4843 = vmatprep.mubr.bf16.mxu0 %v9660_v33  ;;  %v11543_v39 = vadd.f32 %v10992_v62, %v3554_v20  ;;  %v3556_v18 = vpop.f32.mrb[253].mxu1  ;;  %v9663_v62 = vld [vmem:[%s13788_s18 + $0x54] ss:$8 sps:$4 sm:$0xff]   ;;  %v13823_v33 = vld [vmem:[#allocation63_spill] sm:$0xff] }
 0x31b   : > { %v3557_v22 = vpop.f32.mrb[254].mxu1  ;;  %v13824_v28 = vpack.c.bf16 %v13822_v63, %v13823_v33  ;;  %v13826_v63 = vld [vmem:[#allocation65_spill] sm:$0xff] }
 0x31c   : > { %v11554_v56 = vadd.f32 %v11551_v40, %v3557_v22  ;;  %v3559_v9 = vpop.f32.mrb[255].mxu1 }
 0x31d   : > { %v9665_v9 = vld [vmem:[%s13788_s18 + $0x50] ss:$8 sps:$4 sm:$0xff]  }
 0x31e   : > { %9049 = vmatmul.mubr.msk.bf16.gmra.mrb[104].mxu1 %vm3721_vm1, %v13821_v8  ;;  %v9666_v8 = vld [vmem:[%s13788_s18 + $0x64] ss:$8 sps:$4 sm:$0xff]  }
 0x31f   : > { %9052 = vmatprep.mubr.msk.bf16.mxu1 %vm3721_vm1, %v13824_v28  ;;  %v13828_v28 = vld [vmem:[#allocation68_spill] sm:$0xff] }
 0x321   : > { %4844 = vmatmul.mubr.bf16.gmra.mrb[176].mxu0 %v9662_v19  ;;  %v3562_v3 = vpop.f32.mrb[0].mxu1  ;;  %v9668_v19 = vld [vmem:[%s13788_s18 + $0x60] ss:$8 sps:$4 sm:$0xff]  }
 0x322   : > { %4851 = vmatprep.mubr.bf16.mxu0 %v9663_v62  ;;  %v11570_v20 = vadd.f32 %v11551_v40, %v3562_v3  ;;  %v3564_v18 = vpop.f32.mrb[1].mxu1  ;;  %v13825_v62 = vld [vmem:[#allocation66_spill] sm:$0xff]  ;;  %v13829_v3 = vld [vmem:[#allocation67_spill] sm:$0xff] }
 0x323   : > { %v3565_v22 = vpop.f32.mrb[2].mxu1  ;;  %v13827_v33 = vpack.c.bf16 %v13825_v62, %v13826_v63  ;;  %v13830_v18 = vpack.c.bf16 %v13828_v28, %v13829_v3  ;;  %v13832_v28 = vld [vmem:[#allocation69_spill] sm:$0xff] }
 0x324   : > { %v11576_v13 = vadd.f32 %v11551_v40, %v3565_v22  ;;  %v3567_v59 = vpop.f32.mrb[3].mxu1 }
 0x326   : > { %9053 = vmatmul.mubr.msk.bf16.gmra.mrb[108].mxu1 %vm3721_vm1, %v13827_v33  ;;  %v9669_v33 = vld [vmem:[%s13788_s18 + $0x74] ss:$8 sps:$4 sm:$0xff]  }
 0x327   : > { %9056 = vmatprep.mubr.msk.bf16.mxu1 %vm3721_vm1, %v13830_v18  ;;  %v13835_v18 = vld [vmem:[#allocation71_spill] sm:$0xff] }
 0x329   : > { %4852 = vmatmul.mubr.bf16.gmra.mrb[180].mxu0 %v9665_v9  ;;  %v3570_v22 = vpop.f32.mrb[4].mxu1  ;;  %v9671_v9 = vld [vmem:[%s13788_s18 + $0x70] ss:$8 sps:$4 sm:$0xff]  }
 0x32a   : > { %4859 = vmatprep.mubr.bf16.mxu0 %v9666_v8  ;;  %v11592_v59 = vadd.f32 %v11551_v40, %v3570_v22  ;;  %v3572_v55 = vpop.f32.mrb[5].mxu1  ;;  %v13831_v8 = vld [vmem:[#allocation70_spill] sm:$0xff] }
 0x32b   : > { %v3573_v54 = vpop.f32.mrb[6].mxu1  ;;  %v13833_v3 = vpack.c.bf16 %v13831_v8, %v13832_v28  ;;  %v13834_v55 = vld [vmem:[#allocation72_spill] sm:$0xff] }
 0x32c   : > { %v11598_v62 = vadd.f32 %v11551_v40, %v3573_v54  ;;  %v3575_v63 = vpop.f32.mrb[7].mxu1  ;;  %v13836_v22 = vpack.c.bf16 %v13834_v55, %v13835_v18 }
 0x32e   : > { %9057 = vmatmul.mubr.msk.bf16.gmra.mrb[112].mxu1 %vm3721_vm1, %v13833_v3  ;;  %v9672_v3 = vld [vmem:[%s13788_s18 + $0x84] ss:$8 sps:$4 sm:$0xff]  }
 0x32f   : > { %9060 = vmatprep.mubr.msk.bf16.mxu1 %vm3721_vm1, %v13836_v22 }
 0x331   : > { %4860 = vmatmul.mubr.bf16.gmra.mrb[184].mxu0 %v9668_v19  ;;  %v3578_v54 = vpop.f32.mrb[8].mxu1 }
 0x332   : > { %4867 = vmatprep.mubr.bf16.mxu0 %v9669_v33  ;;  %v11614_v63 = vadd.f32 %v11551_v40, %v3578_v54  ;;  %v3580_v36 = vpop.f32.mrb[9].mxu1  ;;  %v13837_v33 = vpack.c.bf16 %v11267_v43, %v11264_v35  ;;  %v9674_v54 = vld [vmem:[%s13788_s18 + $0x80] ss:$8 sps:$4 sm:$0xff]  }
 0x333   : > { %v3581_v10 = vpop.f32.mrb[10].mxu1  ;;  %v13838_v36 = vpack.c.bf16 %v11276_v53, %v11273_v15  ;;  %v9675_v15 = vld [vmem:[%s13788_s18 + $0x94] ss:$8 sps:$4 sm:$0xff]  }
 0x334   : > { %v11620_v8 = vadd.f32 %v11551_v40, %v3581_v10  ;;  %v3583_v28 = vpop.f32.mrb[11].mxu1 }
 0x335   : > { %v13840_v28 = vpack.c.bf16 %v11297_v34, %v11294_v4  ;;  %v9678_v4 = vld [vmem:[%s13788_s18 + $0xa4] ss:$8 sps:$4 sm:$0xff]  }
 0x336   : > { %v3981_v19 = vpack.c.bf16 %v11620_v8, %v11614_v63  ;;  %9061 = vmatmul.mubr.msk.bf16.gmra.mrb[116].mxu1 %vm3721_vm1, %v13837_v33  ;;  %v9709_v63 = vld [vmem:[%s13788_s18 + $0x144] ss:$8 sps:$4 sm:$0xff]  }
 0x337   : > { %9064 = vmatprep.mubr.msk.bf16.mxu1 %vm3721_vm1, %v13838_v36 }
 0x339   : > { %4868 = vmatmul.mubr.bf16.gmra.mrb[188].mxu0 %v9671_v9  ;;  %v3586_v10 = vpop.f32.mrb[12].mxu1  ;;  %v13839_v9 = vpack.c.bf16 %v11288_v25, %v11285_v5 }
 0x33a   : > { %4875 = vmatprep.mubr.bf16.mxu0 %v9672_v3  ;;  %v11636_v55 = vadd.f32 %v11551_v40, %v3586_v10  ;;  %v3588_v18 = vpop.f32.mrb[13].mxu1 }
 0x33b   : > { %v3589_v22 = vpop.f32.mrb[14].mxu1  ;;  %v9677_v18 = vld [vmem:[%s13788_s18 + $0x90] ss:$8 sps:$4 sm:$0xff]  }
 0x33c   : > { %v11642_v35 = vadd.f32 %v11551_v40, %v3589_v22  ;;  %v3591_v43 = vpop.f32.mrb[15].mxu1  ;;  %v13841_v22 = vpack.c.bf16 %v11314_v31, %v11311_v12 }
 0x33e   : > { %v3982_v53 = vpack.c.bf16 %v11642_v35, %v11636_v55  ;;  %9065 = vmatmul.mubr.msk.bf16.gmra.mrb[120].mxu1 %vm3721_vm1, %v13839_v9 }
 0x33f   : > { %9068 = vmatprep.mubr.msk.bf16.mxu1 %vm3721_vm1, %v13840_v28 }
 0x341   : > { %4876 = vmatmul.mubr.bf16.gmra.mrb[192].mxu0 %v9674_v54  ;;  %v3594_v3 = vpop.f32.mrb[16].mxu1  ;;  %v13842_v54 = vpack.c.bf16 %v11322_v32, %v11319_v47  ;;  %v9681_v47 = vld [vmem:[%s13788_s18 + $0xb4] ss:$8 sps:$4 sm:$0xff]  }
 0x342   : > { %4883 = vmatprep.mubr.bf16.mxu0 %v9675_v15  ;;  %v11658_v33 = vadd.f32 %v11551_v40, %v3594_v3  ;;  %v3596_v36 = vpop.f32.mrb[17].mxu1  ;;  %v9680_v3 = vld [vmem:[%s13788_s18 + $0xa0] ss:$8 sps:$4 sm:$0xff]  }
 0x343   : > { %v3597_v10 = vpop.f32.mrb[18].mxu1  ;;  %v13843_v36 = vpack.c.bf16 %v11338_v23, %v11335_v49 }
 0x344   : > { %v11664_v5 = vadd.f32 %v11551_v40, %v3597_v10  ;;  %v3599_v25 = vpop.f32.mrb[19].mxu1  ;;  %v13844_v10 = vpack.c.bf16 %v11347_v26, %v11344_v57  ;;  %v9684_v57 = vld [vmem:[%s13788_s18 + $0xc4] ss:$8 sps:$4 sm:$0xff]  }
 0x346   : > { %v3983_v34 = vpack.c.bf16 %v11664_v5, %v11658_v33  ;;  %9069 = vmatmul.mubr.msk.bf16.gmra.mrb[124].mxu1 %vm3721_vm1, %v13841_v22 }
 0x347   : > { %9072 = vmatprep.mubr.msk.bf16.mxu1 %vm3721_vm1, %v13842_v54  ;;  %v9683_v54 = vld [vmem:[%s13788_s18 + $0xb0] ss:$8 sps:$4 sm:$0xff]  }
 0x349   : > { %4884 = vmatmul.mubr.bf16.gmra.mrb[196].mxu0 %v9677_v18  ;;  %v3602_v43 = vpop.f32.mrb[20].mxu1 }
 0x34a   : > { %4891 = vmatprep.mubr.bf16.mxu0 %v9678_v4  ;;  %v11680_v15 = vadd.f32 %v11551_v40, %v3602_v43  ;;  %v3604_v9 = vpop.f32.mrb[21].mxu1  ;;  %v13845_v43 = vpack.c.bf16 %v11364_v44, %v11361_v14 }
 0x34b   : > { %v3605_v28 = vpop.f32.mrb[22].mxu1  ;;  %v13846_v9 = vpack.c.bf16 %v11372_v11, %v11369_v45  ;;  %v9687_v45 = vld [vmem:[%s13788_s18 + $0xd4] ss:$8 sps:$4 sm:$0xff]  }
 0x34c   : > { %v11686_v12 = vadd.f32 %v11551_v40, %v3605_v28  ;;  %v3607_v31 = vpop.f32.mrb[23].mxu1 }
 0x34e   : > { %v3984_v32 = vpack.c.bf16 %v11686_v12, %v11680_v15  ;;  %9073 = vmatmul.mubr.msk.bf16.gmra.mrb[128].mxu1 %vm3721_vm1, %v13843_v36  ;;  %v9686_v36 = vld [vmem:[%s13788_s18 + $0xc0] ss:$8 sps:$4 sm:$0xff]   ;;  %v9715_v15 = vld [vmem:[%s13788_s18 + $0x164] ss:$8 sps:$4 sm:$0xff]  }
 0x34f   : > { %9076 = vmatprep.mubr.msk.bf16.mxu1 %vm3721_vm1, %v13844_v10  ;;  %v13847_v10 = vpack.c.bf16 %v11388_v21, %v11385_v7 }
 0x351   : > { %4892 = vmatmul.mubr.bf16.gmra.mrb[200].mxu0 %v9680_v3  ;;  %v3610_v18 = vpop.f32.mrb[24].mxu1 }
 0x352   : > { %4899 = vmatprep.mubr.bf16.mxu0 %v9681_v47  ;;  %v11702_v25 = vadd.f32 %v11551_v40, %v3610_v18  ;;  %v3612_v4 = vpop.f32.mrb[25].mxu1  ;;  %v13848_v18 = vpack.c.bf16 %v11397_v37, %v11394_v61  ;;  %v9690_v61 = vld [vmem:[%s13788_s18 + $0xe4] ss:$8 sps:$4 sm:$0xff]  }
 0x353   : > { %v3613_v22 = vpop.f32.mrb[26].mxu1 }
 0x354   : > { %v11708_v49 = vadd.f32 %v11551_v40, %v3613_v22  ;;  %v3615_v23 = vpop.f32.mrb[27].mxu1 }
 0x356   : > { %v3985_v26 = vpack.c.bf16 %v11708_v49, %v11702_v25  ;;  %9077 = vmatmul.mubr.msk.bf16.gmra.mrb[132].mxu1 %vm3721_vm1, %v13845_v43  ;;  %v13849_v43 = vpack.c.bf16 %v11414_v16, %v11411_v42  ;;  %v9717_v49 = vld [vmem:[%s13788_s18 + $0x160] ss:$8 sps:$4 sm:$0xff]  }
 0x357   : > { %9080 = vmatprep.mubr.msk.bf16.mxu1 %vm3721_vm1, %v13846_v9 }
 0x359   : > { %4900 = vmatmul.mubr.bf16.gmra.mrb[204].mxu0 %v9683_v54  ;;  %v3618_v28 = vpop.f32.mrb[28].mxu1 }
 0x35a   : > { %4907 = vmatprep.mubr.bf16.mxu0 %v9684_v57  ;;  %v11724_v3 = vadd.f32 %v11551_v40, %v3618_v28  ;;  %v3620_v31 = vpop.f32.mrb[29].mxu1  ;;  %v9689_v57 = vld [vmem:[%s13788_s18 + $0xd0] ss:$8 sps:$4 sm:$0xff]  }
 0x35b   : > { %v3621_v47 = vpop.f32.mrb[30].mxu1 }
 0x35c   : > { %v11730_v14 = vadd.f32 %v11551_v40, %v3621_v47  ;;  %v3623_v44 = vpop.f32.mrb[31].mxu1 }
 0x35e   : > { %v3986_v11 = vpack.c.bf16 %v11730_v14, %v11724_v3  ;;  %9081 = vmatmul.mubr.msk.bf16.gmra.mrb[136].mxu1 %vm3721_vm1, %v13847_v10  ;;  %v9718_v3 = vld [vmem:[%s13788_s18 + $0x174] ss:$8 sps:$4 sm:$0xff]  }
 0x35f   : > { %9084 = vmatprep.mubr.msk.bf16.mxu1 %vm3721_vm1, %v13848_v18  ;;  %v9696_v18 = vld [vmem:[%s13788_s18 + $0xf0] ss:$8 sps:$4 sm:$0xff]  }
 0x361   : > { %4908 = vmatmul.mubr.bf16.gmra.mrb[208].mxu0 %v9686_v36  ;;  %v3626_v4 = vpop.f32.mrb[32].mxu1  ;;  %v9692_v36 = vld [vmem:[%s13788_s18 + $0xe0] ss:$8 sps:$4 sm:$0xff]  }
 0x362   : > { %4915 = vmatprep.mubr.bf16.mxu0 %v9687_v45  ;;  %v11746_v22 = vadd.f32 %v11551_v40, %v3626_v4  ;;  %v3628_v54 = vpop.f32.mrb[33].mxu1 }
 0x363   : > { %v3629_v23 = vpop.f32.mrb[34].mxu1 }
 0x364   : > { %v11752_v7 = vadd.f32 %v11551_v40, %v3629_v23  ;;  %v3631_v21 = vpop.f32.mrb[35].mxu1 }
 0x365   : > { %v13852_v21 = vpack.c.bf16 %v11527_v17, %v11521_v52  ;;  %v9703_v52 = vld [vmem:[%s13788_s18 + $0x124] ss:$8 sps:$4 sm:$0xff]  }
 0x366   : > { %v3987_v37 = vpack.c.bf16 %v11752_v7, %v11746_v22  ;;  %9085 = vmatmul.mubr.msk.bf16.gmra.mrb[140].mxu1 %vm3721_vm1, %v13849_v43  ;;  %v9720_v7 = vld [vmem:[%s13788_s18 + $0x170] ss:$8 sps:$4 sm:$0xff]  }
 0x367   : > { %9088 = vmatprep.mubr.msk.bf16.mxu1 %vm3721_vm1, %v3971_v24 }
 0x369   : > { %4916 = vmatmul.mubr.bf16.gmra.mrb[212].mxu0 %v9689_v57  ;;  %v3634_v9 = vpop.f32.mrb[36].mxu1  ;;  %v9699_v57 = vld [vmem:[%s13788_s18 + $0x100] ss:$8 sps:$4 sm:$0xff]  }
 0x36a   : > { %4923 = vmatprep.mubr.bf16.mxu0 %v9690_v61  ;;  %v11768_v28 = vadd.f32 %v11551_v40, %v3634_v9  ;;  %v3636_v31 = vpop.f32.mrb[37].mxu1 }
 0x36b   : > { %v3637_v47 = vpop.f32.mrb[38].mxu1 }
 0x36c   : > { %v11774_v42 = vadd.f32 %v11551_v40, %v3637_v47  ;;  %v3639_v16 = vpop.f32.mrb[39].mxu1  ;;  %v9702_v47 = vld [vmem:[%s13788_s18 + $0x110] ss:$8 sps:$4 sm:$0xff]  }
 0x36d   : > { %v13854_v16 = vpack.c.bf16 %v11576_v13, %v11570_v20  ;;  %v9706_v20 = vld [vmem:[%s13788_s18 + $0x134] ss:$8 sps:$4 sm:$0xff]  }
 0x36e   : > { %v3988_v27 = vpack.c.bf16 %v11774_v42, %v11768_v28  ;;  %9089 = vmatmul.mubr.msk.bf16.gmra.mrb[144].mxu1 %vm3721_vm1, %v3972_v0  ;;  %v9697_v0 = vld [vmem:[%s13788_s18 + $0x104] ss:$8 sps:$4 sm:$0xff]  }
 0x36f   : > { %9092 = vmatprep.mubr.msk.bf16.mxu1 %vm3721_vm1, %v3973_v1  ;;  %v9723_v28 = vld [vmem:[%s13788_s18 + $0x184] ss:$8 sps:$4 sm:$0xff]  }
 0x371   : > { %4924 = vmatmul.mubr.bf16.gmra.mrb[216].mxu0 %v9692_v36  ;;  %v3642_v24 = vpop.f32.mrb[40].mxu1  ;;  %v13853_v36 = vpack.c.bf16 %v11554_v56, %v11543_v39 }
 0x372   : > { %4931 = vmatprep.mubr.bf16.mxu0 %v9693_v2  ;;  %v11790_v44 = vadd.f32 %v11551_v40, %v3642_v24  ;;  %v3644_v45 = vpop.f32.mrb[41].mxu1 }
 0x373   : > { %v3645_v10 = vpop.f32.mrb[42].mxu1 }
 0x374   : > { %v11796_v48 = vadd.f32 %v11551_v40, %v3645_v10  ;;  %v3647_v51 = vpop.f32.mrb[43].mxu1 }
 0x375   : > { %v13855_v51 = vpack.c.bf16 %v11598_v62, %v11592_v59 }
 0x376   : > { %v3989_v38 = vpack.c.bf16 %v11796_v48, %v11790_v44  ;;  %9093 = vmatmul.mubr.msk.bf16.gmra.mrb[148].mxu1 %vm3721_vm1, %v3974_v29  ;;  %v9700_v29 = vld [vmem:[%s13788_s18 + $0x114] ss:$8 sps:$4 sm:$0xff]   ;;  %v9721_v48 = vld [vmem:[%s13788_s18 + $0x180] ss:$8 sps:$4 sm:$0xff]  }
 0x377   : > { %9096 = vmatprep.mubr.msk.bf16.mxu1 %vm3721_vm1, %v13850_v6 }
 0x379   : > { %4932 = vmatmul.mubr.bf16.gmra.mrb[220].mxu0 %v9696_v18  ;;  %v3650_v1 = vpop.f32.mrb[44].mxu1  ;;  %v9705_v18 = vld [vmem:[%s13788_s18 + $0x120] ss:$8 sps:$4 sm:$0xff]  }
 0x37a   : > { %4939 = vmatprep.mubr.bf16.mxu0 %v9697_v0  ;;  %v11812_v4 = vadd.f32 %v11551_v40, %v3650_v1  ;;  %v3652_v54 = vpop.f32.mrb[45].mxu1 }
 0x37b   : > { %v3653_v23 = vpop.f32.mrb[46].mxu1 }
 0x37c   : > { %v11818_v46 = vadd.f32 %v11551_v40, %v3653_v23  ;;  %v3655_v60 = vpop.f32.mrb[47].mxu1  ;;  %v9708_v23 = vld [vmem:[%s13788_s18 + $0x130] ss:$8 sps:$4 sm:$0xff]  }
 0x37e   : > { %v3990_v50 = vpack.c.bf16 %v11818_v46, %v11812_v4  ;;  %9097 = vmatmul.mubr.msk.bf16.gmra.mrb[152].mxu1 %vm3721_vm1, %v13851_v30  ;;  %v9711_v30 = vld [vmem:[%s13788_s18 + $0x140] ss:$8 sps:$4 sm:$0xff]   ;;  %v9726_v4 = vld [vmem:[%s13788_s18 + $0x194] ss:$8 sps:$4 sm:$0xff]  }
 0x37f   : > { %9100 = vmatprep.mubr.msk.bf16.mxu1 %vm3721_vm1, %v13852_v21  ;;  %v9714_v21 = vld [vmem:[%s13788_s18 + $0x150] ss:$8 sps:$4 sm:$0xff]  }
 0x381   : > { %4940 = vmatmul.mubr.bf16.gmra.mrb[224].mxu0 %v9699_v57  ;;  %v3658_v61 = vpop.f32.mrb[48].mxu1 }
 0x382   : > { %4947 = vmatprep.mubr.bf16.mxu0 %v9700_v29  ;;  %v11834_v43 = vadd.f32 %v11551_v40, %v3658_v61  ;;  %v3660_v9 = vpop.f32.mrb[49].mxu1 }
 0x383   : > { %v3661_v31 = vpop.f32.mrb[50].mxu1  ;;  %v9724_v9 = vld [vmem:[%s13788_s18 + $0x190] ss:$8 sps:$4 sm:$0xff]  }
 0x384   : > { %v11840_v58 = vadd.f32 %v11551_v40, %v3661_v31  ;;  %v3663_v41 = vpop.f32.mrb[51].mxu1 }
 0x386   : > { %v3991_v17 = vpack.c.bf16 %v11840_v58, %v11834_v43  ;;  %9101 = vmatmul.mubr.msk.bf16.gmra.mrb[156].mxu1 %vm3721_vm1, %v13853_v36 }
 0x387   : > { %9104 = vmatprep.mubr.msk.bf16.mxu1 %vm3721_vm1, %v13854_v16  ;;  %v9732_v16 = vld [vmem:[%s13788_s18 + $0x1b4] ss:$8 sps:$4 sm:$0xff]  }
 0x389   : > { %4948 = vmatmul.mubr.bf16.gmra.mrb[228].mxu0 %v9702_v47  ;;  %v3666_v2 = vpop.f32.mrb[52].mxu1  ;;  %v9729_v47 = vld [vmem:[%s13788_s18 + $0x1a4] ss:$8 sps:$4 sm:$0xff]  }
 0x38a   : > { %4955 = vmatprep.mubr.bf16.mxu0 %v9703_v52  ;;  %v11856_v24 = vadd.f32 %v11551_v40, %v3666_v2  ;;  %v3668_v45 = vpop.f32.mrb[53].mxu1 }
 0x38b   : > { %v3669_v10 = vpop.f32.mrb[54].mxu1 }
 0x38c   : > { %v11862_v39 = vadd.f32 %v11551_v40, %v3669_v10  ;;  %v3671_v56 = vpop.f32.mrb[55].mxu1 }
 0x38d   : > { %v9730_v56 = vld [vmem:[%s13788_s18 + $0x1b0] ss:$8 sps:$4 sm:$0xff]  }
 0x38e   : > { %v3992_v13 = vpack.c.bf16 %v11862_v39, %v11856_v24  ;;  %9105 = vmatmul.mubr.msk.bf16.gmra.mrb[160].mxu1 %vm3721_vm1, %v13855_v51  ;;  %v9735_v51 = vld [vmem:[%s13788_s18 + $0x1c4] ss:$8 sps:$4 sm:$0xff]  }
 0x38f   : > { %9108 = vmatprep.mubr.msk.bf16.mxu1 %vm3721_vm1, %v3981_v19 }
 0x391   : > { %4956 = vmatmul.mubr.bf16.gmra.mrb[232].mxu0 %v9705_v18  ;;  %v3674_v0 = vpop.f32.mrb[56].mxu1 }
 0x392   : > { %4963 = vmatprep.mubr.bf16.mxu0 %v9706_v20  ;;  %v11878_v6 = vadd.f32 %v11551_v40, %v3674_v0  ;;  %v3676_v1 = vpop.f32.mrb[57].mxu1 }
 0x393   : > { %v3677_v54 = vpop.f32.mrb[58].mxu1 }
 0x394   : > { %v3678_v59 = vadd.f32 %v11551_v40, %v3677_v54  ;;  %v3679_v62 = vpop.f32.mrb[59].mxu1 }
 0x396   : > { %v3993_v8 = vpack.c.bf16 %v3678_v59, %v11878_v6  ;;  %9109 = vmatmul.mubr.msk.bf16.gmra.mrb[164].mxu1 %vm3721_vm1, %v3982_v53  ;;  %v9712_v53 = vld [vmem:[%s13788_s18 + $0x154] ss:$8 sps:$4 sm:$0xff]  }
 0x397   : > { %9112 = vmatprep.mubr.msk.bf16.mxu1 %vm3721_vm1, %v3983_v34 }
 0x399   : > { %4964 = vmatmul.mubr.bf16.gmra.mrb[236].mxu0 %v9708_v23  ;;  %v3682_v19 = vpop.f32.mrb[60].mxu1 }
 0x39a   : > { %4971 = vmatprep.mubr.bf16.mxu0 %v9709_v63  ;;  %v3683_v57 = vadd.f32 %v11551_v40, %v3682_v19  ;;  %v3684_v60 = vpop.f32.mrb[61].mxu1 }
 0x39b   : > { %v3685_v29 = vpop.f32.mrb[62].mxu1  ;;  %v9738_v60 = vld [vmem:[%s13788_s18 + $0x1d4] ss:$8 sps:$4 sm:$0xff]  }
 0x39c   : > { %v3686_v55 = vadd.f32 %v11551_v40, %v3685_v29  ;;  %v3687_v35 = vpop.f32.mrb[63].mxu1 }
 0x39e   : > { %v3994_v33 = vpack.c.bf16 %v3686_v55, %v3683_v57  ;;  %9113 = vmatmul.mubr.msk.bf16.gmra.mrb[168].mxu1 %vm3721_vm1, %v3984_v32 }
 0x39f   : > { %9116 = vmatprep.mubr.msk.bf16.mxu1 %vm3721_vm1, %v3985_v26 }
 0x3a1   : > { %4972 = vmatmul.mubr.bf16.gmra.mrb[240].mxu0 %v9711_v30  ;;  %v11912_v5 = vpop.f32.mrb[64].mxu1 }
 0x3a2   : > { %4979 = vmatprep.mubr.bf16.mxu0 %v9712_v53  ;;  %v5550_v40 = vpop.f32.mrb[65].mxu1 }
 0x3a3   : > { %v11914_v34 = vpop.f32.mrb[66].mxu1 }
 0x3a4   : > { %v11919_v61 = vpop.f32.mrb[67].mxu1 }
 0x3a6   : > { %9117 = vmatmul.mubr.msk.bf16.gmra.mrb[172].mxu1 %vm3721_vm1, %v3986_v11 }
 0x3a7   : > { %9120 = vmatprep.mubr.msk.bf16.mxu1 %vm3721_vm1, %v3987_v37 }
 0x3a9   : > { %4980 = vmatmul.mubr.bf16.gmra.mrb[244].mxu0 %v9714_v21  ;;  %v11932_v12 = vpop.f32.mrb[68].mxu1  ;;  %v9736_v21 = vld [vmem:[%s13788_s18 + $0x1d0] ss:$8 sps:$4 sm:$0xff]  }
 0x3aa   : > { %4987 = vmatprep.mubr.bf16.mxu0 %v9715_v15  ;;  %v11934_v32 = vpop.f32.mrb[69].mxu1  ;;  %v9741_v15 = vld [vmem:[%s13788_s18 + $0x1e4] ss:$8 sps:$4 sm:$0xff]  }
 0x3ab   : > { %v11936_v25 = vpop.f32.mrb[70].mxu1 }
 0x3ac   : > { %v11941_v26 = vpop.f32.mrb[71].mxu1 }
 0x3ae   : > { %9121 = vmatmul.mubr.msk.bf16.gmra.mrb[176].mxu1 %vm3721_vm1, %v3988_v27 }
 0x3af   : > { %9124 = vmatprep.mubr.msk.bf16.mxu1 %vm3721_vm1, %v3989_v38 }
 0x3b1   : > { %4988 = vmatmul.mubr.bf16.gmra.mrb[248].mxu0 %v9717_v49  ;;  %v11954_v14 = vpop.f32.mrb[72].mxu1 }
 0x3b2   : > { %4995 = vmatprep.mubr.bf16.mxu0 %v9718_v3  ;;  %v11956_v11 = vpop.f32.mrb[73].mxu1 }
 0x3b3   : > { %v11958_v22 = vpop.f32.mrb[74].mxu1 }
 0x3b4   : > { %v11963_v37 = vpop.f32.mrb[75].mxu1 }
 0x3b6   : > { %9125 = vmatmul.mubr.msk.bf16.gmra.mrb[180].mxu1 %vm3721_vm1, %v3990_v50 }
 0x3b7   : > { %9128 = vmatprep.mubr.msk.bf16.mxu1 %vm3721_vm1, %v3991_v17  ;;  %v9727_v17 = vld [vmem:[%s13788_s18 + $0x1a0] ss:$8 sps:$4 sm:$0xff]  }
 0x3b9   : > { %4996 = vmatmul.mubr.bf16.gmra.mrb[252].mxu0 %v9720_v7  ;;  %v11976_v42 = vpop.f32.mrb[76].mxu1 }
 0x3ba   : > { %5003 = vmatprep.mubr.bf16.mxu0 %v9723_v28  ;;  %v11978_v27 = vpop.f32.mrb[77].mxu1 }
 0x3bb   : > { %v11980_v44 = vpop.f32.mrb[78].mxu1 }
 0x3bc   : > { %v11985_v38 = vpop.f32.mrb[79].mxu1 }
 0x3be   : > { %9129 = vmatmul.mubr.msk.bf16.gmra.mrb[184].mxu1 %vm3721_vm1, %v3992_v13 }
 0x3bf   : > { %9132 = vmatprep.mubr.msk.bf16.mxu1 %vm3721_vm1, %v3993_v8  ;;  %v9733_v8 = vld [vmem:[%s13788_s18 + $0x1c0] ss:$8 sps:$4 sm:$0xff]  }
 0x3c1   : > { %5004 = vmatmul.mubr.bf16.gmra.mrb[0].mxu0 %v9721_v48  ;;  %v11995_v46 = vpop.f32.mrb[80].mxu1 }
 0x3c2   : > { %5011 = vmatprep.mubr.bf16.mxu0 %v9726_v4  ;;  %v11997_v50 = vpop.f32.mrb[81].mxu1 }
 0x3c3   : > { %v11999_v43 = vpop.f32.mrb[82].mxu1 }
 0x3c4   : > { %v12004_v31 = vpop.f32.mrb[83].mxu1 }
 0x3c6   : > { %9133 = vmatmul.mubr.msk.bf16.gmra.mrb[188].mxu1 %vm3721_vm1, %v3994_v33 }
 0x3c9   : > { %5012 = vmatmul.mubr.bf16.gmra.mrb[4].mxu0 %v9724_v9  ;;  %v12010_v58 = vpop.f32.mrb[84].mxu1 }
 0x3ca   : > { %5019 = vmatprep.mubr.bf16.mxu0 %v9729_v47  ;;  %v12012_v41 = vpop.f32.mrb[85].mxu1  ;;  %v9739_v47 = vld [vmem:[%s13788_s18 + $0x1e0] ss:$8 sps:$4 sm:$0xff]  }
 0x3cb   : > { %v12014_v52 = vpop.f32.mrb[86].mxu1 }
 0x3cc   : > { %v12019_v36 = vpop.f32.mrb[87].mxu1 }
 0x3d1   : > { %5020 = vmatmul.mubr.bf16.gmra.mrb[8].mxu0 %v9727_v17  ;;  %v12024_v2 = vpop.f32.mrb[88].mxu1 }
 0x3d2   : > { %5027 = vmatprep.mubr.bf16.mxu0 %v9732_v16  ;;  %v12026_v24 = vpop.f32.mrb[89].mxu1  ;;  %v9744_v16 = vld [vmem:[%s13788_s18 + $0x1f4] ss:$8 sps:$4 sm:$0xff]  }
 0x3d3   : > { %v12028_v10 = vpop.f32.mrb[90].mxu1 }
 0x3d4   : > { %v4813_v45 = vpop.f32.mrb[160].mxu0  ;;  %v12035_v20 = vpop.f32.mrb[91].mxu1 }
 0x3d5   : > { %v12030_v18 = vadd.f32 %v5550_v40, %v4813_v45  ;;  %v4815_v39 = vpop.f32.mrb[161].mxu0 }
 0x3d6   : > { %v4816_v13 = vpop.f32.mrb[162].mxu0 }
 0x3d7   : > { %v12041_v0 = vadd.f32 %v11919_v61, %v4816_v13  ;;  %v4818_v6 = vpop.f32.mrb[163].mxu0 }
 0x3d9   : > { %5028 = vmatmul.mubr.bf16.gmra.mrb[12].mxu0 %v9730_v56  ;;  %v12043_v1 = vpop.f32.mrb[92].mxu1 }
 0x3da   : > { %5035 = vmatprep.mubr.bf16.mxu0 %v9735_v51  ;;  %v12045_v54 = vpop.f32.mrb[93].mxu1 }
 0x3db   : > { %v12047_v59 = vpop.f32.mrb[94].mxu1 }
 0x3dc   : > { %v4821_v23 = vpop.f32.mrb[164].mxu0  ;;  %v12055_v19 = vpop.f32.mrb[95].mxu1 }
 0x3dd   : > { %v12050_v62 = vadd.f32 %v11912_v5, %v4821_v23  ;;  %v4823_v63 = vpop.f32.mrb[165].mxu0  ;;  %v9742_v23 = vld [vmem:[%s13788_s18 + $0x1f0] ss:$8 sps:$4 sm:$0xff]  }
 0x3de   : > { %v4824_v57 = vpop.f32.mrb[166].mxu0 }
 0x3df   : > { %v12061_v29 = vadd.f32 %v11914_v34, %v4824_v57  ;;  %v4826_v30 = vpop.f32.mrb[167].mxu0 }
 0x3e1   : > { %5036 = vmatmul.mubr.bf16.gmra.mrb[16].mxu0 %v9733_v8  ;;  %v12063_v55 = vpop.f32.mrb[96].mxu1 }
 0x3e2   : > { %5043 = vmatprep.mubr.bf16.mxu0 %v9738_v60  ;;  %v12065_v35 = vpop.f32.mrb[97].mxu1 }
 0x3e3   : > { %v12067_v33 = vpop.f32.mrb[98].mxu1 }
 0x3e4   : > { %v4829_v53 = vpop.f32.mrb[168].mxu0  ;;  %v12075_v34 = vpop.f32.mrb[99].mxu1 }
 0x3e5   : > { %v12070_v5 = vadd.f32 %v11934_v32, %v4829_v53  ;;  %v4831_v40 = vpop.f32.mrb[169].mxu0 }
 0x3e6   : > { %v4832_v61 = vpop.f32.mrb[170].mxu0 }
 0x3e7   : > { %v12081_v49 = vadd.f32 %v11941_v26, %v4832_v61  ;;  %v4834_v3 = vpop.f32.mrb[171].mxu0 }
 0x3e9   : > { %5044 = vmatmul.mubr.bf16.gmra.mrb[20].mxu0 %v9736_v21  ;;  %v12083_v32 = vpop.f32.mrb[100].mxu1 }
 0x3ea   : > { %5051 = vmatprep.mubr.bf16.mxu0 %v9741_v15  ;;  %v12085_v7 = vpop.f32.mrb[101].mxu1  ;;  %v9750_v15 = vld [vmem:[%s13788_s18 + $0x214] ss:$8 sps:$4 sm:$0xff]  }
 0x3eb   : > { %v12087_v48 = vpop.f32.mrb[102].mxu1 }
 0x3ec   : > { %v4837_v28 = vpop.f32.mrb[172].mxu0  ;;  %v12095_v26 = vpop.f32.mrb[103].mxu1 }
 0x3ed   : > { %v12090_v4 = vadd.f32 %v11932_v12, %v4837_v28  ;;  %v4839_v9 = vpop.f32.mrb[173].mxu0 }
 0x3ee   : > { %v4840_v17 = vpop.f32.mrb[174].mxu0 }
 0x3ef   : > { %v12101_v45 = vadd.f32 %v11936_v25, %v4840_v17  ;;  %v4842_v39 = vpop.f32.mrb[175].mxu0  ;;  %v9747_v25 = vld [vmem:[%s13788_s18 + $0x204] ss:$8 sps:$4 sm:$0xff]  }
 0x3f0   : > { %v9748_v39 = vld [vmem:[%s13788_s18 + $0x210] ss:$8 sps:$4 sm:$0xff]  }
 0x3f1   : > { %5052 = vmatmul.mubr.bf16.gmra.mrb[24].mxu0 %v9739_v47  ;;  %v12103_v12 = vpop.f32.mrb[104].mxu1 }
 0x3f2   : > { %5059 = vmatprep.mubr.bf16.mxu0 %v9744_v16  ;;  %v12105_v13 = vpop.f32.mrb[105].mxu1 }
 0x3f3   : > { %v12116_v8 = vpop.f32.mrb[106].mxu1 }
 0x3f4   : > { %v4845_v56 = vpop.f32.mrb[176].mxu0  ;;  %v12121_v30 = vpop.f32.mrb[107].mxu1 }
 0x3f5   : > { %v12108_v51 = vadd.f32 %v11956_v11, %v4845_v56  ;;  %v4847_v6 = vpop.f32.mrb[177].mxu0  ;;  %v9793_v11 = vld [vmem:[%s13633_s10 + $0x8] sm:$0xff]  }
 0x3f6   : > { %v4848_v63 = vpop.f32.mrb[178].mxu0  ;;  %9138 = vmatprep.subr.bf16.mxu0 %v9793_v11 }
 0x3f7   : > { %v12119_v57 = vadd.f32 %v11963_v37, %v4848_v63  ;;  %v4850_v60 = vpop.f32.mrb[179].mxu0  ;;  %9139 = vmatpush3.bf16.msra.mxu0 %v9793_v11  ;;  %v9745_v37 = vld [vmem:[%s13788_s18 + $0x200] ss:$8 sps:$4 sm:$0xff]  }
 0x3f9   : > { %5060 = vmatmul.mubr.bf16.gmra.mrb[28].mxu0 %v9742_v23  ;;  %v12138_v9 = vpop.f32.mrb[108].mxu1 }
 0x3fa   : > { %5067 = vmatprep.mubr.bf16.mxu0 %v9747_v25  ;;  %v12140_v47 = vpop.f32.mrb[109].mxu1 }
 0x3fb   : > { %v12151_v6 = vpop.f32.mrb[110].mxu1 }
 0x3fc   : > { %v4853_v53 = vpop.f32.mrb[180].mxu0  ;;  %v12156_v25 = vpop.f32.mrb[111].mxu1 }
 0x3fd   : > { %v12127_v40 = vadd.f32 %v11954_v14, %v4853_v53  ;;  %v4855_v21 = vpop.f32.mrb[181].mxu0  ;;  %v9751_v53 = vld [vmem:[%s13788_s18 + $0x220] ss:$8 sps:$4 sm:$0xff]  }
 0x3fe   : > { %v4856_v61 = vpop.f32.mrb[182].mxu0 }
 0x3ff   : > { %v12136_v3 = vadd.f32 %v11958_v22, %v4856_v61  ;;  %v4858_v28 = vpop.f32.mrb[183].mxu0  ;;  %v9753_v22 = vld [vmem:[%s13788_s18 + $0x224] ss:$8 sps:$4 sm:$0xff]  }
 0x401   : > { %13856 = vst [vmem:[#allocation64_spill] sm:$0xff] %v12136_v3  ;;  %5068 = vmatmul.mubr.bf16.gmra.mrb[32].mxu0 %v9745_v37  ;;  %v9786_v3 = vld [vmem:[%s13788_s18 + $0x2d4] ss:$8 sps:$4 sm:$0xff]  }
 0x402   : > { %5075 = vmatprep.mubr.bf16.mxu0 %v9750_v15  ;;  %v12170_v15 = vpop.f32.mrb[112].mxu1 }
 0x403   : > { %v12172_v28 = vpop.f32.mrb[113].mxu1 }
 0x404   : > { %v4861_v14 = vpop.f32.mrb[184].mxu0 }
 0x405   : > { %v12143_v17 = vadd.f32 %v11978_v27, %v4861_v14  ;;  %v4863_v16 = vpop.f32.mrb[185].mxu0 }
 0x406   : > { %v4864_v56 = vpop.f32.mrb[186].mxu0 }
 0x407   : > { %13857 = vst [vmem:[#allocation63_spill] sm:$0xff] %v12143_v17  ;;  %v12154_v23 = vadd.f32 %v11985_v38, %v4864_v56  ;;  %v4866_v63 = vpop.f32.mrb[187].mxu0  ;;  %v9756_v38 = vld [vmem:[%s13788_s18 + $0x234] ss:$8 sps:$4 sm:$0xff]   ;;  %v12180_v56 = vpop.f32.mrb[114].mxu1 }
 0x408   : > { %v12185_v63 = vpop.f32.mrb[115].mxu1 }
 0x409   : > { %13858 = vst [vmem:[#allocation66_spill] sm:$0xff] %v12154_v23  ;;  %5076 = vmatmul.mubr.bf16.gmra.mrb[36].mxu0 %v9748_v39  ;;  %v9754_v39 = vld [vmem:[%s13788_s18 + $0x230] ss:$8 sps:$4 sm:$0xff]  }
 0x40a   : > { %5083 = vmatprep.mubr.bf16.mxu0 %v9753_v22  ;;  %v9759_v22 = vld [vmem:[%s13788_s18 + $0x244] ss:$8 sps:$4 sm:$0xff]   ;;  %v9766_v23 = vld [vmem:[%s13788_s18 + $0x270] ss:$8 sps:$4 sm:$0xff]  }
 0x40c   : > { %v4869_v27 = vpop.f32.mrb[188].mxu0 }
 0x40d   : > { %v12159_v60 = vadd.f32 %v11976_v42, %v4869_v27  ;;  %v4871_v11 = vpop.f32.mrb[189].mxu0 }
 0x40e   : > { %v4872_v21 = vpop.f32.mrb[190].mxu0 }
 0x40f   : > { %13859 = vst [vmem:[#allocation65_spill] sm:$0xff] %v12159_v60  ;;  %v12168_v37 = vadd.f32 %v11980_v44, %v4872_v21  ;;  %v4874_v61 = vpop.f32.mrb[191].mxu0 }
 0x411   : > { %13860 = vst [vmem:[#allocation68_spill] sm:$0xff] %v12168_v37  ;;  %5084 = vmatmul.mubr.bf16.gmra.mrb[40].mxu0 %v9751_v53  ;;  %v9763_v37 = vld [vmem:[%s13788_s18 + $0x260] ss:$8 sps:$4 sm:$0xff]  }
 0x412   : > { %5091 = vmatprep.mubr.bf16.mxu0 %v9756_v38  ;;  %v9757_v38 = vld [vmem:[%s13788_s18 + $0x240] ss:$8 sps:$4 sm:$0xff]  }
 0x414   : > { %v4877_v42 = vpop.f32.mrb[192].mxu0 }
 0x415   : > { %v12175_v14 = vadd.f32 %v11997_v50, %v4877_v42  ;;  %v4879_v16 = vpop.f32.mrb[193].mxu0  ;;  %v9762_v42 = vld [vmem:[%s13788_s18 + $0x254] ss:$8 sps:$4 sm:$0xff]  }
 0x416   : > { %v4880_v44 = vpop.f32.mrb[194].mxu0 }
 0x417   : > { %v12188_v27 = vadd.f32 %v12004_v31, %v4880_v44  ;;  %v4882_v11 = vpop.f32.mrb[195].mxu0 }
 0x419   : > { %5092 = vmatmul.mubr.bf16.gmra.mrb[44].mxu0 %v9754_v39  ;;  %v12202_v39 = vpop.f32.mrb[116].mxu1 }
 0x41a   : > { %5099 = vmatprep.mubr.bf16.mxu0 %v9759_v22  ;;  %v12204_v44 = vpop.f32.mrb[117].mxu1 }
 0x41c   : > { %v4885_v50 = vpop.f32.mrb[196].mxu0 }
 0x41d   : > { %v12191_v53 = vadd.f32 %v11995_v46, %v4885_v50  ;;  %v4887_v21 = vpop.f32.mrb[197].mxu0  ;;  %v9760_v50 = vld [vmem:[%s13788_s18 + $0x250] ss:$8 sps:$4 sm:$0xff]  }
 0x41e   : > { %v4888_v61 = vpop.f32.mrb[198].mxu0 }
 0x41f   : > { %v12200_v31 = vadd.f32 %v11999_v43, %v4888_v61  ;;  %v4890_v16 = vpop.f32.mrb[199].mxu0  ;;  %v9765_v43 = vld [vmem:[%s13788_s18 + $0x264] ss:$8 sps:$4 sm:$0xff]  }
 0x421   : > { %5100 = vmatmul.mubr.bf16.gmra.mrb[48].mxu0 %v9757_v38  ;;  %v12215_v38 = vpop.f32.mrb[118].mxu1 }
 0x422   : > { %5107 = vmatprep.mubr.bf16.mxu0 %v9762_v42  ;;  %v12220_v16 = vpop.f32.mrb[119].mxu1 }
 0x424   : > { %v4893_v46 = vpop.f32.mrb[200].mxu0 }
 0x425   : > { %v12207_v22 = vadd.f32 %v12012_v41, %v4893_v46  ;;  %v4895_v11 = vpop.f32.mrb[201].mxu0 }
 0x426   : > { %v4896_v21 = vpop.f32.mrb[202].mxu0 }
 0x427   : > { %v12218_v61 = vadd.f32 %v12019_v36, %v4896_v21  ;;  %v4898_v42 = vpop.f32.mrb[203].mxu0  ;;  %v9768_v36 = vld [vmem:[%s13788_s18 + $0x274] ss:$8 sps:$4 sm:$0xff]  }
 0x429   : > { %5108 = vmatmul.mubr.bf16.gmra.mrb[52].mxu0 %v9760_v50  ;;  %v12234_v50 = vpop.f32.mrb[120].mxu1 }
 0x42a   : > { %5115 = vmatprep.mubr.bf16.mxu0 %v9765_v43  ;;  %v12236_v43 = vpop.f32.mrb[121].mxu1 }
 0x42c   : > { %v4901_v41 = vpop.f32.mrb[204].mxu0 }
 0x42d   : > { %v12223_v46 = vadd.f32 %v12010_v58, %v4901_v41  ;;  %v4903_v11 = vpop.f32.mrb[205].mxu0 }
 0x42e   : > { %v4904_v60 = vpop.f32.mrb[206].mxu0 }
 0x42f   : > { %13861 = vst [vmem:[#allocation67_spill] sm:$0xff] %v12223_v46  ;;  %v12232_v21 = vadd.f32 %v12014_v52, %v4904_v60  ;;  %v4906_v42 = vpop.f32.mrb[207].mxu0  ;;  %v9771_v52 = vld [vmem:[%s13788_s18 + $0x284] ss:$8 sps:$4 sm:$0xff]   ;;  %v12247_v60 = vpop.f32.mrb[122].mxu1 }
 0x430   : > { %v12252_v42 = vpop.f32.mrb[123].mxu1  ;;  %v13916_v46 = vld [vmem:[#allocation19_spill] sm:$0xff] }
 0x431   : > { %13862 = vst [vmem:[#allocation70_spill] sm:$0xff] %v12232_v21  ;;  %5116 = vmatmul.mubr.bf16.gmra.mrb[56].mxu0 %v9763_v37 }
 0x432   : > { %5123 = vmatprep.mubr.bf16.mxu0 %v9768_v36 }
 0x434   : > { %v4909_v58 = vpop.f32.mrb[208].mxu0 }
 0x435   : > { %v12239_v41 = vadd.f32 %v12026_v24, %v4909_v58  ;;  %v4911_v11 = vpop.f32.mrb[209].mxu0 }
 0x436   : > { %v4912_v17 = vpop.f32.mrb[210].mxu0 }
 0x437   : > { %13863 = vst [vmem:[#allocation69_spill] sm:$0xff] %v12239_v41  ;;  %v12250_v37 = vadd.f32 %v12035_v20, %v4912_v17  ;;  %v4914_v36 = vpop.f32.mrb[211].mxu0  ;;  %v9769_v41 = vld [vmem:[%s13788_s18 + $0x280] ss:$8 sps:$4 sm:$0xff]   ;;  %v9774_v20 = vld [vmem:[%s13788_s18 + $0x294] ss:$8 sps:$4 sm:$0xff]  }
 0x439   : > { %13864 = vst [vmem:[#allocation72_spill] sm:$0xff] %v12250_v37  ;;  %5124 = vmatmul.mubr.bf16.gmra.mrb[60].mxu0 %v9766_v23  ;;  %v12266_v23 = vpop.f32.mrb[124].mxu1 }
 0x43a   : > { %5131 = vmatprep.mubr.bf16.mxu0 %v9771_v52  ;;  %v12268_v52 = vpop.f32.mrb[125].mxu1 }
 0x43c   : > { %v4917_v24 = vpop.f32.mrb[212].mxu0 }
 0x43d   : > { %v12255_v58 = vadd.f32 %v12024_v2, %v4917_v24  ;;  %v4919_v11 = vpop.f32.mrb[213].mxu0 }
 0x43e   : > { %v4920_v21 = vpop.f32.mrb[214].mxu0 }
 0x43f   : > { %13865 = vst [vmem:[#allocation71_spill] sm:$0xff] %v12255_v58  ;;  %v12264_v17 = vadd.f32 %v12028_v10, %v4920_v21  ;;  %v4922_v36 = vpop.f32.mrb[215].mxu0  ;;  %v9772_v58 = vld [vmem:[%s13788_s18 + $0x290] ss:$8 sps:$4 sm:$0xff]   ;;  %v9777_v10 = vld [vmem:[%s13788_s18 + $0x2a4] ss:$8 sps:$4 sm:$0xff]  }
 0x440   : > { %v12279_v21 = vpop.f32.mrb[126].mxu1 }
 0x441   : > { %13866 = vst [vmem:[#allocation73_spill] sm:$0xff] %v12264_v17  ;;  %5132 = vmatmul.mubr.bf16.gmra.mrb[64].mxu0 %v9769_v41  ;;  %v12284_v36 = vpop.f32.mrb[127].mxu1 }
 0x442   : > { %5139 = vmatprep.mubr.bf16.mxu0 %v9774_v20 }
 0x444   : > { %v4925_v2 = vpop.f32.mrb[216].mxu0 }
 0x445   : > { %v12271_v24 = vadd.f32 %v12045_v54, %v4925_v2  ;;  %v4927_v11 = vpop.f32.mrb[217].mxu0 }
 0x446   : > { %v4928_v37 = vpop.f32.mrb[218].mxu0 }
 0x447   : > { %13867 = vst [vmem:[#allocation74_spill] sm:$0xff] %v12271_v24  ;;  %v12282_v41 = vadd.f32 %v12055_v19, %v4928_v37  ;;  %v4930_v20 = vpop.f32.mrb[219].mxu0  ;;  %v9775_v24 = vld [vmem:[%s13788_s18 + $0x2a0] ss:$8 sps:$4 sm:$0xff]   ;;  %v9780_v19 = vld [vmem:[%s13788_s18 + $0x2b4] ss:$8 sps:$4 sm:$0xff]  }
 0x449   : > { %13868 = vst [vmem:[#allocation75_spill] sm:$0xff] %v12282_v41  ;;  %5140 = vmatmul.mubr.bf16.gmra.mrb[68].mxu0 %v9772_v58  ;;  %v12298_v58 = vpop.f32.mrb[128].mxu1 }
 0x44a   : > { %5147 = vmatprep.mubr.bf16.mxu0 %v9777_v10  ;;  %v12300_v10 = vpop.f32.mrb[129].mxu1 }
 0x44b   : > { %v12308_v41 = vpop.f32.mrb[130].mxu1 }
 0x44c   : > { %v4933_v54 = vpop.f32.mrb[220].mxu0 }
 0x44d   : > { %v12287_v2 = vadd.f32 %v12043_v1, %v4933_v54  ;;  %v4935_v11 = vpop.f32.mrb[221].mxu0 }
 0x44e   : > { %v4936_v17 = vpop.f32.mrb[222].mxu0 }
 0x44f   : > { %13869 = vst [vmem:[#allocation76_spill] sm:$0xff] %v12287_v2  ;;  %v12296_v37 = vadd.f32 %v12047_v59, %v4936_v17  ;;  %v4938_v20 = vpop.f32.mrb[223].mxu0  ;;  %v9778_v2 = vld [vmem:[%s13788_s18 + $0x2b0] ss:$8 sps:$4 sm:$0xff]   ;;  %v9783_v17 = vld [vmem:[%s13788_s18 + $0x2c4] ss:$8 sps:$4 sm:$0xff]  }
 0x451   : > { %13870 = vst [vmem:[#allocation77_spill] sm:$0xff] %v12296_v37  ;;  %5148 = vmatmul.mubr.bf16.gmra.mrb[72].mxu0 %v9775_v24  ;;  %v12313_v24 = vpop.f32.mrb[131].mxu1  ;;  %v9781_v37 = vld [vmem:[%s13788_s18 + $0x2c0] ss:$8 sps:$4 sm:$0xff]  }
 0x452   : > { %5155 = vmatprep.mubr.bf16.mxu0 %v9780_v19 }
 0x454   : > { %v4941_v1 = vpop.f32.mrb[224].mxu0 }
 0x455   : > { %v12303_v54 = vadd.f32 %v12065_v35, %v4941_v1  ;;  %v4943_v11 = vpop.f32.mrb[225].mxu0 }
 0x456   : > { %v4944_v59 = vpop.f32.mrb[226].mxu0 }
 0x457   : > { %13871 = vst [vmem:[#allocation78_spill] sm:$0xff] %v12303_v54  ;;  %v12316_v19 = vadd.f32 %v12075_v34, %v4944_v59  ;;  %v4946_v20 = vpop.f32.mrb[227].mxu0 }
 0x459   : > { %13872 = vst [vmem:[#allocation79_spill] sm:$0xff] %v12316_v19  ;;  %5156 = vmatmul.mubr.bf16.gmra.mrb[76].mxu0 %v9778_v2  ;;  %v12330_v2 = vpop.f32.mrb[132].mxu1  ;;  %v9811_v19 = vld [vmem:[%s13788_s18 + $0x354] ss:$8 sps:$4 sm:$0xff]  }
 0x45a   : > { %5163 = vmatprep.mubr.bf16.mxu0 %v9783_v17  ;;  %v12332_v17 = vpop.f32.mrb[133].mxu1 }
 0x45c   : > { %v4949_v35 = vpop.f32.mrb[228].mxu0 }
 0x45d   : > { %v12319_v1 = vadd.f32 %v12063_v55, %v4949_v35  ;;  %v4951_v11 = vpop.f32.mrb[229].mxu0 }
 0x45e   : > { %v4952_v54 = vpop.f32.mrb[230].mxu0  ;;  %v9784_v11 = vld [vmem:[%s13788_s18 + $0x2d0] ss:$8 sps:$4 sm:$0xff]  }
 0x45f   : > { %13873 = vst [vmem:[#allocation80_spill] sm:$0xff] %v12319_v1  ;;  %v12328_v34 = vadd.f32 %v12067_v33, %v4952_v54  ;;  %v4954_v59 = vpop.f32.mrb[231].mxu0  ;;  %v9789_v33 = vld [vmem:[%s13788_s18 + $0x2e4] ss:$8 sps:$4 sm:$0xff]  }
 0x461   : > { %13874 = vst [vmem:[#allocation81_spill] sm:$0xff] %v12328_v34  ;;  %5164 = vmatmul.mubr.bf16.gmra.mrb[80].mxu0 %v9781_v37  ;;  %v12343_v37 = vpop.f32.mrb[134].mxu1 }
 0x462   : > { %5171 = vmatprep.mubr.bf16.mxu0 %v9786_v3  ;;  %v12348_v59 = vpop.f32.mrb[135].mxu1 }
 0x464   : > { %v4957_v55 = vpop.f32.mrb[232].mxu0 }
 0x465   : > { %v12335_v20 = vadd.f32 %v12085_v7, %v4957_v55  ;;  %v4959_v35 = vpop.f32.mrb[233].mxu0 }
 0x466   : > { %v4960_v1 = vpop.f32.mrb[234].mxu0 }
 0x467   : > { %13875 = vst [vmem:[#allocation82_spill] sm:$0xff] %v12335_v20  ;;  %v12346_v3 = vadd.f32 %v12095_v26, %v4960_v1  ;;  %v4962_v54 = vpop.f32.mrb[235].mxu0  ;;  %v9787_v20 = vld [vmem:[%s13788_s18 + $0x2e0] ss:$8 sps:$4 sm:$0xff]   ;;  %v9792_v26 = vld [vmem:[%s13788_s18 + $0x2f4] ss:$8 sps:$4 sm:$0xff]  }
 0x469   : > { %13876 = vst [vmem:[#allocation83_spill] sm:$0xff] %v12346_v3  ;;  %5172 = vmatmul.mubr.bf16.gmra.mrb[84].mxu0 %v9784_v11  ;;  %v12362_v11 = vpop.f32.mrb[136].mxu1 }
 0x46a   : > { %5179 = vmatprep.mubr.bf16.mxu0 %v9789_v33  ;;  %v12364_v33 = vpop.f32.mrb[137].mxu1 }
 0x46c   : > { %v4965_v7 = vpop.f32.mrb[236].mxu0 }
 0x46d   : > { %v12351_v55 = vadd.f32 %v12083_v32, %v4965_v7  ;;  %v4967_v35 = vpop.f32.mrb[237].mxu0 }
 0x46e   : > { %v4968_v34 = vpop.f32.mrb[238].mxu0 }
 0x46f   : > { %13877 = vst [vmem:[#allocation84_spill] sm:$0xff] %v12351_v55  ;;  %v12360_v1 = vadd.f32 %v12087_v48, %v4968_v34  ;;  %v4970_v54 = vpop.f32.mrb[239].mxu0  ;;  %v9790_v55 = vld [vmem:[%s13788_s18 + $0x2f0] ss:$8 sps:$4 sm:$0xff]   ;;  %v9796_v48 = vld [vmem:[%s13788_s18 + $0x304] ss:$8 sps:$4 sm:$0xff]  }
 0x470   : > { %v12375_v34 = vpop.f32.mrb[138].mxu1 }
 0x471   : > { %13878 = vst [vmem:[#allocation85_spill] sm:$0xff] %v12360_v1  ;;  %5180 = vmatmul.mubr.bf16.gmra.mrb[88].mxu0 %v9787_v20  ;;  %v12380_v54 = vpop.f32.mrb[139].mxu1 }
 0x472   : > { %5187 = vmatprep.mubr.bf16.mxu0 %v9792_v26 }
 0x474   : > { %v4973_v32 = vpop.f32.mrb[240].mxu0 }
 0x475   : > { %v12367_v7 = vadd.f32 %v12105_v13, %v4973_v32  ;;  %v4975_v35 = vpop.f32.mrb[241].mxu0 }
 0x476   : > { %v4976_v3 = vpop.f32.mrb[242].mxu0 }
 0x477   : > { %13879 = vst [vmem:[#allocation86_spill] sm:$0xff] %v12367_v7  ;;  %v12378_v20 = vadd.f32 %v12121_v30, %v4976_v3  ;;  %v4978_v26 = vpop.f32.mrb[243].mxu0  ;;  %v9794_v7 = vld [vmem:[%s13788_s18 + $0x300] ss:$8 sps:$4 sm:$0xff]   ;;  %v9799_v30 = vld [vmem:[%s13788_s18 + $0x314] ss:$8 sps:$4 sm:$0xff]  }
 0x479   : > { %13880 = vst [vmem:[#allocation87_spill] sm:$0xff] %v12378_v20  ;;  %5188 = vmatmul.mubr.bf16.gmra.mrb[92].mxu0 %v9790_v55  ;;  %v12394_v55 = vpop.f32.mrb[140].mxu1 }
 0x47a   : > { %5195 = vmatprep.mubr.bf16.mxu0 %v9796_v48  ;;  %v12396_v48 = vpop.f32.mrb[141].mxu1 }
 0x47c   : > { %v4981_v13 = vpop.f32.mrb[244].mxu0 }
 0x47d   : > { %v12383_v32 = vadd.f32 %v12103_v12, %v4981_v13  ;;  %v4983_v35 = vpop.f32.mrb[245].mxu0 }
 0x47e   : > { %v4984_v1 = vpop.f32.mrb[246].mxu0 }
 0x47f   : > { %13881 = vst [vmem:[#allocation88_spill] sm:$0xff] %v12383_v32  ;;  %v12392_v3 = vadd.f32 %v12116_v8, %v4984_v1  ;;  %v4986_v26 = vpop.f32.mrb[247].mxu0  ;;  %v9797_v32 = vld [vmem:[%s13788_s18 + $0x310] ss:$8 sps:$4 sm:$0xff]   ;;  %v9802_v8 = vld [vmem:[%s13788_s18 + $0x324] ss:$8 sps:$4 sm:$0xff]  }
 0x480   : > { %v12407_v1 = vpop.f32.mrb[142].mxu1 }
 0x481   : > { %13882 = vst [vmem:[#allocation89_spill] sm:$0xff] %v12392_v3  ;;  %5196 = vmatmul.mubr.bf16.gmra.mrb[96].mxu0 %v9794_v7  ;;  %v12412_v26 = vpop.f32.mrb[143].mxu1 }
 0x482   : > { %5203 = vmatprep.mubr.bf16.mxu0 %v9799_v30 }
 0x484   : > { %v4989_v12 = vpop.f32.mrb[248].mxu0 }
 0x485   : > { %v12399_v13 = vadd.f32 %v12140_v47, %v4989_v12  ;;  %v4991_v35 = vpop.f32.mrb[249].mxu0 }
 0x486   : > { %v4992_v20 = vpop.f32.mrb[250].mxu0 }
 0x487   : > { %13883 = vst [vmem:[#allocation90_spill] sm:$0xff] %v12399_v13  ;;  %v12410_v7 = vadd.f32 %v12156_v25, %v4992_v20  ;;  %v4994_v30 = vpop.f32.mrb[251].mxu0  ;;  %v9800_v13 = vld [vmem:[%s13788_s18 + $0x320] ss:$8 sps:$4 sm:$0xff]   ;;  %v9805_v25 = vld [vmem:[%s13788_s18 + $0x334] ss:$8 sps:$4 sm:$0xff]  }
 0x489   : > { %13884 = vst [vmem:[#allocation91_spill] sm:$0xff] %v12410_v7  ;;  %5204 = vmatmul.mubr.bf16.gmra.mrb[100].mxu0 %v9797_v32  ;;  %v12426_v32 = vpop.f32.mrb[144].mxu1 }
 0x48a   : > { %5211 = vmatprep.mubr.bf16.mxu0 %v9802_v8  ;;  %v12428_v8 = vpop.f32.mrb[145].mxu1 }
 0x48b   : > { %v12436_v7 = vpop.f32.mrb[146].mxu1 }
 0x48c   : > { %v4997_v47 = vpop.f32.mrb[252].mxu0 }
 0x48d   : > { %v12415_v12 = vadd.f32 %v12138_v9, %v4997_v47  ;;  %v4999_v35 = vpop.f32.mrb[253].mxu0 }
 0x48e   : > { %v5000_v3 = vpop.f32.mrb[254].mxu0 }
 0x48f   : > { %13885 = vst [vmem:[#allocation92_spill] sm:$0xff] %v12415_v12  ;;  %v12424_v20 = vadd.f32 %v12151_v6, %v5000_v3  ;;  %v5002_v30 = vpop.f32.mrb[255].mxu0  ;;  %v9803_v12 = vld [vmem:[%s13788_s18 + $0x330] ss:$8 sps:$4 sm:$0xff]   ;;  %v9808_v3 = vld [vmem:[%s13788_s18 + $0x344] ss:$8 sps:$4 sm:$0xff]  }
 0x491   : > { %13886 = vst [vmem:[#allocation93_spill] sm:$0xff] %v12424_v20  ;;  %5212 = vmatmul.mubr.bf16.gmra.mrb[104].mxu0 %v9800_v13  ;;  %v12441_v13 = vpop.f32.mrb[147].mxu1  ;;  %v9806_v20 = vld [vmem:[%s13788_s18 + $0x340] ss:$8 sps:$4 sm:$0xff]  }
 0x492   : > { %5219 = vmatprep.mubr.bf16.mxu0 %v9805_v25 }
 0x494   : > { %v5005_v9 = vpop.f32.mrb[0].mxu0 }
 0x495   : > { %v12431_v47 = vadd.f32 %v12172_v28, %v5005_v9  ;;  %v5007_v35 = vpop.f32.mrb[1].mxu0 }
 0x496   : > { %v5008_v6 = vpop.f32.mrb[2].mxu0 }
 0x497   : > { %13887 = vst [vmem:[#allocation94_spill] sm:$0xff] %v12431_v47  ;;  %v12444_v25 = vadd.f32 %v12185_v63, %v5008_v6  ;;  %v5010_v30 = vpop.f32.mrb[3].mxu0 }
 0x499   : > { %13888 = vst [vmem:[#allocation95_spill] sm:$0xff] %v12444_v25  ;;  %5220 = vmatmul.mubr.bf16.gmra.mrb[108].mxu0 %v9803_v12  ;;  %v12458_v12 = vpop.f32.mrb[148].mxu1  ;;  %v9835_v25 = vld [vmem:[%s13788_s18 + $0x3d4] ss:$8 sps:$4 sm:$0xff]  }
 0x49a   : > { %5227 = vmatprep.mubr.bf16.mxu0 %v9808_v3  ;;  %v12460_v3 = vpop.f32.mrb[149].mxu1 }
 0x49c   : > { %v5013_v28 = vpop.f32.mrb[4].mxu0 }
 0x49d   : > { %v12447_v9 = vadd.f32 %v12170_v15, %v5013_v28  ;;  %v5015_v35 = vpop.f32.mrb[5].mxu0 }
 0x49e   : > { %v5016_v47 = vpop.f32.mrb[6].mxu0  ;;  %v9809_v35 = vld [vmem:[%s13788_s18 + $0x350] ss:$8 sps:$4 sm:$0xff]  }
 0x49f   : > { %13889 = vst [vmem:[#allocation96_spill] sm:$0xff] %v12447_v9  ;;  %v12456_v63 = vadd.f32 %v12180_v56, %v5016_v47  ;;  %v5018_v6 = vpop.f32.mrb[7].mxu0  ;;  %v9814_v56 = vld [vmem:[%s13788_s18 + $0x364] ss:$8 sps:$4 sm:$0xff]  }
 0x4a1   : > { %13890 = vst [vmem:[#allocation97_spill] sm:$0xff] %v12456_v63  ;;  %5228 = vmatmul.mubr.bf16.gmra.mrb[112].mxu0 %v9806_v20  ;;  %v12471_v20 = vpop.f32.mrb[150].mxu1 }
 0x4a2   : > { %5235 = vmatprep.mubr.bf16.mxu0 %v9811_v19  ;;  %v12476_v6 = vpop.f32.mrb[151].mxu1 }
 0x4a4   : > { %v5021_v15 = vpop.f32.mrb[8].mxu0 }
 0x4a5   : > { %v12463_v30 = vadd.f32 %v12204_v44, %v5021_v15  ;;  %v5023_v28 = vpop.f32.mrb[9].mxu0 }
 0x4a6   : > { %v5024_v9 = vpop.f32.mrb[10].mxu0 }
 0x4a7   : > { %13891 = vst [vmem:[#allocation98_spill] sm:$0xff] %v12463_v30  ;;  %v12474_v19 = vadd.f32 %v12220_v16, %v5024_v9  ;;  %v5026_v47 = vpop.f32.mrb[11].mxu0  ;;  %v9812_v30 = vld [vmem:[%s13788_s18 + $0x360] ss:$8 sps:$4 sm:$0xff]   ;;  %v9817_v16 = vld [vmem:[%s13788_s18 + $0x374] ss:$8 sps:$4 sm:$0xff]  }
 0x4a9   : > { %13892 = vst [vmem:[#allocation99_spill] sm:$0xff] %v12474_v19  ;;  %5236 = vmatmul.mubr.bf16.gmra.mrb[116].mxu0 %v9809_v35  ;;  %v12490_v35 = vpop.f32.mrb[152].mxu1 }
 0x4aa   : > { %5243 = vmatprep.mubr.bf16.mxu0 %v9814_v56  ;;  %v12492_v56 = vpop.f32.mrb[153].mxu1 }
 0x4ac   : > { %v5029_v44 = vpop.f32.mrb[12].mxu0 }
 0x4ad   : > { %v12479_v15 = vadd.f32 %v12202_v39, %v5029_v44  ;;  %v5031_v28 = vpop.f32.mrb[13].mxu0 }
 0x4ae   : > { %v5032_v63 = vpop.f32.mrb[14].mxu0 }
 0x4af   : > { %13893 = vst [vmem:[#allocation100_spill] sm:$0xff] %v12479_v15  ;;  %v12488_v9 = vadd.f32 %v12215_v38, %v5032_v63  ;;  %v5034_v47 = vpop.f32.mrb[15].mxu0  ;;  %v9815_v15 = vld [vmem:[%s13788_s18 + $0x370] ss:$8 sps:$4 sm:$0xff]   ;;  %v9820_v38 = vld [vmem:[%s13788_s18 + $0x384] ss:$8 sps:$4 sm:$0xff]  }
 0x4b0   : > { %v12503_v63 = vpop.f32.mrb[154].mxu1 }
 0x4b1   : > { %13894 = vst [vmem:[#allocation101_spill] sm:$0xff] %v12488_v9  ;;  %5244 = vmatmul.mubr.bf16.gmra.mrb[120].mxu0 %v9812_v30  ;;  %v12508_v47 = vpop.f32.mrb[155].mxu1 }
 0x4b2   : > { %5251 = vmatprep.mubr.bf16.mxu0 %v9817_v16 }
 0x4b4   : > { %v5037_v39 = vpop.f32.mrb[16].mxu0 }
 0x4b5   : > { %v12495_v44 = vadd.f32 %v12236_v43, %v5037_v39  ;;  %v5039_v28 = vpop.f32.mrb[17].mxu0 }
 0x4b6   : > { %v5040_v19 = vpop.f32.mrb[18].mxu0 }
 0x4b7   : > { %13895 = vst [vmem:[#allocation102_spill] sm:$0xff] %v12495_v44  ;;  %v12506_v30 = vadd.f32 %v12252_v42, %v5040_v19  ;;  %v5042_v16 = vpop.f32.mrb[19].mxu0  ;;  %v9818_v44 = vld [vmem:[%s13788_s18 + $0x380] ss:$8 sps:$4 sm:$0xff]   ;;  %v9823_v42 = vld [vmem:[%s13788_s18 + $0x394] ss:$8 sps:$4 sm:$0xff]  }
 0x4b9   : > { %13896 = vst [vmem:[#allocation103_spill] sm:$0xff] %v12506_v30  ;;  %5252 = vmatmul.mubr.bf16.gmra.mrb[124].mxu0 %v9815_v15  ;;  %v12522_v15 = vpop.f32.mrb[156].mxu1 }
 0x4ba   : > { %5259 = vmatprep.mubr.bf16.mxu0 %v9820_v38  ;;  %v12524_v38 = vpop.f32.mrb[157].mxu1 }
 0x4bc   : > { %v5045_v43 = vpop.f32.mrb[20].mxu0 }
 0x4bd   : > { %v12511_v39 = vadd.f32 %v12234_v50, %v5045_v43  ;;  %v5047_v28 = vpop.f32.mrb[21].mxu0 }
 0x4be   : > { %v5048_v9 = vpop.f32.mrb[22].mxu0 }
 0x4bf   : > { %13897 = vst [vmem:[#allocation104_spill] sm:$0xff] %v12511_v39  ;;  %v12520_v19 = vadd.f32 %v12247_v60, %v5048_v9  ;;  %v5050_v16 = vpop.f32.mrb[23].mxu0  ;;  %v9821_v39 = vld [vmem:[%s13788_s18 + $0x390] ss:$8 sps:$4 sm:$0xff]   ;;  %v9826_v60 = vld [vmem:[%s13788_s18 + $0x3a4] ss:$8 sps:$4 sm:$0xff]  }
 0x4c0   : > { %v12535_v9 = vpop.f32.mrb[158].mxu1 }
 0x4c1   : > { %13898 = vst [vmem:[#allocation105_spill] sm:$0xff] %v12520_v19  ;;  %5260 = vmatmul.mubr.bf16.gmra.mrb[128].mxu0 %v9818_v44  ;;  %v12540_v16 = vpop.f32.mrb[159].mxu1 }
 0x4c2   : > { %5267 = vmatprep.mubr.bf16.mxu0 %v9823_v42 }
 0x4c4   : > { %v5053_v50 = vpop.f32.mrb[24].mxu0 }
 0x4c5   : > { %v12527_v43 = vadd.f32 %v12268_v52, %v5053_v50  ;;  %v5055_v28 = vpop.f32.mrb[25].mxu0 }
 0x4c6   : > { %v5056_v30 = vpop.f32.mrb[26].mxu0 }
 0x4c7   : > { %13899 = vst [vmem:[#allocation106_spill] sm:$0xff] %v12527_v43  ;;  %v12538_v44 = vadd.f32 %v12284_v36, %v5056_v30  ;;  %v5058_v42 = vpop.f32.mrb[27].mxu0  ;;  %v9824_v43 = vld [vmem:[%s13788_s18 + $0x3a0] ss:$8 sps:$4 sm:$0xff]   ;;  %v9829_v36 = vld [vmem:[%s13788_s18 + $0x3b4] ss:$8 sps:$4 sm:$0xff]  }
 0x4c9   : > { %13900 = vst [vmem:[#allocation107_spill] sm:$0xff] %v12538_v44  ;;  %5268 = vmatmul.mubr.bf16.gmra.mrb[132].mxu0 %v9821_v39  ;;  %v12554_v39 = vpop.f32.mrb[160].mxu1 }
 0x4ca   : > { %5275 = vmatprep.mubr.bf16.mxu0 %v9826_v60  ;;  %v12556_v60 = vpop.f32.mrb[161].mxu1 }
 0x4cb   : > { %v12564_v44 = vpop.f32.mrb[162].mxu1 }
 0x4cc   : > { %v5061_v52 = vpop.f32.mrb[28].mxu0 }
 0x4cd   : > { %v12543_v50 = vadd.f32 %v12266_v23, %v5061_v52  ;;  %v5063_v28 = vpop.f32.mrb[29].mxu0 }
 0x4ce   : > { %v5064_v19 = vpop.f32.mrb[30].mxu0 }
 0x4cf   : > { %13901 = vst [vmem:[#allocation108_spill] sm:$0xff] %v12543_v50  ;;  %v12552_v30 = vadd.f32 %v12279_v21, %v5064_v19  ;;  %v5066_v42 = vpop.f32.mrb[31].mxu0  ;;  %v9827_v50 = vld [vmem:[%s13788_s18 + $0x3b0] ss:$8 sps:$4 sm:$0xff]   ;;  %v9832_v19 = vld [vmem:[%s13788_s18 + $0x3c4] ss:$8 sps:$4 sm:$0xff]  }
 0x4d1   : > { %13902 = vst [vmem:[#allocation109_spill] sm:$0xff] %v12552_v30  ;;  %5276 = vmatmul.mubr.bf16.gmra.mrb[136].mxu0 %v9824_v43  ;;  %v12569_v43 = vpop.f32.mrb[163].mxu1  ;;  %v9830_v30 = vld [vmem:[%s13788_s18 + $0x3c0] ss:$8 sps:$4 sm:$0xff]  }
 0x4d2   : > { %5283 = vmatprep.mubr.bf16.mxu0 %v9829_v36 }
 0x4d4   : > { %v5069_v23 = vpop.f32.mrb[32].mxu0 }
 0x4d5   : > { %v12559_v52 = vadd.f32 %v12300_v10, %v5069_v23  ;;  %v5071_v28 = vpop.f32.mrb[33].mxu0 }
 0x4d6   : > { %v5072_v21 = vpop.f32.mrb[34].mxu0 }
 0x4d7   : > { %13903 = vst [vmem:[#allocation110_spill] sm:$0xff] %v12559_v52  ;;  %v12572_v36 = vadd.f32 %v12313_v24, %v5072_v21  ;;  %v5074_v42 = vpop.f32.mrb[35].mxu0 }
 0x4d9   : > { %13904 = vst [vmem:[#allocation111_spill] sm:$0xff] %v12572_v36  ;;  %5284 = vmatmul.mubr.bf16.gmra.mrb[140].mxu0 %v9827_v50  ;;  %v12586_v50 = vpop.f32.mrb[164].mxu1 }
 0x4da   : > { %5291 = vmatprep.mubr.bf16.mxu0 %v9832_v19  ;;  %v12588_v19 = vpop.f32.mrb[165].mxu1 }
 0x4dc   : > { %v5077_v10 = vpop.f32.mrb[36].mxu0 }
 0x4dd   : > { %v12575_v23 = vadd.f32 %v12298_v58, %v5077_v10  ;;  %v5079_v28 = vpop.f32.mrb[37].mxu0 }
 0x4de   : > { %v5080_v52 = vpop.f32.mrb[38].mxu0  ;;  %v9833_v28 = vld [vmem:[%s13788_s18 + $0x3d0] ss:$8 sps:$4 sm:$0xff]  }
 0x4df   : > { %13905 = vst [vmem:[#allocation112_spill] sm:$0xff] %v12575_v23  ;;  %v12584_v24 = vadd.f32 %v12308_v41, %v5080_v52  ;;  %v5082_v21 = vpop.f32.mrb[39].mxu0  ;;  %v9838_v41 = vld [vmem:[%s13788_s18 + $0x3e4] ss:$8 sps:$4 sm:$0xff]  }
 0x4e1   : > { %13906 = vst [vmem:[#allocation113_spill] sm:$0xff] %v12584_v24  ;;  %5292 = vmatmul.mubr.bf16.gmra.mrb[144].mxu0 %v9830_v30  ;;  %v12599_v30 = vpop.f32.mrb[166].mxu1 }
 0x4e2   : > { %5299 = vmatprep.mubr.bf16.mxu0 %v9835_v25  ;;  %v12604_v21 = vpop.f32.mrb[167].mxu1 }
 0x4e4   : > { %v5085_v58 = vpop.f32.mrb[40].mxu0 }
 0x4e5   : > { %v12591_v42 = vadd.f32 %v12332_v17, %v5085_v58  ;;  %v5087_v10 = vpop.f32.mrb[41].mxu0 }
 0x4e6   : > { %v5088_v23 = vpop.f32.mrb[42].mxu0 }
 0x4e7   : > { %13907 = vst [vmem:[#allocation114_spill] sm:$0xff] %v12591_v42  ;;  %v12602_v25 = vadd.f32 %v12348_v59, %v5088_v23  ;;  %v5090_v52 = vpop.f32.mrb[43].mxu0  ;;  %v9836_v42 = vld [vmem:[%s13788_s18 + $0x3e0] ss:$8 sps:$4 sm:$0xff]   ;;  %v9841_v59 = vld [vmem:[%s13788_s18 + $0x3f4] ss:$8 sps:$4 sm:$0xff]  }
 0x4e9   : > { %13908 = vst [vmem:[#allocation115_spill] sm:$0xff] %v12602_v25  ;;  %5300 = vmatmul.mubr.bf16.gmra.mrb[148].mxu0 %v9833_v28  ;;  %v12618_v28 = vpop.f32.mrb[168].mxu1 }
 0x4ea   : > { %5307 = vmatprep.mubr.bf16.mxu0 %v9838_v41  ;;  %v12620_v41 = vpop.f32.mrb[169].mxu1 }
 0x4eb   : > { %v12628_v36 = vpop.f32.mrb[170].mxu1 }
 0x4ec   : > { %v5093_v17 = vpop.f32.mrb[44].mxu0 }
 0x4ed   : > { %v12607_v58 = vadd.f32 %v12330_v2, %v5093_v17  ;;  %v5095_v10 = vpop.f32.mrb[45].mxu0 }
 0x4ee   : > { %v5096_v24 = vpop.f32.mrb[46].mxu0 }
 0x4ef   : > { %13909 = vst [vmem:[#allocation116_spill] sm:$0xff] %v12607_v58  ;;  %v12616_v23 = vadd.f32 %v12343_v37, %v5096_v24  ;;  %v5098_v52 = vpop.f32.mrb[47].mxu0  ;;  %v9839_v58 = vld [vmem:[%s13788_s18 + $0x3f0] ss:$8 sps:$4 sm:$0xff]  }
 0x4f1   : > { %13910 = vst [vmem:[#allocation117_spill] sm:$0xff] %v12616_v23  ;;  %5308 = vmatmul.mubr.bf16.gmra.mrb[152].mxu0 %v9836_v42  ;;  %v12633_v42 = vpop.f32.mrb[171].mxu1 }
 0x4f2   : > { %5315 = vmatprep.mubr.bf16.mxu0 %v9841_v59  ;;  %v13913_v59 = vld [vmem:[#allocation16_spill] sm:$0xff] }
 0x4f4   : > { %v5101_v2 = vpop.f32.mrb[48].mxu0 }
 0x4f5   : > { %v12623_v17 = vadd.f32 %v12364_v33, %v5101_v2  ;;  %v5103_v10 = vpop.f32.mrb[49].mxu0 }
 0x4f6   : > { %v5104_v25 = vpop.f32.mrb[50].mxu0 }
 0x4f7   : > { %13911 = vst [vmem:[#allocation118_spill] sm:$0xff] %v12623_v17  ;;  %v12631_v37 = vadd.f32 %v12380_v54, %v5104_v25  ;;  %v5106_v24 = vpop.f32.mrb[51].mxu0  ;;  %v12645_v54 = vpop.f32.mrb[172].mxu1  ;;  %v13917_v25 = vld [vmem:[#allocation22_spill] sm:$0xff] }
 0x4f8   : > { %v12649_v24 = vpop.f32.mrb[173].mxu1 }
 0x4f9   : > { %13912 = vst [vmem:[#allocation119_spill] sm:$0xff] %v12631_v37  ;;  %5316 = vmatmul.mubr.bf16.gmra.mrb[156].mxu0 %v9839_v58 }
 0x4fa   : > { %9140 = vmatprep.mubr.msk.bf16.mxu0 %vm3721_vm1, %v13913_v59 }
 0x4fc   : > { %v5109_v33 = vpop.f32.mrb[52].mxu0 }
 0x4fd   : > { %v12638_v52 = vadd.f32 %v12362_v11, %v5109_v33  ;;  %v5111_v2 = vpop.f32.mrb[53].mxu0 }
 0x4fe   : > { %v5112_v10 = vpop.f32.mrb[54].mxu0  ;;  %v12654_v2 = vpop.f32.mrb[174].mxu1 }
 0x4ff   : > { %13914 = vst [vmem:[#allocation16_spill] sm:$0xff] %v12638_v52  ;;  %v12641_v17 = vadd.f32 %v12375_v34, %v5112_v10  ;;  %v5114_v23 = vpop.f32.mrb[55].mxu0  ;;  %v13920_v10 = vld [vmem:[#allocation25_spill] sm:$0xff] }
 0x501   : > { %13915 = vst [vmem:[#allocation120_spill] sm:$0xff] %v12641_v17  ;;  %9141 = vmatmul.mubr.msk.bf16.vlgmr.msra.gmra.mrb[160].mxu0 %vm3721_vm1, %v13916_v46  ;;  %v12659_v46 = vpop.f32.mrb[175].mxu1 }
 0x502   : > { %9144 = vmatprep.mubr.msk.bf16.mxu0 %vm3721_vm1, %v13917_v25  ;;  %v13921_v25 = vld [vmem:[#allocation28_spill] sm:$0xff] }
 0x504   : > { %v5117_v58 = vpop.f32.mrb[56].mxu0 }
 0x505   : > { %v12652_v11 = vadd.f32 %v12396_v48, %v5117_v58  ;;  %v5119_v59 = vpop.f32.mrb[57].mxu0 }
 0x506   : > { %v5120_v33 = vpop.f32.mrb[58].mxu0 }
 0x507   : > { %13918 = vst [vmem:[#allocation19_spill] sm:$0xff] %v12652_v11  ;;  %v12657_v34 = vadd.f32 %v12412_v26, %v5120_v33  ;;  %v5122_v23 = vpop.f32.mrb[59].mxu0  ;;  %v13924_v33 = vld [vmem:[#allocation31_spill] sm:$0xff] }
 0x508   : > { %v12673_v23 = vpop.f32.mrb[176].mxu1 }
 0x509   : > { %13919 = vst [vmem:[#allocation22_spill] sm:$0xff] %v12657_v34  ;;  %9145 = vmatmul.mubr.msk.bf16.gmra.mrb[164].mxu0 %vm3721_vm1, %v13920_v10  ;;  %v13925_v34 = vld [vmem:[#allocation34_spill] sm:$0xff] }
 0x50a   : > { %9148 = vmatprep.mubr.msk.bf16.mxu0 %vm3721_vm1, %v13921_v25  ;;  %v12677_v25 = vpop.f32.mrb[177].mxu1 }
 0x50c   : > { %v5125_v17 = vpop.f32.mrb[60].mxu0 }
 0x50d   : > { %v12666_v48 = vadd.f32 %v12394_v55, %v5125_v17  ;;  %v5127_v58 = vpop.f32.mrb[61].mxu0 }
 0x50e   : > { %v5128_v59 = vpop.f32.mrb[62].mxu0  ;;  %v12682_v58 = vpop.f32.mrb[178].mxu1 }
 0x50f   : > { %13922 = vst [vmem:[#allocation25_spill] sm:$0xff] %v12666_v48  ;;  %v12669_v11 = vadd.f32 %v12407_v1, %v5128_v59  ;;  %v5130_v26 = vpop.f32.mrb[63].mxu0  ;;  %v12684_v59 = vpop.f32.mrb[179].mxu1 }
 0x511   : > { %13923 = vst [vmem:[#allocation28_spill] sm:$0xff] %v12669_v11  ;;  %9149 = vmatmul.mubr.msk.bf16.gmra.mrb[168].mxu0 %vm3721_vm1, %v13924_v33  ;;  %v13928_v11 = vld [vmem:[#allocation37_spill] sm:$0xff] }
 0x512   : > { %9152 = vmatprep.mubr.msk.bf16.mxu0 %vm3721_vm1, %v13925_v34  ;;  %v13929_v34 = vld [vmem:[#allocation40_spill] sm:$0xff] }
 0x514   : > { %v5133_v10 = vpop.f32.mrb[64].mxu0 }
 0x515   : > { %v12680_v55 = vadd.f32 %v12428_v8, %v5133_v10  ;;  %v5135_v17 = vpop.f32.mrb[65].mxu0 }
 0x516   : > { %v5136_v1 = vpop.f32.mrb[66].mxu0 }
 0x517   : > { %13926 = vst [vmem:[#allocation31_spill] sm:$0xff] %v12680_v55  ;;  %v12687_v26 = vadd.f32 %v12441_v13, %v5136_v1  ;;  %v5138_v33 = vpop.f32.mrb[67].mxu0  ;;  %v13932_v55 = vld [vmem:[#allocation43_spill] sm:$0xff]  ;;  %v12701_v13 = vpop.f32.mrb[180].mxu1  ;;  %v13933_v1 = vld [vmem:[#allocation46_spill] sm:$0xff] }
 0x518   : > { %v12705_v33 = vpop.f32.mrb[181].mxu1 }
 0x519   : > { %13927 = vst [vmem:[#allocation34_spill] sm:$0xff] %v12687_v26  ;;  %9153 = vmatmul.mubr.msk.bf16.gmra.mrb[172].mxu0 %vm3721_vm1, %v13928_v11 }
 0x51a   : > { %9156 = vmatprep.mubr.msk.bf16.mxu0 %vm3721_vm1, %v13929_v34 }
 0x51c   : > { %v5141_v48 = vpop.f32.mrb[68].mxu0 }
 0x51d   : > { %v12694_v8 = vadd.f32 %v12426_v32, %v5141_v48  ;;  %v5143_v10 = vpop.f32.mrb[69].mxu0 }
 0x51e   : > { %v5144_v17 = vpop.f32.mrb[70].mxu0  ;;  %v12710_v10 = vpop.f32.mrb[182].mxu1 }
 0x51f   : > { %13930 = vst [vmem:[#allocation37_spill] sm:$0xff] %v12694_v8  ;;  %v12697_v52 = vadd.f32 %v12436_v7, %v5144_v17  ;;  %v5146_v37 = vpop.f32.mrb[71].mxu0  ;;  %v13936_v17 = vld [vmem:[#allocation49_spill] sm:$0xff] }
 0x521   : > { %13931 = vst [vmem:[#allocation40_spill] sm:$0xff] %v12697_v52  ;;  %9157 = vmatmul.mubr.msk.bf16.gmra.mrb[176].mxu0 %vm3721_vm1, %v13932_v55  ;;  %v12715_v55 = vpop.f32.mrb[183].mxu1 }
 0x522   : > { %9160 = vmatprep.mubr.msk.bf16.mxu0 %vm3721_vm1, %v13933_v1  ;;  %v13937_v1 = vld [vmem:[#allocation52_spill] sm:$0xff] }
 0x524   : > { %v5149_v11 = vpop.f32.mrb[72].mxu0 }
 0x525   : > { %v12708_v32 = vadd.f32 %v12460_v3, %v5149_v11  ;;  %v5151_v48 = vpop.f32.mrb[73].mxu0 }
 0x526   : > { %v5152_v34 = vpop.f32.mrb[74].mxu0 }
 0x527   : > { %13934 = vst [vmem:[#allocation43_spill] sm:$0xff] %v12708_v32  ;;  %v12713_v7 = vadd.f32 %v12476_v6, %v5152_v34  ;;  %v5154_v37 = vpop.f32.mrb[75].mxu0  ;;  %v13940_v34 = vld [vmem:[#allocation55_spill] sm:$0xff] }
 0x528   : > { %v12729_v37 = vpop.f32.mrb[184].mxu1 }
 0x529   : > { %13935 = vst [vmem:[#allocation46_spill] sm:$0xff] %v12713_v7  ;;  %9161 = vmatmul.mubr.msk.bf16.gmra.mrb[180].mxu0 %vm3721_vm1, %v13936_v17  ;;  %v13941_v7 = vld [vmem:[#allocation58_spill] sm:$0xff] }
 0x52a   : > { %9164 = vmatprep.mubr.msk.bf16.mxu0 %vm3721_vm1, %v13937_v1  ;;  %v12733_v1 = vpop.f32.mrb[185].mxu1 }
 0x52c   : > { %v5157_v52 = vpop.f32.mrb[76].mxu0 }
 0x52d   : > { %v12722_v3 = vadd.f32 %v12458_v12, %v5157_v52  ;;  %v5159_v11 = vpop.f32.mrb[77].mxu0 }
 0x52e   : > { %v5160_v48 = vpop.f32.mrb[78].mxu0 }
 0x52f   : > { %13938 = vst [vmem:[#allocation49_spill] sm:$0xff] %v12722_v3  ;;  %v12725_v32 = vadd.f32 %v12471_v20, %v5160_v48  ;;  %v5162_v6 = vpop.f32.mrb[79].mxu0  ;;  %v12738_v3 = vpop.f32.mrb[186].mxu1 }
 0x530   : > { %v12743_v6 = vpop.f32.mrb[187].mxu1 }
 0x531   : > { %13939 = vst [vmem:[#allocation52_spill] sm:$0xff] %v12725_v32  ;;  %9165 = vmatmul.mubr.msk.bf16.gmra.mrb[184].mxu0 %vm3721_vm1, %v13940_v34  ;;  %v13944_v34 = vld [vmem:[#allocation61_spill] sm:$0xff] }
 0x532   : > { %9168 = vmatprep.mubr.msk.bf16.mxu0 %vm3721_vm1, %v13941_v7 }
 0x534   : > { %v5165_v17 = vpop.f32.mrb[80].mxu0 }
 0x535   : > { %v12736_v12 = vadd.f32 %v12492_v56, %v5165_v17  ;;  %v5167_v52 = vpop.f32.mrb[81].mxu0 }
 0x536   : > { %v5168_v11 = vpop.f32.mrb[82].mxu0 }
 0x537   : > { %13942 = vst [vmem:[#allocation55_spill] sm:$0xff] %v12736_v12  ;;  %v12741_v20 = vadd.f32 %v12508_v47, %v5168_v11  ;;  %v5170_v48 = vpop.f32.mrb[83].mxu0  ;;  %v12753_v12 = vpop.f32.mrb[188].mxu1 }
 0x538   : > { %v12755_v11 = vpop.f32.mrb[189].mxu1 }
 0x539   : > { %13943 = vst [vmem:[#allocation58_spill] sm:$0xff] %v12741_v20  ;;  %9169 = vmatmul.mubr.msk.bf16.gmra.mrb[188].mxu0 %vm3721_vm1, %v13944_v34  ;;  %v12760_v26 = vpop.f32.mrb[190].mxu1 }
 0x53c   : > { %v5173_v7 = vpop.f32.mrb[84].mxu0 }
 0x53d   : > { %v12748_v32 = vadd.f32 %v12490_v35, %v5173_v7  ;;  %v5175_v8 = vpop.f32.mrb[85].mxu0  ;;  %v12765_v7 = vpop.f32.mrb[191].mxu1 }
 0x53e   : > { %v5176_v56 = vpop.f32.mrb[86].mxu0 }
 0x53f   : > { %13945 = vst [vmem:[#allocation61_spill] sm:$0xff] %v12748_v32  ;;  %v12751_v17 = vadd.f32 %v12503_v63, %v5176_v56  ;;  %v5178_v52 = vpop.f32.mrb[87].mxu0 }
 0x541   : > { %13946 = vst [vmem:[#allocation121_spill] sm:$0xff] %v12751_v17 }
 0x544   : > { %v5181_v47 = vpop.f32.mrb[88].mxu0 }
 0x545   : > { %v12758_v48 = vadd.f32 %v12524_v38, %v5181_v47  ;;  %v5183_v20 = vpop.f32.mrb[89].mxu0 }
 0x546   : > { %v5184_v34 = vpop.f32.mrb[90].mxu0 }
 0x547   : > { %13947 = vst [vmem:[#allocation122_spill] sm:$0xff] %v12758_v48  ;;  %v12763_v35 = vadd.f32 %v12540_v16, %v5184_v34  ;;  %v5186_v8 = vpop.f32.mrb[91].mxu0 }
 0x549   : > { %13948 = vst [vmem:[#allocation123_spill] sm:$0xff] %v12763_v35 }
 0x54c   : > { %v5189_v63 = vpop.f32.mrb[92].mxu0 }
 0x54d   : > { %v12768_v56 = vadd.f32 %v12522_v15, %v5189_v63  ;;  %v5191_v52 = vpop.f32.mrb[93].mxu0 }
 0x54e   : > { %v5192_v17 = vpop.f32.mrb[94].mxu0 }
 0x54f   : > { %v12771_v32 = vadd.f32 %v12535_v9, %v5192_v17  ;;  %v5194_v38 = vpop.f32.mrb[95].mxu0 }
 0x554   : > { %v5197_v20 = vpop.f32.mrb[96].mxu0 }
 0x555   : > { %v12774_v47 = vadd.f32 %v12556_v60, %v5197_v20  ;;  %v5199_v48 = vpop.f32.mrb[97].mxu0 }
 0x556   : > { %v5200_v16 = vpop.f32.mrb[98].mxu0 }
 0x557   : > { %v12777_v34 = vadd.f32 %v12569_v43, %v5200_v16  ;;  %v5202_v8 = vpop.f32.mrb[99].mxu0 }
 0x55c   : > { %v5205_v35 = vpop.f32.mrb[100].mxu0 }
 0x55d   : > { %v12780_v15 = vadd.f32 %v12554_v39, %v5205_v35  ;;  %v5207_v63 = vpop.f32.mrb[101].mxu0 }
 0x55e   : > { %v5208_v52 = vpop.f32.mrb[102].mxu0 }
 0x55f   : > { %v12783_v9 = vadd.f32 %v12564_v44, %v5208_v52  ;;  %v5210_v17 = vpop.f32.mrb[103].mxu0 }
 0x564   : > { %v5213_v38 = vpop.f32.mrb[104].mxu0 }
 0x565   : > { %v12786_v60 = vadd.f32 %v12588_v19, %v5213_v38  ;;  %v5215_v48 = vpop.f32.mrb[105].mxu0 }
 0x566   : > { %v5216_v20 = vpop.f32.mrb[106].mxu0 }
 0x567   : > { %v12789_v43 = vadd.f32 %v12604_v21, %v5216_v20  ;;  %v5218_v16 = vpop.f32.mrb[107].mxu0 }
 0x56c   : > { %v5221_v8 = vpop.f32.mrb[108].mxu0 }
 0x56d   : > { %v12792_v39 = vadd.f32 %v12586_v50, %v5221_v8  ;;  %v5223_v35 = vpop.f32.mrb[109].mxu0 }
 0x56e   : > { %v5224_v63 = vpop.f32.mrb[110].mxu0 }
 0x56f   : > { %v12795_v44 = vadd.f32 %v12599_v30, %v5224_v63  ;;  %v5226_v52 = vpop.f32.mrb[111].mxu0 }
 0x574   : > { %v5229_v17 = vpop.f32.mrb[112].mxu0 }
 0x575   : > { %v12798_v19 = vadd.f32 %v12620_v41, %v5229_v17  ;;  %v5231_v38 = vpop.f32.mrb[113].mxu0 }
 0x576   : > { %v5232_v48 = vpop.f32.mrb[114].mxu0 }
 0x577   : > { %13949 = vst [vmem:[#allocation124_spill] sm:$0xff] %v12798_v19  ;;  %v12801_v21 = vadd.f32 %v12633_v42, %v5232_v48  ;;  %v5234_v20 = vpop.f32.mrb[115].mxu0 }
 0x579   : > { %13950 = vst [vmem:[#allocation125_spill] sm:$0xff] %v12801_v21 }
 0x57c   : > { %v5237_v16 = vpop.f32.mrb[116].mxu0 }
 0x57d   : > { %v12804_v50 = vadd.f32 %v12618_v28, %v5237_v16  ;;  %v5239_v8 = vpop.f32.mrb[117].mxu0 }
 0x57e   : > { %v5240_v35 = vpop.f32.mrb[118].mxu0 }
 0x57f   : > { %13951 = vst [vmem:[#allocation126_spill] sm:$0xff] %v12804_v50  ;;  %v12807_v30 = vadd.f32 %v12628_v36, %v5240_v35  ;;  %v5242_v63 = vpop.f32.mrb[119].mxu0 }
 0x581   : > { %13952 = vst [vmem:[#allocation127_spill] sm:$0xff] %v12807_v30 }
 0x584   : > { %v5245_v52 = vpop.f32.mrb[120].mxu0 }
 0x585   : > { %v12810_v41 = vadd.f32 %v12649_v24, %v5245_v52  ;;  %v5247_v17 = vpop.f32.mrb[121].mxu0 }
 0x586   : > { %v5248_v38 = vpop.f32.mrb[122].mxu0 }
 0x587   : > { %13953 = vst [vmem:[#allocation128_spill] sm:$0xff] %v12810_v41  ;;  %v12813_v42 = vadd.f32 %v12659_v46, %v5248_v38  ;;  %v5250_v48 = vpop.f32.mrb[123].mxu0 }
 0x589   : > { %13954 = vst [vmem:[#allocation129_spill] sm:$0xff] %v12813_v42 }
 0x58c   : > { %v5253_v20 = vpop.f32.mrb[124].mxu0 }
 0x58d   : > { %v12816_v28 = vadd.f32 %v12645_v54, %v5253_v20  ;;  %v5255_v16 = vpop.f32.mrb[125].mxu0  ;;  %v9844_v54 = vld [vmem:[%s13957_s20 + $0x4] ss:$8 sps:$4 sm:$0xff]  }
 0x58e   : > { %v5256_v8 = vpop.f32.mrb[126].mxu0  ;;  %6476 = vmatprep.mubr.bf16.mxu0 %v9844_v54 }
 0x58f   : > { %13955 = vst [vmem:[#allocation130_spill] sm:$0xff] %v12816_v28  ;;  %v12819_v36 = vadd.f32 %v12654_v2, %v5256_v8  ;;  %v5258_v35 = vpop.f32.mrb[127].mxu0 }
 0x591   : > { %13956 = vst [vmem:[#allocation131_spill] sm:$0xff] %v12819_v36 }
 0x594   : > { %v5261_v63 = vpop.f32.mrb[128].mxu0 }
 0x595   : > { %v12822_v24 = vadd.f32 %v12677_v25, %v5261_v63  ;;  %v5263_v52 = vpop.f32.mrb[129].mxu0 }
 0x596   : > { %v5264_v17 = vpop.f32.mrb[130].mxu0 }
 0x597   : > { %v12825_v46 = vadd.f32 %v12684_v59, %v5264_v17  ;;  %v5266_v38 = vpop.f32.mrb[131].mxu0 }
 0x59c   : > { %v5269_v48 = vpop.f32.mrb[132].mxu0 }
 0x59d   : > { %v12831_v2 = vadd.f32 %v12673_v23, %v5269_v48  ;;  %v5271_v20 = vpop.f32.mrb[133].mxu0 }
 0x59e   : > { %v5272_v16 = vpop.f32.mrb[134].mxu0 }
 0x59f   : > { %v12834_v25 = vadd.f32 %v12682_v58, %v5272_v16  ;;  %v5274_v8 = vpop.f32.mrb[135].mxu0 }
 0x5a1   : > { %13958 = vst [vmem:[#allocation132_spill] sm:$0xff] %v12834_v25 }
 0x5a4   : > { %v5277_v35 = vpop.f32.mrb[136].mxu0 }
 0x5a5   : > { %v12837_v59 = vadd.f32 %v12705_v33, %v5277_v35  ;;  %v5279_v63 = vpop.f32.mrb[137].mxu0 }
 0x5a6   : > { %v5280_v52 = vpop.f32.mrb[138].mxu0 }
 0x5a7   : > { %13959 = vst [vmem:[#allocation133_spill] sm:$0xff] %v12837_v59  ;;  %v12840_v17 = vadd.f32 %v12715_v55, %v5280_v52  ;;  %v5282_v38 = vpop.f32.mrb[139].mxu0 }
 0x5a9   : > { %13960 = vst [vmem:[#allocation134_spill] sm:$0xff] %v12840_v17 }
 0x5ac   : > { %v5285_v54 = vpop.f32.mrb[140].mxu0 }
 0x5ad   : > { %v12843_v23 = vadd.f32 %v12701_v13, %v5285_v54  ;;  %v5287_v48 = vpop.f32.mrb[141].mxu0 }
 0x5ae   : > { %v5288_v20 = vpop.f32.mrb[142].mxu0 }
 0x5af   : > { %13961 = vst [vmem:[#allocation135_spill] sm:$0xff] %v12843_v23  ;;  %v12846_v58 = vadd.f32 %v12710_v10, %v5288_v20  ;;  %v5290_v16 = vpop.f32.mrb[143].mxu0 }
 0x5b1   : > { %13962 = vst [vmem:[#allocation136_spill] sm:$0xff] %v12846_v58 }
 0x5b4   : > { %v5293_v8 = vpop.f32.mrb[144].mxu0 }
 0x5b5   : > { %v12849_v33 = vadd.f32 %v12733_v1, %v5293_v8  ;;  %v5295_v35 = vpop.f32.mrb[145].mxu0 }
 0x5b6   : > { %v5296_v63 = vpop.f32.mrb[146].mxu0 }
 0x5b7   : > { %13963 = vst [vmem:[#allocation137_spill] sm:$0xff] %v12849_v33  ;;  %v12852_v55 = vadd.f32 %v12743_v6, %v5296_v63  ;;  %v5298_v52 = vpop.f32.mrb[147].mxu0 }
 0x5b9   : > { %13964 = vst [vmem:[#allocation138_spill] sm:$0xff] %v12852_v55 }
 0x5bc   : > { %v5301_v38 = vpop.f32.mrb[148].mxu0 }
 0x5bd   : > { %v12855_v13 = vadd.f32 %v12729_v37, %v5301_v38  ;;  %v5303_v54 = vpop.f32.mrb[149].mxu0 }
 0x5be   : > { %v5304_v48 = vpop.f32.mrb[150].mxu0 }
 0x5bf   : > { %13965 = vst [vmem:[#allocation139_spill] sm:$0xff] %v12855_v13  ;;  %v12858_v10 = vadd.f32 %v12738_v3, %v5304_v48  ;;  %v5306_v20 = vpop.f32.mrb[151].mxu0 }
 0x5c1   : > { %13966 = vst [vmem:[#allocation140_spill] sm:$0xff] %v12858_v10 }
 0x5c4   : > { %v5309_v16 = vpop.f32.mrb[152].mxu0 }
 0x5c5   : > { %v12861_v1 = vadd.f32 %v12755_v11, %v5309_v16  ;;  %v5311_v8 = vpop.f32.mrb[153].mxu0  ;;  %v12875_v11 = vld [vmem:[%s13634_s11] ss:$0 sm:$0xff] }
 0x5c6   : > { %v5312_v35 = vpop.f32.mrb[154].mxu0 }
 0x5c7   : > { %13967 = vst [vmem:[#allocation141_spill] sm:$0xff] %v12861_v1  ;;  %v12864_v6 = vadd.f32 %v12765_v7, %v5312_v35  ;;  %v5314_v63 = vpop.f32.mrb[155].mxu0 }
 0x5c9   : > { %13968 = vst [vmem:[#allocation142_spill] sm:$0xff] %v12864_v6 }
 0x5cc   : > { %v5317_v52 = vpop.f32.mrb[156].mxu0 }
 0x5cd   : > { %v12867_v37 = vadd.f32 %v12753_v12, %v5317_v52  ;;  %v5319_v38 = vpop.f32.mrb[157].mxu0 }
 0x5ce   : > { %v5320_v54 = vpop.f32.mrb[158].mxu0 }
 0x5cf   : > { %13969 = vst [vmem:[#allocation143_spill] sm:$0xff] %v12867_v37  ;;  %v12870_v3 = vadd.f32 %v12760_v26, %v5320_v54  ;;  %v5322_v48 = vpop.f32.mrb[159].mxu0 }
 0x5d1   : > { %13970 = vst [vmem:[#allocation144_spill] sm:$0xff] %v12870_v3 }
 0x5d4   : > { %v9142_v20 = vpop.f32.mrb[160].mxu0 }
 0x5d5   : > { %v6253_v16 = vpop.f32.mrb[161].mxu0  ;;  %v6262_v8 = vadd.f32 %v9142_v20, %v12875_v11 }
 0x5d6   : > { %v9143_v7 = vpop.f32.mrb[162].mxu0  ;;  %v6254_v63 = vadd.f32 %v12875_v11, %v6253_v16 }
 0x5d7   : > { %v6265_v35 = vadd.f32 %v9143_v7, %v12875_v11  ;;  %v6256_v12 = vpop.f32.mrb[163].mxu0 }
 0x5d8   : > { %v6257_v52 = vadd.f32 %v12875_v11, %v6256_v12 }
 0x5d9   : > { %v12881_v26 = vpack.c.bf16 %v6265_v35, %v6262_v8 }
 0x5da   : > { %v12883_v38 = vpack.c.bf16 %v6257_v52, %v6254_v63 }
 0x5db   : > { %6531 = vrot.lane.b32.xlu1 %v12881_v26, %s10004_s30 }
 0x5dc   : > { %v9146_v54 = vpop.f32.mrb[164].mxu0  ;;  %6529 = vrot.lane.b32.xlu0 %v12883_v38, %s10004_s30 }
 0x5dd   : > { %v6269_v48 = vpop.f32.mrb[165].mxu0  ;;  %v6278_v7 = vadd.f32 %v9146_v54, %v12875_v11 }
 0x5de   : > { %v9147_v20 = vpop.f32.mrb[166].mxu0  ;;  %v6270_v8 = vadd.f32 %v12875_v11, %v6269_v48 }
 0x5df   : > { %v6281_v16 = vadd.f32 %v9147_v20, %v12875_v11  ;;  %v6272_v3 = vpop.f32.mrb[167].mxu0 }
 0x5e0   : > { %v6273_v35 = vadd.f32 %v12875_v11, %v6272_v3 }
 0x5e1   : > { %v12893_v12 = vpack.c.bf16 %v6281_v16, %v6278_v7 }
 0x5e2   : > { %v12895_v63 = vpack.c.bf16 %v6273_v35, %v6270_v8 }
 0x5e4   : > { %v9150_v52 = vpop.f32.mrb[168].mxu0 }
 0x5e5   : > { %v6285_v37 = vpop.f32.mrb[169].mxu0  ;;  %v6294_v1 = vadd.f32 %v9150_v52, %v12875_v11 }
 0x5e6   : > { %v9151_v6 = vpop.f32.mrb[170].mxu0  ;;  %v6286_v54 = vadd.f32 %v12875_v11, %v6285_v37 }
 0x5e7   : > { %v6297_v10 = vadd.f32 %v9151_v6, %v12875_v11  ;;  %v6288_v36 = vpop.f32.mrb[171].mxu0 }
 0x5e8   : > { %v6289_v20 = vadd.f32 %v12875_v11, %v6288_v36 }
 0x5e9   : > { %v12901_v13 = vpack.c.bf16 %v6297_v10, %v6294_v1 }
 0x5ea   : > { %v12903_v48 = vpack.c.bf16 %v6289_v20, %v6286_v54 }
 0x5ec   : > { %v9154_v3 = vpop.f32.mrb[172].mxu0 }
 0x5ed   : > { %v6301_v7 = vpop.f32.mrb[173].mxu0  ;;  %v6310_v8 = vadd.f32 %v9154_v3, %v12875_v11 }
 0x5ee   : > { %v9155_v16 = vpop.f32.mrb[174].mxu0  ;;  %v6302_v52 = vadd.f32 %v12875_v11, %v6301_v7 }
 0x5ef   : > { %v6313_v35 = vadd.f32 %v9155_v16, %v12875_v11  ;;  %v6304_v28 = vpop.f32.mrb[175].mxu0 }
 0x5f0   : > { %v6305_v6 = vadd.f32 %v12875_v11, %v6304_v28 }
 0x5f1   : > { %v12909_v55 = vpack.c.bf16 %v6313_v35, %v6310_v8 }
 0x5f2   : > { %v12911_v37 = vpack.c.bf16 %v6305_v6, %v6302_v52 }
 0x5f4   : > { %v9158_v36 = vpop.f32.mrb[176].mxu0 }
 0x5f5   : > { %v6317_v10 = vpop.f32.mrb[177].mxu0  ;;  %v6326_v54 = vadd.f32 %v9158_v36, %v12875_v11 }
 0x5f6   : > { %v9159_v1 = vpop.f32.mrb[178].mxu0  ;;  %v6318_v3 = vadd.f32 %v12875_v11, %v6317_v10 }
 0x5f7   : > { %v6329_v20 = vadd.f32 %v9159_v1, %v12875_v11  ;;  %v6320_v42 = vpop.f32.mrb[179].mxu0 }
 0x5f8   : > { %v6321_v16 = vadd.f32 %v12875_v11, %v6320_v42 }
 0x5f9   : > { %v12917_v33 = vpack.c.bf16 %v6329_v20, %v6326_v54 }
 0x5fa   : > { %v12919_v7 = vpack.c.bf16 %v6321_v16, %v6318_v3 }
 0x5fb   : > { %6547 = vrot.lane.b32.xlu1 %v12917_v33, %s10004_s30 }
 0x5fc   : > { %v9162_v28 = vpop.f32.mrb[180].mxu0  ;;  %8855 = vmatprep.subr.bf16.mxu0 %v12919_v7  ;;  %6545 = vrot.lane.b32.xlu0 %v12919_v7, %s10004_s30 }
 0x5fd   : > { %v6333_v8 = vpop.f32.mrb[181].mxu0  ;;  %8856 = vmatpush3.bf16.msra.mxu0 %v12883_v38  ;;  %v6342_v42 = vadd.f32 %v9162_v28, %v12875_v11 }
 0x5fe   : > { %v9163_v35 = vpop.f32.mrb[182].mxu0  ;;  %8857 = vmatprep.subr.bf16.mxu0 %v12917_v33  ;;  %v6334_v36 = vadd.f32 %v12875_v11, %v6333_v8 }
 0x5ff   : > { %v6345_v52 = vadd.f32 %v9163_v35, %v12875_v11  ;;  %v6336_v6 = vpop.f32.mrb[183].mxu0 }
 0x600   : > { %v6337_v10 = vadd.f32 %v12875_v11, %v6336_v6  ;;  %6533 = vrot.lane.b32.xlu0 %v12895_v63, %s10004_s30 }
 0x601   : > { %v6399_v1 = vpack.c.bf16 %v6345_v52, %v6342_v42  ;;  %8858 = vmatpush3.bf16.msra.mxu0 %v12881_v26 }
 0x602   : > { %v6398_v54 = vpack.c.bf16 %v6337_v10, %v6334_v36 }
 0x604   : > { %v9166_v20 = vpop.f32.mrb[184].mxu0  ;;  %6549 = vrot.lane.b32.xlu1 %v6398_v54, %s10004_s30  ;;  %6535 = vrot.lane.b32.xlu0 %v12893_v12, %s10004_s30 }
 0x605   : > { %8859 = vmatprep.subr.bf16.mxu0 %v6398_v54  ;;  %v6349_v3 = vpop.f32.mrb[185].mxu0  ;;  %v6358_v28 = vadd.f32 %v9166_v20, %v12875_v11 }
 0x606   : > { %8860 = vmatpush3.bf16.msra.mxu0 %v12895_v63  ;;  %v9167_v16 = vpop.f32.mrb[186].mxu0  ;;  %v6350_v42 = vadd.f32 %v12875_v11, %v6349_v3 }
 0x607   : > { %v6361_v8 = vadd.f32 %v9167_v16, %v12875_v11  ;;  %8861 = vmatprep.subr.bf16.mxu0 %v6399_v1  ;;  %v6352_v35 = vpop.f32.mrb[187].mxu0 }
 0x608   : > { %v6353_v52 = vadd.f32 %v12875_v11, %v6352_v35  ;;  %6551 = vrot.lane.b32.xlu1 %v6399_v1, %s10004_s30  ;;  %6537 = vrot.lane.b32.xlu0 %v12903_v48, %s10004_s30 }
 0x609   : > { %v12946_v6 = vpack.c.bf16 %v6361_v8, %v6358_v28 }
 0x60a   : > { %v6400_v36 = vpack.c.bf16 %v6353_v52, %v6350_v42  ;;  %8862 = vmatpush3.bf16.msra.mxu0 %v12893_v12 }
 0x60c   : > { %v9170_v10 = vpop.f32.mrb[188].mxu0  ;;  %6553 = vrot.lane.b32.xlu1 %v6400_v36, %s10004_s30  ;;  %6539 = vrot.lane.b32.xlu0 %v12901_v13, %s10004_s30 }
 0x60d   : > { %8863 = vmatprep.subr.bf16.mxu0 %v6400_v36  ;;  %v6365_v20 = vpop.f32.mrb[189].mxu0  ;;  %v6374_v16 = vadd.f32 %v9170_v10, %v12875_v11  ;;  %v9847_v10 = vld [vmem:[%s13957_s20 + $0x14] ss:$8 sps:$4 sm:$0xff]  }
 0x60e   : > { %8864 = vmatpush3.bf16.msra.mxu0 %v12903_v48  ;;  %v9171_v3 = vpop.f32.mrb[190].mxu0  ;;  %v6366_v8 = vadd.f32 %v12875_v11, %v6365_v20  ;;  %v9850_v20 = vld [vmem:[%s13957_s20 + $0x24] ss:$8 sps:$4 sm:$0xff]  }
 0x60f   : > { %v6377_v35 = vadd.f32 %v9171_v3, %v12875_v11  ;;  %8865 = vmatprep.subr.bf16.mxu0 %v12946_v6  ;;  %v6368_v28 = vpop.f32.mrb[191].mxu0 }
 0x610   : > { %v6369_v42 = vadd.f32 %v12875_v11, %v6368_v28  ;;  %6555 = vrot.lane.b32.xlu1 %v12946_v6, %s10004_s30  ;;  %6541 = vrot.lane.b32.xlu0 %v12911_v37, %s10004_s30  ;;  %v9842_v11 = vld [vmem:[%s13957_s20] ss:$8 sps:$4 sm:$0xff]  }
 0x611   : > { %v12962_v52 = vpack.c.bf16 %v6377_v35, %v6374_v16 }
 0x612   : > { %v12964_v41 = vpack.c.bf16 %v6369_v42, %v6366_v8  ;;  %8866 = vmatpush3.bf16.msra.mxu0 %v12901_v13 }
 0x614   : > { %6557 = vrot.lane.b32.xlu1 %v12964_v41, %s10004_s30  ;;  %6543 = vrot.lane.b32.xlu0 %v12909_v55, %s10004_s30 }
 0x615   : > { %8867 = vmatprep.subr.bf16.mxu0 %v12964_v41 }
 0x616   : > { %8868 = vmatpush3.bf16.msra.mxu0 %v12911_v37 }
 0x617   : > { %8869 = vmatprep.subr.bf16.mxu0 %v12962_v52 }
 0x618   : > { %6559 = vrot.lane.b32.xlu1 %v12962_v52, %s10004_s30  ;;  %6822 = vrot.lane.b32.xlu0 %v12883_v38, %s10005_s25  ;;  %v9845_v38 = vld [vmem:[%s13957_s20 + $0x10] ss:$8 sps:$4 sm:$0xff]  }
 0x61a   : > { %8870 = vmatpush3.bf16.msra.mxu0 %v12909_v55 }
 0x61c   : > { %6838 = vrot.lane.b32.xlu1 %v12919_v7, %s10005_s25  ;;  %6824 = vrot.lane.b32.xlu0 %v12881_v26, %s10005_s25  ;;  %v9853_v26 = vld [vmem:[%s13957_s20 + $0x34] ss:$8 sps:$4 sm:$0xff]  }
 0x61d   : > { %6477 = vmatmul.mubr.bf16.vlgmr.msra.gmra.mrb[192].mxu0 %v9842_v11 }
 0x61e   : > { %6484 = vmatprep.mubr.bf16.mxu0 %v9847_v10 }
 0x620   : > { %6840 = vrot.lane.b32.xlu1 %v12917_v33, %s10005_s25  ;;  %6844 = vrot.lane.b32.xlu0 %v6399_v1, %s10005_s25  ;;  %v9848_v33 = vld [vmem:[%s13957_s20 + $0x20] ss:$8 sps:$4 sm:$0xff]  }
 0x624   : > { %6842 = vrot.lane.b32.xlu1 %v6398_v54, %s10005_s25  ;;  %6846 = vrot.lane.b32.xlu0 %v6400_v36, %s10005_s25 }
 0x625   : > { %6485 = vmatmul.mubr.bf16.gmra.mrb[196].mxu0 %v9845_v38 }
 0x626   : > { %6492 = vmatprep.mubr.bf16.mxu0 %v9850_v20 }
 0x628   : > { %6826 = vrot.lane.b32.xlu1 %v12895_v63, %s10005_s25  ;;  %v9851_v63 = vld [vmem:[%s13957_s20 + $0x30] ss:$8 sps:$4 sm:$0xff]  }
 0x62c   : > { %6828 = vrot.lane.b32.xlu1 %v12893_v12, %s10005_s25 }
 0x62d   : > { %6493 = vmatmul.mubr.bf16.gmra.mrb[200].mxu0 %v9848_v33 }
 0x62e   : > { %6500 = vmatprep.mubr.bf16.mxu0 %v9853_v26 }
 0x630   : > { %6830 = vrot.lane.b32.xlu1 %v12903_v48, %s10005_s25 }
 0x635   : > { %6501 = vmatmul.mubr.bf16.gmra.mrb[204].mxu0 %v9851_v63 }
 0x64d   : > { %v6532_v1 = vpop.permute.xlu1 %6531 }
 0x64e   : > { %v6530_v7 = vpop.permute.xlu0 %6529  ;;  %v6577_v48 = vsel %vm3721_vm1, %v6532_v1, 0 }
 0x64f   : > { %v6574_v36 = vsel %vm3721_vm1, %v6530_v7, 0 }
 0x66d   : > { %v6548_v3 = vpop.permute.xlu1 %6547 }
 0x66e   : > { %v6546_v54 = vpop.permute.xlu0 %6545 }
 0x66f   : > { %9192 = vmatprep.subr.msk.bf16.mxu1 %vm3721_vm1, %v6546_v54 }
 0x670   : > { %8896 = vmatpush3.bf16.xpose.msra.mxu1 %v6574_v36 }
 0x671   : > { %9193 = vmatprep.subr.msk.bf16.mxu1 %vm3721_vm1, %v6548_v3 }
 0x672   : > { %v6534_v12 = vpop.permute.xlu0 %6533 }
 0x673   : > { %v6580_v10 = vsel %vm3721_vm1, %v6534_v12, 0 }
 0x676   : > { %v6550_v16 = vpop.permute.xlu1 %6549  ;;  %v6536_v35 = vpop.permute.xlu0 %6535 }
 0x677   : > { %v6583_v26 = vsel %vm3721_vm1, %v6536_v35, 0 }
 0x678   : > { %8898 = vmatpush3.bf16.xpose.msra.mxu1 %v6577_v48 }
 0x679   : > { %9194 = vmatprep.subr.msk.bf16.mxu1 %vm3721_vm1, %v6550_v16 }
 0x67a   : > { %v6552_v28 = vpop.permute.xlu1 %6551  ;;  %v6538_v8 = vpop.permute.xlu0 %6537 }
 0x67b   : > { %v6586_v36 = vsel %vm3721_vm1, %v6538_v8, 0 }
 0x67e   : > { %v6554_v42 = vpop.permute.xlu1 %6553  ;;  %v6540_v11 = vpop.permute.xlu0 %6539 }
 0x67f   : > { %v6589_v35 = vsel %vm3721_vm1, %v6540_v11, 0 }
 0x680   : > { %8900 = vmatpush3.bf16.xpose.msra.mxu1 %v6580_v10 }
 0x681   : > { %9195 = vmatprep.subr.msk.bf16.mxu1 %vm3721_vm1, %v6552_v28 }
 0x682   : > { %v6556_v38 = vpop.permute.xlu1 %6555  ;;  %v6542_v20 = vpop.permute.xlu0 %6541 }
 0x686   : > { %v6558_v33 = vpop.permute.xlu1 %6557  ;;  %v6544_v63 = vpop.permute.xlu0 %6543 }
 0x687   : > { %v6595_v11 = vsel %vm3721_vm1, %v6544_v63, 0 }
 0x688   : > { %8902 = vmatpush3.bf16.xpose.msra.mxu1 %v6583_v26 }
 0x689   : > { %9196 = vmatprep.subr.msk.bf16.mxu1 %vm3721_vm1, %v6554_v42  ;;  %v6592_v42 = vsel %vm3721_vm1, %v6542_v20, 0 }
 0x68a   : > { %v6560_v7 = vpop.permute.xlu1 %6559  ;;  %v6823_v1 = vpop.permute.xlu0 %6822 }
 0x68e   : > { %v6839_v54 = vpop.permute.xlu1 %6838  ;;  %v6825_v12 = vpop.permute.xlu0 %6824 }
 0x68f   : > { %8919 = vmatprep.subr.bf16.mxu0 %v6839_v54 }
 0x690   : > { %8904 = vmatpush3.bf16.xpose.msra.mxu1 %v6586_v36  ;;  %8920 = vmatpush3.bf16.msra.mxu0 %v6823_v1 }
 0x691   : > { %9197 = vmatprep.subr.msk.bf16.mxu1 %vm3721_vm1, %v6556_v38 }
 0x692   : > { %v6841_v3 = vpop.permute.xlu1 %6840  ;;  %v6845_v48 = vpop.permute.xlu0 %6844 }
 0x693   : > { %8921 = vmatprep.subr.bf16.mxu0 %v6841_v3 }
 0x694   : > { %8922 = vmatpush3.bf16.msra.mxu0 %v6825_v12 }
 0x696   : > { %v6843_v16 = vpop.permute.xlu1 %6842  ;;  %v6847_v10 = vpop.permute.xlu0 %6846 }
 0x697   : > { %8923 = vmatprep.subr.bf16.mxu0 %v6843_v16 }
 0x698   : > { %8906 = vmatpush3.bf16.xpose.msra.mxu1 %v6589_v35 }
 0x699   : > { %9198 = vmatprep.subr.msk.bf16.mxu1 %vm3721_vm1, %v6558_v33 }
 0x69a   : > { %v6827_v28 = vpop.permute.xlu1 %6826 }
 0x69b   : > { %8924 = vmatpush3.bf16.msra.mxu0 %v6827_v28 }
 0x69c   : > { %8925 = vmatprep.subr.bf16.mxu0 %v6845_v48 }
 0x69e   : > { %v6829_v8 = vpop.permute.xlu1 %6828 }
 0x69f   : > { %8926 = vmatpush3.bf16.msra.mxu0 %v6829_v8 }
 0x6a0   : > { %8908 = vmatpush3.bf16.xpose.msra.mxu1 %v6592_v42  ;;  %8927 = vmatprep.subr.bf16.mxu0 %v6847_v10 }
 0x6a1   : > { %9199 = vmatprep.subr.msk.bf16.mxu1 %vm3721_vm1, %v6560_v7 }
 0x6a2   : > { %v6831_v38 = vpop.permute.xlu1 %6830 }
 0x6a3   : > { %8928 = vmatpush3.bf16.msra.mxu0 %v6831_v38 }
 0x6a8   : > { %8910 = vmatpush3.bf16.xpose.msra.mxu1 %v6595_v11 }
 0x6f0   : > { %v8871_v26 = vpop.f32.mrb[192].mxu0 }
 0x6f1   : > { %v8872_v1 = vpop.f32.mrb[193].mxu0 }
 0x6f2   : > { %v8873_v33 = vadd.f32 %v8872_v1, %v8871_v26  ;;  %v8874_v54 = vpop.f32.mrb[194].mxu0 }
 0x6f3   : > { %v8875_v36 = vpop.f32.mrb[195].mxu0 }
 0x6f4   : > { %v8876_v3 = vadd.f32 %v8875_v36, %v8874_v54 }
 0x6f6   : > { %v6509_v12 = vpack.c.bf16 %v8876_v3, %v8873_v33 }
 0x6f8   : > { %v8877_v16 = vpop.f32.mrb[196].mxu0  ;;  %8911 = vmatprep.mubr.msk.bf16.mxu1 %vm3721_vm1, %v6509_v12 }
 0x6f9   : > { %v8878_v20 = vpop.f32.mrb[197].mxu0  ;;  %8912 = vmatmul.mubr.msk.bf16.vlgmr.msra.gmra.mrb[192].mxu1 %vm3721_vm1, %v6509_v12 }
 0x6fa   : > { %v8879_v35 = vadd.f32 %v8878_v20, %v8877_v16  ;;  %v8880_v7 = vpop.f32.mrb[198].mxu0 }
 0x6fb   : > { %v8881_v48 = vpop.f32.mrb[199].mxu0 }
 0x6fc   : > { %v8882_v28 = vadd.f32 %v8881_v48, %v8880_v7 }
 0x6fe   : > { %v6510_v8 = vpack.c.bf16 %v8882_v28, %v8879_v35 }
 0x700   : > { %8913 = vmatprep.mubr.msk.bf16.mxu1 %vm3721_vm1, %v6510_v8  ;;  %v8883_v63 = vpop.f32.mrb[200].mxu0 }
 0x701   : > { %8914 = vmatmul.mubr.msk.bf16.gmra.mrb[196].mxu1 %vm3721_vm1, %v6510_v8  ;;  %v8884_v42 = vpop.f32.mrb[201].mxu0 }
 0x702   : > { %v8885_v10 = vadd.f32 %v8884_v42, %v8883_v63  ;;  %v8886_v38 = vpop.f32.mrb[202].mxu0 }
 0x703   : > { %v8887_v11 = vpop.f32.mrb[203].mxu0 }
 0x704   : > { %v8888_v26 = vadd.f32 %v8887_v11, %v8886_v38 }
 0x706   : > { %v6511_v1 = vpack.c.bf16 %v8888_v26, %v8885_v10 }
 0x708   : > { %v8889_v33 = vpop.f32.mrb[204].mxu0  ;;  %8915 = vmatprep.mubr.msk.bf16.mxu1 %vm3721_vm1, %v6511_v1 }
 0x709   : > { %v8890_v54 = vpop.f32.mrb[205].mxu0  ;;  %8916 = vmatmul.mubr.msk.bf16.gmra.mrb[200].mxu1 %vm3721_vm1, %v6511_v1 }
 0x70a   : > { %v8891_v36 = vadd.f32 %v8890_v54, %v8889_v33  ;;  %v8892_v3 = vpop.f32.mrb[206].mxu0 }
 0x70b   : > { %v8893_v12 = vpop.f32.mrb[207].mxu0 }
 0x70c   : > { %v8894_v16 = vadd.f32 %v8893_v12, %v8892_v3 }
 0x70e   : > { %v6512_v20 = vpack.c.bf16 %v8894_v16, %v8891_v36 }
 0x710   : > { %8917 = vmatprep.mubr.msk.bf16.mxu1 %vm3721_vm1, %v6512_v20 }
 0x711   : > { %8918 = vmatmul.mubr.msk.bf16.gmra.mrb[204].mxu1 %vm3721_vm1, %v6512_v20 }
 0x7cc   : > { %v6655_v35 = vpop.f32.mrb[192].mxu1 }
 0x7cd   : > { %v6657_v7 = vpop.f32.mrb[193].mxu1 }
 0x7ce   : > { %v6659_v48 = vpop.f32.mrb[194].mxu1  ;;  %v6694_v28 = vmax.f32 %v6655_v35, %v6657_v7 }
 0x7cf   : > { %v6661_v8 = vpop.f32.mrb[195].mxu1 }
 0x7d0   : > { %6695 = vmax.xlane.f32.xlu0 %v6694_v28  ;;  %v6697_v63 = vmax.f32 %v6659_v48, %v6661_v8 }
 0x7d2   : > { %6698 = vmax.xlane.f32.xlu1 %v6697_v63 }
 0x7d4   : > { %v6665_v42 = vpop.f32.mrb[196].mxu1 }
 0x7d5   : > { %v6667_v10 = vpop.f32.mrb[197].mxu1 }
 0x7d6   : > { %v6700_v38 = vmax.f32 %v6665_v42, %v6667_v10  ;;  %v6669_v11 = vpop.f32.mrb[198].mxu1 }
 0x7d7   : > { %v6671_v26 = vpop.f32.mrb[199].mxu1 }
 0x7d8   : > { %6701 = vmax.xlane.f32.xlu0 %v6700_v38  ;;  %v6703_v1 = vmax.f32 %v6669_v11, %v6671_v26 }
 0x7dc   : > { %6704 = vmax.xlane.f32.xlu0 %v6703_v1  ;;  %v13039_v33 = vpop.f32.mrb[200].mxu1 }
 0x7dd   : > { %v13041_v54 = vpop.f32.mrb[201].mxu1 }
 0x7de   : > { %v13043_v36 = vpop.f32.mrb[202].mxu1  ;;  %v6706_v3 = vmax.f32 %v13039_v33, %v13041_v54 }
 0x7df   : > { %v13047_v12 = vpop.f32.mrb[203].mxu1 }
 0x7e0   : > { %v6709_v16 = vmax.f32 %v13043_v36, %v13047_v12 }
 0x7e3   : > { %6832 = vrot.lane.b32.xlu1 %v12901_v13, %s10005_s25 }
 0x7e4   : > { %v13053_v20 = vpop.f32.mrb[204].mxu1 }
 0x7e5   : > { %v13055_v28 = vpop.f32.mrb[205].mxu1 }
 0x7e6   : > { %v6712_v63 = vmax.f32 %v13053_v20, %v13055_v28  ;;  %v13059_v38 = vpop.f32.mrb[206].mxu1 }
 0x7e7   : > { %v13061_v1 = vpop.f32.mrb[207].mxu1 }
 0x7e8   : > { %v6715_v58 = vmax.f32 %v13059_v38, %v13061_v1 }
 0x7f2   : > { %6848 = vrot.lane.b32.xlu0 %v12946_v6, %s10005_s25 }
 0x807   : > { %6707 = vmax.xlane.f32.xlu1 %v6706_v3 }
 0x80b   : > { %6713 = vmax.xlane.f32.xlu1 %v6712_v63 }
 0x811   : > { %6710 = vmax.xlane.f32.xlu0 %v6709_v16 }
 0x815   : > { %6716 = vmax.xlane.f32.xlu0 %v6715_v58 }
 0x81c   : > { %6834 = vrot.lane.b32.xlu1 %v12911_v37, %s10005_s25 }
 0x82b   : > { %6850 = vrot.lane.b32.xlu0 %v12964_v41, %s10005_s25 }
 0x85d   : > { %v6696_v13 = vpop.xlane.xlu0 %6695 }
 0x85e   : > { %v6718_v30 = vsub.f32 %v6655_v35, %v6696_v13  ;;  %v6719_v23 = vsub.f32 %v6657_v7, %v6696_v13 }
 0x85f   : > { %v6699_v50 = vpop.xlane.xlu1 %6698 }
 0x860   : > { %v6734_v17 = vmul.f32 1.442695, %v6718_v30  ;;  %v6736_v21 = vmul.f32 1.442695, %v6719_v23  ;;  %v6720_v59 = vsub.f32 %v6659_v48, %v6699_v50  ;;  %v6721_v19 = vsub.f32 %v6661_v8, %v6699_v50 }
 0x862   : > { %9858 = vpow2.f32 %v6734_v17  ;;  %v6738_v6 = vmul.f32 1.442695, %v6720_v59  ;;  %v6740_v3 = vmul.f32 1.442695, %v6721_v19 }
 0x863   : > { %9860 = vpow2.f32 %v6736_v21  ;;  %v6833_v59 = vpop.permute.xlu1 %6832 }
 0x864   : > { %9862 = vpow2.f32 %v6738_v6 }
 0x865   : > { %9864 = vpow2.f32 %v6740_v3  ;;  %v6702_v58 = vpop.xlane.xlu0 %6701 }
 0x866   : > { %v6722_v16 = vsub.f32 %v6665_v42, %v6702_v58  ;;  %v6723_v37 = vsub.f32 %v6667_v10, %v6702_v58 }
 0x868   : > { %v6742_v63 = vmul.f32 1.442695, %v6722_v16  ;;  %v6744_v25 = vmul.f32 1.442695, %v6723_v37 }
 0x869   : > { %v6705_v41 = vpop.xlane.xlu0 %6704 }
 0x86a   : > { %9866 = vpow2.f32 %v6742_v63  ;;  %v6724_v35 = vsub.f32 %v6669_v11, %v6705_v41  ;;  %v6725_v7 = vsub.f32 %v6671_v26, %v6705_v41 }
 0x86b   : > { %9868 = vpow2.f32 %v6744_v25 }
 0x86c   : > { %v13071_v30 = vpop.eup %9858  ;;  %v6746_v23 = vmul.f32 1.442695, %v6724_v35  ;;  %v6748_v50 = vmul.f32 1.442695, %v6725_v7 }
 0x86d   : > { %v13073_v17 = vpop.eup %9860  ;;  %v6849_v19 = vpop.permute.xlu0 %6848 }
 0x86e   : > { %v13075_v21 = vpop.eup %9862  ;;  %9870 = vpow2.f32 %v6746_v23  ;;  %8929 = vmatprep.subr.bf16.mxu0 %v6849_v19  ;;  %v6766_v48 = vadd.f32 %v13073_v17, %v13071_v30 }
 0x86f   : > { %v13079_v8 = vpop.eup %9864  ;;  %9872 = vpow2.f32 %v6748_v50  ;;  %8930 = vmatpush3.bf16.msra.mxu0 %v6833_v59 }
 0x870   : > { %6767 = vadd.xlane.f32.xlu1 %v6766_v48  ;;  %v6769_v25 = vadd.f32 %v13079_v8, %v13075_v21 }
 0x872   : > { %6770 = vadd.xlane.f32.xlu0 %v6769_v25 }
 0x874   : > { %v13083_v42 = vpop.eup %9866 }
 0x875   : > { %v13085_v10 = vpop.eup %9868 }
 0x876   : > { %v6772_v11 = vadd.f32 %v13085_v10, %v13083_v42 }
 0x878   : > { %v13089_v26 = vpop.eup %9870  ;;  %6773 = vadd.xlane.f32.xlu0 %v6772_v11 }
 0x879   : > { %v13091_v13 = vpop.eup %9872 }
 0x87a   : > { %v6775_v6 = vadd.f32 %v13091_v13, %v13089_v26 }
 0x87c   : > { %6776 = vadd.xlane.f32.xlu1 %v6775_v6 }
 0x894   : > { %v6708_v3 = vpop.xlane.xlu1 %6707 }
 0x895   : > { %v6726_v58 = vsub.f32 %v13039_v33, %v6708_v3  ;;  %v6727_v16 = vsub.f32 %v13041_v54, %v6708_v3 }
 0x897   : > { %v6750_v37 = vmul.f32 1.442695, %v6726_v58  ;;  %v6752_v63 = vmul.f32 1.442695, %v6727_v16 }
 0x898   : > { %v6714_v41 = vpop.xlane.xlu1 %6713 }
 0x899   : > { %9874 = vpow2.f32 %v6750_v37  ;;  %v6730_v35 = vsub.f32 %v13053_v20, %v6714_v41  ;;  %v6731_v7 = vsub.f32 %v13055_v28, %v6714_v41 }
 0x89a   : > { %9876 = vpow2.f32 %v6752_v63 }
 0x89b   : > { %v6758_v23 = vmul.f32 1.442695, %v6730_v35  ;;  %v6760_v50 = vmul.f32 1.442695, %v6731_v7 }
 0x89c   : > { %v6835_v37 = vpop.permute.xlu1 %6834 }
 0x89d   : > { %9878 = vpow2.f32 %v6758_v23 }
 0x89e   : > { %9880 = vpow2.f32 %v6760_v50  ;;  %v6711_v19 = vpop.xlane.xlu0 %6710 }
 0x89f   : > { %v6728_v59 = vsub.f32 %v13043_v36, %v6711_v19  ;;  %v6729_v33 = vsub.f32 %v13047_v12, %v6711_v19  ;;  %v13134_v19 = vld [vmem:[%s13632_s9] ss:$0 sm:$0xff] }
 0x8a1   : > { %v6754_v48 = vmul.f32 1.442695, %v6728_v59  ;;  %v6756_v54 = vmul.f32 1.442695, %v6729_v33  ;;  %v6068_v59 = vadd.f32 %v13134_v19, %v12030_v18  ;;  %v6069_v33 = vadd.f32 %v13134_v19, %v12041_v0 }
 0x8a2   : > { %v6717_v25 = vpop.xlane.xlu0 %6716  ;;  %v6073_v18 = vadd.f32 %v13134_v19, %v12081_v49  ;;  %v6085_v0 = vadd.f32 %v13134_v19, %v12188_v27  ;;  %v6076_v49 = vadd.f32 %v13134_v19, %v12108_v51  ;;  %v6088_v27 = vadd.f32 %v13134_v19, %v12207_v22 }
 0x8a3   : > { %v13101_v11 = vpop.eup %9874  ;;  %9882 = vpow2.f32 %v6754_v48  ;;  %v6732_v20 = vsub.f32 %v13059_v38, %v6717_v25  ;;  %v6733_v28 = vsub.f32 %v13061_v1, %v6717_v25  ;;  %v6070_v48 = vadd.f32 %v13134_v19, %v12050_v62  ;;  %v13971_v25 = vld [vmem:[#allocation67_spill] sm:$0xff] }
 0x8a4   : > { %v13105_v6 = vpop.eup %9876  ;;  %9884 = vpow2.f32 %v6756_v54  ;;  %v6084_v54 = vadd.f32 %v13134_v19, %v12175_v14  ;;  %v6074_v62 = vadd.f32 %v13134_v19, %v12090_v4  ;;  %v6087_v14 = vadd.f32 %v13134_v19, %v12200_v31 }
 0x8a5   : > { %v6762_v3 = vmul.f32 1.442695, %v6732_v20  ;;  %v6764_v58 = vmul.f32 1.442695, %v6733_v28  ;;  %v6778_v36 = vadd.f32 %v13105_v6, %v13101_v11  ;;  %v6089_v31 = vadd.f32 %v13134_v19, %v12218_v61  ;;  %v13972_v28 = vld [vmem:[#allocation64_spill] sm:$0xff] }
 0x8a6   : > { %v6851_v16 = vpop.permute.xlu0 %6850  ;;  %v6078_v51 = vadd.f32 %v13134_v19, %v12127_v40  ;;  %v6090_v22 = vadd.f32 %v13134_v19, %v13971_v25  ;;  %v13986_v25 = vld [vmem:[#allocation80_spill] sm:$0xff] }
 0x8a7   : > { %v13109_v12 = vpop.eup %9878  ;;  %9886 = vpow2.f32 %v6762_v3  ;;  %6779 = vadd.xlane.f32.xlu0 %v6778_v36  ;;  %8931 = vmatprep.subr.bf16.mxu0 %v6851_v16  ;;  %v6079_v3 = vadd.f32 %v13134_v19, %v13972_v28 }
 0x8a8   : > { %v13111_v63 = vpop.eup %9880  ;;  %9888 = vpow2.f32 %v6764_v58  ;;  %8932 = vmatpush3.bf16.msra.mxu0 %v6835_v37  ;;  %v13973_v58 = vld [vmem:[#allocation70_spill] sm:$0xff] }
 0x8a9   : > { %v6784_v38 = vadd.f32 %v13111_v63, %v13109_v12 }
 0x8ab   : > { %6785 = vadd.xlane.f32.xlu0 %v6784_v38  ;;  %v13974_v38 = vld [vmem:[#allocation63_spill] sm:$0xff] }
 0x8ad   : > { %v13115_v1 = vpop.eup %9882 }
 0x8ae   : > { %v13117_v41 = vpop.eup %9884 }
 0x8af   : > { %v6781_v35 = vadd.f32 %v13117_v41, %v13115_v1 }
 0x8b1   : > { %v13121_v7 = vpop.eup %9886  ;;  %6782 = vadd.xlane.f32.xlu1 %v6781_v35  ;;  %v6080_v35 = vadd.f32 %v13134_v19, %v13974_v38  ;;  %v13991_v38 = vld [vmem:[#allocation94_spill] sm:$0xff] }
 0x8b2   : > { %v13123_v23 = vpop.eup %9888 }
 0x8b3   : > { %v6787_v50 = vadd.f32 %v13123_v23, %v13121_v7 }
 0x8b5   : > { %6788 = vadd.xlane.f32.xlu1 %v6787_v50  ;;  %v13975_v50 = vld [vmem:[#allocation69_spill] sm:$0xff] }
 0x8c1   : > { %6852 = vrot.lane.b32.xlu0 %v12962_v52, %s10005_s25  ;;  %v6072_v52 = vadd.f32 %v13134_v19, %v12070_v5  ;;  %v6075_v5 = vadd.f32 %v13134_v19, %v12101_v45  ;;  %v6077_v45 = vadd.f32 %v13134_v19, %v12119_v57  ;;  %v6091_v57 = vadd.f32 %v13134_v19, %v13973_v58 }
 0x8c6   : > { %6836 = vrot.lane.b32.xlu1 %v12909_v55, %s10005_s25  ;;  %v6071_v55 = vadd.f32 %v13134_v19, %v12061_v29  ;;  %v6086_v29 = vadd.f32 %v13134_v19, %v12191_v53  ;;  %s8414_s25 = sshll.u32 %s10228_s27, 8 }
 0x8c7   : > { %s13475_s0 = scalar_lea.vmem %s13639_s16, %s8414_s25  ;;  %s10008_s25 = smov [#allocation2]  }
 0x8c8   : > { %s9911_s23 = sshll.u32 %s10008_s25, 4  ;;  %s9912_s23 = int_to_ptr.vmem [resolvable:$false] %s9911_s23 }
 0x8c9   : > { %s9913_s3 = scalar_lea.vmem %s9912_s23, 32 }
 0x8df   : > { %7039 = vxpose.xlu0.b32.start [1/16] (narrow) %v6068_v59, 32  ;;  %v6092_v59 = vadd.f32 %v13134_v19, %v13975_v50 }
 0x8e3   : > { %7040 = vxpose.xlu0.b32.cont [2/16] (narrow) %v6069_v33, 32 }
 0x8e7   : > { %7041 = vxpose.xlu0.b32.cont [3/16] (narrow) %v6070_v48, 32 }
 0x8eb   : > { %7042 = vxpose.xlu0.b32.cont [4/16] (narrow) %v6071_v55, 32  ;;  %v13977_v55 = vld [vmem:[#allocation72_spill] sm:$0xff] }
 0x8ef   : > { %7043 = vxpose.xlu0.b32.cont [5/16] (narrow) %v6072_v52, 32  ;;  %7071 = vxpose.xlu1.b32.start [1/16] (narrow) %v6084_v54, 32  ;;  %v13979_v54 = vld [vmem:[#allocation71_spill] sm:$0xff] }
 0x8f3   : > { %7044 = vxpose.xlu0.b32.cont [6/16] (narrow) %v6073_v18, 32  ;;  %7072 = vxpose.xlu1.b32.cont [2/16] (narrow) %v6085_v0, 32  ;;  %v6094_v18 = vadd.f32 %v13134_v19, %v13979_v54  ;;  %v13980_v0 = vld [vmem:[#allocation68_spill] sm:$0xff] }
 0x8f7   : > { %7045 = vxpose.xlu0.b32.cont [7/16] (narrow) %v6074_v62, 32  ;;  %7073 = vxpose.xlu1.b32.cont [3/16] (narrow) %v6086_v29, 32  ;;  %v6083_v62 = vadd.f32 %v13134_v19, %v13980_v0  ;;  %v13981_v29 = vld [vmem:[#allocation73_spill] sm:$0xff] }
 0x8fb   : > { %7046 = vxpose.xlu0.b32.cont [8/16] (narrow) %v6075_v5, 32  ;;  %7074 = vxpose.xlu1.b32.cont [4/16] (narrow) %v6087_v14, 32  ;;  %v6095_v5 = vadd.f32 %v13134_v19, %v13981_v29  ;;  %v13982_v14 = vld [vmem:[#allocation74_spill] sm:$0xff] }
 0x8fd   : > { %v6768_v4 = vpop.xlane.xlu1 %6767 }
 0x8fe   : > { %9890 = vrcp.f32 %v6768_v4 }
 0x8ff   : > { %7047 = vxpose.xlu0.b32.cont [9/16] (narrow) %v6076_v49, 32  ;;  %7075 = vxpose.xlu1.b32.cont [5/16] (narrow) %v6088_v27, 32  ;;  %v6771_v53 = vpop.xlane.xlu0 %6770  ;;  %v6096_v49 = vadd.f32 %v13134_v19, %v13982_v14  ;;  %v13983_v27 = vld [vmem:[#allocation78_spill] sm:$0xff] }
 0x900   : > { %9892 = vrcp.f32 %v6771_v53  ;;  %v6100_v4 = vadd.f32 %v13134_v19, %v13983_v27  ;;  %v13984_v53 = vld [vmem:[#allocation75_spill] sm:$0xff]  ;;  %v13998_v27 = vld [vmem:[#allocation86_spill] sm:$0xff] }
 0x903   : > { %7048 = vxpose.xlu0.b32.cont [10/16] (narrow) %v6077_v45, 32  ;;  %7076 = vxpose.xlu1.b32.cont [6/16] (narrow) %v6089_v31, 32  ;;  %v6097_v45 = vadd.f32 %v13134_v19, %v13984_v53  ;;  %v13985_v31 = vld [vmem:[#allocation79_spill] sm:$0xff]  ;;  %v13999_v53 = vld [vmem:[#allocation98_spill] sm:$0xff] }
 0x905   : > { %v6774_v50 = vpop.xlane.xlu0 %6773 }
 0x907   : > { %7049 = vxpose.xlu0.b32.cont [11/16] (narrow) %v6078_v51, 32  ;;  %7077 = vxpose.xlu1.b32.cont [7/16] (narrow) %v6090_v22, 32  ;;  %v6101_v51 = vadd.f32 %v13134_v19, %v13985_v31  ;;  %v6102_v22 = vadd.f32 %v13134_v19, %v13986_v25 }
 0x908   : > { %v9891_v20 = vpop.eup %9890 }
 0x909   : > { %v13177_v61 = vmul.f32 %v9891_v20, %v13071_v30  ;;  %v6799_v40 = vmul.f32 %v9891_v20, %v13073_v17  ;;  %v6093_v17 = vadd.f32 %v13134_v19, %v13977_v55  ;;  %v13987_v20 = vld [vmem:[#allocation76_spill] sm:$0xff] }
 0x90a   : > { %v9893_v36 = vpop.eup %9892  ;;  %v6098_v28 = vadd.f32 %v13134_v19, %v13987_v20 }
 0x90b   : > { %v13180_v16 = vmul.f32 %v9893_v36, %v13075_v21  ;;  %7050 = vxpose.xlu0.b32.cont [12/16] (narrow) %v6079_v3, 32  ;;  %7078 = vxpose.xlu1.b32.cont [8/16] (narrow) %v6091_v57, 32  ;;  %v6801_v37 = vmul.f32 %v9893_v36, %v13079_v8  ;;  %v13976_v21 = vld [vmem:[#allocation66_spill] sm:$0xff]  ;;  %v13978_v8 = vld [vmem:[#allocation65_spill] sm:$0xff] }
 0x90c   : > { %v6081_v48 = vadd.f32 %v13134_v19, %v13976_v21  ;;  %v6082_v52 = vadd.f32 %v13134_v19, %v13978_v8  ;;  %v13988_v3 = vld [vmem:[#allocation81_spill] sm:$0xff]  ;;  %v13993_v21 = vld [vmem:[#allocation95_spill] sm:$0xff] }
 0x90d   : > { %v6814_v33 = vpack.c.bf16 %v13180_v16, %v13177_v61  ;;  %v6815_v30 = vpack.c.bf16 %v6801_v37, %v6799_v40  ;;  %v6103_v58 = vadd.f32 %v13134_v19, %v13988_v3  ;;  %v13989_v57 = vld [vmem:[#allocation77_spill] sm:$0xff]  ;;  %v13990_v40 = vld [vmem:[#allocation82_spill] sm:$0xff]  ;;  %v14008_v16 = vld [vmem:[#allocation91_spill] sm:$0xff] }
 0x90e   : > { %v6099_v36 = vadd.f32 %v13134_v19, %v13989_v57  ;;  %v6104_v37 = vadd.f32 %v13134_v19, %v13990_v40  ;;  %v14002_v57 = vld [vmem:[#allocation88_spill] sm:$0xff] }
 0x90f   : > { %7051 = vxpose.xlu0.b32.cont [13/16] (narrow) %v6080_v35, 32  ;;  %7079 = vxpose.xlu1.b32.cont [9/16] (narrow) %v6092_v59, 32  ;;  %v6116_v35 = vadd.f32 %v13134_v19, %v13991_v38  ;;  %v13992_v59 = vld [vmem:[#allocation83_spill] sm:$0xff]  ;;  %v14003_v40 = vld [vmem:[#allocation100_spill] sm:$0xff] }
 0x910   : > { %6902 = vmatprep.mubr.bf16.mxu0 %v6815_v30  ;;  %v6105_v30 = vadd.f32 %v13134_v19, %v13992_v59  ;;  %v14004_v59 = vld [vmem:[#allocation89_spill] sm:$0xff] }
 0x913   : > { %7052 = vxpose.xlu0.b32.cont [14/16] (narrow) %v6081_v48, 32  ;;  %7080 = vxpose.xlu1.b32.cont [10/16] (narrow) %v6093_v17, 32  ;;  %v6117_v48 = vadd.f32 %v13134_v19, %v13993_v21  ;;  %v13994_v17 = vld [vmem:[#allocation84_spill] sm:$0xff]  ;;  %v14005_v21 = vld [vmem:[#allocation101_spill] sm:$0xff] }
 0x914   : > { %v6106_v8 = vadd.f32 %v13134_v19, %v13994_v17 }
 0x917   : > { %7053 = vxpose.xlu0.b32.cont [15/16] (narrow) %v6082_v52, 32  ;;  %7081 = vxpose.xlu1.b32.cont [11/16] (narrow) %v6094_v18, 32  ;;  %v13995_v52 = vld [vmem:[#allocation96_spill] sm:$0xff]  ;;  %v6777_v18 = vpop.xlane.xlu1 %6776 }
 0x918   : > { %v6118_v54 = vadd.f32 %v13134_v19, %v13995_v52  ;;  %9894 = vrcp.f32 %v6777_v18 }
 0x919   : > { %9896 = vrcp.f32 %v6774_v50 }
 0x91b   : > { %7054 = vxpose.xlu0.b32.end [16/16] (narrow) %v6083_v62, 32  ;;  %7082 = vxpose.xlu1.b32.cont [12/16] (narrow) %v6095_v5, 32  ;;  %v13996_v62 = vld [vmem:[#allocation85_spill] sm:$0xff] }
 0x91c   : > { %v6107_v29 = vadd.f32 %v13134_v19, %v13996_v62  ;;  %v13997_v5 = vld [vmem:[#allocation97_spill] sm:$0xff] }
 0x91d   : > { %v6119_v14 = vadd.f32 %v13134_v19, %v13997_v5  ;;  %v14009_v5 = vld [vmem:[#allocation103_spill] sm:$0xff] }
 0x91f   : > { %7103 = vxpose.xlu0.b32.start [1/16] (narrow) %v6100_v4, 32  ;;  %7083 = vxpose.xlu1.b32.cont [13/16] (narrow) %v6096_v49, 32  ;;  %v6108_v4 = vadd.f32 %v13134_v19, %v13998_v27  ;;  %v14010_v27 = vld [vmem:[#allocation92_spill] sm:$0xff] }
 0x922   : > { %v9895_v3 = vpop.eup %9894 }
 0x923   : > { %7104 = vxpose.xlu0.b32.cont [2/16] (narrow) %v6101_v51, 32  ;;  %7084 = vxpose.xlu1.b32.cont [14/16] (narrow) %v6097_v45, 32  ;;  %v6120_v45 = vadd.f32 %v13134_v19, %v13999_v53  ;;  %v14000_v51 = vld [vmem:[#allocation87_spill] sm:$0xff]  ;;  %v6804_v52 = vmul.f32 %v9895_v3, %v13089_v26 }
 0x924   : > { %v6109_v25 = vadd.f32 %v13134_v19, %v14000_v51 }
 0x927   : > { %7105 = vxpose.xlu0.b32.cont [3/16] (narrow) %v6102_v22, 32  ;;  %7085 = vxpose.xlu1.b32.cont [15/16] (narrow) %v6098_v28, 32  ;;  %v14001_v22 = vld [vmem:[#allocation99_spill] sm:$0xff] }
 0x928   : > { %v6121_v20 = vadd.f32 %v13134_v19, %v14001_v22 }
 0x92b   : > { %7106 = vxpose.xlu0.b32.cont [4/16] (narrow) %v6103_v58, 32  ;;  %7086 = vxpose.xlu1.b32.end [16/16] (narrow) %v6099_v36, 32  ;;  %v9897_v58 = vpop.eup %9896  ;;  %v6110_v36 = vadd.f32 %v13134_v19, %v14002_v57  ;;  %v14015_v57 = vld [vmem:[#allocation106_spill] sm:$0xff] }
 0x92c   : > { %v6803_v50 = vmul.f32 %v9897_v58, %v13085_v10 }
 0x92f   : > { %7107 = vxpose.xlu0.b32.cont [5/16] (narrow) %v6104_v37, 32  ;;  %7135 = vxpose.xlu1.b32.start [1/16] (narrow) %v6116_v35, 32  ;;  %v6122_v37 = vadd.f32 %v13134_v19, %v14003_v40  ;;  %v6805_v35 = vmul.f32 %v9895_v3, %v13091_v13  ;;  %v14016_v40 = vld [vmem:[#allocation111_spill] sm:$0xff] }
 0x933   : > { %7108 = vxpose.xlu0.b32.cont [6/16] (narrow) %v6105_v30, 32  ;;  %7136 = vxpose.xlu1.b32.cont [2/16] (narrow) %v6117_v48, 32  ;;  %v6111_v30 = vadd.f32 %v13134_v19, %v14004_v59  ;;  %v6123_v48 = vadd.f32 %v13134_v19, %v14005_v21 }
 0x934   : > { %v6780_v55 = vpop.xlane.xlu0 %6779 }
 0x937   : > { %7109 = vxpose.xlu0.b32.cont [7/16] (narrow) %v6106_v8, 32  ;;  %7137 = vxpose.xlu1.b32.cont [3/16] (narrow) %v6118_v54, 32  ;;  %v14006_v8 = vld [vmem:[#allocation90_spill] sm:$0xff] }
 0x938   : > { %v6786_v0 = vpop.xlane.xlu0 %6785  ;;  %v6112_v10 = vadd.f32 %v13134_v19, %v14006_v8  ;;  %v14007_v54 = vld [vmem:[#allocation102_spill] sm:$0xff] }
 0x939   : > { %v6124_v18 = vadd.f32 %v13134_v19, %v14007_v54  ;;  %v14024_v54 = vld [vmem:[#allocation115_spill] sm:$0xff] }
 0x93b   : > { %7110 = vxpose.xlu0.b32.cont [8/16] (narrow) %v6107_v29, 32  ;;  %7138 = vxpose.xlu1.b32.cont [4/16] (narrow) %v6119_v14, 32  ;;  %v6125_v14 = vadd.f32 %v13134_v19, %v14009_v5  ;;  %v14028_v5 = vld [vmem:[#allocation117_spill] sm:$0xff] }
 0x93c   : > { %v6853_v49 = vpop.permute.xlu0 %6852 }
 0x93d   : > { %8933 = vmatprep.subr.bf16.mxu0 %v6853_v49 }
 0x93e   : > { %v6783_v31 = vpop.xlane.xlu1 %6782 }
 0x93f   : > { %7111 = vxpose.xlu0.b32.cont [9/16] (narrow) %v6108_v4, 32  ;;  %7139 = vxpose.xlu1.b32.cont [5/16] (narrow) %v6120_v45, 32  ;;  %9898 = vrcp.f32 %v6783_v31 }
 0x940   : > { %9900 = vrcp.f32 %v6780_v55  ;;  %v6817_v55 = vpack.c.bf16 %v6805_v35, %v6803_v50  ;;  %v14017_v35 = vld [vmem:[#allocation107_spill] sm:$0xff] }
 0x941   : > { %v6129_v50 = vadd.f32 %v13134_v19, %v14017_v35  ;;  %v14042_v35 = vld [vmem:[#allocation25_spill] sm:$0xff] }
 0x942   : > { %v6789_v28 = vpop.xlane.xlu1 %6788 }
 0x943   : > { %7112 = vxpose.xlu0.b32.cont [10/16] (narrow) %v6109_v25, 32  ;;  %7140 = vxpose.xlu1.b32.cont [6/16] (narrow) %v6121_v20, 32  ;;  %9902 = vrcp.f32 %v6789_v28  ;;  %v14012_v25 = vld [vmem:[#allocation93_spill] sm:$0xff] }
 0x944   : > { %9904 = vrcp.f32 %v6786_v0  ;;  %v6802_v0 = vmul.f32 %v9897_v58, %v13083_v42  ;;  %v6114_v42 = vadd.f32 %v13134_v19, %v14010_v27  ;;  %v6115_v22 = vadd.f32 %v13134_v19, %v14012_v25  ;;  %v14013_v28 = vld [vmem:[#allocation105_spill] sm:$0xff] }
 0x945   : > { %v6127_v3 = vadd.f32 %v13134_v19, %v14013_v28  ;;  %v14036_v28 = vld [vmem:[#allocation120_spill] sm:$0xff] }
 0x946   : > { %v6837_v38 = vpop.permute.xlu1 %6836  ;;  %v6816_v29 = vpack.c.bf16 %v6804_v52, %v6802_v0 }
 0x947   : > { %7113 = vxpose.xlu0.b32.cont [11/16] (narrow) %v6110_v36, 32  ;;  %7141 = vxpose.xlu1.b32.cont [7/16] (narrow) %v6122_v37, 32  ;;  %v6133_v37 = vadd.f32 %v13134_v19, %v14016_v40 }
 0x948   : > { %8934 = vmatpush3.bf16.msra.mxu0 %v6837_v38 }
 0x949   : > { %v9899_v17 = vpop.eup %9898 }
 0x94a   : > { %v9901_v13 = vpop.eup %9900  ;;  %v6809_v62 = vmul.f32 %v9899_v17, %v13117_v41  ;;  %v6808_v4 = vmul.f32 %v9899_v17, %v13115_v1 }
 0x94b   : > { %6903 = vmatmul.mubr.bf16.vlgmr.msra.gmra.mrb[208].mxu0 %v6814_v33  ;;  %7114 = vxpose.xlu0.b32.cont [12/16] (narrow) %v6111_v30, 32  ;;  %v6807_v61 = vmul.f32 %v9901_v13, %v13105_v6  ;;  %v6113_v33 = vadd.f32 %v13134_v19, %v14008_v16  ;;  %v14011_v6 = vld [vmem:[#allocation104_spill] sm:$0xff]  ;;  %v6806_v31 = vmul.f32 %v9901_v13, %v13101_v11  ;;  %v14022_v13 = vld [vmem:[#allocation114_spill] sm:$0xff] }
 0x94c   : > { %7142 = vxpose.xlu1.b32.cont [8/16] (narrow) %v6123_v48, 32  ;;  %6910 = vmatprep.mubr.bf16.mxu0 %v6817_v55  ;;  %v6126_v53 = vadd.f32 %v13134_v19, %v14011_v6  ;;  %v14019_v30 = vld [vmem:[#allocation108_spill] sm:$0xff]  ;;  %v14021_v55 = vld [vmem:[#allocation109_spill] sm:$0xff]  ;;  %v6136_v8 = vadd.f32 %v13134_v19, %v14022_v13  ;;  %v14032_v6 = vld [vmem:[#allocation119_spill] sm:$0xff] }
 0x94d   : > { %v6819_v49 = vpack.c.bf16 %v6809_v62, %v6807_v61  ;;  %v9903_v26 = vpop.eup %9902  ;;  %v6818_v20 = vpack.c.bf16 %v6808_v4, %v6806_v31  ;;  %v6130_v21 = vadd.f32 %v13134_v19, %v14019_v30  ;;  %v6131_v17 = vadd.f32 %v13134_v19, %v14021_v55  ;;  %v14025_v62 = vld [vmem:[#allocation34_spill] sm:$0xff]  ;;  %v14026_v61 = vld [vmem:[#allocation116_spill] sm:$0xff] }
 0x94e   : > { %v9905_v41 = vpop.eup %9904  ;;  %v6813_v45 = vmul.f32 %v9903_v26, %v13123_v23  ;;  %v6812_v1 = vmul.f32 %v9903_v26, %v13121_v7  ;;  %v14014_v23 = vld [vmem:[#allocation110_spill] sm:$0xff]  ;;  %v14018_v7 = vld [vmem:[#allocation112_spill] sm:$0xff]  ;;  %v6149_v0 = vadd.f32 %v13134_v19, %v14025_v62  ;;  %v6138_v16 = vadd.f32 %v13134_v19, %v14026_v61 }
 0x94f   : > { %7115 = vxpose.xlu0.b32.cont [13/16] (narrow) %v6112_v10, 32  ;;  %v6811_v51 = vmul.f32 %v9905_v41, %v13111_v63  ;;  %v6132_v11 = vadd.f32 %v13134_v19, %v14014_v23  ;;  %v6128_v63 = vadd.f32 %v13134_v19, %v14015_v57  ;;  %v6810_v36 = vmul.f32 %v9905_v41, %v13109_v12  ;;  %v14020_v12 = vld [vmem:[#allocation113_spill] sm:$0xff]  ;;  %v14023_v10 = vld [vmem:[#allocation31_spill] sm:$0xff]  ;;  %v14030_v41 = vld [vmem:[#allocation118_spill] sm:$0xff] }
 0x950   : > { %7143 = vxpose.xlu1.b32.cont [9/16] (narrow) %v6124_v18, 32  ;;  %v6134_v59 = vadd.f32 %v13134_v19, %v14018_v7  ;;  %v6135_v48 = vadd.f32 %v13134_v19, %v14020_v12  ;;  %v6148_v52 = vadd.f32 %v13134_v19, %v14023_v10  ;;  %v6137_v18 = vadd.f32 %v13134_v19, %v14024_v54  ;;  %v14038_v23 = vld [vmem:[#allocation19_spill] sm:$0xff]  ;;  %v14043_v7 = vld [vmem:[#allocation61_spill] sm:$0xff]  ;;  %v14044_v30 = vld [vmem:[#allocation28_spill] sm:$0xff] }
 0x951   : > { %v6821_v58 = vpack.c.bf16 %v6813_v45, %v6811_v51  ;;  %v6820_v38 = vpack.c.bf16 %v6812_v1, %v6810_v36  ;;  %v6140_v27 = vadd.f32 %v13134_v19, %v14030_v41  ;;  %v14033_v45 = vld [vmem:[#allocation46_spill] sm:$0xff]  ;;  %v14034_v51 = vld [vmem:[#allocation16_spill] sm:$0xff]  ;;  %v14039_v57 = vld [vmem:[#allocation55_spill] sm:$0xff]  ;;  %v6164_v55 = vadd.f32 %v13134_v19, %v12774_v47 }
 0x952   : > { %v6153_v31 = vadd.f32 %v13134_v19, %v14033_v45  ;;  %v6142_v25 = vadd.f32 %v13134_v19, %v14034_v51  ;;  %v14040_v36 = vld [vmem:[#allocation22_spill] sm:$0xff]  ;;  %v14045_v12 = vld [vmem:[#allocation121_spill] sm:$0xff]  ;;  %v14047_v10 = vld [vmem:[#allocation123_spill] sm:$0xff]  ;;  %v6166_v47 = vadd.f32 %v13134_v19, %v12780_v15  ;;  %v6167_v62 = vadd.f32 %v13134_v19, %v12783_v9 }
 0x953   : > { %6911 = vmatmul.mubr.bf16.gmra.mrb[212].mxu0 %v6816_v29  ;;  %7116 = vxpose.xlu0.b32.cont [14/16] (narrow) %v6113_v33, 32  ;;  %v14027_v33 = vld [vmem:[#allocation37_spill] sm:$0xff]  ;;  %v6145_v40 = vadd.f32 %v13134_v19, %v14040_v36  ;;  %v6180_v15 = vadd.f32 %v13134_v19, %v12822_v24  ;;  %v6169_v61 = vadd.f32 %v13134_v19, %v12789_v43  ;;  %v14048_v24 = vld [vmem:[#allocation132_spill] sm:$0xff] }
 0x954   : > { %7144 = vxpose.xlu1.b32.cont [10/16] (narrow) %v6125_v14, 32  ;;  %6918 = vmatprep.mubr.bf16.mxu0 %v6819_v49  ;;  %v6150_v29 = vadd.f32 %v13134_v19, %v14027_v33  ;;  %v6139_v14 = vadd.f32 %v13134_v19, %v14028_v5  ;;  %v14029_v49 = vld [vmem:[#allocation40_spill] sm:$0xff]  ;;  %v9854_v54 = vld [vmem:[%s13635_s12] sm:$0xff]   ;;  %v6181_v9 = vadd.f32 %v13134_v19, %v12825_v46 }
 0x955   : > { %v6151_v26 = vadd.f32 %v13134_v19, %v14029_v49  ;;  %9172 = vmatprep.subr.bf16.mxu1 %v9854_v54  ;;  %v6183_v33 = vadd.f32 %v13134_v19, %v14048_v24  ;;  %v14049_v43 = vld [vmem:[#allocation124_spill] sm:$0xff]  ;;  %v14090_v24 = vld [vmem:[#allocation50_spill] sm:$0xff] }
 0x956   : > { %9173 = vmatpush3.bf16.msra.mxu1 %v9854_v54  ;;  %v6172_v46 = vadd.f32 %v13134_v19, %v14049_v43  ;;  %v14076_v54 = vld [vmem:[#allocation39_spill] sm:$0xff] }
 0x957   : > { %7117 = vxpose.xlu0.b32.cont [15/16] (narrow) %v6114_v42, 32  ;;  %v14031_v42 = vld [vmem:[#allocation43_spill] sm:$0xff] }
 0x958   : > { %7145 = vxpose.xlu1.b32.cont [11/16] (narrow) %v6126_v53, 32  ;;  %v6152_v4 = vadd.f32 %v13134_v19, %v14031_v42  ;;  %v6141_v53 = vadd.f32 %v13134_v19, %v14032_v6  ;;  %v14092_v43 = vld [vmem:[#allocation51_spill] sm:$0xff] }
 0x95b   : > { %6919 = vmatmul.mubr.bf16.gmra.mrb[216].mxu0 %v6818_v20  ;;  %7118 = vxpose.xlu0.b32.end [16/16] (narrow) %v6115_v22, 32  ;;  %v14035_v22 = vld [vmem:[#allocation49_spill] sm:$0xff] }
 0x95c   : > { %7146 = vxpose.xlu1.b32.cont [12/16] (narrow) %v6127_v3, 32  ;;  %6926 = vmatprep.mubr.bf16.mxu0 %v6821_v58  ;;  %v6154_v20 = vadd.f32 %v13134_v19, %v14035_v22  ;;  %v6143_v3 = vadd.f32 %v13134_v19, %v14036_v28  ;;  %v14037_v58 = vld [vmem:[#allocation52_spill] sm:$0xff] }
 0x95d   : > { %v6155_v1 = vadd.f32 %v13134_v19, %v14037_v58 }
 0x95f   : > { %7167 = vxpose.xlu0.b32.start [1/16] (narrow) %v6132_v11, 32  ;;  %v6144_v11 = vadd.f32 %v13134_v19, %v14038_v23 }
 0x960   : > { %7147 = vxpose.xlu1.b32.cont [13/16] (narrow) %v6128_v63, 32  ;;  %v6156_v63 = vadd.f32 %v13134_v19, %v14039_v57 }
 0x963   : > { %6927 = vmatmul.mubr.bf16.gmra.mrb[220].mxu0 %v6820_v38  ;;  %7168 = vxpose.xlu0.b32.cont [2/16] (narrow) %v6133_v37, 32  ;;  %v14041_v37 = vld [vmem:[#allocation58_spill] sm:$0xff] }
 0x964   : > { %7148 = vxpose.xlu1.b32.cont [14/16] (narrow) %v6129_v50, 32  ;;  %v6157_v38 = vadd.f32 %v13134_v19, %v14041_v37  ;;  %v6146_v50 = vadd.f32 %v13134_v19, %v14042_v35 }
 0x967   : > { %7169 = vxpose.xlu0.b32.cont [3/16] (narrow) %v6134_v59, 32  ;;  %v6158_v59 = vadd.f32 %v13134_v19, %v14043_v7  ;;  %v14067_v7 = vld [vmem:[#allocation142_spill] sm:$0xff] }
 0x968   : > { %7149 = vxpose.xlu1.b32.cont [15/16] (narrow) %v6130_v21, 32  ;;  %v6147_v21 = vadd.f32 %v13134_v19, %v14044_v30  ;;  %v14068_v30 = vld [vmem:[#allocation15_spill] sm:$0xff] }
 0x96b   : > { %7170 = vxpose.xlu0.b32.cont [4/16] (narrow) %v6135_v48, 32  ;;  %v6159_v48 = vadd.f32 %v13134_v19, %v14045_v12 }
 0x96c   : > { %7150 = vxpose.xlu1.b32.end [16/16] (narrow) %v6131_v17, 32  ;;  %v14046_v17 = vld [vmem:[#allocation122_spill] sm:$0xff] }
 0x96d   : > { %v6160_v13 = vadd.f32 %v13134_v19, %v14046_v17 }
 0x96f   : > { %7171 = vxpose.xlu0.b32.cont [5/16] (narrow) %v6136_v8, 32  ;;  %v6165_v8 = vadd.f32 %v13134_v19, %v12777_v34  ;;  %v9855_v34 = vld [vmem:[%s13635_s12 + $0x8] sm:$0xff]  }
 0x970   : > { %7199 = vxpose.xlu1.b32.start [1/16] (narrow) %v6148_v52, 32  ;;  %v6161_v52 = vadd.f32 %v13134_v19, %v14047_v10  ;;  %9174 = vmatprep.subr.bf16.mxu1 %v9855_v34  ;;  %v14074_v10 = vld [vmem:[#allocation38_spill] sm:$0xff] }
 0x971   : > { %9175 = vmatpush3.bf16.msra.mxu1 %v9855_v34  ;;  %v14079_v34 = vld [vmem:[#allocation24_spill] sm:$0xff] }
 0x973   : > { %7172 = vxpose.xlu0.b32.cont [6/16] (narrow) %v6137_v18, 32  ;;  %v6162_v18 = vadd.f32 %v13134_v19, %v12768_v56  ;;  %v6168_v56 = vadd.f32 %v13134_v19, %v12786_v60  ;;  %v6171_v60 = vadd.f32 %v13134_v19, %v12795_v44  ;;  %v14052_v44 = vld [vmem:[#allocation134_spill] sm:$0xff] }
 0x974   : > { %7200 = vxpose.xlu1.b32.cont [2/16] (narrow) %v6149_v0, 32  ;;  %v6163_v0 = vadd.f32 %v13134_v19, %v12771_v32  ;;  %v6170_v32 = vadd.f32 %v13134_v19, %v12792_v39  ;;  %v10006_v39 = vmov 0.0   ;;  %v6185_v49 = vadd.f32 %v13134_v19, %v14052_v44 }
 0x975   : > { %9184 = vmatprep.subr.bf16.mxu1 %v10006_v39 }
 0x977   : > { %7173 = vxpose.xlu0.b32.cont [7/16] (narrow) %v6138_v16, 32  ;;  %v6182_v16 = vadd.f32 %v13134_v19, %v12831_v2  ;;  %v14051_v2 = vld [vmem:[#allocation125_spill] sm:$0xff] }
 0x978   : > { %7201 = vxpose.xlu1.b32.cont [3/16] (narrow) %v6150_v29, 32  ;;  %v14050_v29 = vld [vmem:[#allocation133_spill] sm:$0xff] }
 0x979   : > { %v6184_v5 = vadd.f32 %v13134_v19, %v14050_v29  ;;  %v14094_v29 = vld [vmem:[#allocation53_spill] sm:$0xff] }
 0x97b   : > { %7174 = vxpose.xlu0.b32.cont [8/16] (narrow) %v6139_v14, 32  ;;  %v6173_v14 = vadd.f32 %v13134_v19, %v14051_v2  ;;  %v14096_v2 = vld [vmem:[#allocation54_spill] sm:$0xff] }
 0x97c   : > { %7202 = vxpose.xlu1.b32.cont [4/16] (narrow) %v6151_v26, 32  ;;  %v14053_v26 = vld [vmem:[#allocation126_spill] sm:$0xff] }
 0x97d   : > { %v6174_v41 = vadd.f32 %v13134_v19, %v14053_v26  ;;  %v14097_v26 = vld [vmem:[#allocation56_spill] sm:$0xff] }
 0x97f   : > { %7175 = vxpose.xlu0.b32.cont [9/16] (narrow) %v6140_v27, 32  ;;  %v14054_v27 = vld [vmem:[#allocation135_spill] sm:$0xff] }
 0x980   : > { %7203 = vxpose.xlu1.b32.cont [5/16] (narrow) %v6152_v4, 32  ;;  %v6186_v42 = vadd.f32 %v13134_v19, %v14054_v27  ;;  %v14055_v4 = vld [vmem:[#allocation127_spill] sm:$0xff] }
 0x981   : > { %v6175_v6 = vadd.f32 %v13134_v19, %v14055_v4 }
 0x983   : > { %7176 = vxpose.xlu0.b32.cont [10/16] (narrow) %v6141_v53, 32  ;;  %v14056_v53 = vld [vmem:[#allocation136_spill] sm:$0xff] }
 0x984   : > { %7204 = vxpose.xlu1.b32.cont [6/16] (narrow) %v6153_v31, 32  ;;  %v6187_v45 = vadd.f32 %v13134_v19, %v14056_v53  ;;  %v14057_v31 = vld [vmem:[#allocation128_spill] sm:$0xff] }
 0x985   : > { %v6176_v51 = vadd.f32 %v13134_v19, %v14057_v31 }
 0x987   : > { %7177 = vxpose.xlu0.b32.cont [11/16] (narrow) %v6142_v25, 32  ;;  %v14058_v25 = vld [vmem:[#allocation137_spill] sm:$0xff] }
 0x988   : > { %7205 = vxpose.xlu1.b32.cont [7/16] (narrow) %v6154_v20, 32  ;;  %v6188_v22 = vadd.f32 %v13134_v19, %v14058_v25  ;;  %v14059_v20 = vld [vmem:[#allocation129_spill] sm:$0xff] }
 0x989   : > { %v6177_v28 = vadd.f32 %v13134_v19, %v14059_v20 }
 0x98b   : > { %7178 = vxpose.xlu0.b32.cont [12/16] (narrow) %v6143_v3, 32  ;;  %v14060_v3 = vld [vmem:[#allocation138_spill] sm:$0xff] }
 0x98c   : > { %7206 = vxpose.xlu1.b32.cont [8/16] (narrow) %v6155_v1, 32  ;;  %v6189_v58 = vadd.f32 %v13134_v19, %v14060_v3  ;;  %v14061_v1 = vld [vmem:[#allocation130_spill] sm:$0xff] }
 0x98d   : > { %v6178_v23 = vadd.f32 %v13134_v19, %v14061_v1 }
 0x98f   : > { %7179 = vxpose.xlu0.b32.cont [13/16] (narrow) %v6144_v11, 32  ;;  %v14062_v11 = vld [vmem:[#allocation139_spill] sm:$0xff] }
 0x990   : > { %7207 = vxpose.xlu1.b32.cont [9/16] (narrow) %v6156_v63, 32  ;;  %v6190_v57 = vadd.f32 %v13134_v19, %v14062_v11  ;;  %v14063_v63 = vld [vmem:[#allocation131_spill] sm:$0xff] }
 0x991   : > { %v6179_v36 = vadd.f32 %v13134_v19, %v14063_v63  ;;  %v9857_v11 = vld [vmem:[%s13637_s14 + $0x8] sm:$0xff]  }
 0x993   : > { %7180 = vxpose.xlu0.b32.cont [14/16] (narrow) %v6145_v40, 32  ;;  %v14064_v40 = vld [vmem:[#allocation140_spill] sm:$0xff] }
 0x994   : > { %7208 = vxpose.xlu1.b32.cont [10/16] (narrow) %v6157_v38, 32  ;;  %v6191_v37 = vadd.f32 %v13134_v19, %v14064_v40  ;;  %v14065_v38 = vld [vmem:[#allocation141_spill] sm:$0xff] }
 0x995   : > { %v6192_v35 = vadd.f32 %v13134_v19, %v14065_v38 }
 0x997   : > { %7181 = vxpose.xlu0.b32.cont [15/16] (narrow) %v6146_v50, 32  ;;  %v14066_v50 = vld [vmem:[#allocation14_spill] sm:$0xff] }
 0x998   : > { %7209 = vxpose.xlu1.b32.cont [11/16] (narrow) %v6158_v59, 32  ;;  %v6193_v59 = vadd.f32 %v13134_v19, %v14067_v7 }
 0x99b   : > { %7182 = vxpose.xlu0.b32.end [16/16] (narrow) %v6147_v21, 32  ;;  %v14069_v21 = vld [vmem:[#allocation143_spill] sm:$0xff] }
 0x99c   : > { %7210 = vxpose.xlu1.b32.cont [12/16] (narrow) %v6159_v48, 32  ;;  %v6194_v12 = vadd.f32 %v13134_v19, %v14069_v21  ;;  %v14070_v48 = vld [vmem:[#allocation17_spill] sm:$0xff] }
 0x99f   : > { %7231 = vxpose.xlu0.b32.start [1/16] (narrow) %v6164_v55, 32  ;;  %v14071_v55 = vld [vmem:[#allocation144_spill] sm:$0xff] }
 0x9a0   : > { %7211 = vxpose.xlu1.b32.cont [13/16] (narrow) %v6160_v13, 32  ;;  %v6195_v17 = vadd.f32 %v13134_v19, %v14071_v55  ;;  %v14072_v13 = vld [vmem:[#allocation18_spill] sm:$0xff]  ;;  %v7055_v55 = vpop.trf.xlu0 }
 0x9a1   : > { %v14081_v19 = vld [vmem:[#allocation26_spill] sm:$0xff]  ;;  %7295 = vst [vmem:[%s13475_s0] sm:$0xff] %v7055_v55 }
 0x9a3   : > { %7232 = vxpose.xlu0.b32.cont [2/16] (narrow) %v6165_v8, 32  ;;  %v14073_v8 = vld [vmem:[#allocation20_spill] sm:$0xff] }
 0x9a4   : > { %7212 = vxpose.xlu1.b32.cont [14/16] (narrow) %v6161_v52, 32  ;;  %v14075_v52 = vld [vmem:[#allocation21_spill] sm:$0xff] }
 0x9a7   : > { %7233 = vxpose.xlu0.b32.cont [3/16] (narrow) %v6166_v47, 32  ;;  %v14077_v47 = vld [vmem:[#allocation23_spill] sm:$0xff] }
 0x9a8   : > { %7213 = vxpose.xlu1.b32.cont [15/16] (narrow) %v6162_v18, 32  ;;  %v14078_v18 = vld [vmem:[#allocation41_spill] sm:$0xff] }
 0x9ab   : > { %7234 = vxpose.xlu0.b32.cont [4/16] (narrow) %v6167_v62, 32  ;;  %v14080_v62 = vld [vmem:[#allocation42_spill] sm:$0xff] }
 0x9ac   : > { %7214 = vxpose.xlu1.b32.end [16/16] (narrow) %v6163_v0, 32  ;;  %v14082_v0 = vld [vmem:[#allocation44_spill] sm:$0xff] }
 0x9af   : > { %7235 = vxpose.xlu0.b32.cont [5/16] (narrow) %v6168_v56, 32  ;;  %v14083_v56 = vld [vmem:[#allocation27_spill] sm:$0xff] }
 0x9b0   : > { %7263 = vxpose.xlu1.b32.start [1/16] (narrow) %v6180_v15, 32  ;;  %v14084_v15 = vld [vmem:[#allocation45_spill] sm:$0xff] }
 0x9b3   : > { %7236 = vxpose.xlu0.b32.cont [6/16] (narrow) %v6169_v61, 32  ;;  %v14085_v61 = vld [vmem:[#allocation29_spill] sm:$0xff] }
 0x9b4   : > { %7264 = vxpose.xlu1.b32.cont [2/16] (narrow) %v6181_v9, 32  ;;  %v14086_v9 = vld [vmem:[#allocation47_spill] sm:$0xff] }
 0x9b7   : > { %7237 = vxpose.xlu0.b32.cont [7/16] (narrow) %v6170_v32, 32  ;;  %v14087_v32 = vld [vmem:[#allocation30_spill] sm:$0xff] }
 0x9b8   : > { %7265 = vxpose.xlu1.b32.cont [3/16] (narrow) %v6182_v16, 32  ;;  %v14088_v16 = vld [vmem:[#allocation48_spill] sm:$0xff] }
 0x9bb   : > { %7238 = vxpose.xlu0.b32.cont [8/16] (narrow) %v6171_v60, 32  ;;  %v14089_v60 = vld [vmem:[#allocation32_spill] sm:$0xff] }
 0x9bc   : > { %7266 = vxpose.xlu1.b32.cont [4/16] (narrow) %v6183_v33, 32  ;;  %v14091_v33 = vld [vmem:[#allocation33_spill] sm:$0xff] }
 0x9bf   : > { %7239 = vxpose.xlu0.b32.cont [9/16] (narrow) %v6172_v46, 32  ;;  %v14093_v46 = vld [vmem:[#allocation35_spill] sm:$0xff] }
 0x9c0   : > { %7267 = vxpose.xlu1.b32.cont [5/16] (narrow) %v6184_v5, 32  ;;  %v14095_v5 = vld [vmem:[#allocation36_spill] sm:$0xff] }
 0x9c3   : > { %7240 = vxpose.xlu0.b32.cont [10/16] (narrow) %v6173_v14, 32 }
 0x9c4   : > { %7268 = vxpose.xlu1.b32.cont [6/16] (narrow) %v6185_v49, 32 }
 0x9c7   : > { %7241 = vxpose.xlu0.b32.cont [11/16] (narrow) %v6174_v41, 32 }
 0x9c8   : > { %7269 = vxpose.xlu1.b32.cont [7/16] (narrow) %v6186_v42, 32 }
 0x9cb   : > { %7242 = vxpose.xlu0.b32.cont [12/16] (narrow) %v6175_v6, 32  ;;  %v14098_v6 = vld [vmem:[#allocation57_spill] sm:$0xff] }
 0x9cc   : > { %7270 = vxpose.xlu1.b32.cont [8/16] (narrow) %v6187_v45, 32 }
 0x9cf   : > { %7243 = vxpose.xlu0.b32.cont [13/16] (narrow) %v6176_v51, 32  ;;  %v14099_v51 = vld [vmem:[#allocation59_spill] sm:$0xff] }
 0x9d0   : > { %7271 = vxpose.xlu1.b32.cont [9/16] (narrow) %v6188_v22, 32 }
 0x9d3   : > { %7244 = vxpose.xlu0.b32.cont [14/16] (narrow) %v6177_v28, 32  ;;  %v9856_v28 = vld [vmem:[%s13637_s14] sm:$0xff]  }
 0x9d4   : > { %7272 = vxpose.xlu1.b32.cont [10/16] (narrow) %v6189_v58, 32  ;;  %v14100_v58 = vld [vmem:[#allocation60_spill] sm:$0xff] }
 0x9d7   : > { %7245 = vxpose.xlu0.b32.cont [15/16] (narrow) %v6178_v23, 32 }
 0x9d8   : > { %7273 = vxpose.xlu1.b32.cont [11/16] (narrow) %v6190_v57, 32 }
 0x9db   : > { %7246 = vxpose.xlu0.b32.end [16/16] (narrow) %v6179_v36, 32 }
 0x9dc   : > { %7274 = vxpose.xlu1.b32.cont [12/16] (narrow) %v6191_v37, 32 }
 0x9df   : > { %7327 = vxpose.xlu0.b32.start [1/16] (narrow) %v14066_v50, 32 }
 0x9e0   : > { %7275 = vxpose.xlu1.b32.cont [13/16] (narrow) %v6192_v35, 32 }
 0x9e3   : > { %7328 = vxpose.xlu0.b32.cont [2/16] (narrow) %v14068_v30, 32 }
 0x9e4   : > { %7276 = vxpose.xlu1.b32.cont [14/16] (narrow) %v6193_v59, 32 }
 0x9e7   : > { %7329 = vxpose.xlu0.b32.cont [3/16] (narrow) %v14070_v48, 32 }
 0x9e8   : > { %7277 = vxpose.xlu1.b32.cont [15/16] (narrow) %v6194_v12, 32  ;;  %v14101_v12 = vld [vmem:[#allocation62_spill] sm:$0xff] }
 0x9e9   : > { %v7508_v48 = vpack.c.bf16 %v14101_v12, %v14101_v12 }
 0x9eb   : > { %7330 = vxpose.xlu0.b32.cont [4/16] (narrow) %v14072_v13, 32 }
 0x9ec   : > { %7278 = vxpose.xlu1.b32.end [16/16] (narrow) %v6195_v17, 32  ;;  %v7087_v17 = vpop.trf.xlu1 }
 0x9ed   : > { %7296 = vst [vmem:[%s13475_s0 + $0x8] sm:$0xff] %v7087_v17 }
 0x9ef   : > { %7331 = vxpose.xlu0.b32.cont [5/16] (narrow) %v14073_v8, 32 }
 0x9f0   : > { %7359 = vxpose.xlu1.b32.start [1/16] (narrow) %v14074_v10, 32  ;;  %v7088_v13 = vpop.trf.xlu1 }
 0x9f1   : > { %7304 = vst [vmem:[%s13475_s0 + $0x48] sm:$0xff] %v7088_v13 }
 0x9f3   : > { %7332 = vxpose.xlu0.b32.cont [6/16] (narrow) %v14075_v52, 32 }
 0x9f4   : > { %7360 = vxpose.xlu1.b32.cont [2/16] (narrow) %v14076_v54, 32  ;;  %v7089_v10 = vpop.trf.xlu1 }
 0x9f5   : > { %7312 = vst [vmem:[%s13475_s0 + $0x88] sm:$0xff] %v7089_v10 }
 0x9f7   : > { %7333 = vxpose.xlu0.b32.cont [7/16] (narrow) %v14077_v47, 32 }
 0x9f8   : > { %7361 = vxpose.xlu1.b32.cont [3/16] (narrow) %v14078_v18, 32  ;;  %v7090_v54 = vpop.trf.xlu1 }
 0x9f9   : > { %7320 = vst [vmem:[%s13475_s0 + $0xc8] sm:$0xff] %v7090_v54 }
 0x9fb   : > { %7334 = vxpose.xlu0.b32.cont [8/16] (narrow) %v14079_v34, 32 }
 0x9fc   : > { %7362 = vxpose.xlu1.b32.cont [4/16] (narrow) %v14080_v62, 32  ;;  %v7151_v18 = vpop.trf.xlu1 }
 0x9fd   : > { %7298 = vst [vmem:[%s13475_s0 + $0x18] sm:$0xff] %v7151_v18 }
 0x9ff   : > { %7335 = vxpose.xlu0.b32.cont [9/16] (narrow) %v14081_v19, 32 }
 0xa00   : > { %7363 = vxpose.xlu1.b32.cont [5/16] (narrow) %v14082_v0, 32  ;;  %v7152_v62 = vpop.trf.xlu1 }
 0xa01   : > { %7306 = vst [vmem:[%s13475_s0 + $0x58] sm:$0xff] %v7152_v62 }
 0xa03   : > { %7336 = vxpose.xlu0.b32.cont [10/16] (narrow) %v14083_v56, 32 }
 0xa04   : > { %7364 = vxpose.xlu1.b32.cont [6/16] (narrow) %v14084_v15, 32  ;;  %v7153_v0 = vpop.trf.xlu1 }
 0xa05   : > { %7314 = vst [vmem:[%s13475_s0 + $0x98] sm:$0xff] %v7153_v0 }
 0xa07   : > { %7337 = vxpose.xlu0.b32.cont [11/16] (narrow) %v14085_v61, 32 }
 0xa08   : > { %7365 = vxpose.xlu1.b32.cont [7/16] (narrow) %v14086_v9, 32  ;;  %v7154_v15 = vpop.trf.xlu1 }
 0xa09   : > { %7322 = vst [vmem:[%s13475_s0 + $0xd8] sm:$0xff] %v7154_v15 }
 0xa0b   : > { %7338 = vxpose.xlu0.b32.cont [12/16] (narrow) %v14087_v32, 32 }
 0xa0c   : > { %7366 = vxpose.xlu1.b32.cont [8/16] (narrow) %v14088_v16, 32  ;;  %v7215_v9 = vpop.trf.xlu1 }
 0xa0d   : > { %7300 = vst [vmem:[%s13475_s0 + $0x28] sm:$0xff] %v7215_v9 }
 0xa0f   : > { %7339 = vxpose.xlu0.b32.cont [13/16] (narrow) %v14089_v60, 32 }
 0xa10   : > { %7367 = vxpose.xlu1.b32.cont [9/16] (narrow) %v14090_v24, 32  ;;  %v7216_v16 = vpop.trf.xlu1 }
 0xa11   : > { %7308 = vst [vmem:[%s13475_s0 + $0x68] sm:$0xff] %v7216_v16 }
 0xa13   : > { %7340 = vxpose.xlu0.b32.cont [14/16] (narrow) %v14091_v33, 32 }
 0xa14   : > { %7368 = vxpose.xlu1.b32.cont [10/16] (narrow) %v14092_v43, 32  ;;  %v7217_v24 = vpop.trf.xlu1 }
 0xa15   : > { %7316 = vst [vmem:[%s13475_s0 + $0xa8] sm:$0xff] %v7217_v24 }
 0xa17   : > { %7341 = vxpose.xlu0.b32.cont [15/16] (narrow) %v14093_v46, 32 }
 0xa18   : > { %7369 = vxpose.xlu1.b32.cont [11/16] (narrow) %v14094_v29, 32  ;;  %v7218_v43 = vpop.trf.xlu1 }
 0xa19   : > { %7324 = vst [vmem:[%s13475_s0 + $0xe8] sm:$0xff] %v7218_v43 }
 0xa1b   : > { %7342 = vxpose.xlu0.b32.end [16/16] (narrow) %v14095_v5, 32 }
 0xa1c   : > { %7370 = vxpose.xlu1.b32.cont [12/16] (narrow) %v14096_v2, 32 }
 0xa1e   : > { %v8935_v14 = vpop.f32.mrb[208].mxu0 }
 0xa1f   : > { %v8936_v44 = vpop.f32.mrb[209].mxu0 }
 0xa20   : > { %v8937_v49 = vadd.f32 %v8936_v44, %v8935_v14  ;;  %7371 = vxpose.xlu1.b32.cont [13/16] (narrow) %v14097_v26, 32  ;;  %v8938_v41 = vpop.f32.mrb[210].mxu0 }
 0xa21   : > { %v8939_v27 = vpop.f32.mrb[211].mxu0 }
 0xa22   : > { %v8940_v42 = vadd.f32 %v8939_v27, %v8938_v41 }
 0xa24   : > { %v6935_v4 = vpack.c.bf16 %v8940_v42, %v8937_v49  ;;  %7372 = vxpose.xlu1.b32.cont [14/16] (narrow) %v14098_v6, 32 }
 0xa26   : > { %v8941_v53 = vpop.f32.mrb[212].mxu0  ;;  %9176 = vmatprep.mubr.msk.bf16.mxu1 %vm3721_vm1, %v6935_v4 }
 0xa27   : > { %v8942_v45 = vpop.f32.mrb[213].mxu0 }
 0xa28   : > { %v8943_v31 = vadd.f32 %v8942_v45, %v8941_v53  ;;  %7373 = vxpose.xlu1.b32.cont [15/16] (narrow) %v14099_v51, 32  ;;  %v8944_v25 = vpop.f32.mrb[214].mxu0  ;;  %v13516_v53 = vld [vmem:[%s13636_s13] ss:$0 sm:$0xff] }
 0xa29   : > { %v8945_v22 = vpop.f32.mrb[215].mxu0 }
 0xa2a   : > { %v8946_v20 = vadd.f32 %v8945_v22, %v8944_v25 }
 0xa2c   : > { %v6936_v3 = vpack.c.bf16 %v8946_v20, %v8943_v31  ;;  %7374 = vxpose.xlu1.b32.end [16/16] (narrow) %v14100_v58, 32 }
 0xa2e   : > { %v8947_v1 = vpop.f32.mrb[216].mxu0  ;;  %9177 = vmatmul.mubr.msk.bf16.vlgmr.msra.gmra.mrb[208].mxu1 %vm3721_vm1, %v6936_v3 }
 0xa2f   : > { %v8948_v23 = vpop.f32.mrb[217].mxu0  ;;  %9185 = vmatpush3.bf16.msra.mxu1 %v9856_v28 }
 0xa30   : > { %v8949_v57 = vadd.f32 %v8948_v23, %v8947_v1  ;;  %v8950_v63 = vpop.f32.mrb[218].mxu0  ;;  %9186 = vmatprep.subr.bf16.mxu1 %v10006_v39  ;;  %v7279_v29 = vpop.trf.xlu1 }
 0xa31   : > { %v8951_v36 = vpop.f32.mrb[219].mxu0  ;;  %7302 = vst [vmem:[%s13475_s0 + $0x38] sm:$0xff] %v7279_v29 }
 0xa32   : > { %v8952_v40 = vadd.f32 %v8951_v36, %v8950_v63 }
 0xa33   : > { %9187 = vmatpush3.bf16.msra.mxu1 %v9857_v11 }
 0xa34   : > { %v6937_v37 = vpack.c.bf16 %v8952_v40, %v8949_v57  ;;  %v7280_v2 = vpop.trf.xlu1 }
 0xa35   : > { %7310 = vst [vmem:[%s13475_s0 + $0x78] sm:$0xff] %v7280_v2 }
 0xa36   : > { %v8953_v38 = vpop.f32.mrb[220].mxu0  ;;  %9180 = vmatprep.mubr.msk.bf16.mxu1 %vm3721_vm1, %v6937_v37 }
 0xa37   : > { %v8954_v35 = vpop.f32.mrb[221].mxu0 }
 0xa38   : > { %v8955_v50 = vadd.f32 %v8954_v35, %v8953_v38  ;;  %v8956_v7 = vpop.f32.mrb[222].mxu0  ;;  %v7281_v44 = vpop.trf.xlu1 }
 0xa39   : > { %v8957_v59 = vpop.f32.mrb[223].mxu0  ;;  %7318 = vst [vmem:[%s13475_s0 + $0xb8] sm:$0xff] %v7281_v44 }
 0xa3a   : > { %v8958_v30 = vadd.f32 %v8957_v59, %v8956_v7 }
 0xa3c   : > { %v6938_v21 = vpack.c.bf16 %v8958_v30, %v8955_v50  ;;  %v7282_v26 = vpop.trf.xlu1 }
 0xa3d   : > { %7326 = vst [vmem:[%s13475_s0 + $0xf8] sm:$0xff] %v7282_v26 }
 0xa3e   : > { %9181 = vmatmul.mubr.msk.bf16.gmra.mrb[212].mxu1 %vm3721_vm1, %v6938_v21 }
 0xa3f   : > { %9188 = vmatprep.mubr.msk.bf16.mxu1 %vm10007_vm3, %v10006_v39  ;;  %v7056_v39 = vpop.trf.xlu0 }
 0xa40   : > { %7303 = vst [vmem:[%s13475_s0 + $0x40] sm:$0xff] %v7056_v39 }
 0xa43   : > { %v7057_v8 = vpop.trf.xlu0 }
 0xa44   : > { %7311 = vst [vmem:[%s13475_s0 + $0x80] sm:$0xff] %v7057_v8 }
 0xa46   : > { %9189 = vmatmul.mubr.msk.bf16.vlgmr.msra.gmra.mrb[216].mxu1 %vm3721_vm1, %v7508_v48 }
 0xa47   : > { %v7058_v52 = vpop.trf.xlu0 }
 0xa48   : > { %7319 = vst [vmem:[%s13475_s0 + $0xc0] sm:$0xff] %v7058_v52 }
 0xa4b   : > { %v7119_v47 = vpop.trf.xlu0 }
 0xa4c   : > { %7297 = vst [vmem:[%s13475_s0 + $0x10] sm:$0xff] %v7119_v47 }
 0xa4f   : > { %v7120_v34 = vpop.trf.xlu0 }
 0xa50   : > { %7305 = vst [vmem:[%s13475_s0 + $0x50] sm:$0xff] %v7120_v34 }
 0xa53   : > { %v7121_v19 = vpop.trf.xlu0 }
 0xa54   : > { %7313 = vst [vmem:[%s13475_s0 + $0x90] sm:$0xff] %v7121_v19 }
 0xa57   : > { %v7122_v56 = vpop.trf.xlu0 }
 0xa58   : > { %7321 = vst [vmem:[%s13475_s0 + $0xd0] sm:$0xff] %v7122_v56 }
 0xa5b   : > { %v7183_v61 = vpop.trf.xlu0 }
 0xa5c   : > { %7299 = vst [vmem:[%s13475_s0 + $0x20] sm:$0xff] %v7183_v61 }
 0xa5f   : > { %v7184_v32 = vpop.trf.xlu0 }
 0xa60   : > { %7307 = vst [vmem:[%s13475_s0 + $0x60] sm:$0xff] %v7184_v32 }
 0xa63   : > { %v7185_v60 = vpop.trf.xlu0 }
 0xa64   : > { %7315 = vst [vmem:[%s13475_s0 + $0xa0] sm:$0xff] %v7185_v60 }
 0xa67   : > { %v7186_v33 = vpop.trf.xlu0 }
 0xa68   : > { %7323 = vst [vmem:[%s13475_s0 + $0xe0] sm:$0xff] %v7186_v33 }
 0xa6b   : > { %v7247_v46 = vpop.trf.xlu0 }
 0xa6c   : > { %7301 = vst [vmem:[%s13475_s0 + $0x30] sm:$0xff] %v7247_v46 }
 0xa6f   : > { %v7248_v5 = vpop.trf.xlu0 }
 0xa70   : > { %7309 = vst [vmem:[%s13475_s0 + $0x70] sm:$0xff] %v7248_v5  ;;  %v7375_v27 = vpop.trf.xlu1 }
 0xa71   : > { %7392 = vst [vmem:[%s687_s26 + $0x8] sm:$0xff] %v7375_v27 }
 0xa73   : > { %v7249_v14 = vpop.trf.xlu0 }
 0xa74   : > { %7317 = vst [vmem:[%s13475_s0 + $0xb0] sm:$0xff] %v7249_v14  ;;  %v7376_v20 = vpop.trf.xlu1 }
 0xa75   : > { %7394 = vst [vmem:[%s687_s26 + $0x18] sm:$0xff] %v7376_v20 }
 0xa77   : > { %v7250_v49 = vpop.trf.xlu0 }
 0xa78   : > { %7325 = vst [vmem:[%s13475_s0 + $0xf0] sm:$0xff] %v7250_v49  ;;  %v7377_v3 = vpop.trf.xlu1  ;;  %s7611_s0 = sshll.u32 %s661_s29, 4  ;;  %s13532_s0 = int_to_ptr.vmem [resolvable:$true] %s7611_s0 }
 0xa79   : > { %7396 = vst [vmem:[%s687_s26 + $0x28] sm:$0xff] %v7377_v3  ;;  %s9907_s29 = scalar_lea.vmem %s13532_s0, 16  ;;  %p9914_p0 = scmp.lt.s32.totalorder %s13532_s0, %s9912_s23 }
 0xa7a   : > { %p9908_p11 = scmp.ne.s32.totalorder %s13532_s0, %s9907_s29  ;;  %p9915_p1 = scmp.lt.s32.totalorder %s9913_s3, %s9907_s29 }
 0xa7b   : > { %v7343_v41 = vpop.trf.xlu0 }
 0xa7c   : > { %7391 = vst [vmem:[%s687_s26] sm:$0xff] %v7343_v41  ;;  %v7378_v1 = vpop.trf.xlu1  ;;  %p9909_p12 = pnand %p9908_p11, %p10153_p5  ;;  %p9916_p2 = por %p9915_p1, %p9914_p0 }
 0xa7d   : > { %7398 = vst [vmem:[%s687_s26 + $0x38] sm:$0xff] %v7378_v1 }
 0xa7e   : > { %p9910_p13 = pneg %p9909_p12 }
 0xa7f   : > { %v7344_v42 = vpop.trf.xlu0 }
 0xa80   : > { %7393 = vst [vmem:[%s687_s26 + $0x10] sm:$0xff] %v7344_v42  ;;  %p9917_p3 = pnand %p9916_p2, %p9910_p13 }
 0xa83   : > { %v7345_v4 = vpop.trf.xlu0 }
 0xa84   : > { %7395 = vst [vmem:[%s687_s26 + $0x20] sm:$0xff] %v7345_v4 }
 0xa87   : > { %v7346_v6 = vpop.trf.xlu0 }
 0xa88   : > { %7397 = vst [vmem:[%s687_s26 + $0x30] sm:$0xff] %v7346_v6  ;;  %s7586_s26 = scalar_lea.sflag [#allocation3], %s10966_s24 }
 0xb01   : > { %v9178_v45 = vpop.f32.mrb[208].mxu1 }
 0xb02   : > { %v7008_v31 = vpop.f32.mrb[209].mxu1  ;;  %v7017_v58 = vadd.f32 %v9178_v45, %v13516_v53 }
 0xb03   : > { %v7009_v51 = vadd.f32 %v13516_v53, %v7008_v31  ;;  %v9179_v25 = vpop.f32.mrb[210].mxu1 }
 0xb04   : > { %v7011_v22 = vpop.f32.mrb[211].mxu1  ;;  %v7020_v23 = vadd.f32 %v9179_v25, %v13516_v53 }
 0xb05   : > { %7399 = vxpose.xlu0.b32.start [1/8] (short) (narrow) %v7009_v51, 32  ;;  %v7012_v28 = vadd.f32 %v13516_v53, %v7011_v22 }
 0xb09   : > { %7400 = vxpose.xlu0.b32.cont [2/8] (short) (narrow) %v7012_v28, 32 }
 0xb0d   : > { %7401 = vxpose.xlu0.b32.cont [3/8] (short) (narrow) %v7017_v58, 32 }
 0xb11   : > { %v9182_v11 = vpop.f32.mrb[212].mxu1  ;;  %7402 = vxpose.xlu0.b32.cont [4/8] (short) (narrow) %v7020_v23, 32 }
 0xb12   : > { %v7024_v57 = vpop.f32.mrb[213].mxu1 }
 0xb13   : > { %v7025_v63 = vadd.f32 %v13516_v53, %v7024_v57  ;;  %v13535_v36 = vpop.f32.mrb[214].mxu1 }
 0xb14   : > { %9920 = shalt.err (!%p9917_p3)
}
 0xb15   : > { %s9921_s30 = scalar_lea.hbm %s13530_s28, 16  ;;  %s9925_s25 = scalar_lea.hbm %s13642_s19, 32 }
 0xb16   : > { %p9922_p4 = scmp.ne.s32.totalorder %s13530_s28, %s9921_s30  ;;  %p9926_p9 = scmp.lt.u32.totalorder %s13530_s28, %s13642_s19 }
 0xb17   : > { %p9927_p10 = scmp.lt.u32.totalorder %s9925_s25, %s9921_s30  ;;  %p9929_p12 = scmp.lt.u32.totalorder %s9921_s30, %s13530_s28 }
 0xb18   : > { %p9923_p7 = pnand %p9922_p4, %p10153_p5 }
 0xb19   : > { %p9928_p11 = por %p9927_p10, %p9926_p9 }
 0xb1a   : > { %p9924_p8 = pneg %p9923_p7 }
 0xb1b   : > { %p9930_p13 = por %p9929_p12, %p9928_p11 }
 0xb1d   : > { %p9931_p0 = pnand %p9930_p13, %p9924_p8 }
 0xb1f   : > { %9934 = shalt.err (!%p9931_p0)
}
 0xb20   : > { %9201 = dma.vmem_to_hbm [thread:$0]  (%p10153_p5), %s13532_s0, 16, %s13530_s28, %s7586_s26   ;;  %v7027_v40 = vpop.f32.mrb[215].mxu1  ;;  %7403 = vxpose.xlu0.b32.cont [5/8] (short) (narrow) %v7025_v63, 32  ;;  %v7513_v38 = vld [vmem:[%s13638_s15] sm:$0x1]  ;;  %v7033_v59 = vadd.f32 %v9182_v11, %v13516_v53 }
 0xb21   : > { %v7028_v37 = vadd.f32 %v13516_v53, %v7027_v40  ;;  %s667_s1 = scalar_lea.vmem [#allocation4], %s10966_s24  ;;  %v7563_v35 = vpop.f32.mrb[216].mxu1  ;;  %s14102_s3 = sshll.u32 %s10136_s2, 4 }
 0xb22   : > { %s7624_s29 = sshll.u32 %s667_s1, 4  ;;  %v7564_v50 = vadd.f32 %v7563_v35, %v7513_v38  ;;  %v9190_v7 = vpop.f32.mrb[217].mxu1  ;;  %s14103_s0 = sld [smem:[#allocation153_spill]]  ;;  %s13571_s29 = int_to_ptr.vmem [resolvable:$true] %s7624_s29 }
 0xb23   : > { %v7566_v30 = vpop.f32.mrb[218].mxu1  ;;  %s7590_s26 = scalar_lea.sflag [#allocation5], %s10966_s24  ;;  %s9935_s23 = scalar_lea.vmem %s13571_s29, 16 }
 0xb24   : > { %7404 = vxpose.xlu0.b32.cont [6/8] (short) (narrow) %v7028_v37, 32  ;;  %7569 = vst [vmem:[%s667_s1] sm:$0x1] %v7564_v50  ;;  %v9191_v21 = vpop.f32.mrb[219].mxu1  ;;  %p9936_p1 = scmp.ne.s32.totalorder %s13571_s29, %s9935_s23  ;;  %s10009_s2 = smov [#allocation4]  }
 0xb25   : > { %s9939_s5 = sshll.u32 %s10009_s2, 4  ;;  %s9940_s5 = int_to_ptr.vmem [resolvable:$false] %s9939_s5 }
 0xb26   : > { %p9937_p2 = pnand %p9936_p1, %p10153_p5  ;;  %s9941_s6 = scalar_lea.vmem %s9940_s5, 32 }
 0xb27   : > { %p9942_p4 = scmp.lt.s32.totalorder %s13571_s29, %s9940_s5  ;;  %p9943_p7 = scmp.lt.s32.totalorder %s9941_s6, %s9935_s23 }
 0xb28   : > { %s13569_s28 = scalar_lea.hbm %s14103_s0, %s14102_s3  ;;  %7405 = vxpose.xlu0.b32.cont [7/8] (short) (narrow) %v7033_v59, 32  ;;  %p9938_p3 = pneg %p9937_p2 }
 0xb29   : > { %p9944_p8 = por %p9943_p7, %p9942_p4 }
 0xb2b   : > { %p9945_p9 = pnand %p9944_p8, %p9938_p3 }
 0xb2d   : > { %9948 = shalt.err (!%p9945_p9)
}
 0xb2e   : > { %s9949_s24 = scalar_lea.hbm %s13569_s28, 16  ;;  %s9953_s30 = scalar_lea.hbm %s14103_s0, 32 }
 0xb2f   : > { %p9950_p10 = scmp.ne.s32.totalorder %s13569_s28, %s9949_s24  ;;  %p9954_p13 = scmp.lt.u32.totalorder %s13569_s28, %s14103_s0 }
 0xb30   : > { %p9955_p0 = scmp.lt.u32.totalorder %s9953_s30, %s9949_s24  ;;  %p9957_p2 = scmp.lt.u32.totalorder %s9949_s24, %s13569_s28 }
 0xb31   : > { %p9951_p11 = pnand %p9950_p10, %p10153_p5 }
 0xb32   : > { %p9956_p1 = por %p9955_p0, %p9954_p13 }
 0xb33   : > { %p9952_p12 = pneg %p9951_p11 }
 0xb34   : > { %p9958_p3 = por %p9957_p2, %p9956_p1 }
 0xb36   : > { %p9959_p4 = pnand %p9958_p3, %p9952_p12 }
 0xb38   : > { %9962 = shalt.err (!%p9959_p4)
}
 0xb39   : > { %9202 = dma.vmem_to_hbm [thread:$0]  (%p10153_p5), %s13571_s29, 16, %s13569_s28, %s7590_s26   ;;  %v7036_v12 = vadd.f32 %v13535_v36, %v13516_v53 }
 0xb3a   : > { %s8416_s23 = sshll.u32 %s10228_s27, 5  ;;  %s14104_s1 = sld [smem:[#allocation152_spill]] }
 0xb3b   : > { %7406 = vxpose.xlu0.b32.end [8/8] (short) (narrow) %v7036_v12, 32 }
 0xb40   : > { %s692_s3 = scalar_lea.vmem %s14104_s1, %s8416_s23 }
 0xb9f   : > { %v7415_v48 = vpop.trf.xlu0 }
 0xba0   : > { %7431 = vst.msk [vmem:[%s692_s3] sm:$0xff] %vm2951_vm0, %v7415_v48 }
 0xba3   : > { %v7416_v55 = vpop.trf.xlu0 }
 0xba4   : > { %7432 = vst.msk [vmem:[%s692_s3 + $0x8] sm:$0xff] %vm2951_vm0, %v7416_v55 }
 0xba7   : > { %v7417_v17 = vpop.trf.xlu0 }
 0xba8   : > { %7433 = vst.msk [vmem:[%s692_s3 + $0x10] sm:$0xff] %vm2951_vm0, %v7417_v17 }
 0xbab   : > { %v7418_v39 = vpop.trf.xlu0 }
 0xbac   : > { %7434 = vst.msk [vmem:[%s692_s3 + $0x18] sm:$0xff] %vm2951_vm0, %v7418_v39 }
 0xbad PF: > { %s14105_s4 = sld [smem:[#allocation10_spill]]  ;;  %s14106_s29 = sld [smem:[#allocation8_spill]] }
 0xbb3   : > { %p9212_p5 = scmp.ge.s32.totalorder %s14105_s4, 2  ;;  %s7660_s28 = sand.u32 1, %s14106_s29  }
 0xbb4   : > { %s7661_s26 = scalar_lea.sflag [#allocation3], %s7660_s28 }
 0xbb5   : > { %p9206_p7 = pnand %p9212_p5, %p10157_p6 }
 0xbb7   : > { %9980 = dma.done.wait (!%p9206_p7), %s7661_s26, 16  }
 0xbb8   : > { %9982 = vsyncadd (!%p9206_p7), %s7661_s26, 4294967280  ;;  %s7669_s24 = scalar_lea.sflag [#allocation5], %s7660_s28 }
 0xbb9   : > { %9984 = dma.done.wait (!%p9206_p7), %s7669_s24, 16  }
 0xbba   : > { %9986 = vsyncadd (!%p9206_p7), %s7669_s24, 4294967280  ;;  %s14108_s24 = sld [smem:[#allocation11_spill]]  ;;  %s14109_s30 = sld [smem:[#allocation9_spill]] }
 0xbbb   : > { %s14110_s23 = sld [smem:[#allocation12_spill]]  ;;  %s14111_s1 = smov %s9993_s22 }
 0xbc0   : > { %p34_p8 = scmp.ge.s32.totalorder %s14108_s24, 4   ;;  %s14112_s22 = smov %s14109_s30 }
 0xbc2   :  { %36 = sbr.rel (!%p34_p8) target bundleno = 15 (0xf), region = 175 }
 0xbc9   :  { %7673 = vsyncpa [#allocation3], 1 }
 0xbca   :  { %7675 = vsyncpa [#allocation3 + $0x1], 1 }
 0xbcb   :  { %7676 = vsyncpa [#allocation5], 1 }
 0xbcc   :  { %7678 = vsyncpa [#allocation5 + $0x1], 1 }

</bundles_post_ra>
